<compile_context>
chip_gen: v7x
topology: tpu7x:2x2x1
jax: 0.10.0
libtpu: 0.0.40
codegen_flags: <defaults>
</compile_context>

<pallas_src>
import numpy as np

import jax
import jax.numpy as jnp
from jax.experimental import pallas as pl
from jax.experimental.pallas import tpu as pltpu

# ----------------------------- model config ---------------------------------
IN_SIZE = (4, 16, 16)          # (C, H, W)
OUT_CLASSES = 10
FILTERS = [8, 8, 16, 16]       # N conv layers
POOL_EVERY = 2                 # P
HIDDEN_DIMS = [32, 16]         # M hidden linear layers
PADDED_OUT = 128               # lane-dense logits slab; sliced to OUT_CLASSES outside


# ----------------------------- in-kernel helpers ------------------------------
def _conv3x3(x3, wk_ref, b_ref):
    """3x3 same-padded conv (+folded BN) + bias + ReLU as ONE MXU matmul.

    x3     : (h, w, cin) f32 activation for one image.
    wk_ref : (9*cin, cout) bf16 weights, rows ordered (dy, dx, cin).
    """
    h, w, ci = x3.shape
    co = wk_ref.shape[1]
    zrow = jnp.zeros((1, w, ci), jnp.float32)
    xh = jnp.concatenate([zrow, x3, zrow], axis=0)            # pad H
    zcol = jnp.zeros((h + 2, 1, ci), jnp.float32)
    xp = jnp.concatenate([zcol, xh, zcol], axis=1)            # pad W
    taps = [xp[dy:dy + h, dx:dx + w, :].reshape(h * w, ci)
            for dy in range(3) for dx in range(3)]
    big = jnp.concatenate(taps, axis=-1).astype(jnp.bfloat16)  # (h*w, 9*cin)
    y = jnp.dot(big, wk_ref[...], preferred_element_type=jnp.float32)
    y = jnp.maximum(y + b_ref[...], 0.0)                      # bias + ReLU (f32 VPU)
    # TODO(synk): Dropout(0.1) after each conv+BN+ReLU is identity (eval mode).
    return y.reshape(h, w, co)


def _even_rows(x):
    h = x.shape[0]
    return jnp.concatenate([x[i:i + 1] for i in range(0, h, 2)], axis=0)


def _even_cols(x):
    w = x.shape[1]
    return jnp.concatenate([x[:, j:j + 1, :] for j in range(0, w, 2)], axis=1)


def _pairmax_cols(x):
    w = x.shape[1]
    ev = _even_cols(x)
    od = jnp.concatenate([x[:, j:j + 1, :] for j in range(1, w, 2)], axis=1)
    return jnp.maximum(ev, od)


def _pairmax_rows(x):
    h = x.shape[0]
    ev = _even_rows(x)
    od = jnp.concatenate([x[i:i + 1] for i in range(1, h, 2)], axis=0)
    return jnp.maximum(ev, od)


def _res_pool(a3, wd_ref, bd_ref):
    """MyResPooling: 2x2/stride-2 max-pool + (1x1 stride-2 conv) residual.

    a3: (h, w, c) f32.  Pooling is pure slice/concat + elementwise max; the
    down-conv is a dense 1x1 matmul on the full grid followed by the same
    stride-2 selection (no gather matrices, no strided HBM access).
    """
    h, w, c = a3.shape
    pooled = _pairmax_rows(_pairmax_cols(a3))                 # (h/2, w/2, c)
    down = jnp.dot(a3.reshape(h * w, c).astype(jnp.bfloat16), wd_ref[...],
                   preferred_element_type=jnp.float32) + bd_ref[...]
    down = _even_rows(_even_cols(down.reshape(h, w, c)))      # stride-2 sub-grid
    return pooled + down


def _chan_front_pad(x3, cout):
    """Zero-pad channels at the FRONT (lane concat) — the MyResBlock residual."""
    h, w, ci = x3.shape
    if cout == ci:
        return x3
    z = jnp.zeros((h, w, cout - ci), jnp.float32)
    return jnp.concatenate([z, x3], axis=-1)


# ----------------------------- fused Pallas kernel ---------------------------
def fused_net_kernel(
    x_ref,
    cw1_ref, cb1_ref, cw2_ref, cb2_ref, dw1_ref, db1_ref,
    cw3_ref, cb3_ref, cw4_ref, cb4_ref, dw2_ref, db2_ref,
    fw1_ref, fb1_ref, fw2_ref, fb2_ref, fw3_ref, fb3_ref,
    out_ref,
):
    """Entire YourCodeNet forward for one image; all activations VMEM/vreg-resident."""
    x = x_ref[0].astype(jnp.float32)                          # (16, 16, 4)

    # ---- MyResBlock 1: conv(4->8)+BN+ReLU, conv(8->8)+BN+ReLU, + front-padded input
    a = _conv3x3(x, cw1_ref, cb1_ref)                         # (16, 16, 8)
    z = _conv3x3(a, cw2_ref, cb2_ref)                         # (16, 16, 8)
    z = z + _chan_front_pad(x, z.shape[-1])

    # ---- MyResPooling(8) ----
    p1 = _res_pool(z, dw1_ref, db1_ref)                       # (8, 8, 8)

    # ---- MyResBlock 2: conv(8->16)+BN+ReLU, conv(16->16)+BN+ReLU, + front-padded input
    a = _conv3x3(p1, cw3_ref, cb3_ref)                        # (8, 8, 16)
    z = _conv3x3(a, cw4_ref, cb4_ref)                         # (8, 8, 16)
    z = z + _chan_front_pad(p1, z.shape[-1])

    # ---- MyResPooling(16) ----
    p2 = _res_pool(z, dw2_ref, db2_ref)                       # (4, 4, 16)

    # ---- Classifier: Flatten -> (Linear+ReLU)*2 -> Linear --------------------
    hq, wq, c2 = p2.shape
    # NHWC-order flatten; fc1's weight rows were permuted at prep time so this
    # is exactly torch's NCHW Flatten (no runtime transpose).
    feat = jnp.concatenate(
        [p2[i:i + 1, j, :] for i in range(hq) for j in range(wq)], axis=-1)  # (1, 256)

    hid = jnp.dot(feat.astype(jnp.bfloat16), fw1_ref[...],
                  preferred_element_type=jnp.float32)
    hid = jnp.maximum(hid + fb1_ref[...], 0.0)
    # TODO(synk): Dropout(0.3) / Dropout(0.4) after hidden layers are identity (eval).
    hid = jnp.dot(hid.astype(jnp.bfloat16), fw2_ref[...],
                  preferred_element_type=jnp.float32)
    hid = jnp.maximum(hid + fb2_ref[...], 0.0)
    logits = jnp.dot(hid.astype(jnp.bfloat16), fw3_ref[...],
                     preferred_element_type=jnp.float32) + fb3_ref[...]      # (1, 128)
    out_ref[...] = logits.reshape(1, 1, PADDED_OUT).astype(out_ref.dtype)


# ----------------------------- wrapper ---------------------------------------
def your_code_net_forward(kernel_args, x_nchw):
    """x_nchw: (N, C, H, W).  Returns (N, OUT_CLASSES) logits."""
    x = jnp.transpose(x_nchw, (0, 2, 3, 1)).astype(jnp.float32)   # NCHW -> NHWC
    n, h, w, c = x.shape
    tb = 1                                                        # one image per grid step

    def whole(arr):
        nd = arr.ndim
        return pl.BlockSpec(arr.shape, lambda b, _nd=nd: (0,) * _nd)

    in_specs = [pl.BlockSpec((tb, h, w, c), lambda b: (b, 0, 0, 0))]
    in_specs += [whole(a) for a in kernel_args]
    out_spec = pl.BlockSpec((tb, 1, PADDED_OUT), lambda b: (b, 0, 0))

    out = pl.pallas_call(
        fused_net_kernel,
        out_shape=jax.ShapeDtypeStruct((n, 1, PADDED_OUT), jnp.float32),
        grid=(n // tb,),
        in_specs=in_specs,
        out_specs=out_spec,
        compiler_params=pltpu.CompilerParams(
            dimension_semantics=("parallel",)),
    )(x, *kernel_args)
    return out[:, 0, :OUT_CLASSES]


# ----------------------------- parameters ------------------------------------
def fold_bn_into_conv(w, b, gamma, beta, mean, var, eps=1e-5):
    scale = gamma / jnp.sqrt(var + eps)                           # (Cout,)
    return w * scale, (b - mean) * scale + beta


def init_params(key):
    """Raw parameters (PyTorch-equivalent layouts / init ranges)."""
    params = {"conv": [], "down": [], "fc": []}
    in_c, in_h, in_w = IN_SIZE
    calc_h, calc_w = in_h, in_w
    r = -1
    for _ in range(len(FILTERS) // POOL_EVERY):
        block = []
        for _ in range(POOL_EVERY):
            cin = in_c if r == -1 else FILTERS[r]
            cout = FILTERS[r + 1]
            key, k1, k2 = jax.random.split(key, 3)
            bound = 1.0 / np.sqrt(cin * 9)
            w = jax.random.uniform(k1, (3, 3, cin, cout), jnp.float32, -bound, bound)
            b = jax.random.uniform(k2, (cout,), jnp.float32, -bound, bound)
            # BatchNorm2d eval-mode running stats (defaults).
            block.append({"w": w, "b": b,
                          "gamma": jnp.ones((cout,), jnp.float32),
                          "beta": jnp.zeros((cout,), jnp.float32),
                          "mean": jnp.zeros((cout,), jnp.float32),
                          "var": jnp.ones((cout,), jnp.float32)})
            r += 1
        params["conv"].append(block)
        c = FILTERS[r]
        key, k1, k2 = jax.random.split(key, 3)
        bound = 1.0 / np.sqrt(c)
        # 1x1 stride-2 down-conv weight stored as (Cin, Cout) (= torch w[:,:,0,0].T).
        wd = jax.random.uniform(k1, (c, c), jnp.float32, -bound, bound)
        bd = jax.random.uniform(k2, (c,), jnp.float32, -bound, bound)
        params["down"].append((wd, bd))
        calc_h = (calc_h - 2) // 2 + 1
        calc_w = (calc_w - 2) // 2 + 1

    feat = FILTERS[-1] * calc_h * calc_w
    dims = [feat] + list(HIDDEN_DIMS) + [OUT_CLASSES]
    for fin, fout in zip(dims[:-1], dims[1:]):
        key, k1, k2 = jax.random.split(key, 3)
        bound = 1.0 / np.sqrt(fin)
        # (Fin, Fout); fc[0]'s rows follow torch's NCHW Flatten index order.
        w = jax.random.uniform(k1, (fin, fout), jnp.float32, -bound, bound)
        b = jax.random.uniform(k2, (fout,), jnp.float32, -bound, bound)
        params["fc"].append((w, b))
    return params


def prepare_kernel_args(params):
    """Fold BN, flatten conv taps into the contraction dim (bf16), permute fc1
    rows to NHWC order, and pad the final linear layer to a lane-dense 128."""
    in_c, in_h, in_w = IN_SIZE
    args = []
    h, w, cin_blk = in_h, in_w, in_c
    for blk_i, block in enumerate(params["conv"]):
        for layer in block:
            wf, bf = fold_bn_into_conv(layer["w"], layer["b"], layer["gamma"],
                                       layer["beta"], layer["mean"], layer["var"])
            cin, cout = wf.shape[2], wf.shape[3]
            args.append(wf.reshape(9 * cin, cout).astype(jnp.bfloat16))  # (dy,dx,cin) rows
            args.append(bf.reshape(1, cout).astype(jnp.float32))
        cout = block[-1]["w"].shape[3]
        wd, bd = params["down"][blk_i]
        args.append(wd.astype(jnp.bfloat16))
        args.append(bd.reshape(1, -1).astype(jnp.float32))
        h, w, cin_blk = h // 2, w // 2, cout

    # fc1: permute rows from torch NCHW-flatten order (c*S + s) to the kernel's
    # NHWC-flatten order (s*C + c) so no runtime transpose is needed.
    (w1, b1), (w2, b2), (w3, b3) = params["fc"]
    s_cnt, c_cnt = h * w, cin_blk
    rp = np.arange(s_cnt * c_cnt)
    s_idx, c_idx = np.divmod(rp, c_cnt)
    perm = c_idx * s_cnt + s_idx
    args.append(jnp.asarray(w1)[perm, :].astype(jnp.bfloat16))
    args.append(b1.reshape(1, -1).astype(jnp.float32))
    args.append(w2.astype(jnp.bfloat16))
    args.append(b2.reshape(1, -1).astype(jnp.float32))
    # Final layer padded to 128 output lanes (unmasked stores); sliced outside.
    w3p = jnp.zeros((w3.shape[0], PADDED_OUT), jnp.float32).at[:, :OUT_CLASSES].set(w3)
    b3p = jnp.zeros((1, PADDED_OUT), jnp.float32).at[0, :OUT_CLASSES].set(b3)
    args.append(w3p.astype(jnp.bfloat16))
    args.append(b3p)
    return tuple(args)


# ----------------------------- plain-JAX reference ----------------------------
def reference_forward(params, x_nchw):
    """Straightforward XLA implementation mirroring the torch module (eval mode)."""
    x = jnp.transpose(x_nchw, (0, 2, 3, 1)).astype(jnp.float32)   # NHWC

    def conv3x3_ref(x, w, b):                                     # w: (3,3,Cin,Cout)
        n, h, wd_, _ = x.shape
        xp = jnp.pad(x, ((0, 0), (1, 1), (1, 1), (0, 0)))
        y = jnp.zeros((n, h, wd_, w.shape[-1]), jnp.float32) + b
        for dy in range(3):
            for dx in range(3):
                y = y + jnp.einsum("nhwc,co->nhwo",
                                   xp[:, dy:dy + h, dx:dx + wd_, :], w[dy, dx])
        return y

    for blk_i, block in enumerate(params["conv"]):
        blk_in = x
        for layer in block:
            wf, bf = fold_bn_into_conv(layer["w"], layer["b"], layer["gamma"],
                                       layer["beta"], layer["mean"], layer["var"])
            x = jax.nn.relu(conv3x3_ref(x, wf, bf))
        pad_c = x.shape[-1] - blk_in.shape[-1]
        x = x + jnp.pad(blk_in, ((0, 0), (0, 0), (0, 0), (pad_c, 0)))
        wd, bd = params["down"][blk_i]
        pooled = jnp.maximum(jnp.maximum(x[:, 0::2, 0::2, :], x[:, 0::2, 1::2, :]),
                             jnp.maximum(x[:, 1::2, 0::2, :], x[:, 1::2, 1::2, :]))
        down = jnp.einsum("nhwc,co->nhwo", x[:, 0::2, 0::2, :], wd) + bd
        x = pooled + down

    n = x.shape[0]
    feat = jnp.transpose(x, (0, 3, 1, 2)).reshape(n, -1)          # torch Flatten (NCHW)
    for k, (w, b) in enumerate(params["fc"]):
        feat = feat @ w + b
        if k < len(params["fc"]) - 1:
            feat = jax.nn.relu(feat)
    return feat


# ----------------------------- main -------------------------------------------
if __name__ == "__main__":
    key = jax.random.PRNGKey(0)
    pkey, xkey = jax.random.split(key)
    params = init_params(pkey)
    x = jax.random.normal(xkey, (2, IN_SIZE[0], IN_SIZE[1], IN_SIZE[2]), jnp.float32)  # NCHW

    kargs = prepare_kernel_args(params)
    out = jax.jit(your_code_net_forward)(kargs, x)
    out = jax.block_until_ready(out)

    assert out.shape == (2, OUT_CLASSES), out.shape
    assert bool(jnp.all(jnp.isfinite(out)))

    # Numerical self-check of the fused bf16-matmul kernel against the f32 reference.
    ref = jax.block_until_ready(jax.jit(reference_forward)(params, x))
    max_diff = float(jnp.max(jnp.abs(out - ref)))
    assert bool(jnp.allclose(out, ref, rtol=3e-2, atol=3e-2)), max_diff

    print("KERNEL_OK")
</pallas_src>

<mosaic_0001>
module attributes {stable_mosaic.version = 11 : i64} {
  func.func @fused_net_kernel(%arg0: i32, %arg1: memref<1x16x16x4xf32, #tpu.memory_space<vmem>>, %arg2: memref<36x8xbf16, #tpu.memory_space<vmem>>, %arg3: memref<1x8xf32, #tpu.memory_space<vmem>>, %arg4: memref<72x8xbf16, #tpu.memory_space<vmem>>, %arg5: memref<1x8xf32, #tpu.memory_space<vmem>>, %arg6: memref<8x8xbf16, #tpu.memory_space<vmem>>, %arg7: memref<1x8xf32, #tpu.memory_space<vmem>>, %arg8: memref<72x16xbf16, #tpu.memory_space<vmem>>, %arg9: memref<1x16xf32, #tpu.memory_space<vmem>>, %arg10: memref<144x16xbf16, #tpu.memory_space<vmem>>, %arg11: memref<1x16xf32, #tpu.memory_space<vmem>>, %arg12: memref<16x16xbf16, #tpu.memory_space<vmem>>, %arg13: memref<1x16xf32, #tpu.memory_space<vmem>>, %arg14: memref<256x32xbf16, #tpu.memory_space<vmem>>, %arg15: memref<1x32xf32, #tpu.memory_space<vmem>>, %arg16: memref<32x16xbf16, #tpu.memory_space<vmem>>, %arg17: memref<1x16xf32, #tpu.memory_space<vmem>>, %arg18: memref<16x128xbf16, #tpu.memory_space<vmem>>, %arg19: memref<1x128xf32, #tpu.memory_space<vmem>>, %arg20: memref<1x1x128xf32, #tpu.memory_space<vmem>>) attributes {dimension_semantics = [#tpu.dimension_semantics<parallel>], iteration_bounds = array<i64: 2>, scalar_prefetch = 0 : i64, scratch_operands = 0 : i64, tpu.core_type = #tpu.core_type<tc>, window_params = [{transform_indices = @transform_0, window_bounds = array<i64: 1, 16, 16, 4>}, {pipeline_mode = #tpu.pipeline_mode<synchronous>, transform_indices = @transform_1, window_bounds = array<i64: 36, 8>}, {pipeline_mode = #tpu.pipeline_mode<synchronous>, transform_indices = @transform_2, window_bounds = array<i64: 1, 8>}, {pipeline_mode = #tpu.pipeline_mode<synchronous>, transform_indices = @transform_3, window_bounds = array<i64: 72, 8>}, {pipeline_mode = #tpu.pipeline_mode<synchronous>, transform_indices = @transform_4, window_bounds = array<i64: 1, 8>}, {pipeline_mode = #tpu.pipeline_mode<synchronous>, transform_indices = @transform_5, window_bounds = array<i64: 8, 8>}, {pipeline_mode = #tpu.pipeline_mode<synchronous>, transform_indices = @transform_6, window_bounds = array<i64: 1, 8>}, {pipeline_mode = #tpu.pipeline_mode<synchronous>, transform_indices = @transform_7, window_bounds = array<i64: 72, 16>}, {pipeline_mode = #tpu.pipeline_mode<synchronous>, transform_indices = @transform_8, window_bounds = array<i64: 1, 16>}, {pipeline_mode = #tpu.pipeline_mode<synchronous>, transform_indices = @transform_9, window_bounds = array<i64: 144, 16>}, {pipeline_mode = #tpu.pipeline_mode<synchronous>, transform_indices = @transform_10, window_bounds = array<i64: 1, 16>}, {pipeline_mode = #tpu.pipeline_mode<synchronous>, transform_indices = @transform_11, window_bounds = array<i64: 16, 16>}, {pipeline_mode = #tpu.pipeline_mode<synchronous>, transform_indices = @transform_12, window_bounds = array<i64: 1, 16>}, {pipeline_mode = #tpu.pipeline_mode<synchronous>, transform_indices = @transform_13, window_bounds = array<i64: 256, 32>}, {pipeline_mode = #tpu.pipeline_mode<synchronous>, transform_indices = @transform_14, window_bounds = array<i64: 1, 32>}, {pipeline_mode = #tpu.pipeline_mode<synchronous>, transform_indices = @transform_15, window_bounds = array<i64: 32, 16>}, {pipeline_mode = #tpu.pipeline_mode<synchronous>, transform_indices = @transform_16, window_bounds = array<i64: 1, 16>}, {pipeline_mode = #tpu.pipeline_mode<synchronous>, transform_indices = @transform_17, window_bounds = array<i64: 16, 128>}, {pipeline_mode = #tpu.pipeline_mode<synchronous>, transform_indices = @transform_18, window_bounds = array<i64: 1, 128>}, {transform_indices = @transform_19, window_bounds = array<i64: 1, 1, 128>}]} {
    %c0 = arith.constant 0 : index
    %c0_0 = arith.constant 0 : index
    %c0_1 = arith.constant 0 : index
    %c0_2 = arith.constant 0 : index
    %0 = vector.load %arg1[%c0, %c0_0, %c0_1, %c0_2] : memref<1x16x16x4xf32, #tpu.memory_space<vmem>>, vector<1x16x16x4xf32>
    %1 = vector.shape_cast %0 : vector<1x16x16x4xf32> to vector<16x16x4xf32>
    %cst = arith.constant 0.000000e+00 : f32
    %2 = vector.broadcast %cst : f32 to vector<1x16x4xf32>
    %3 = tpu.concatenate %2, %1, %2 in 0 : vector<1x16x4xf32>, vector<16x16x4xf32>, vector<1x16x4xf32> -> vector<18x16x4xf32>
    %cst_3 = arith.constant 0.000000e+00 : f32
    %4 = vector.broadcast %cst_3 : f32 to vector<18x1x4xf32>
    %5 = tpu.concatenate %4, %3, %4 in 1 : vector<18x1x4xf32>, vector<18x16x4xf32>, vector<18x1x4xf32> -> vector<18x18x4xf32>
    %6 = vector.extract_strided_slice %5 {offsets = [0, 0, 0], sizes = [16, 16, 4], strides = [1, 1, 1]} : vector<18x18x4xf32> to vector<16x16x4xf32>
    %7 = vector.shape_cast %6 : vector<16x16x4xf32> to vector<256x4xf32>
    %8 = vector.extract_strided_slice %5 {offsets = [0, 1, 0], sizes = [16, 16, 4], strides = [1, 1, 1]} : vector<18x18x4xf32> to vector<16x16x4xf32>
    %9 = vector.shape_cast %8 : vector<16x16x4xf32> to vector<256x4xf32>
    %10 = vector.extract_strided_slice %5 {offsets = [0, 2, 0], sizes = [16, 16, 4], strides = [1, 1, 1]} : vector<18x18x4xf32> to vector<16x16x4xf32>
    %11 = vector.shape_cast %10 : vector<16x16x4xf32> to vector<256x4xf32>
    %12 = vector.extract_strided_slice %5 {offsets = [1, 0, 0], sizes = [16, 16, 4], strides = [1, 1, 1]} : vector<18x18x4xf32> to vector<16x16x4xf32>
    %13 = vector.shape_cast %12 : vector<16x16x4xf32> to vector<256x4xf32>
    %14 = vector.extract_strided_slice %5 {offsets = [1, 1, 0], sizes = [16, 16, 4], strides = [1, 1, 1]} : vector<18x18x4xf32> to vector<16x16x4xf32>
    %15 = vector.shape_cast %14 : vector<16x16x4xf32> to vector<256x4xf32>
    %16 = vector.extract_strided_slice %5 {offsets = [1, 2, 0], sizes = [16, 16, 4], strides = [1, 1, 1]} : vector<18x18x4xf32> to vector<16x16x4xf32>
    %17 = vector.shape_cast %16 : vector<16x16x4xf32> to vector<256x4xf32>
    %18 = vector.extract_strided_slice %5 {offsets = [2, 0, 0], sizes = [16, 16, 4], strides = [1, 1, 1]} : vector<18x18x4xf32> to vector<16x16x4xf32>
    %19 = vector.shape_cast %18 : vector<16x16x4xf32> to vector<256x4xf32>
    %20 = vector.extract_strided_slice %5 {offsets = [2, 1, 0], sizes = [16, 16, 4], strides = [1, 1, 1]} : vector<18x18x4xf32> to vector<16x16x4xf32>
    %21 = vector.shape_cast %20 : vector<16x16x4xf32> to vector<256x4xf32>
    %22 = vector.extract_strided_slice %5 {offsets = [2, 2, 0], sizes = [16, 16, 4], strides = [1, 1, 1]} : vector<18x18x4xf32> to vector<16x16x4xf32>
    %23 = vector.shape_cast %22 : vector<16x16x4xf32> to vector<256x4xf32>
    %24 = tpu.concatenate %7, %9, %11, %13, %15, %17, %19, %21, %23 in 1 : vector<256x4xf32>, vector<256x4xf32>, vector<256x4xf32>, vector<256x4xf32>, vector<256x4xf32>, vector<256x4xf32>, vector<256x4xf32>, vector<256x4xf32>, vector<256x4xf32> -> vector<256x36xf32>
    %25 = arith.truncf %24 : vector<256x36xf32> to vector<256x36xbf16>
    %c0_4 = arith.constant 0 : index
    %c0_5 = arith.constant 0 : index
    %26 = vector.load %arg2[%c0_4, %c0_5] : memref<36x8xbf16, #tpu.memory_space<vmem>>, vector<36x8xbf16>
    %cst_6 = arith.constant dense<0.000000e+00> : vector<256x8xf32>
    %27 = tpu.matmul %25, %26, %cst_6 {dimension_numbers = #tpu.dot_dimension_numbers<[1], [0], [0], [1], [0, 0, 1, 1], [], []>} : vector<256x36xbf16>, vector<36x8xbf16>, vector<256x8xf32> -> vector<256x8xf32>
    %c0_7 = arith.constant 0 : index
    %c0_8 = arith.constant 0 : index
    %28 = vector.load %arg3[%c0_7, %c0_8] : memref<1x8xf32, #tpu.memory_space<vmem>>, vector<1x8xf32>
    %29 = vector.broadcast %28 : vector<1x8xf32> to vector<256x8xf32>
    %30 = arith.addf %27, %29 : vector<256x8xf32>
    %cst_9 = arith.constant 0.000000e+00 : f32
    %31 = vector.broadcast %cst_9 : f32 to vector<256x8xf32>
    %32 = arith.maximumf %30, %31 : vector<256x8xf32>
    %33 = vector.shape_cast %32 : vector<256x8xf32> to vector<16x16x8xf32>
    %cst_10 = arith.constant 0.000000e+00 : f32
    %34 = vector.broadcast %cst_10 : f32 to vector<1x16x8xf32>
    %35 = tpu.concatenate %34, %33, %34 in 0 : vector<1x16x8xf32>, vector<16x16x8xf32>, vector<1x16x8xf32> -> vector<18x16x8xf32>
    %cst_11 = arith.constant 0.000000e+00 : f32
    %36 = vector.broadcast %cst_11 : f32 to vector<18x1x8xf32>
    %37 = tpu.concatenate %36, %35, %36 in 1 : vector<18x1x8xf32>, vector<18x16x8xf32>, vector<18x1x8xf32> -> vector<18x18x8xf32>
    %38 = vector.extract_strided_slice %37 {offsets = [0, 0, 0], sizes = [16, 16, 8], strides = [1, 1, 1]} : vector<18x18x8xf32> to vector<16x16x8xf32>
    %39 = vector.shape_cast %38 : vector<16x16x8xf32> to vector<256x8xf32>
    %40 = vector.extract_strided_slice %37 {offsets = [0, 1, 0], sizes = [16, 16, 8], strides = [1, 1, 1]} : vector<18x18x8xf32> to vector<16x16x8xf32>
    %41 = vector.shape_cast %40 : vector<16x16x8xf32> to vector<256x8xf32>
    %42 = vector.extract_strided_slice %37 {offsets = [0, 2, 0], sizes = [16, 16, 8], strides = [1, 1, 1]} : vector<18x18x8xf32> to vector<16x16x8xf32>
    %43 = vector.shape_cast %42 : vector<16x16x8xf32> to vector<256x8xf32>
    %44 = vector.extract_strided_slice %37 {offsets = [1, 0, 0], sizes = [16, 16, 8], strides = [1, 1, 1]} : vector<18x18x8xf32> to vector<16x16x8xf32>
    %45 = vector.shape_cast %44 : vector<16x16x8xf32> to vector<256x8xf32>
    %46 = vector.extract_strided_slice %37 {offsets = [1, 1, 0], sizes = [16, 16, 8], strides = [1, 1, 1]} : vector<18x18x8xf32> to vector<16x16x8xf32>
    %47 = vector.shape_cast %46 : vector<16x16x8xf32> to vector<256x8xf32>
    %48 = vector.extract_strided_slice %37 {offsets = [1, 2, 0], sizes = [16, 16, 8], strides = [1, 1, 1]} : vector<18x18x8xf32> to vector<16x16x8xf32>
    %49 = vector.shape_cast %48 : vector<16x16x8xf32> to vector<256x8xf32>
    %50 = vector.extract_strided_slice %37 {offsets = [2, 0, 0], sizes = [16, 16, 8], strides = [1, 1, 1]} : vector<18x18x8xf32> to vector<16x16x8xf32>
    %51 = vector.shape_cast %50 : vector<16x16x8xf32> to vector<256x8xf32>
    %52 = vector.extract_strided_slice %37 {offsets = [2, 1, 0], sizes = [16, 16, 8], strides = [1, 1, 1]} : vector<18x18x8xf32> to vector<16x16x8xf32>
    %53 = vector.shape_cast %52 : vector<16x16x8xf32> to vector<256x8xf32>
    %54 = vector.extract_strided_slice %37 {offsets = [2, 2, 0], sizes = [16, 16, 8], strides = [1, 1, 1]} : vector<18x18x8xf32> to vector<16x16x8xf32>
    %55 = vector.shape_cast %54 : vector<16x16x8xf32> to vector<256x8xf32>
    %56 = tpu.concatenate %39, %41, %43, %45, %47, %49, %51, %53, %55 in 1 : vector<256x8xf32>, vector<256x8xf32>, vector<256x8xf32>, vector<256x8xf32>, vector<256x8xf32>, vector<256x8xf32>, vector<256x8xf32>, vector<256x8xf32>, vector<256x8xf32> -> vector<256x72xf32>
    %57 = arith.truncf %56 : vector<256x72xf32> to vector<256x72xbf16>
    %c0_12 = arith.constant 0 : index
    %c0_13 = arith.constant 0 : index
    %58 = vector.load %arg4[%c0_12, %c0_13] : memref<72x8xbf16, #tpu.memory_space<vmem>>, vector<72x8xbf16>
    %cst_14 = arith.constant dense<0.000000e+00> : vector<256x8xf32>
    %59 = tpu.matmul %57, %58, %cst_14 {dimension_numbers = #tpu.dot_dimension_numbers<[1], [0], [0], [1], [0, 0, 1, 1], [], []>} : vector<256x72xbf16>, vector<72x8xbf16>, vector<256x8xf32> -> vector<256x8xf32>
    %c0_15 = arith.constant 0 : index
    %c0_16 = arith.constant 0 : index
    %60 = vector.load %arg5[%c0_15, %c0_16] : memref<1x8xf32, #tpu.memory_space<vmem>>, vector<1x8xf32>
    %61 = vector.broadcast %60 : vector<1x8xf32> to vector<256x8xf32>
    %62 = arith.addf %59, %61 : vector<256x8xf32>
    %cst_17 = arith.constant 0.000000e+00 : f32
    %63 = vector.broadcast %cst_17 : f32 to vector<256x8xf32>
    %64 = arith.maximumf %62, %63 : vector<256x8xf32>
    %65 = vector.shape_cast %64 : vector<256x8xf32> to vector<16x16x8xf32>
    %cst_18 = arith.constant 0.000000e+00 : f32
    %66 = vector.broadcast %cst_18 : f32 to vector<16x16x4xf32>
    %67 = tpu.concatenate %66, %1 in 2 : vector<16x16x4xf32>, vector<16x16x4xf32> -> vector<16x16x8xf32>
    %68 = arith.addf %65, %67 : vector<16x16x8xf32>
    %69 = vector.extract_strided_slice %68 {offsets = [0, 0, 0], sizes = [16, 1, 8], strides = [1, 1, 1]} : vector<16x16x8xf32> to vector<16x1x8xf32>
    %70 = vector.extract_strided_slice %68 {offsets = [0, 2, 0], sizes = [16, 1, 8], strides = [1, 1, 1]} : vector<16x16x8xf32> to vector<16x1x8xf32>
    %71 = vector.extract_strided_slice %68 {offsets = [0, 4, 0], sizes = [16, 1, 8], strides = [1, 1, 1]} : vector<16x16x8xf32> to vector<16x1x8xf32>
    %72 = vector.extract_strided_slice %68 {offsets = [0, 6, 0], sizes = [16, 1, 8], strides = [1, 1, 1]} : vector<16x16x8xf32> to vector<16x1x8xf32>
    %73 = vector.extract_strided_slice %68 {offsets = [0, 8, 0], sizes = [16, 1, 8], strides = [1, 1, 1]} : vector<16x16x8xf32> to vector<16x1x8xf32>
    %74 = vector.extract_strided_slice %68 {offsets = [0, 10, 0], sizes = [16, 1, 8], strides = [1, 1, 1]} : vector<16x16x8xf32> to vector<16x1x8xf32>
    %75 = vector.extract_strided_slice %68 {offsets = [0, 12, 0], sizes = [16, 1, 8], strides = [1, 1, 1]} : vector<16x16x8xf32> to vector<16x1x8xf32>
    %76 = vector.extract_strided_slice %68 {offsets = [0, 14, 0], sizes = [16, 1, 8], strides = [1, 1, 1]} : vector<16x16x8xf32> to vector<16x1x8xf32>
    %77 = tpu.concatenate %69, %70, %71, %72, %73, %74, %75, %76 in 1 : vector<16x1x8xf32>, vector<16x1x8xf32>, vector<16x1x8xf32>, vector<16x1x8xf32>, vector<16x1x8xf32>, vector<16x1x8xf32>, vector<16x1x8xf32>, vector<16x1x8xf32> -> vector<16x8x8xf32>
    %78 = vector.extract_strided_slice %68 {offsets = [0, 1, 0], sizes = [16, 1, 8], strides = [1, 1, 1]} : vector<16x16x8xf32> to vector<16x1x8xf32>
    %79 = vector.extract_strided_slice %68 {offsets = [0, 3, 0], sizes = [16, 1, 8], strides = [1, 1, 1]} : vector<16x16x8xf32> to vector<16x1x8xf32>
    %80 = vector.extract_strided_slice %68 {offsets = [0, 5, 0], sizes = [16, 1, 8], strides = [1, 1, 1]} : vector<16x16x8xf32> to vector<16x1x8xf32>
    %81 = vector.extract_strided_slice %68 {offsets = [0, 7, 0], sizes = [16, 1, 8], strides = [1, 1, 1]} : vector<16x16x8xf32> to vector<16x1x8xf32>
    %82 = vector.extract_strided_slice %68 {offsets = [0, 9, 0], sizes = [16, 1, 8], strides = [1, 1, 1]} : vector<16x16x8xf32> to vector<16x1x8xf32>
    %83 = vector.extract_strided_slice %68 {offsets = [0, 11, 0], sizes = [16, 1, 8], strides = [1, 1, 1]} : vector<16x16x8xf32> to vector<16x1x8xf32>
    %84 = vector.extract_strided_slice %68 {offsets = [0, 13, 0], sizes = [16, 1, 8], strides = [1, 1, 1]} : vector<16x16x8xf32> to vector<16x1x8xf32>
    %85 = vector.extract_strided_slice %68 {offsets = [0, 15, 0], sizes = [16, 1, 8], strides = [1, 1, 1]} : vector<16x16x8xf32> to vector<16x1x8xf32>
    %86 = tpu.concatenate %78, %79, %80, %81, %82, %83, %84, %85 in 1 : vector<16x1x8xf32>, vector<16x1x8xf32>, vector<16x1x8xf32>, vector<16x1x8xf32>, vector<16x1x8xf32>, vector<16x1x8xf32>, vector<16x1x8xf32>, vector<16x1x8xf32> -> vector<16x8x8xf32>
    %87 = arith.maximumf %77, %86 : vector<16x8x8xf32>
    %88 = vector.extract_strided_slice %87 {offsets = [0, 0, 0], sizes = [1, 8, 8], strides = [1, 1, 1]} : vector<16x8x8xf32> to vector<1x8x8xf32>
    %89 = vector.extract_strided_slice %87 {offsets = [2, 0, 0], sizes = [1, 8, 8], strides = [1, 1, 1]} : vector<16x8x8xf32> to vector<1x8x8xf32>
    %90 = vector.extract_strided_slice %87 {offsets = [4, 0, 0], sizes = [1, 8, 8], strides = [1, 1, 1]} : vector<16x8x8xf32> to vector<1x8x8xf32>
    %91 = vector.extract_strided_slice %87 {offsets = [6, 0, 0], sizes = [1, 8, 8], strides = [1, 1, 1]} : vector<16x8x8xf32> to vector<1x8x8xf32>
    %92 = vector.extract_strided_slice %87 {offsets = [8, 0, 0], sizes = [1, 8, 8], strides = [1, 1, 1]} : vector<16x8x8xf32> to vector<1x8x8xf32>
    %93 = vector.extract_strided_slice %87 {offsets = [10, 0, 0], sizes = [1, 8, 8], strides = [1, 1, 1]} : vector<16x8x8xf32> to vector<1x8x8xf32>
    %94 = vector.extract_strided_slice %87 {offsets = [12, 0, 0], sizes = [1, 8, 8], strides = [1, 1, 1]} : vector<16x8x8xf32> to vector<1x8x8xf32>
    %95 = vector.extract_strided_slice %87 {offsets = [14, 0, 0], sizes = [1, 8, 8], strides = [1, 1, 1]} : vector<16x8x8xf32> to vector<1x8x8xf32>
    %96 = tpu.concatenate %88, %89, %90, %91, %92, %93, %94, %95 in 0 : vector<1x8x8xf32>, vector<1x8x8xf32>, vector<1x8x8xf32>, vector<1x8x8xf32>, vector<1x8x8xf32>, vector<1x8x8xf32>, vector<1x8x8xf32>, vector<1x8x8xf32> -> vector<8x8x8xf32>
    %97 = vector.extract_strided_slice %87 {offsets = [1, 0, 0], sizes = [1, 8, 8], strides = [1, 1, 1]} : vector<16x8x8xf32> to vector<1x8x8xf32>
    %98 = vector.extract_strided_slice %87 {offsets = [3, 0, 0], sizes = [1, 8, 8], strides = [1, 1, 1]} : vector<16x8x8xf32> to vector<1x8x8xf32>
    %99 = vector.extract_strided_slice %87 {offsets = [5, 0, 0], sizes = [1, 8, 8], strides = [1, 1, 1]} : vector<16x8x8xf32> to vector<1x8x8xf32>
    %100 = vector.extract_strided_slice %87 {offsets = [7, 0, 0], sizes = [1, 8, 8], strides = [1, 1, 1]} : vector<16x8x8xf32> to vector<1x8x8xf32>
    %101 = vector.extract_strided_slice %87 {offsets = [9, 0, 0], sizes = [1, 8, 8], strides = [1, 1, 1]} : vector<16x8x8xf32> to vector<1x8x8xf32>
    %102 = vector.extract_strided_slice %87 {offsets = [11, 0, 0], sizes = [1, 8, 8], strides = [1, 1, 1]} : vector<16x8x8xf32> to vector<1x8x8xf32>
    %103 = vector.extract_strided_slice %87 {offsets = [13, 0, 0], sizes = [1, 8, 8], strides = [1, 1, 1]} : vector<16x8x8xf32> to vector<1x8x8xf32>
    %104 = vector.extract_strided_slice %87 {offsets = [15, 0, 0], sizes = [1, 8, 8], strides = [1, 1, 1]} : vector<16x8x8xf32> to vector<1x8x8xf32>
    %105 = tpu.concatenate %97, %98, %99, %100, %101, %102, %103, %104 in 0 : vector<1x8x8xf32>, vector<1x8x8xf32>, vector<1x8x8xf32>, vector<1x8x8xf32>, vector<1x8x8xf32>, vector<1x8x8xf32>, vector<1x8x8xf32>, vector<1x8x8xf32> -> vector<8x8x8xf32>
    %106 = arith.maximumf %96, %105 : vector<8x8x8xf32>
    %107 = vector.shape_cast %68 : vector<16x16x8xf32> to vector<256x8xf32>
    %108 = arith.truncf %107 : vector<256x8xf32> to vector<256x8xbf16>
    %c0_19 = arith.constant 0 : index
    %c0_20 = arith.constant 0 : index
    %109 = vector.load %arg6[%c0_19, %c0_20] : memref<8x8xbf16, #tpu.memory_space<vmem>>, vector<8x8xbf16>
    %cst_21 = arith.constant dense<0.000000e+00> : vector<256x8xf32>
    %110 = tpu.matmul %108, %109, %cst_21 {dimension_numbers = #tpu.dot_dimension_numbers<[1], [0], [0], [1], [0, 0, 1, 1], [], []>} : vector<256x8xbf16>, vector<8x8xbf16>, vector<256x8xf32> -> vector<256x8xf32>
    %c0_22 = arith.constant 0 : index
    %c0_23 = arith.constant 0 : index
    %111 = vector.load %arg7[%c0_22, %c0_23] : memref<1x8xf32, #tpu.memory_space<vmem>>, vector<1x8xf32>
    %112 = vector.broadcast %111 : vector<1x8xf32> to vector<256x8xf32>
    %113 = arith.addf %110, %112 : vector<256x8xf32>
    %114 = vector.shape_cast %113 : vector<256x8xf32> to vector<16x16x8xf32>
    %115 = vector.extract_strided_slice %114 {offsets = [0, 0, 0], sizes = [16, 1, 8], strides = [1, 1, 1]} : vector<16x16x8xf32> to vector<16x1x8xf32>
    %116 = vector.extract_strided_slice %114 {offsets = [0, 2, 0], sizes = [16, 1, 8], strides = [1, 1, 1]} : vector<16x16x8xf32> to vector<16x1x8xf32>
    %117 = vector.extract_strided_slice %114 {offsets = [0, 4, 0], sizes = [16, 1, 8], strides = [1, 1, 1]} : vector<16x16x8xf32> to vector<16x1x8xf32>
    %118 = vector.extract_strided_slice %114 {offsets = [0, 6, 0], sizes = [16, 1, 8], strides = [1, 1, 1]} : vector<16x16x8xf32> to vector<16x1x8xf32>
    %119 = vector.extract_strided_slice %114 {offsets = [0, 8, 0], sizes = [16, 1, 8], strides = [1, 1, 1]} : vector<16x16x8xf32> to vector<16x1x8xf32>
    %120 = vector.extract_strided_slice %114 {offsets = [0, 10, 0], sizes = [16, 1, 8], strides = [1, 1, 1]} : vector<16x16x8xf32> to vector<16x1x8xf32>
    %121 = vector.extract_strided_slice %114 {offsets = [0, 12, 0], sizes = [16, 1, 8], strides = [1, 1, 1]} : vector<16x16x8xf32> to vector<16x1x8xf32>
    %122 = vector.extract_strided_slice %114 {offsets = [0, 14, 0], sizes = [16, 1, 8], strides = [1, 1, 1]} : vector<16x16x8xf32> to vector<16x1x8xf32>
    %123 = tpu.concatenate %115, %116, %117, %118, %119, %120, %121, %122 in 1 : vector<16x1x8xf32>, vector<16x1x8xf32>, vector<16x1x8xf32>, vector<16x1x8xf32>, vector<16x1x8xf32>, vector<16x1x8xf32>, vector<16x1x8xf32>, vector<16x1x8xf32> -> vector<16x8x8xf32>
    %124 = vector.extract_strided_slice %123 {offsets = [0, 0, 0], sizes = [1, 8, 8], strides = [1, 1, 1]} : vector<16x8x8xf32> to vector<1x8x8xf32>
    %125 = vector.extract_strided_slice %123 {offsets = [2, 0, 0], sizes = [1, 8, 8], strides = [1, 1, 1]} : vector<16x8x8xf32> to vector<1x8x8xf32>
    %126 = vector.extract_strided_slice %123 {offsets = [4, 0, 0], sizes = [1, 8, 8], strides = [1, 1, 1]} : vector<16x8x8xf32> to vector<1x8x8xf32>
    %127 = vector.extract_strided_slice %123 {offsets = [6, 0, 0], sizes = [1, 8, 8], strides = [1, 1, 1]} : vector<16x8x8xf32> to vector<1x8x8xf32>
    %128 = vector.extract_strided_slice %123 {offsets = [8, 0, 0], sizes = [1, 8, 8], strides = [1, 1, 1]} : vector<16x8x8xf32> to vector<1x8x8xf32>
    %129 = vector.extract_strided_slice %123 {offsets = [10, 0, 0], sizes = [1, 8, 8], strides = [1, 1, 1]} : vector<16x8x8xf32> to vector<1x8x8xf32>
    %130 = vector.extract_strided_slice %123 {offsets = [12, 0, 0], sizes = [1, 8, 8], strides = [1, 1, 1]} : vector<16x8x8xf32> to vector<1x8x8xf32>
    %131 = vector.extract_strided_slice %123 {offsets = [14, 0, 0], sizes = [1, 8, 8], strides = [1, 1, 1]} : vector<16x8x8xf32> to vector<1x8x8xf32>
    %132 = tpu.concatenate %124, %125, %126, %127, %128, %129, %130, %131 in 0 : vector<1x8x8xf32>, vector<1x8x8xf32>, vector<1x8x8xf32>, vector<1x8x8xf32>, vector<1x8x8xf32>, vector<1x8x8xf32>, vector<1x8x8xf32>, vector<1x8x8xf32> -> vector<8x8x8xf32>
    %133 = arith.addf %106, %132 : vector<8x8x8xf32>
    %cst_24 = arith.constant 0.000000e+00 : f32
    %134 = vector.broadcast %cst_24 : f32 to vector<1x8x8xf32>
    %135 = tpu.concatenate %134, %133, %134 in 0 : vector<1x8x8xf32>, vector<8x8x8xf32>, vector<1x8x8xf32> -> vector<10x8x8xf32>
    %cst_25 = arith.constant 0.000000e+00 : f32
    %136 = vector.broadcast %cst_25 : f32 to vector<10x1x8xf32>
    %137 = tpu.concatenate %136, %135, %136 in 1 : vector<10x1x8xf32>, vector<10x8x8xf32>, vector<10x1x8xf32> -> vector<10x10x8xf32>
    %138 = vector.extract_strided_slice %137 {offsets = [0, 0, 0], sizes = [8, 8, 8], strides = [1, 1, 1]} : vector<10x10x8xf32> to vector<8x8x8xf32>
    %139 = vector.shape_cast %138 : vector<8x8x8xf32> to vector<64x8xf32>
    %140 = vector.extract_strided_slice %137 {offsets = [0, 1, 0], sizes = [8, 8, 8], strides = [1, 1, 1]} : vector<10x10x8xf32> to vector<8x8x8xf32>
    %141 = vector.shape_cast %140 : vector<8x8x8xf32> to vector<64x8xf32>
    %142 = vector.extract_strided_slice %137 {offsets = [0, 2, 0], sizes = [8, 8, 8], strides = [1, 1, 1]} : vector<10x10x8xf32> to vector<8x8x8xf32>
    %143 = vector.shape_cast %142 : vector<8x8x8xf32> to vector<64x8xf32>
    %144 = vector.extract_strided_slice %137 {offsets = [1, 0, 0], sizes = [8, 8, 8], strides = [1, 1, 1]} : vector<10x10x8xf32> to vector<8x8x8xf32>
    %145 = vector.shape_cast %144 : vector<8x8x8xf32> to vector<64x8xf32>
    %146 = vector.extract_strided_slice %137 {offsets = [1, 1, 0], sizes = [8, 8, 8], strides = [1, 1, 1]} : vector<10x10x8xf32> to vector<8x8x8xf32>
    %147 = vector.shape_cast %146 : vector<8x8x8xf32> to vector<64x8xf32>
    %148 = vector.extract_strided_slice %137 {offsets = [1, 2, 0], sizes = [8, 8, 8], strides = [1, 1, 1]} : vector<10x10x8xf32> to vector<8x8x8xf32>
    %149 = vector.shape_cast %148 : vector<8x8x8xf32> to vector<64x8xf32>
    %150 = vector.extract_strided_slice %137 {offsets = [2, 0, 0], sizes = [8, 8, 8], strides = [1, 1, 1]} : vector<10x10x8xf32> to vector<8x8x8xf32>
    %151 = vector.shape_cast %150 : vector<8x8x8xf32> to vector<64x8xf32>
    %152 = vector.extract_strided_slice %137 {offsets = [2, 1, 0], sizes = [8, 8, 8], strides = [1, 1, 1]} : vector<10x10x8xf32> to vector<8x8x8xf32>
    %153 = vector.shape_cast %152 : vector<8x8x8xf32> to vector<64x8xf32>
    %154 = vector.extract_strided_slice %137 {offsets = [2, 2, 0], sizes = [8, 8, 8], strides = [1, 1, 1]} : vector<10x10x8xf32> to vector<8x8x8xf32>
    %155 = vector.shape_cast %154 : vector<8x8x8xf32> to vector<64x8xf32>
    %156 = tpu.concatenate %139, %141, %143, %145, %147, %149, %151, %153, %155 in 1 : vector<64x8xf32>, vector<64x8xf32>, vector<64x8xf32>, vector<64x8xf32>, vector<64x8xf32>, vector<64x8xf32>, vector<64x8xf32>, vector<64x8xf32>, vector<64x8xf32> -> vector<64x72xf32>
    %157 = arith.truncf %156 : vector<64x72xf32> to vector<64x72xbf16>
    %c0_26 = arith.constant 0 : index
    %c0_27 = arith.constant 0 : index
    %158 = vector.load %arg8[%c0_26, %c0_27] : memref<72x16xbf16, #tpu.memory_space<vmem>>, vector<72x16xbf16>
    %cst_28 = arith.constant dense<0.000000e+00> : vector<64x16xf32>
    %159 = tpu.matmul %157, %158, %cst_28 {dimension_numbers = #tpu.dot_dimension_numbers<[1], [0], [0], [1], [0, 0, 1, 1], [], []>} : vector<64x72xbf16>, vector<72x16xbf16>, vector<64x16xf32> -> vector<64x16xf32>
    %c0_29 = arith.constant 0 : index
    %c0_30 = arith.constant 0 : index
    %160 = vector.load %arg9[%c0_29, %c0_30] : memref<1x16xf32, #tpu.memory_space<vmem>>, vector<1x16xf32>
    %161 = vector.broadcast %160 : vector<1x16xf32> to vector<64x16xf32>
    %162 = arith.addf %159, %161 : vector<64x16xf32>
    %cst_31 = arith.constant 0.000000e+00 : f32
    %163 = vector.broadcast %cst_31 : f32 to vector<64x16xf32>
    %164 = arith.maximumf %162, %163 : vector<64x16xf32>
    %165 = vector.shape_cast %164 : vector<64x16xf32> to vector<8x8x16xf32>
    %cst_32 = arith.constant 0.000000e+00 : f32
    %166 = vector.broadcast %cst_32 : f32 to vector<1x8x16xf32>
    %167 = tpu.concatenate %166, %165, %166 in 0 : vector<1x8x16xf32>, vector<8x8x16xf32>, vector<1x8x16xf32> -> vector<10x8x16xf32>
    %cst_33 = arith.constant 0.000000e+00 : f32
    %168 = vector.broadcast %cst_33 : f32 to vector<10x1x16xf32>
    %169 = tpu.concatenate %168, %167, %168 in 1 : vector<10x1x16xf32>, vector<10x8x16xf32>, vector<10x1x16xf32> -> vector<10x10x16xf32>
    %170 = vector.extract_strided_slice %169 {offsets = [0, 0, 0], sizes = [8, 8, 16], strides = [1, 1, 1]} : vector<10x10x16xf32> to vector<8x8x16xf32>
    %171 = vector.shape_cast %170 : vector<8x8x16xf32> to vector<64x16xf32>
    %172 = vector.extract_strided_slice %169 {offsets = [0, 1, 0], sizes = [8, 8, 16], strides = [1, 1, 1]} : vector<10x10x16xf32> to vector<8x8x16xf32>
    %173 = vector.shape_cast %172 : vector<8x8x16xf32> to vector<64x16xf32>
    %174 = vector.extract_strided_slice %169 {offsets = [0, 2, 0], sizes = [8, 8, 16], strides = [1, 1, 1]} : vector<10x10x16xf32> to vector<8x8x16xf32>
    %175 = vector.shape_cast %174 : vector<8x8x16xf32> to vector<64x16xf32>
    %176 = vector.extract_strided_slice %169 {offsets = [1, 0, 0], sizes = [8, 8, 16], strides = [1, 1, 1]} : vector<10x10x16xf32> to vector<8x8x16xf32>
    %177 = vector.shape_cast %176 : vector<8x8x16xf32> to vector<64x16xf32>
    %178 = vector.extract_strided_slice %169 {offsets = [1, 1, 0], sizes = [8, 8, 16], strides = [1, 1, 1]} : vector<10x10x16xf32> to vector<8x8x16xf32>
    %179 = vector.shape_cast %178 : vector<8x8x16xf32> to vector<64x16xf32>
    %180 = vector.extract_strided_slice %169 {offsets = [1, 2, 0], sizes = [8, 8, 16], strides = [1, 1, 1]} : vector<10x10x16xf32> to vector<8x8x16xf32>
    %181 = vector.shape_cast %180 : vector<8x8x16xf32> to vector<64x16xf32>
    %182 = vector.extract_strided_slice %169 {offsets = [2, 0, 0], sizes = [8, 8, 16], strides = [1, 1, 1]} : vector<10x10x16xf32> to vector<8x8x16xf32>
    %183 = vector.shape_cast %182 : vector<8x8x16xf32> to vector<64x16xf32>
    %184 = vector.extract_strided_slice %169 {offsets = [2, 1, 0], sizes = [8, 8, 16], strides = [1, 1, 1]} : vector<10x10x16xf32> to vector<8x8x16xf32>
    %185 = vector.shape_cast %184 : vector<8x8x16xf32> to vector<64x16xf32>
    %186 = vector.extract_strided_slice %169 {offsets = [2, 2, 0], sizes = [8, 8, 16], strides = [1, 1, 1]} : vector<10x10x16xf32> to vector<8x8x16xf32>
    %187 = vector.shape_cast %186 : vector<8x8x16xf32> to vector<64x16xf32>
    %188 = tpu.concatenate %171, %173, %175, %177, %179, %181, %183, %185, %187 in 1 : vector<64x16xf32>, vector<64x16xf32>, vector<64x16xf32>, vector<64x16xf32>, vector<64x16xf32>, vector<64x16xf32>, vector<64x16xf32>, vector<64x16xf32>, vector<64x16xf32> -> vector<64x144xf32>
    %189 = arith.truncf %188 : vector<64x144xf32> to vector<64x144xbf16>
    %c0_34 = arith.constant 0 : index
    %c0_35 = arith.constant 0 : index
    %190 = vector.load %arg10[%c0_34, %c0_35] : memref<144x16xbf16, #tpu.memory_space<vmem>>, vector<144x16xbf16>
    %cst_36 = arith.constant dense<0.000000e+00> : vector<64x16xf32>
    %191 = tpu.matmul %189, %190, %cst_36 {dimension_numbers = #tpu.dot_dimension_numbers<[1], [0], [0], [1], [0, 0, 1, 1], [], []>} : vector<64x144xbf16>, vector<144x16xbf16>, vector<64x16xf32> -> vector<64x16xf32>
    %c0_37 = arith.constant 0 : index
    %c0_38 = arith.constant 0 : index
    %192 = vector.load %arg11[%c0_37, %c0_38] : memref<1x16xf32, #tpu.memory_space<vmem>>, vector<1x16xf32>
    %193 = vector.broadcast %192 : vector<1x16xf32> to vector<64x16xf32>
    %194 = arith.addf %191, %193 : vector<64x16xf32>
    %cst_39 = arith.constant 0.000000e+00 : f32
    %195 = vector.broadcast %cst_39 : f32 to vector<64x16xf32>
    %196 = arith.maximumf %194, %195 : vector<64x16xf32>
    %197 = vector.shape_cast %196 : vector<64x16xf32> to vector<8x8x16xf32>
    %cst_40 = arith.constant 0.000000e+00 : f32
    %198 = vector.broadcast %cst_40 : f32 to vector<8x8x8xf32>
    %199 = tpu.concatenate %198, %133 in 2 : vector<8x8x8xf32>, vector<8x8x8xf32> -> vector<8x8x16xf32>
    %200 = arith.addf %197, %199 : vector<8x8x16xf32>
    %201 = vector.extract_strided_slice %200 {offsets = [0, 0, 0], sizes = [8, 1, 16], strides = [1, 1, 1]} : vector<8x8x16xf32> to vector<8x1x16xf32>
    %202 = vector.extract_strided_slice %200 {offsets = [0, 2, 0], sizes = [8, 1, 16], strides = [1, 1, 1]} : vector<8x8x16xf32> to vector<8x1x16xf32>
    %203 = vector.extract_strided_slice %200 {offsets = [0, 4, 0], sizes = [8, 1, 16], strides = [1, 1, 1]} : vector<8x8x16xf32> to vector<8x1x16xf32>
    %204 = vector.extract_strided_slice %200 {offsets = [0, 6, 0], sizes = [8, 1, 16], strides = [1, 1, 1]} : vector<8x8x16xf32> to vector<8x1x16xf32>
    %205 = tpu.concatenate %201, %202, %203, %204 in 1 : vector<8x1x16xf32>, vector<8x1x16xf32>, vector<8x1x16xf32>, vector<8x1x16xf32> -> vector<8x4x16xf32>
    %206 = vector.extract_strided_slice %200 {offsets = [0, 1, 0], sizes = [8, 1, 16], strides = [1, 1, 1]} : vector<8x8x16xf32> to vector<8x1x16xf32>
    %207 = vector.extract_strided_slice %200 {offsets = [0, 3, 0], sizes = [8, 1, 16], strides = [1, 1, 1]} : vector<8x8x16xf32> to vector<8x1x16xf32>
    %208 = vector.extract_strided_slice %200 {offsets = [0, 5, 0], sizes = [8, 1, 16], strides = [1, 1, 1]} : vector<8x8x16xf32> to vector<8x1x16xf32>
    %209 = vector.extract_strided_slice %200 {offsets = [0, 7, 0], sizes = [8, 1, 16], strides = [1, 1, 1]} : vector<8x8x16xf32> to vector<8x1x16xf32>
    %210 = tpu.concatenate %206, %207, %208, %209 in 1 : vector<8x1x16xf32>, vector<8x1x16xf32>, vector<8x1x16xf32>, vector<8x1x16xf32> -> vector<8x4x16xf32>
    %211 = arith.maximumf %205, %210 : vector<8x4x16xf32>
    %212 = vector.extract_strided_slice %211 {offsets = [0, 0, 0], sizes = [1, 4, 16], strides = [1, 1, 1]} : vector<8x4x16xf32> to vector<1x4x16xf32>
    %213 = vector.extract_strided_slice %211 {offsets = [2, 0, 0], sizes = [1, 4, 16], strides = [1, 1, 1]} : vector<8x4x16xf32> to vector<1x4x16xf32>
    %214 = vector.extract_strided_slice %211 {offsets = [4, 0, 0], sizes = [1, 4, 16], strides = [1, 1, 1]} : vector<8x4x16xf32> to vector<1x4x16xf32>
    %215 = vector.extract_strided_slice %211 {offsets = [6, 0, 0], sizes = [1, 4, 16], strides = [1, 1, 1]} : vector<8x4x16xf32> to vector<1x4x16xf32>
    %216 = tpu.concatenate %212, %213, %214, %215 in 0 : vector<1x4x16xf32>, vector<1x4x16xf32>, vector<1x4x16xf32>, vector<1x4x16xf32> -> vector<4x4x16xf32>
    %217 = vector.extract_strided_slice %211 {offsets = [1, 0, 0], sizes = [1, 4, 16], strides = [1, 1, 1]} : vector<8x4x16xf32> to vector<1x4x16xf32>
    %218 = vector.extract_strided_slice %211 {offsets = [3, 0, 0], sizes = [1, 4, 16], strides = [1, 1, 1]} : vector<8x4x16xf32> to vector<1x4x16xf32>
    %219 = vector.extract_strided_slice %211 {offsets = [5, 0, 0], sizes = [1, 4, 16], strides = [1, 1, 1]} : vector<8x4x16xf32> to vector<1x4x16xf32>
    %220 = vector.extract_strided_slice %211 {offsets = [7, 0, 0], sizes = [1, 4, 16], strides = [1, 1, 1]} : vector<8x4x16xf32> to vector<1x4x16xf32>
    %221 = tpu.concatenate %217, %218, %219, %220 in 0 : vector<1x4x16xf32>, vector<1x4x16xf32>, vector<1x4x16xf32>, vector<1x4x16xf32> -> vector<4x4x16xf32>
    %222 = arith.maximumf %216, %221 : vector<4x4x16xf32>
    %223 = vector.shape_cast %200 : vector<8x8x16xf32> to vector<64x16xf32>
    %224 = arith.truncf %223 : vector<64x16xf32> to vector<64x16xbf16>
    %c0_41 = arith.constant 0 : index
    %c0_42 = arith.constant 0 : index
    %225 = vector.load %arg12[%c0_41, %c0_42] : memref<16x16xbf16, #tpu.memory_space<vmem>>, vector<16x16xbf16>
    %cst_43 = arith.constant dense<0.000000e+00> : vector<64x16xf32>
    %226 = tpu.matmul %224, %225, %cst_43 {dimension_numbers = #tpu.dot_dimension_numbers<[1], [0], [0], [1], [0, 0, 1, 1], [], []>} : vector<64x16xbf16>, vector<16x16xbf16>, vector<64x16xf32> -> vector<64x16xf32>
    %c0_44 = arith.constant 0 : index
    %c0_45 = arith.constant 0 : index
    %227 = vector.load %arg13[%c0_44, %c0_45] : memref<1x16xf32, #tpu.memory_space<vmem>>, vector<1x16xf32>
    %228 = vector.broadcast %227 : vector<1x16xf32> to vector<64x16xf32>
    %229 = arith.addf %226, %228 : vector<64x16xf32>
    %230 = vector.shape_cast %229 : vector<64x16xf32> to vector<8x8x16xf32>
    %231 = vector.extract_strided_slice %230 {offsets = [0, 0, 0], sizes = [8, 1, 16], strides = [1, 1, 1]} : vector<8x8x16xf32> to vector<8x1x16xf32>
    %232 = vector.extract_strided_slice %230 {offsets = [0, 2, 0], sizes = [8, 1, 16], strides = [1, 1, 1]} : vector<8x8x16xf32> to vector<8x1x16xf32>
    %233 = vector.extract_strided_slice %230 {offsets = [0, 4, 0], sizes = [8, 1, 16], strides = [1, 1, 1]} : vector<8x8x16xf32> to vector<8x1x16xf32>
    %234 = vector.extract_strided_slice %230 {offsets = [0, 6, 0], sizes = [8, 1, 16], strides = [1, 1, 1]} : vector<8x8x16xf32> to vector<8x1x16xf32>
    %235 = tpu.concatenate %231, %232, %233, %234 in 1 : vector<8x1x16xf32>, vector<8x1x16xf32>, vector<8x1x16xf32>, vector<8x1x16xf32> -> vector<8x4x16xf32>
    %236 = vector.extract_strided_slice %235 {offsets = [0, 0, 0], sizes = [1, 4, 16], strides = [1, 1, 1]} : vector<8x4x16xf32> to vector<1x4x16xf32>
    %237 = vector.extract_strided_slice %235 {offsets = [2, 0, 0], sizes = [1, 4, 16], strides = [1, 1, 1]} : vector<8x4x16xf32> to vector<1x4x16xf32>
    %238 = vector.extract_strided_slice %235 {offsets = [4, 0, 0], sizes = [1, 4, 16], strides = [1, 1, 1]} : vector<8x4x16xf32> to vector<1x4x16xf32>
    %239 = vector.extract_strided_slice %235 {offsets = [6, 0, 0], sizes = [1, 4, 16], strides = [1, 1, 1]} : vector<8x4x16xf32> to vector<1x4x16xf32>
    %240 = tpu.concatenate %236, %237, %238, %239 in 0 : vector<1x4x16xf32>, vector<1x4x16xf32>, vector<1x4x16xf32>, vector<1x4x16xf32> -> vector<4x4x16xf32>
    %241 = arith.addf %222, %240 : vector<4x4x16xf32>
    %242 = vector.extract_strided_slice %241 {offsets = [0, 0, 0], sizes = [1, 1, 16], strides = [1, 1, 1]} : vector<4x4x16xf32> to vector<1x1x16xf32>
    %243 = vector.shape_cast %242 : vector<1x1x16xf32> to vector<1x16xf32>
    %244 = vector.extract_strided_slice %241 {offsets = [0, 1, 0], sizes = [1, 1, 16], strides = [1, 1, 1]} : vector<4x4x16xf32> to vector<1x1x16xf32>
    %245 = vector.shape_cast %244 : vector<1x1x16xf32> to vector<1x16xf32>
    %246 = vector.extract_strided_slice %241 {offsets = [0, 2, 0], sizes = [1, 1, 16], strides = [1, 1, 1]} : vector<4x4x16xf32> to vector<1x1x16xf32>
    %247 = vector.shape_cast %246 : vector<1x1x16xf32> to vector<1x16xf32>
    %248 = vector.extract_strided_slice %241 {offsets = [0, 3, 0], sizes = [1, 1, 16], strides = [1, 1, 1]} : vector<4x4x16xf32> to vector<1x1x16xf32>
    %249 = vector.shape_cast %248 : vector<1x1x16xf32> to vector<1x16xf32>
    %250 = vector.extract_strided_slice %241 {offsets = [1, 0, 0], sizes = [1, 1, 16], strides = [1, 1, 1]} : vector<4x4x16xf32> to vector<1x1x16xf32>
    %251 = vector.shape_cast %250 : vector<1x1x16xf32> to vector<1x16xf32>
    %252 = vector.extract_strided_slice %241 {offsets = [1, 1, 0], sizes = [1, 1, 16], strides = [1, 1, 1]} : vector<4x4x16xf32> to vector<1x1x16xf32>
    %253 = vector.shape_cast %252 : vector<1x1x16xf32> to vector<1x16xf32>
    %254 = vector.extract_strided_slice %241 {offsets = [1, 2, 0], sizes = [1, 1, 16], strides = [1, 1, 1]} : vector<4x4x16xf32> to vector<1x1x16xf32>
    %255 = vector.shape_cast %254 : vector<1x1x16xf32> to vector<1x16xf32>
    %256 = vector.extract_strided_slice %241 {offsets = [1, 3, 0], sizes = [1, 1, 16], strides = [1, 1, 1]} : vector<4x4x16xf32> to vector<1x1x16xf32>
    %257 = vector.shape_cast %256 : vector<1x1x16xf32> to vector<1x16xf32>
    %258 = vector.extract_strided_slice %241 {offsets = [2, 0, 0], sizes = [1, 1, 16], strides = [1, 1, 1]} : vector<4x4x16xf32> to vector<1x1x16xf32>
    %259 = vector.shape_cast %258 : vector<1x1x16xf32> to vector<1x16xf32>
    %260 = vector.extract_strided_slice %241 {offsets = [2, 1, 0], sizes = [1, 1, 16], strides = [1, 1, 1]} : vector<4x4x16xf32> to vector<1x1x16xf32>
    %261 = vector.shape_cast %260 : vector<1x1x16xf32> to vector<1x16xf32>
    %262 = vector.extract_strided_slice %241 {offsets = [2, 2, 0], sizes = [1, 1, 16], strides = [1, 1, 1]} : vector<4x4x16xf32> to vector<1x1x16xf32>
    %263 = vector.shape_cast %262 : vector<1x1x16xf32> to vector<1x16xf32>
    %264 = vector.extract_strided_slice %241 {offsets = [2, 3, 0], sizes = [1, 1, 16], strides = [1, 1, 1]} : vector<4x4x16xf32> to vector<1x1x16xf32>
    %265 = vector.shape_cast %264 : vector<1x1x16xf32> to vector<1x16xf32>
    %266 = vector.extract_strided_slice %241 {offsets = [3, 0, 0], sizes = [1, 1, 16], strides = [1, 1, 1]} : vector<4x4x16xf32> to vector<1x1x16xf32>
    %267 = vector.shape_cast %266 : vector<1x1x16xf32> to vector<1x16xf32>
    %268 = vector.extract_strided_slice %241 {offsets = [3, 1, 0], sizes = [1, 1, 16], strides = [1, 1, 1]} : vector<4x4x16xf32> to vector<1x1x16xf32>
    %269 = vector.shape_cast %268 : vector<1x1x16xf32> to vector<1x16xf32>
    %270 = vector.extract_strided_slice %241 {offsets = [3, 2, 0], sizes = [1, 1, 16], strides = [1, 1, 1]} : vector<4x4x16xf32> to vector<1x1x16xf32>
    %271 = vector.shape_cast %270 : vector<1x1x16xf32> to vector<1x16xf32>
    %272 = vector.extract_strided_slice %241 {offsets = [3, 3, 0], sizes = [1, 1, 16], strides = [1, 1, 1]} : vector<4x4x16xf32> to vector<1x1x16xf32>
    %273 = vector.shape_cast %272 : vector<1x1x16xf32> to vector<1x16xf32>
    %274 = tpu.concatenate %243, %245, %247, %249, %251, %253, %255, %257, %259, %261, %263, %265, %267, %269, %271, %273 in 1 : vector<1x16xf32>, vector<1x16xf32>, vector<1x16xf32>, vector<1x16xf32>, vector<1x16xf32>, vector<1x16xf32>, vector<1x16xf32>, vector<1x16xf32>, vector<1x16xf32>, vector<1x16xf32>, vector<1x16xf32>, vector<1x16xf32>, vector<1x16xf32>, vector<1x16xf32>, vector<1x16xf32>, vector<1x16xf32> -> vector<1x256xf32>
    %275 = arith.truncf %274 : vector<1x256xf32> to vector<1x256xbf16>
    %c0_46 = arith.constant 0 : index
    %c0_47 = arith.constant 0 : index
    %276 = vector.load %arg14[%c0_46, %c0_47] : memref<256x32xbf16, #tpu.memory_space<vmem>>, vector<256x32xbf16>
    %cst_48 = arith.constant dense<0.000000e+00> : vector<1x32xf32>
    %277 = tpu.matmul %275, %276, %cst_48 {dimension_numbers = #tpu.dot_dimension_numbers<[1], [0], [0], [1], [0, 0, 1, 1], [], []>} : vector<1x256xbf16>, vector<256x32xbf16>, vector<1x32xf32> -> vector<1x32xf32>
    %c0_49 = arith.constant 0 : index
    %c0_50 = arith.constant 0 : index
    %278 = vector.load %arg15[%c0_49, %c0_50] : memref<1x32xf32, #tpu.memory_space<vmem>>, vector<1x32xf32>
    %279 = arith.addf %277, %278 : vector<1x32xf32>
    %cst_51 = arith.constant 0.000000e+00 : f32
    %280 = vector.broadcast %cst_51 : f32 to vector<1x32xf32>
    %281 = arith.maximumf %279, %280 : vector<1x32xf32>
    %282 = arith.truncf %281 : vector<1x32xf32> to vector<1x32xbf16>
    %c0_52 = arith.constant 0 : index
    %c0_53 = arith.constant 0 : index
    %283 = vector.load %arg16[%c0_52, %c0_53] : memref<32x16xbf16, #tpu.memory_space<vmem>>, vector<32x16xbf16>
    %cst_54 = arith.constant dense<0.000000e+00> : vector<1x16xf32>
    %284 = tpu.matmul %282, %283, %cst_54 {dimension_numbers = #tpu.dot_dimension_numbers<[1], [0], [0], [1], [0, 0, 1, 1], [], []>} : vector<1x32xbf16>, vector<32x16xbf16>, vector<1x16xf32> -> vector<1x16xf32>
    %c0_55 = arith.constant 0 : index
    %c0_56 = arith.constant 0 : index
    %285 = vector.load %arg17[%c0_55, %c0_56] : memref<1x16xf32, #tpu.memory_space<vmem>>, vector<1x16xf32>
    %286 = arith.addf %284, %285 : vector<1x16xf32>
    %cst_57 = arith.constant 0.000000e+00 : f32
    %287 = vector.broadcast %cst_57 : f32 to vector<1x16xf32>
    %288 = arith.maximumf %286, %287 : vector<1x16xf32>
    %289 = arith.truncf %288 : vector<1x16xf32> to vector<1x16xbf16>
    %c0_58 = arith.constant 0 : index
    %c0_59 = arith.constant 0 : index
    %290 = vector.load %arg18[%c0_58, %c0_59] : memref<16x128xbf16, #tpu.memory_space<vmem>>, vector<16x128xbf16>
    %cst_60 = arith.constant dense<0.000000e+00> : vector<1x128xf32>
    %291 = tpu.matmul %289, %290, %cst_60 {dimension_numbers = #tpu.dot_dimension_numbers<[1], [0], [0], [1], [0, 0, 1, 1], [], []>} : vector<1x16xbf16>, vector<16x128xbf16>, vector<1x128xf32> -> vector<1x128xf32>
    %c0_61 = arith.constant 0 : index
    %c0_62 = arith.constant 0 : index
    %292 = vector.load %arg19[%c0_61, %c0_62] : memref<1x128xf32, #tpu.memory_space<vmem>>, vector<1x128xf32>
    %293 = arith.addf %291, %292 : vector<1x128xf32>
    %294 = vector.shape_cast %293 : vector<1x128xf32> to vector<1x1x128xf32>
    %c0_63 = arith.constant 0 : index
    %c0_64 = arith.constant 0 : index
    %c0_65 = arith.constant 0 : index
    %295 = vector.load %arg20[%c0_63, %c0_64, %c0_65] : memref<1x1x128xf32, #tpu.memory_space<vmem>>, vector<1x1x128xf32>
    tpu.vector_store %arg20[%c0_63, %c0_64, %c0_65], %294 {strides = array<i32>} : memref<1x1x128xf32, #tpu.memory_space<vmem>>, vector<1x1x128xf32>,
    return
  }
  func.func @transform_0(%arg0: i32) -> (i32, i32, i32, i32) {
    %c0_i32 = arith.constant 0 : i32
    %c0_i32_0 = arith.constant 0 : i32
    %c0_i32_1 = arith.constant 0 : i32
    %c0_i32_2 = arith.constant 0 : i32
    return %arg0, %c0_i32, %c0_i32_0, %c0_i32_1 : i32, i32, i32, i32
  }
  func.func @transform_1(%arg0: i32) -> (i32, i32) {
    %c0_i32 = arith.constant 0 : i32
    %c0_i32_0 = arith.constant 0 : i32
    %c0_i32_1 = arith.constant 0 : i32
    return %c0_i32, %c0_i32_0 : i32, i32
  }
  func.func @transform_2(%arg0: i32) -> (i32, i32) {
    %c0_i32 = arith.constant 0 : i32
    %c0_i32_0 = arith.constant 0 : i32
    %c0_i32_1 = arith.constant 0 : i32
    return %c0_i32, %c0_i32_0 : i32, i32
  }
  func.func @transform_3(%arg0: i32) -> (i32, i32) {
    %c0_i32 = arith.constant 0 : i32
    %c0_i32_0 = arith.constant 0 : i32
    %c0_i32_1 = arith.constant 0 : i32
    return %c0_i32, %c0_i32_0 : i32, i32
  }
  func.func @transform_4(%arg0: i32) -> (i32, i32) {
    %c0_i32 = arith.constant 0 : i32
    %c0_i32_0 = arith.constant 0 : i32
    %c0_i32_1 = arith.constant 0 : i32
    return %c0_i32, %c0_i32_0 : i32, i32
  }
  func.func @transform_5(%arg0: i32) -> (i32, i32) {
    %c0_i32 = arith.constant 0 : i32
    %c0_i32_0 = arith.constant 0 : i32
    %c0_i32_1 = arith.constant 0 : i32
    return %c0_i32, %c0_i32_0 : i32, i32
  }
  func.func @transform_6(%arg0: i32) -> (i32, i32) {
    %c0_i32 = arith.constant 0 : i32
    %c0_i32_0 = arith.constant 0 : i32
    %c0_i32_1 = arith.constant 0 : i32
    return %c0_i32, %c0_i32_0 : i32, i32
  }
  func.func @transform_7(%arg0: i32) -> (i32, i32) {
    %c0_i32 = arith.constant 0 : i32
    %c0_i32_0 = arith.constant 0 : i32
    %c0_i32_1 = arith.constant 0 : i32
    return %c0_i32, %c0_i32_0 : i32, i32
  }
  func.func @transform_8(%arg0: i32) -> (i32, i32) {
    %c0_i32 = arith.constant 0 : i32
    %c0_i32_0 = arith.constant 0 : i32
    %c0_i32_1 = arith.constant 0 : i32
    return %c0_i32, %c0_i32_0 : i32, i32
  }
  func.func @transform_9(%arg0: i32) -> (i32, i32) {
    %c0_i32 = arith.constant 0 : i32
    %c0_i32_0 = arith.constant 0 : i32
    %c0_i32_1 = arith.constant 0 : i32
    return %c0_i32, %c0_i32_0 : i32, i32
  }
  func.func @transform_10(%arg0: i32) -> (i32, i32) {
    %c0_i32 = arith.constant 0 : i32
    %c0_i32_0 = arith.constant 0 : i32
    %c0_i32_1 = arith.constant 0 : i32
    return %c0_i32, %c0_i32_0 : i32, i32
  }
  func.func @transform_11(%arg0: i32) -> (i32, i32) {
    %c0_i32 = arith.constant 0 : i32
    %c0_i32_0 = arith.constant 0 : i32
    %c0_i32_1 = arith.constant 0 : i32
    return %c0_i32, %c0_i32_0 : i32, i32
  }
  func.func @transform_12(%arg0: i32) -> (i32, i32) {
    %c0_i32 = arith.constant 0 : i32
    %c0_i32_0 = arith.constant 0 : i32
    %c0_i32_1 = arith.constant 0 : i32
    return %c0_i32, %c0_i32_0 : i32, i32
  }
  func.func @transform_13(%arg0: i32) -> (i32, i32) {
    %c0_i32 = arith.constant 0 : i32
    %c0_i32_0 = arith.constant 0 : i32
    %c0_i32_1 = arith.constant 0 : i32
    return %c0_i32, %c0_i32_0 : i32, i32
  }
  func.func @transform_14(%arg0: i32) -> (i32, i32) {
    %c0_i32 = arith.constant 0 : i32
    %c0_i32_0 = arith.constant 0 : i32
    %c0_i32_1 = arith.constant 0 : i32
    return %c0_i32, %c0_i32_0 : i32, i32
  }
  func.func @transform_15(%arg0: i32) -> (i32, i32) {
    %c0_i32 = arith.constant 0 : i32
    %c0_i32_0 = arith.constant 0 : i32
    %c0_i32_1 = arith.constant 0 : i32
    return %c0_i32, %c0_i32_0 : i32, i32
  }
  func.func @transform_16(%arg0: i32) -> (i32, i32) {
    %c0_i32 = arith.constant 0 : i32
    %c0_i32_0 = arith.constant 0 : i32
    %c0_i32_1 = arith.constant 0 : i32
    return %c0_i32, %c0_i32_0 : i32, i32
  }
  func.func @transform_17(%arg0: i32) -> (i32, i32) {
    %c0_i32 = arith.constant 0 : i32
    %c0_i32_0 = arith.constant 0 : i32
    %c0_i32_1 = arith.constant 0 : i32
    return %c0_i32, %c0_i32_0 : i32, i32
  }
  func.func @transform_18(%arg0: i32) -> (i32, i32) {
    %c0_i32 = arith.constant 0 : i32
    %c0_i32_0 = arith.constant 0 : i32
    %c0_i32_1 = arith.constant 0 : i32
    return %c0_i32, %c0_i32_0 : i32, i32
  }
  func.func @transform_19(%arg0: i32) -> (i32, i32, i32) {
    %c0_i32 = arith.constant 0 : i32
    %c0_i32_0 = arith.constant 0 : i32
    %c0_i32_1 = arith.constant 0 : i32
    return %arg0, %c0_i32, %c0_i32_0 : i32, i32, i32
  }
}

</mosaic_0001>

<bundles_post_ra>
// kernel: your_code_net_forward.1
= control target key start
LH: loop header
LB: loop body
LE: loop exit
PB: predicated region body
PF: predicated region fallthrough
CT: control target
= control target key end

     0   :  { %s12721_s0 = inlined_call_operand.vmem [shape: f32[2,16,16,4], index: 0, kind: input, shape index: {}]   ;;  %s12722_s1 = inlined_call_operand.vmem [shape: bf16[36,8], index: 1, kind: input, shape index: {}]   ;;  %s12723_s2 = inlined_call_operand.vmem [shape: f32[1,8], index: 2, kind: input, shape index: {}]   ;;  %s12724_s3 = inlined_call_operand.vmem [shape: bf16[72,8], index: 3, kind: input, shape index: {}]   ;;  %s12725_s4 = inlined_call_operand.vmem [shape: f32[1,8], index: 4, kind: input, shape index: {}]   ;;  %s12726_s5 = inlined_call_operand.vmem [shape: bf16[8,8], index: 5, kind: input, shape index: {}]   ;;  %s12727_s6 = inlined_call_operand.vmem [shape: f32[1,8], index: 6, kind: input, shape index: {}]   ;;  %s12728_s7 = inlined_call_operand.vmem [shape: bf16[72,16], index: 7, kind: input, shape index: {}]   ;;  %s12729_s8 = inlined_call_operand.vmem [shape: f32[1,16], index: 8, kind: input, shape index: {}]   ;;  %s12730_s9 = inlined_call_operand.vmem [shape: bf16[144,16], index: 9, kind: input, shape index: {}]   ;;  %s12731_s10 = inlined_call_operand.vmem [shape: f32[1,16], index: 10, kind: input, shape index: {}]   ;;  %s12732_s11 = inlined_call_operand.vmem [shape: bf16[16,16], index: 11, kind: input, shape index: {}]   ;;  %s12733_s12 = inlined_call_operand.vmem [shape: f32[1,16], index: 12, kind: input, shape index: {}]   ;;  %s12734_s13 = inlined_call_operand.vmem [shape: bf16[256,32], index: 13, kind: input, shape index: {}]   ;;  %s12735_s14 = inlined_call_operand.vmem [shape: f32[1,32], index: 14, kind: input, shape index: {}]   ;;  %s12736_s15 = inlined_call_operand.vmem [shape: bf16[32,16], index: 15, kind: input, shape index: {}]   ;;  %s12737_s16 = inlined_call_operand.vmem [shape: f32[1,16], index: 16, kind: input, shape index: {}]   ;;  %s12738_s17 = inlined_call_operand.vmem [shape: bf16[16,128], index: 17, kind: input, shape index: {}]   ;;  %s12739_s18 = inlined_call_operand.vmem [shape: f32[1,128], index: 18, kind: input, shape index: {}]   ;;  %s12740_s19 = inlined_call_operand.hbm [shape: f32[2,1,128], index: 19, kind: output, shape index: {}]  }
   0x1   :  { %12796 = sst [smem:[#allocation17_spill]] %s12721_s0 }
   0x2   :  { %12797 = sst [smem:[#allocation18_spill]] %s12722_s1 }
   0x3   :  { %12798 = sst [smem:[#allocation19_spill]] %s12723_s2 }
   0x4   :  { %12799 = sst [smem:[#allocation20_spill]] %s12724_s3 }
   0x5   :  { %12800 = sst [smem:[#allocation21_spill]] %s12725_s4 }
   0x6   :  { %12801 = sst [smem:[#allocation22_spill]] %s12726_s5 }
   0x7   :  { %12802 = sst [smem:[#allocation23_spill]] %s12740_s19 }
   0x8   :  { %24 = vsyncpa [#allocation3], 0 }
   0x9   :  { %26 = vsyncpa [#allocation3 + $0x1], 0  ;;  %s9166_s0 = smov 0   ;;  %s9168_s30 = smov 0  }
   0xa   :  { %s9170_s20 = smov 0   ;;  %s9172_s21 = smov 0  }
   0xb LB: > { %12803 = sst [smem:[#allocation5_spill]] %s9033_s0  ;;  %s9187_s1 = sadd.s32 4294967295, %s9045_s21   ;;  %s9045_s21 = sphi %s9172_s21, %s12885_s21   ;;  %s9041_s20 = sphi %s9170_s20, %s12887_s20   ;;  %s9037_s30 = sphi %s9168_s30, %s12889_s30   ;;  %s9033_s0 = sphi %s9166_s0, %s12888_s0  }
   0xc   : > { %12804 = sst [smem:[#allocation6_spill]] %s9041_s20  ;;  %s6862_s22 = sadd.s32 4294967294, %s9045_s21  }
   0xd   : > { %12805 = sst [smem:[#allocation7_spill]] %s9045_s21  ;;  %s9191_s2 = sadd.s32 1, %s9045_s21  }
   0xe   : > { %12806 = sst [smem:[#allocation8_spill]] %s9191_s2  ;;  %s443_s23 = sadd.s32 1, %s9041_s20 }
   0xf   : > { %s440_s24 = ssub.s32 %s9045_s21, %s9191_s2  ;;  %p453_p0 = scmp.ne.s32.totalorder %s9041_s20, %s9037_s30 }
  0x10   : > { %p441_p1 = scmp.eq.s32.totalorder %s440_s24, 0  ;;  %p454_p2 = scmp.eq.s32.totalorder %s9187_s1, 1 }
  0x11   : > { %p459_p3 = scmp.ne.s32.totalorder %s9037_s30, %s9033_s0  ;;  %p460_p4 = scmp.eq.s32.totalorder %s6862_s22, 1 }
  0x12   : > { %s9202_s25 = scalar_select %p441_p1, %s9041_s20, %s443_s23  }
  0x13   : > { %p9204_p5 = por %p454_p2, %p453_p0  ;;  %p9208_p6 = por %p460_p4, %p459_p3 }
  0x14   : > { %12807 = sst [smem:[#allocation9_spill]] %s9202_s25  ;;  %p6865_p7 = scmp.ge.s32.totalorder %s9045_s21, 1 }
  0x15   : > { %s12808_s3 = scalar_select %p9204_p5, 1, 0 }
  0x16   : > { %s12810_s26 = scalar_select %p9208_p6, 1, 0 }
  0x17   : > { %12809 = sst [smem:[#allocation10_spill]] %s12808_s3  ;;  %p540_p8 = scmp.lt.s32.totalorder %s9045_s21, 3 }
  0x18   : > { %12811 = sst [smem:[#allocation11_spill]] %s12810_s26 }
  0x19   : > { %p541_p9 = pnand %p6865_p7, %p540_p8 }
  0x1b   : > { %544 = sbr.rel (%p541_p9) target bundleno = 3029 (0xbd5), region = 96 }
  0x22   : > { %vm666_vm0 = vcmask 1040384   ;;  %v12764_v0 = vmov 0.0   ;;  %p595_p10 = scmp.lt.s32.totalorder %s9187_s1, 1  ;;  %vm913_vm1 = vcmask 1045504   ;;  %vm832_vm2 = vcmask 1046528   ;;  %s12814_s23 = sld [smem:[#allocation17_spill]] }
  0x23   : > { %v9215_v1 = vrot.slane %v12764_v0, 7  ;;  %s12744_s29 = smov 12   ;;  %s12761_s22 = smov 20   ;;  %vm2130_vm3 = vcmask 1041408   ;;  %vm1774_vm4 = vcmask 31744   ;;  %vm1807_vm5 = vcmask 64512  }
  0x24   : > { %s596_s27 = scalar_select %p595_p10, %s9187_s1, 1  ;;  %vm1840_vm6 = vcmask 97280   ;;  %vm1873_vm7 = vcmask 130048   ;;  %vm1906_vm8 = vcmask 162816   ;;  %vm1939_vm9 = vcmask 195584  }
  0x25   : > { %v9220_v2 = vsel %vm666_vm0, 0.0, %v9215_v1  ;;  %v9224_v3 = vsel %vm666_vm0, %v9215_v1, 0.0  ;;  %v915_v4 = vrot.slane %v9215_v1, 2  ;;  %v834_v5 = vrot.slane %v9215_v1, 1  ;;  %s12752_s25 = smov 28   ;;  %s12821_s20 = smov 32  }
  0x26   : > { %12812 = vst [vmem:[#allocation12_spill] sm:$0xff] %v9220_v2  ;;  %12813 = vst [vmem:[#allocation13_spill] sm:$0xff] %v9224_v3  ;;  %v12766_v6 = vrot.slane %v9220_v2, 2  ;;  %v12767_v7 = vrot.slane %v9224_v3, 2  ;;  %v12768_v8 = vrot.slane %v9220_v2, 1  ;;  %v12769_v9 = vrot.slane %v9224_v3, 1 }
  0x27   : > { %s6981_s28 = sshll.u32 %s596_s27, 8  ;;  %s12746_s27 = smov 8   ;;  %vm1972_vm10 = vcmask 228352   ;;  %vm2005_vm11 = vcmask 261120   ;;  %vm2081_vm12 = vcmask 293888   ;;  %vm3814_vm13 = vcmask 1043456  }
  0x28   : > { %v916_v10 = vsel %vm913_vm1, %v12766_v6, %v915_v4  ;;  %v918_v11 = vsel %vm913_vm1, %v915_v4, %v12767_v7  ;;  %v835_v12 = vsel %vm832_vm2, %v12768_v8, %v834_v5  ;;  %v837_v13 = vsel %vm832_vm2, %v834_v5, %v12769_v9  ;;  %s9248_s24 = scalar_lea.vmem %s12814_s23, %s6981_s28  ;;  %s12748_s28 = smov 4  }
  0x29   : > { %v9250_v14 = vpack.i.bf16 %v918_v11, %v916_v10  ;;  %v9252_v15 = vpack.i.bf16 %v837_v13, %v835_v12  ;;  %v603_v16 = vld [vmem:[%s9248_s24 + $0x10] sm:$0xff]  ;;  %v604_v17 = vld [vmem:[%s9248_s24 + $0x18] sm:$0xff]  ;;  %v601_v18 = vld [vmem:[%s9248_s24] sm:$0xff]  ;;  %s12750_s23 = smov 24   ;;  %s12822_s2 = smov 16   ;;  %vm3574_vm14 = vcmask 326656  }
  0x2a   : > { %v672_v19 = vrot.slane %v603_v16, 7  ;;  %v673_v20 = vrot.slane %v604_v17, 7  ;;  %v602_v21 = vld [vmem:[%s9248_s24 + $0x8] sm:$0xff]  ;;  %v669_v22 = vrot.slane %v601_v18, 7  ;;  %v605_v23 = vld [vmem:[%s9248_s24 + $0x20] sm:$0xff]  ;;  %s12775_s26 = smov 64  }
  0x2b   : > { %v606_v24 = vld [vmem:[%s9248_s24 + $0x28] sm:$0xff]  ;;  %7303 = vrot.lane.b32.xlu1 %v9250_v14, %s12746_s27  ;;  %7298 = vrot.lane.b32.xlu0 %v9252_v15, %s12748_s28  ;;  %v670_v25 = vrot.slane %v602_v21, 7  ;;  %v675_v26 = vrot.slane %v605_v23, 7  ;;  %v607_v21 = vld [vmem:[%s9248_s24 + $0x30] sm:$0xff]  ;;  %s12835_s0 = sld [smem:[#allocation20_spill]]  ;;  %s12837_s21 = smov 56  }
  0x2c   : > { %v676_v27 = vrot.slane %v606_v24, 7  ;;  %v9265_v28 = vsel %vm666_vm0, %v672_v19, %v673_v20  ;;  %v9268_v29 = vsel %vm666_vm0, 0.0, %v672_v19  ;;  %v9271_v30 = vsel %vm666_vm0, 0.0, %v669_v22  ;;  %s12861_s5 = sld [smem:[#allocation22_spill]]  ;;  %s12865_s4 = sld [smem:[#allocation21_spill]] }
  0x2d   : > { %v785_v31 = vsel %vm666_vm0, %v673_v20, 0.0  ;;  %v7312_v32 = vpack.i.bf16 %v9265_v28, %v9268_v29  ;;  %v9277_v33 = vsel %vm666_vm0, %v669_v22, %v670_v25  ;;  %v784_v34 = vsel %vm666_vm0, %v670_v25, 0.0  ;;  %v608_v22 = vld [vmem:[%s9248_s24 + $0x38] sm:$0xff] }
  0x2e   : > { %v919_v35 = vrot.slane %v9271_v30, 2  ;;  %v7307_v36 = vpack.i.bf16 %v9277_v33, %v9271_v30  ;;  %v920_v37 = vrot.slane %v9277_v33, 2  ;;  %v922_v38 = vrot.slane %v784_v34, 2 }
  0x2f   : > { %v838_v39 = vrot.slane %v9271_v30, 1  ;;  %7313 = vrot.lane.b32.xlu1 %v7312_v32, %s12744_s29  ;;  %v839_v40 = vrot.slane %v9277_v33, 1  ;;  %v841_v41 = vrot.slane %v784_v34, 1  ;;  %v843_v42 = vrot.slane %v9268_v29, 1 }
  0x30   : > { %v844_v43 = vrot.slane %v9265_v28, 1  ;;  %7308 = vrot.lane.b32.xlu0 %v7307_v36, %s12744_s29  ;;  %v921_v44 = vsel %vm913_vm1, %v919_v35, %v920_v37  ;;  %v923_v45 = vsel %vm913_vm1, %v920_v37, %v922_v38  ;;  %v846_v46 = vrot.slane %v785_v31, 1  ;;  %s12815_s29 = sld [smem:[#allocation18_spill]]  ;;  %v609_v36 = vld [vmem:[%s9248_s24 + $0x40] sm:$0xff] }
  0x31   : > { %v924_v47 = vrot.slane %v9268_v29, 2  ;;  %v7322_v48 = vpack.i.bf16 %v923_v45, %v921_v44  ;;  %v840_v49 = vsel %vm832_vm2, %v838_v39, %v839_v40  ;;  %v842_v50 = vsel %vm832_vm2, %v839_v40, %v841_v41  ;;  %v610_v41 = vld [vmem:[%s9248_s24 + $0x48] sm:$0xff]  ;;  %s12836_s19 = smov %s12835_s0 }
  0x32   : > { %v845_v51 = vsel %vm832_vm2, %v843_v42, %v844_v43  ;;  %v7317_v52 = vpack.i.bf16 %v842_v50, %v840_v49  ;;  %v847_v53 = vsel %vm832_vm2, %v844_v43, %v846_v46  ;;  %v925_v54 = vrot.slane %v9265_v28, 2 }
  0x33   : > { %7323 = vrot.lane.b32.xlu1 %v7322_v48, %s12746_s27  ;;  %v7332_v55 = vpack.i.bf16 %v847_v53, %v845_v51  ;;  %v927_v56 = vrot.slane %v785_v31, 2  ;;  %v9302_v58 = vsel %vm666_vm0, 0.0, %v675_v26  ;;  %v9306_v60 = vsel %vm666_vm0, %v675_v26, %v676_v27  ;;  %s12759_s27 = smov 16  }
  0x34   : > { %7318 = vrot.lane.b32.xlu0 %v7317_v52, %s12748_s28  ;;  %v926_v57 = vsel %vm913_vm1, %v924_v47, %v925_v54  ;;  %v786_v61 = vsel %vm666_vm0, %v676_v27, 0.0  ;;  %v848_v4 = vrot.slane %v9302_v58, 1  ;;  %v849_v5 = vrot.slane %v9306_v60, 1  ;;  %s12816_s28 = smov 4  }
  0x35   : > { %v928_v59 = vsel %vm913_vm1, %v925_v54, %v927_v56  ;;  %v851_v10 = vrot.slane %v786_v61, 1  ;;  %v7352_v12 = vpack.i.bf16 %v9306_v60, %v9302_v58  ;;  %v929_v18 = vrot.slane %v9302_v58, 2 }
  0x36   : > { %v8907_v62 = vld [vmem:[%s12815_s29] sm:$0xff]   ;;  %v7342_v63 = vpack.i.bf16 %v928_v59, %v926_v57  ;;  %v8908_v11 = vld [vmem:[%s12815_s29 + $0x8] sm:$0xff]   ;;  %v850_v13 = vsel %vm832_vm2, %v848_v4, %v849_v5  ;;  %v930_v19 = vrot.slane %v9306_v60, 2  ;;  %v932_v20 = vrot.slane %v786_v61, 2 }
  0x37   : > { %7333 = vrot.lane.b32.xlu1 %v7332_v55, %s12759_s27  ;;  %7080 = vmatprep.subr.bf16.mxu0 %v8907_v62  ;;  %v852_v16 = vsel %vm832_vm2, %v849_v5, %v851_v10  ;;  %v678_v23 = vrot.slane %v607_v21, 7  ;;  %v679_v26 = vrot.slane %v608_v22, 7  ;;  %v681_v44 = vrot.slane %v609_v36, 7 }
  0x38   : > { %7328 = vrot.lane.b32.xlu0 %v7317_v52, %s12759_s27  ;;  %7081 = vmatpush3.bf16.msra.mxu0 %v8907_v62  ;;  %v7362_v17 = vpack.i.bf16 %v852_v16, %v850_v13  ;;  %v931_v24 = vsel %vm913_vm1, %v929_v18, %v930_v19  ;;  %v933_v25 = vsel %vm913_vm1, %v930_v19, %v932_v20  ;;  %v682_v47 = vrot.slane %v610_v41, 7  ;;  %v612_v13 = vld [vmem:[%s9248_s24 + $0x58] sm:$0xff] }
  0x39   : > { %7082 = vmatprep.subr.bf16.mxu0 %v8908_v11  ;;  %v7377_v27 = vpack.i.bf16 %v933_v25, %v931_v24  ;;  %v9338_v31 = vsel %vm666_vm0, 0.0, %v678_v23  ;;  %v787_v34 = vsel %vm666_vm0, %v679_v26, 0.0  ;;  %v9363_v51 = vsel %vm666_vm0, 0.0, %v681_v44 }
  0x3a   : > { %v853_v35 = vrot.slane %v9338_v31, 1  ;;  %v856_v38 = vrot.slane %v787_v34, 1  ;;  %v934_v39 = vrot.slane %v9338_v31, 2  ;;  %v937_v43 = vrot.slane %v787_v34, 2  ;;  %v613_v34 = vld [vmem:[%s9248_s24 + $0x60] sm:$0xff] }
  0x3b   : > { %7343 = vrot.lane.b32.xlu1 %v7342_v63, %s12761_s22  ;;  %v9366_v52 = vsel %vm666_vm0, %v681_v44, %v682_v47  ;;  %v788_v53 = vsel %vm666_vm0, %v682_v47, 0.0  ;;  %v939_v5 = vrot.slane %v9363_v51, 2  ;;  %v685_v20 = vrot.slane %v612_v13, 7 }
  0x3c   : > { %7338 = vrot.lane.b32.xlu0 %v7322_v48, %s12761_s22  ;;  %7083 = vmatpush3.bf16.msra.mxu0 %v8908_v11  ;;  %v859_v56 = vrot.slane %v9366_v52, 1  ;;  %v861_v57 = vrot.slane %v788_v53, 1  ;;  %v7432_v59 = vpack.i.bf16 %v9366_v52, %v9363_v51  ;;  %v940_v10 = vrot.slane %v9366_v52, 2 }
  0x3d   : > { %v942_v11 = vrot.slane %v788_v53, 2  ;;  %v789_v24 = vsel %vm666_vm0, %v685_v20, 0.0  ;;  %vm3607_vm15 = vcmask 392192  }
  0x3e   : > { %v862_v62 = vsel %vm832_vm2, %v859_v56, %v861_v57  ;;  %v947_v41 = vrot.slane %v789_v24, 2 }
  0x3f   : > { %7353 = vrot.lane.b32.xlu1 %v7352_v12, %s12750_s23  ;;  %v943_v18 = vsel %vm913_vm1, %v940_v10, %v942_v11 }
  0x40   : > { %7348 = vrot.lane.b32.xlu0 %v7312_v32, %s12750_s23  ;;  %s12754_s23 = smov 32   ;;  %v9341_v32 = vsel %vm666_vm0, %v678_v23, %v679_v26 }
  0x41   : > { %v854_v37 = vrot.slane %v9341_v32, 1  ;;  %v935_v40 = vrot.slane %v9341_v32, 2  ;;  %v7402_v42 = vpack.i.bf16 %v9341_v32, %v9338_v31 }
  0x43   : > { %7363 = vrot.lane.b32.xlu1 %v7362_v17, %s12752_s25  ;;  %v855_v45 = vsel %vm832_vm2, %v853_v35, %v854_v37  ;;  %v857_v46 = vsel %vm832_vm2, %v854_v37, %v856_v38  ;;  %v936_v49 = vsel %vm913_vm1, %v934_v39, %v935_v40  ;;  %v938_v50 = vsel %vm913_vm1, %v935_v40, %v937_v43  ;;  %v614_v35 = vld [vmem:[%s9248_s24 + $0x68] sm:$0xff] }
  0x44   : > { %7358 = vrot.lane.b32.xlu0 %v7332_v55, %s12752_s25  ;;  %s12817_s25 = smov 8   ;;  %v7412_v48 = vpack.i.bf16 %v857_v46, %v855_v45  ;;  %v7422_v54 = vpack.i.bf16 %v938_v50, %v936_v49  ;;  %v688_v43 = vrot.slane %v614_v35, 7 }
  0x46   : > { %v790_v49 = vsel %vm666_vm0, %v688_v43, 0.0 }
  0x47   : > { %7373 = vrot.lane.b32.xlu1 %v7332_v55, %s12816_s28  ;;  %v858_v55 = vrot.slane %v9363_v51, 1 }
  0x48   : > { %7368 = vrot.lane.b32.xlu0 %v7342_v63, %s12754_s23 }
  0x49   : > { %v860_v61 = vsel %vm832_vm2, %v858_v55, %v859_v56  ;;  %v871_v55 = vrot.slane %v790_v49, 1 }
  0x4a   : > { %v7442_v4 = vpack.i.bf16 %v862_v62, %v860_v61 }
  0x4b   : > { %7383 = vrot.lane.b32.xlu1 %v7362_v17, %s12816_s28 }
  0x4c   : > { %7378 = vrot.lane.b32.xlu0 %v7377_v27, %s12754_s23  ;;  %s12818_s23 = smov 12  }
  0x4f   : > { %7393 = vrot.lane.b32.xlu1 %v7377_v27, %s12817_s25 }
  0x50   : > { %7388 = vrot.lane.b32.xlu0 %v7342_v63, %s12817_s25  ;;  %v8909_v63 = vld [vmem:[%s12815_s29 + $0x10] ss:$0 sps:$4 sm:$0x33]   ;;  %s12823_s29 = smov 20  }
  0x51   : > { %7236 = vmatprep.subr.msk.bf16.mxu0 %vm2130_vm3, %v8909_v63  ;;  %v2132_v16 = vsel %vm2130_vm3, %v8909_v63, 0 }
  0x52   : > { %7085 = vmatpush3.bf16.msra.mxu0 %v2132_v16 }
  0x53   : > { %7403 = vrot.lane.b32.xlu1 %v7402_v42, %s12818_s23 }
  0x54   : > { %7398 = vrot.lane.b32.xlu0 %v7352_v12, %s12818_s23  ;;  %v611_v12 = vld [vmem:[%s9248_s24 + $0x50] sm:$0xff] }
  0x55   : > { %v684_v19 = vrot.slane %v611_v12, 7 }
  0x57   : > { %7413 = vrot.lane.b32.xlu1 %v7412_v48, %s12759_s27  ;;  %v9397_v22 = vsel %vm666_vm0, %v684_v19, %v685_v20  ;;  %v9400_v23 = vsel %vm666_vm0, 0.0, %v684_v19 }
  0x58   : > { %7408 = vrot.lane.b32.xlu0 %v7362_v17, %s12759_s27  ;;  %s12819_s27 = smov 24   ;;  %v941_v17 = vsel %vm913_vm1, %v939_v5, %v940_v10  ;;  %v863_v25 = vrot.slane %v9400_v23, 1  ;;  %v864_v26 = vrot.slane %v9397_v22, 1  ;;  %v7482_v36 = vpack.i.bf16 %v9397_v22, %v9400_v23  ;;  %v615_v5 = vld [vmem:[%s9248_s24 + $0x70] sm:$0xff]  ;;  %v616_v10 = vld [vmem:[%s9248_s24 + $0x78] sm:$0xff] }
  0x59   : > { %v7457_v21 = vpack.i.bf16 %v943_v18, %v941_v17  ;;  %v944_v37 = vrot.slane %v9400_v23, 2  ;;  %v945_v40 = vrot.slane %v9397_v22, 2  ;;  %v690_v13 = vrot.slane %v615_v5, 7 }
  0x5a   : > { %v865_v38 = vsel %vm832_vm2, %v863_v25, %v864_v26  ;;  %v691_v16 = vrot.slane %v616_v10, 7 }
  0x5b   : > { %7423 = vrot.lane.b32.xlu1 %v7422_v54, %s12761_s22  ;;  %v946_v45 = vsel %vm913_vm1, %v944_v37, %v945_v40  ;;  %v948_v46 = vsel %vm913_vm1, %v945_v40, %v947_v41  ;;  %v9454_v19 = vsel %vm666_vm0, 0.0, %v690_v13 }
  0x5c   : > { %7418 = vrot.lane.b32.xlu0 %v7377_v27, %s12761_s22  ;;  %s12820_s22 = smov 28   ;;  %v866_v27 = vrot.slane %v789_v24, 1  ;;  %v7502_v50 = vpack.i.bf16 %v948_v46, %v946_v45  ;;  %v9451_v18 = vsel %vm666_vm0, %v690_v13, %v691_v16  ;;  %v791_v20 = vsel %vm666_vm0, %v691_v16, 0.0 }
  0x5d   : > { %v874_v24 = vrot.slane %v9451_v18, 1  ;;  %v876_v25 = vrot.slane %v791_v20, 1  ;;  %v954_v35 = vrot.slane %v9454_v19, 2 }
  0x5e   : > { %v867_v39 = vsel %vm832_vm2, %v864_v26, %v866_v27  ;;  %v617_v26 = vld [vmem:[%s9248_s24 + $0x80] sm:$0xff]  ;;  %v618_v27 = vld [vmem:[%s9248_s24 + $0x88] sm:$0xff] }
  0x5f   : > { %7433 = vrot.lane.b32.xlu1 %v7432_v59, %s12819_s27  ;;  %v7492_v44 = vpack.i.bf16 %v867_v39, %v865_v38  ;;  %v877_v37 = vsel %vm832_vm2, %v874_v24, %v876_v25  ;;  %v955_v38 = vrot.slane %v9451_v18, 2  ;;  %v957_v39 = vrot.slane %v791_v20, 2 }
  0x60   : > { %7428 = vrot.lane.b32.xlu0 %v7402_v42, %s12819_s27  ;;  %v687_v42 = vrot.slane %v613_v34, 7  ;;  %v7562_v34 = vpack.i.bf16 %v9451_v18, %v9454_v19  ;;  %v693_v40 = vrot.slane %v617_v26, 7  ;;  %v694_v41 = vrot.slane %v618_v27, 7 }
  0x62   : > { %v9422_v47 = vsel %vm666_vm0, %v687_v42, %v688_v43  ;;  %v956_v43 = vsel %vm913_vm1, %v954_v35, %v955_v38  ;;  %v9476_v45 = vsel %vm666_vm0, %v693_v40, %v694_v41  ;;  %v9479_v46 = vsel %vm666_vm0, 0.0, %v693_v40 }
  0x63   : > { %7443 = vrot.lane.b32.xlu1 %v7442_v4, %s12820_s22  ;;  %v950_v63 = vrot.slane %v9422_v47, 2  ;;  %v959_v13 = vrot.slane %v9479_v46, 2  ;;  %v960_v16 = vrot.slane %v9476_v45, 2 }
  0x64   : > { %7438 = vrot.lane.b32.xlu0 %v7412_v48, %s12820_s22 }
  0x65   : > { %v961_v35 = vsel %vm913_vm1, %v959_v13, %v960_v16 }
  0x67   : > { %7453 = vrot.lane.b32.xlu1 %v7412_v48, %s12816_s28  ;;  %v9425_v48 = vsel %vm666_vm0, 0.0, %v687_v42 }
  0x68   : > { %7448 = vrot.lane.b32.xlu0 %v7422_v54, %s12821_s20  ;;  %v868_v53 = vrot.slane %v9425_v48, 1  ;;  %v7512_v56 = vpack.i.bf16 %v9422_v47, %v9425_v48  ;;  %v949_v62 = vrot.slane %v9425_v48, 2 }
  0x6a   : > { %v951_v11 = vsel %vm913_vm1, %v949_v62, %v950_v63 }
  0x6b   : > { %7463 = vrot.lane.b32.xlu1 %v7442_v4, %s12816_s28 }
  0x6c   : > { %7458 = vrot.lane.b32.xlu0 %v7457_v21, %s12821_s20 }
  0x6f   : > { %7473 = vrot.lane.b32.xlu1 %v7457_v21, %s12817_s25 }
  0x70   : > { %7468 = vrot.lane.b32.xlu0 %v7422_v54, %s12817_s25  ;;  %v869_v54 = vrot.slane %v9422_v47, 1 }
  0x72   : > { %v870_v57 = vsel %vm832_vm2, %v868_v53, %v869_v54  ;;  %v878_v53 = vrot.slane %v9479_v46, 1 }
  0x73   : > { %7483 = vrot.lane.b32.xlu1 %v7482_v36, %s12818_s23 }
  0x74   : > { %7478 = vrot.lane.b32.xlu0 %v7432_v59, %s12818_s23  ;;  %v872_v59 = vsel %vm832_vm2, %v869_v54, %v871_v55  ;;  %v879_v54 = vrot.slane %v9476_v45, 1 }
  0x75   : > { %v7522_v61 = vpack.i.bf16 %v872_v59, %v870_v57 }
  0x76   : > { %v880_v57 = vsel %vm832_vm2, %v878_v53, %v879_v54 }
  0x77   : > { %7493 = vrot.lane.b32.xlu1 %v7492_v44, %s12822_s2 }
  0x78   : > { %7488 = vrot.lane.b32.xlu0 %v7442_v4, %s12822_s2  ;;  %v952_v4 = vrot.slane %v790_v49, 2  ;;  %v792_v49 = vsel %vm666_vm0, %v694_v41, 0.0 }
  0x79   : > { %v881_v55 = vrot.slane %v792_v49, 1 }
  0x7a   : > { %v953_v12 = vsel %vm913_vm1, %v950_v63, %v952_v4  ;;  %v620_v4 = vld [vmem:[%s9248_s24 + $0x98] sm:$0xff] }
  0x7b   : > { %7503 = vrot.lane.b32.xlu1 %v7502_v50, %s12823_s29  ;;  %v7537_v17 = vpack.i.bf16 %v953_v12, %v951_v11  ;;  %v882_v59 = vsel %vm832_vm2, %v879_v54, %v881_v55  ;;  %v697_v11 = vrot.slane %v620_v4, 7 }
  0x7c   : > { %7498 = vrot.lane.b32.xlu0 %v7457_v21, %s12823_s29  ;;  %v873_v21 = vrot.slane %v9454_v19, 1  ;;  %v9505_v5 = vpack.i.bf16 %v882_v59, %v880_v57 }
  0x7d   : > { %v793_v27 = vsel %vm666_vm0, %v697_v11, 0.0 }
  0x7e   : > { %v967_v54 = vrot.slane %v793_v27, 2 }
  0x7f   : > { %7513 = vrot.lane.b32.xlu1 %v7512_v56, %s12819_s27 }
  0x80   : > { %7508 = vrot.lane.b32.xlu0 %v7482_v36, %s12819_s27  ;;  %v875_v36 = vsel %vm832_vm2, %v873_v21, %v874_v24  ;;  %v621_v21 = vld [vmem:[%s9248_s24 + $0xa0] sm:$0xff]  ;;  %v622_v24 = vld [vmem:[%s9248_s24 + $0xa8] sm:$0xff] }
  0x81   : > { %v7572_v42 = vpack.i.bf16 %v877_v37, %v875_v36  ;;  %v699_v37 = vrot.slane %v621_v21, 7 }
  0x83   : > { %7523 = vrot.lane.b32.xlu1 %v7522_v61, %s12820_s22 }
  0x84   : > { %7518 = vrot.lane.b32.xlu0 %v7492_v44, %s12820_s22 }
  0x87   : > { %7533 = vrot.lane.b32.xlu1 %v7492_v44, %s12816_s28  ;;  %v958_v44 = vsel %vm913_vm1, %v955_v38, %v957_v39  ;;  %v700_v38 = vrot.slane %v622_v24, 7 }
  0x88   : > { %7528 = vrot.lane.b32.xlu0 %v7502_v50, %s12821_s20 }
  0x89   : > { %v9542_v57 = vsel %vm666_vm0, %v699_v37, %v700_v38  ;;  %v9558_v13 = vsel %vm666_vm0, %v700_v38, 0.0 }
  0x8b   : > { %7543 = vrot.lane.b32.xlu1 %v7522_v61, %s12816_s28 }
  0x8c   : > { %7538 = vrot.lane.b32.xlu0 %v7537_v17, %s12821_s20 }
  0x8f   : > { %7553 = vrot.lane.b32.xlu1 %v7537_v17, %s12817_s25 }
  0x90   : > { %7548 = vrot.lane.b32.xlu0 %v7502_v50, %s12817_s25  ;;  %v9483_v50 = vpack.i.bf16 %v958_v44, %v956_v43  ;;  %v886_v43 = vrot.slane %v793_v27, 1 }
  0x93   : > { %7563 = vrot.lane.b32.xlu1 %v7562_v34, %s12818_s23 }
  0x94   : > { %7558 = vrot.lane.b32.xlu0 %v7512_v56, %s12818_s23  ;;  %v9492_v56 = vpack.i.bf16 %v9476_v45, %v9479_v46 }
  0x97   : > { %7573 = vrot.lane.b32.xlu1 %v7572_v42, %s12822_s2 }
  0x98   : > { %7568 = vrot.lane.b32.xlu0 %v7522_v61, %s12822_s2  ;;  %v619_v61 = vld [vmem:[%s9248_s24 + $0x90] sm:$0xff] }
  0x99   : > { %v696_v10 = vrot.slane %v619_v61, 7 }
  0x9b   : > { %7583 = vrot.lane.b32.xlu1 %v9483_v50, %s12823_s29  ;;  %v9519_v25 = vsel %vm666_vm0, 0.0, %v696_v10  ;;  %v9523_v26 = vsel %vm666_vm0, %v696_v10, %v697_v11 }
  0x9c   : > { %7578 = vrot.lane.b32.xlu0 %v7537_v17, %s12823_s29  ;;  %v962_v17 = vrot.slane %v792_v49, 2  ;;  %v883_v40 = vrot.slane %v9519_v25, 1  ;;  %v884_v41 = vrot.slane %v9523_v26, 1  ;;  %v964_v44 = vrot.slane %v9519_v25, 2 }
  0x9d   : > { %v9498_v62 = vpop.permute.xlu1 %7303  ;;  %v9500_v63 = vpop.permute.xlu0 %7298  ;;  %v965_v49 = vrot.slane %v9523_v26, 2  ;;  %v9570_v38 = vpack.i.bf16 %v9523_v26, %v9519_v25 }
  0x9e   : > { %v963_v36 = vsel %vm913_vm1, %v960_v16, %v962_v17  ;;  %v885_v61 = vsel %vm832_vm2, %v883_v40, %v884_v41  ;;  %v887_v4 = vsel %vm832_vm2, %v884_v41, %v886_v43  ;;  %v889_v17 = vrot.slane %v9542_v57, 1 }
  0x9f   : > { %7593 = vrot.lane.b32.xlu1 %v9492_v56, %s12819_s27  ;;  %v9537_v53 = vpack.i.bf16 %v963_v36, %v961_v35  ;;  %v966_v10 = vsel %vm913_vm1, %v964_v44, %v965_v49  ;;  %v968_v11 = vsel %vm913_vm1, %v965_v49, %v967_v54  ;;  %v7301_v21 = vunpack.i.h.bf16 %v9500_v63 }
  0xa0   : > { %7588 = vrot.lane.b32.xlu0 %v7562_v34, %s12819_s27  ;;  %v7300_v24 = vunpack.i.l.bf16 %v9500_v63  ;;  %v9572_v40 = vpack.i.bf16 %v887_v4, %v885_v61  ;;  %v9576_v63 = vpack.i.bf16 %v968_v11, %v966_v10  ;;  %v891_v41 = vrot.slane %v9558_v13, 1  ;;  %v9592_v61 = vld [vmem:[%s9248_s24 + $0xb0] sm:$0xff]  ;;  %v9595_v4 = vld [vmem:[%s9248_s24 + $0xb8] sm:$0xff] }
  0xa1   : > { %v9508_v12 = vpop.permute.xlu1 %7313  ;;  %v7306_v43 = vunpack.i.h.bf16 %v9498_v62  ;;  %v7305_v44 = vunpack.i.l.bf16 %v9498_v62  ;;  %v1776_v10 = vsel %vm1774_vm4, %v9215_v1, %v7301_v21 }
  0xa2   : > { %v9512_v20 = vpop.permute.xlu0 %7308  ;;  %v1775_v11 = vsel %vm1774_vm4, %v9220_v2, %v7300_v24 }
  0xa3   : > { %7603 = vrot.lane.b32.xlu1 %v9505_v5, %s12820_s22  ;;  %v7310_v6 = vunpack.i.l.bf16 %v9512_v20 }
  0xa4   : > { %7598 = vrot.lane.b32.xlu0 %v7572_v42, %s12820_s22 }
  0xa5   : > { %v9526_v34 = vpop.permute.xlu1 %7323 }
  0xa6   : > { %v7319_v39 = vpop.permute.xlu0 %7318  ;;  %v7326_v62 = vunpack.i.h.bf16 %v9526_v34 }
  0xa7   : > { %7613 = vrot.lane.b32.xlu1 %v7572_v42, %s12816_s28  ;;  %v9545_v42 = vsel %vm666_vm0, 0.0, %v699_v37  ;;  %v7321_v35 = vunpack.i.h.bf16 %v7319_v39  ;;  %v7320_v36 = vunpack.i.l.bf16 %v7319_v39 }
  0xa8   : > { %7608 = vrot.lane.b32.xlu0 %v9483_v50, %s12821_s20  ;;  %v888_v16 = vrot.slane %v9545_v42, 1  ;;  %v9580_v39 = vpack.i.bf16 %v9542_v57, %v9545_v42 }
  0xa9   : > { %v9539_v55 = vpop.permute.xlu1 %7333  ;;  %v1778_v7 = vsel %vm1774_vm4, %v9277_v33, %v7321_v35  ;;  %v1777_v21 = vsel %vm1774_vm4, %v9271_v30, %v7320_v36  ;;  %v7315_v33 = vunpack.i.l.bf16 %v9508_v12  ;;  %v1808_v35 = vsel %vm1807_vm5, %v1775_v11, %v7305_v44 }
  0xaa   : > { %v9547_v59 = vpop.permute.xlu0 %7328  ;;  %v9588_v49 = vsel %vm832_vm2, %v888_v16, %v889_v17  ;;  %v7311_v16 = vunpack.i.h.bf16 %v9512_v20  ;;  %v7316_v20 = vunpack.i.h.bf16 %v9508_v12  ;;  %v1809_v30 = vsel %vm1807_vm5, %v1776_v10, %v7306_v43 }
  0xab   : > { %7623 = vrot.lane.b32.xlu1 %v9505_v5, %s12816_s28  ;;  %v1811_v36 = vsel %vm1807_vm5, %v1778_v7, %v7326_v62  ;;  %v7330_v9 = vunpack.i.l.bf16 %v9547_v59  ;;  %v1841_v12 = vsel %vm1840_vm6, %v1808_v35, %v7310_v6  ;;  %v7335_v7 = vunpack.i.l.bf16 %v9539_v55 }
  0xac   : > { %7618 = vrot.lane.b32.xlu0 %v9537_v53, %s12821_s20  ;;  %v1842_v24 = vsel %vm1840_vm6, %v1809_v30, %v7311_v16 }
  0xad   : > { %v9564_v27 = vpop.permute.xlu1 %7343 }
  0xae   : > { %v9566_v37 = vpop.permute.xlu0 %7338 }
  0xaf   : > { %7633 = vrot.lane.b32.xlu1 %v9537_v53, %s12817_s25  ;;  %v7341_v44 = vunpack.i.h.bf16 %v9566_v37  ;;  %v7340_v43 = vunpack.i.l.bf16 %v9566_v37 }
  0xb0   : > { %7628 = vrot.lane.b32.xlu0 %v9483_v50, %s12817_s25  ;;  %v7325_v50 = vunpack.i.l.bf16 %v9526_v34  ;;  %v892_v34 = vsel %vm832_vm2, %v889_v17, %v891_v41  ;;  %v7331_v41 = vunpack.i.h.bf16 %v9547_v59 }
  0xb1   : > { %v9603_v0 = vpop.permute.xlu1 %7353 }
  0xb2   : > { %v7349_v8 = vpop.permute.xlu0 %7348  ;;  %v1810_v17 = vsel %vm1807_vm5, %v1777_v21, %v7325_v50  ;;  %v1844_v50 = vsel %vm1840_vm6, %v1811_v36, %v7316_v20  ;;  %v1875_v37 = vsel %vm1873_vm7, %v1842_v24, %v7331_v41  ;;  %v1874_v21 = vsel %vm1873_vm7, %v1841_v12, %v7330_v9 }
  0xb3   : > { %7643 = vrot.lane.b32.xlu1 %v9570_v38, %s12818_s23  ;;  %v7351_v11 = vunpack.i.h.bf16 %v7349_v8  ;;  %v7350_v62 = vunpack.i.l.bf16 %v7349_v8  ;;  %v1843_v59 = vsel %vm1840_vm6, %v1810_v17, %v7315_v33  ;;  %v7345_v8 = vunpack.i.l.bf16 %v9564_v27 }
  0xb4   : > { %7638 = vrot.lane.b32.xlu0 %v9492_v56, %s12818_s23  ;;  %v7336_v56 = vunpack.i.h.bf16 %v9539_v55  ;;  %v7346_v55 = vunpack.i.h.bf16 %v9564_v27  ;;  %v1907_v30 = vsel %vm1906_vm8, %v1874_v21, %v7340_v43  ;;  %v1908_v33 = vsel %vm1906_vm8, %v1875_v37, %v7341_v44 }
  0xb5   : > { %v7364_v54 = vpop.permute.xlu1 %7363  ;;  %v7356_v20 = vunpack.i.h.bf16 %v9603_v0  ;;  %v7355_v36 = vunpack.i.l.bf16 %v9603_v0  ;;  %v1940_v9 = vsel %vm1939_vm9, %v1907_v30, %v7350_v62  ;;  %v1941_v27 = vsel %vm1939_vm9, %v1908_v33, %v7351_v11 }
  0xb6   : > { %v7359_v10 = vpop.permute.xlu0 %7358  ;;  %v7366_v24 = vunpack.i.h.bf16 %v7364_v54  ;;  %v7365_v41 = vunpack.i.l.bf16 %v7364_v54  ;;  %v1876_v0 = vsel %vm1873_vm7, %v1843_v59, %v7335_v7  ;;  %v1877_v43 = vsel %vm1873_vm7, %v1844_v50, %v7336_v56 }
  0xb7   : > { %7653 = vrot.lane.b32.xlu1 %v9572_v40, %s12822_s2  ;;  %v7361_v16 = vunpack.i.h.bf16 %v7359_v10  ;;  %v7360_v6 = vunpack.i.l.bf16 %v7359_v10  ;;  %v1909_v11 = vsel %vm1906_vm8, %v1876_v0, %v7345_v8  ;;  %v1910_v54 = vsel %vm1906_vm8, %v1877_v43, %v7346_v55 }
  0xb8   : > { %7648 = vrot.lane.b32.xlu0 %v9505_v5, %s12822_s2  ;;  %v1942_v7 = vsel %vm1939_vm9, %v1909_v11, %v7355_v36  ;;  %v1943_v56 = vsel %vm1939_vm9, %v1910_v54, %v7356_v20  ;;  %v625_v20 = vld [vmem:[%s9248_s24 + $0xc0] sm:$0xff]  ;;  %v626_v36 = vld [vmem:[%s9248_s24 + $0xc8] sm:$0xff] }
  0xb9   : > { %v9643_v35 = vpop.permute.xlu1 %7373  ;;  %v1973_v12 = vsel %vm1972_vm10, %v1940_v9, %v7360_v6  ;;  %v1974_v44 = vsel %vm1972_vm10, %v1941_v27, %v7361_v16  ;;  %v9666_v16 = vpack.i.bf16 %v892_v34, %v9588_v49  ;;  %v1975_v6 = vsel %vm1972_vm10, %v1942_v7, %v7365_v41 }
  0xba   : > { %v7369_v17 = vpop.permute.xlu0 %7368  ;;  %v1976_v55 = vsel %vm1972_vm10, %v1943_v56, %v7366_v24  ;;  %v972_v49 = vrot.slane %v9558_v13, 2  ;;  %v12826_v9 = vrot.slane %v9595_v4, 7  ;;  %v12827_v27 = vrot.slane %v9592_v61, 7 }
  0xbb   : > { %v7371_v5 = vunpack.i.h.bf16 %v7369_v17  ;;  %v7370_v10 = vunpack.i.l.bf16 %v7369_v17  ;;  %7663 = vrot.lane.b32.xlu1 %v9576_v63, %s12823_s29  ;;  %v706_v11 = vrot.slane %v626_v36, 7 }
  0xbc   : > { %7658 = vrot.lane.b32.xlu0 %v9537_v53, %s12823_s29  ;;  %v9698_v24 = vsel %vm666_vm0, %v12827_v27, %v12826_v9  ;;  %v12828_v41 = vmov %v12827_v27  ;;  %v12830_v43 = vmov %v12826_v9 }
  0xbd   : > { %v9659_v37 = vpop.permute.xlu1 %7383  ;;  %v2006_v21 = vsel %vm2005_vm11, %v1973_v12, %v7370_v10  ;;  %v2007_v62 = vsel %vm2005_vm11, %v1974_v44, %v7371_v5  ;;  %v12825_v10 = vrot.slane %v9545_v42, 2  ;;  %v9703_v12 = vsel %vm666_vm0, 0.0, %v12828_v41 }
  0xbe   : > { %v7379_v30 = vpop.permute.xlu0 %7378  ;;  %v2038_v53 = vpack.c.bf16 %v2007_v62, %v2006_v21  ;;  %v795_v21 = vsel %vm666_vm0, %v12830_v43, 0.0  ;;  %v705_v62 = vrot.slane %v625_v20, 7  ;;  %v974_v4 = vrot.slane %v9703_v12, 2 }
  0xbf   : > { %v7381_v59 = vunpack.i.h.bf16 %v7379_v30  ;;  %v7380_v50 = vunpack.i.l.bf16 %v7379_v30  ;;  %7673 = vrot.lane.b32.xlu1 %v9580_v39, %s12819_s27  ;;  %v893_v30 = vrot.slane %v9703_v12, 1  ;;  %v896_v56 = vrot.slane %v795_v21, 1 }
  0xc0   : > { %7668 = vrot.lane.b32.xlu0 %v9570_v38, %s12819_s27  ;;  %7086 = vmatprep.mubr.msk.bf16.mxu0 %vm2081_vm12, %v2038_v53  ;;  %v12824_v38 = vrot.slane %v9542_v57, 2  ;;  %v894_v53 = vrot.slane %v9698_v24, 1  ;;  %v7386_v9 = vunpack.i.h.bf16 %v9659_v37  ;;  %v7385_v27 = vunpack.i.l.bf16 %v9659_v37 }
  0xc1   : > { %v2008_v34 = vsel %vm2005_vm11, %v1975_v6, %v7380_v50  ;;  %v2009_v8 = vsel %vm2005_vm11, %v1976_v55, %v7381_v59  ;;  %v9680_v33 = vpop.permute.xlu1 %7393  ;;  %v975_v59 = vrot.slane %v9698_v24, 2  ;;  %v977_v50 = vrot.slane %v795_v21, 2 }
  0xc2   : > { %v9684_v17 = vpop.permute.xlu0 %7388  ;;  %v2039_v5 = vpack.c.bf16 %v2009_v8, %v2008_v34  ;;  %v971_v13 = vsel %vm913_vm1, %v12825_v10, %v12824_v38  ;;  %v12829_v44 = vmov %v12824_v38  ;;  %v9729_v6 = vsel %vm666_vm0, %v705_v62, %v706_v11 }
  0xc3   : > { %7683 = vrot.lane.b32.xlu1 %v9666_v16, %s12820_s22  ;;  %v973_v0 = vsel %vm913_vm1, %v12829_v44, %v972_v49  ;;  %v9732_v55 = vsel %vm666_vm0, 0.0, %v705_v62  ;;  %v9735_v49 = vsel %vm666_vm0, %v706_v11, 0.0  ;;  %v895_v8 = vsel %vm832_vm2, %v893_v30, %v894_v53 }
  0xc4   : > { %7678 = vrot.lane.b32.xlu0 %v9572_v40, %s12820_s22  ;;  %7087 = vmatmul.mubr.msk.bf16.vlgmr.msra.gmra.mrb[0].mxu0 %vm2081_vm12, %v2039_v5  ;;  %v9722_v7 = vpack.i.bf16 %v973_v0, %v971_v13  ;;  %v897_v20 = vsel %vm832_vm2, %v894_v53, %v896_v56  ;;  %v898_v36 = vrot.slane %v9732_v55, 1  ;;  %v899_v5 = vrot.slane %v9729_v6, 1 }
  0xc5   : > { %v9714_v54 = vpop.permute.xlu1 %7403  ;;  %v901_v38 = vrot.slane %v9735_v49, 1  ;;  %v976_v10 = vsel %vm913_vm1, %v974_v4, %v975_v59  ;;  %v978_v13 = vsel %vm913_vm1, %v975_v59, %v977_v50  ;;  %v9758_v44 = vpack.i.bf16 %v9698_v24, %v9703_v12 }
  0xc6   : > { %v9716_v61 = vpop.permute.xlu0 %7398  ;;  %v9760_v43 = vpack.i.bf16 %v897_v20, %v895_v8  ;;  %v9764_v21 = vpack.i.bf16 %v978_v13, %v976_v10  ;;  %v9768_v62 = vpack.i.bf16 %v9729_v6, %v9732_v55  ;;  %v900_v37 = vsel %vm832_vm2, %v898_v36, %v899_v5 }
  0xc7   : > { %7693 = vrot.lane.b32.xlu1 %v9572_v40, %s12816_s28  ;;  %v902_v11 = vsel %vm832_vm2, %v899_v5, %v901_v38  ;;  %v7376_v30 = vunpack.i.h.bf16 %v9643_v35  ;;  %v7375_v53 = vunpack.i.l.bf16 %v9643_v35  ;;  %v7396_v56 = vunpack.i.h.bf16 %v9680_v33 }
  0xc8   : > { %7688 = vrot.lane.b32.xlu0 %v9576_v63, %s12821_s20  ;;  %v7395_v4 = vunpack.i.l.bf16 %v9680_v33  ;;  %v1782_v59 = vsel %vm1774_vm4, %v9306_v60, %v7386_v9  ;;  %v1781_v50 = vsel %vm1774_vm4, %v9302_v58, %v7385_v27  ;;  %v7391_v8 = vunpack.i.h.bf16 %v9684_v17 }
  0xc9   : > { %v9737_v40 = vpop.permute.xlu1 %7413  ;;  %v7390_v20 = vunpack.i.l.bf16 %v9684_v17  ;;  %v7406_v35 = vunpack.i.h.bf16 %v9714_v54  ;;  %v7405_v5 = vunpack.i.l.bf16 %v9714_v54  ;;  %v7401_v60 = vunpack.i.h.bf16 %v9716_v61 }
  0xca   : > { %v9739_v34 = vpop.permute.xlu0 %7408  ;;  %v7400_v10 = vunpack.i.l.bf16 %v9716_v61  ;;  %v9794_v58 = vpack.i.bf16 %v902_v11, %v900_v37  ;;  %v1780_v13 = vsel %vm1774_vm4, %v9265_v28, %v7376_v30  ;;  %v1779_v54 = vsel %vm1774_vm4, %v9268_v29, %v7375_v53 }
  0xcb   : > { %7703 = vrot.lane.b32.xlu1 %v9666_v16, %s12816_s28  ;;  %v1814_v9 = vsel %vm1807_vm5, %v1781_v50, %v7395_v4  ;;  %v1815_v27 = vsel %vm1807_vm5, %v1782_v59, %v7396_v56  ;;  %v1813_v61 = vsel %vm1807_vm5, %v1780_v13, %v7391_v8  ;;  %v1812_v37 = vsel %vm1807_vm5, %v1779_v54, %v7390_v20 }
  0xcc   : > { %7698 = vrot.lane.b32.xlu0 %v9722_v7, %s12821_s20  ;;  %v7411_v11 = vunpack.i.h.bf16 %v9739_v34  ;;  %v7410_v17 = vunpack.i.l.bf16 %v9739_v34  ;;  %v1847_v28 = vsel %vm1840_vm6, %v1814_v9, %v7405_v5  ;;  %v1848_v29 = vsel %vm1840_vm6, %v1815_v27, %v7406_v35 }
  0xcd   : > { %v9754_v41 = vpop.permute.xlu1 %7423  ;;  %v1845_v56 = vsel %vm1840_vm6, %v1812_v37, %v7400_v10  ;;  %v7416_v8 = vunpack.i.h.bf16 %v9737_v40  ;;  %v7415_v34 = vunpack.i.l.bf16 %v9737_v40 }
  0xce   : > { %v7419_v0 = vpop.permute.xlu0 %7418 }
  0xcf   : > { %7713 = vrot.lane.b32.xlu1 %v9722_v7, %s12817_s25  ;;  %v7421_v30 = vunpack.i.h.bf16 %v7419_v0  ;;  %v7420_v53 = vunpack.i.l.bf16 %v7419_v0  ;;  %v1878_v0 = vsel %vm1873_vm7, %v1845_v56, %v7410_v17  ;;  %v1881_v56 = vsel %vm1873_vm7, %v1848_v29, %v7416_v8 }
  0xd0   : > { %7708 = vrot.lane.b32.xlu0 %v9576_v63, %s12817_s25  ;;  %v980_v63 = vrot.slane %v9729_v6, 2 }
  0xd1   : > { %v9784_v36 = vpop.permute.xlu1 %7433  ;;  %v1911_v13 = vsel %vm1906_vm8, %v1878_v0, %v7420_v53  ;;  %v628_v0 = vld [vmem:[%s9248_s24 + $0xd8] sm:$0xff] }
  0xd2   : > { %v7429_v33 = vpop.permute.xlu0 %7428  ;;  %v7436_v54 = vunpack.i.h.bf16 %v9784_v36  ;;  %v7435_v9 = vunpack.i.l.bf16 %v9784_v36  ;;  %v1880_v36 = vsel %vm1873_vm7, %v1847_v28, %v7415_v34 }
  0xd3   : > { %7723 = vrot.lane.b32.xlu1 %v9758_v44, %s12818_s23  ;;  %v7431_v59 = vunpack.i.h.bf16 %v7429_v33  ;;  %v7430_v50 = vunpack.i.l.bf16 %v7429_v33  ;;  %v7425_v33 = vunpack.i.l.bf16 %v9754_v41 }
  0xd4   : > { %7718 = vrot.lane.b32.xlu0 %v9580_v39, %s12818_s23  ;;  %v1846_v39 = vsel %vm1840_vm6, %v1813_v61, %v7401_v60  ;;  %v7426_v60 = vunpack.i.h.bf16 %v9754_v41  ;;  %v627_v41 = vld [vmem:[%s9248_s24 + $0xd0] sm:$0xff] }
  0xd5   : > { %v7444_v38 = vpop.permute.xlu1 %7443  ;;  %v1879_v35 = vsel %vm1873_vm7, %v1846_v39, %v7411_v11  ;;  %v1944_v27 = vsel %vm1939_vm9, %v1911_v13, %v7430_v50 }
  0xd6   : > { %v7439_v4 = vpop.permute.xlu0 %7438  ;;  %v1912_v40 = vsel %vm1906_vm8, %v1879_v35, %v7421_v30  ;;  %v7446_v11 = vunpack.i.h.bf16 %v7444_v38  ;;  %v7445_v53 = vunpack.i.l.bf16 %v7444_v38  ;;  %v1913_v38 = vsel %vm1906_vm8, %v1880_v36, %v7425_v33 }
  0xd7   : > { %7733 = vrot.lane.b32.xlu1 %v9760_v43, %s12822_s2  ;;  %v7441_v20 = vunpack.i.h.bf16 %v7439_v4  ;;  %v7440_v5 = vunpack.i.l.bf16 %v7439_v4  ;;  %v1945_v17 = vsel %vm1939_vm9, %v1912_v40, %v7431_v59  ;;  %v1946_v28 = vsel %vm1939_vm9, %v1913_v38, %v7435_v9 }
  0xd8   : > { %7728 = vrot.lane.b32.xlu0 %v9666_v16, %s12822_s2  ;;  %v1979_v13 = vsel %vm1972_vm10, %v1946_v28, %v7445_v53 }
  0xd9   : > { %v9823_v10 = vpop.permute.xlu1 %7453  ;;  %v1977_v30 = vsel %vm1972_vm10, %v1944_v27, %v7440_v5  ;;  %v1978_v4 = vsel %vm1972_vm10, %v1945_v17, %v7441_v20  ;;  %v1914_v5 = vsel %vm1906_vm8, %v1881_v56, %v7426_v60  ;;  %v709_v60 = vrot.slane %v628_v0, 7  ;;  %v630_v27 = vld [vmem:[%s9248_s24 + $0xe8] sm:$0xff] }
  0xda   : > { %v7449_v16 = vpop.permute.xlu0 %7448  ;;  %v1947_v29 = vsel %vm1939_vm9, %v1914_v5, %v7436_v54  ;;  %v712_v56 = vrot.slane %v630_v27, 7 }
  0xdb   : > { %v7451_v61 = vunpack.i.h.bf16 %v7449_v16  ;;  %v7450_v37 = vunpack.i.l.bf16 %v7449_v16  ;;  %7743 = vrot.lane.b32.xlu1 %v9764_v21, %s12823_s29  ;;  %v1980_v33 = vsel %vm1972_vm10, %v1947_v29, %v7446_v11  ;;  %v629_v16 = vld [vmem:[%s9248_s24 + $0xe0] sm:$0xff] }
  0xdc   : > { %7738 = vrot.lane.b32.xlu0 %v9722_v7, %s12823_s29  ;;  %v708_v7 = vrot.slane %v627_v41, 7  ;;  %v12832_v41 = vrot.slane %v9735_v49, 2  ;;  %v711_v36 = vrot.slane %v629_v16, 7  ;;  %v9907_v29 = vsel %vm666_vm0, %v712_v56, 0.0 }
  0xdd   : > { %v2010_v39 = vsel %vm2005_vm11, %v1977_v30, %v7450_v37  ;;  %v2011_v59 = vsel %vm2005_vm11, %v1978_v4, %v7451_v61  ;;  %v9842_v50 = vpop.permute.xlu1 %7463  ;;  %v797_v4 = vsel %vm666_vm0, %v709_v60, 0.0 }
  0xde   : > { %v7459_v35 = vpop.permute.xlu0 %7458  ;;  %v2040_v20 = vpack.c.bf16 %v2011_v59, %v2010_v39  ;;  %v983_v11 = vsel %vm913_vm1, %v980_v63, %v12832_v41  ;;  %v9877_v53 = vsel %vm666_vm0, 0.0, %v708_v7  ;;  %v9883_v30 = vsel %vm666_vm0, %v708_v7, %v709_v60 }
  0xdf   : > { %v7461_v8 = vunpack.i.h.bf16 %v7459_v35  ;;  %v7460_v34 = vunpack.i.l.bf16 %v7459_v35  ;;  %7753 = vrot.lane.b32.xlu1 %v9768_v62, %s12819_s27  ;;  %v903_v59 = vrot.slane %v9877_v53, 1  ;;  %v904_v0 = vrot.slane %v9883_v30, 1 }
  0xe0   : > { %7748 = vrot.lane.b32.xlu0 %v9758_v44, %s12819_s27  ;;  %7090 = vmatprep.mubr.msk.bf16.mxu0 %vm2081_vm12, %v2040_v20  ;;  %v12831_v44 = vrot.slane %v9732_v55, 2  ;;  %v906_v38 = vrot.slane %v797_v4, 1  ;;  %v984_v5 = vrot.slane %v9877_v53, 2  ;;  %v985_v35 = vrot.slane %v9883_v30, 2 }
  0xe1   : > { %v2013_v40 = vsel %vm2005_vm11, %v1980_v33, %v7461_v8  ;;  %v2012_v9 = vsel %vm2005_vm11, %v1979_v13, %v7460_v34  ;;  %v9858_v54 = vpop.permute.xlu1 %7473  ;;  %v987_v20 = vrot.slane %v797_v4, 2  ;;  %v9901_v7 = vsel %vm666_vm0, %v711_v36, %v712_v56 }
  0xe2   : > { %v9862_v17 = vpop.permute.xlu0 %7468  ;;  %v2041_v61 = vpack.c.bf16 %v2013_v40, %v2012_v9  ;;  %v981_v37 = vsel %vm913_vm1, %v12831_v44, %v980_v63  ;;  %v9904_v28 = vsel %vm666_vm0, 0.0, %v711_v36  ;;  %v909_v13 = vrot.slane %v9901_v7, 1 }
  0xe3   : > { %7763 = vrot.lane.b32.xlu1 %v9794_v58, %s12820_s22  ;;  %v9890_v63 = vpack.i.bf16 %v983_v11, %v981_v37  ;;  %v908_v34 = vrot.slane %v9904_v28, 1  ;;  %v911_v33 = vrot.slane %v9907_v29, 1  ;;  %v905_v60 = vsel %vm832_vm2, %v903_v59, %v904_v0 }
  0xe4   : > { %7758 = vrot.lane.b32.xlu0 %v9760_v43, %s12820_s22  ;;  %7091 = vmatmul.mubr.msk.bf16.gmra.mrb[4].mxu0 %vm2081_vm12, %v2041_v61  ;;  %v907_v40 = vsel %vm832_vm2, %v904_v0, %v906_v38  ;;  %v986_v9 = vsel %vm913_vm1, %v984_v5, %v985_v35  ;;  %v988_v16 = vsel %vm913_vm1, %v985_v35, %v987_v20  ;;  %v7466_v27 = vunpack.i.h.bf16 %v9842_v50 }
  0xe5   : > { %v9886_v49 = vpop.permute.xlu1 %7483  ;;  %v7465_v61 = vunpack.i.l.bf16 %v9842_v50  ;;  %v9930_v41 = vpack.i.bf16 %v9883_v30, %v9877_v53  ;;  %v9934_v11 = vpack.i.bf16 %v907_v40, %v905_v60  ;;  %v9936_v4 = vpack.i.bf16 %v988_v16, %v986_v9 }
  0xe6   : > { %v9888_v39 = vpop.permute.xlu0 %7478  ;;  %v910_v36 = vsel %vm832_vm2, %v908_v34, %v909_v13  ;;  %v912_v56 = vsel %vm832_vm2, %v909_v13, %v911_v33  ;;  %v7456_v50 = vunpack.i.h.bf16 %v9823_v10  ;;  %v7455_v59 = vunpack.i.l.bf16 %v9823_v10 }
  0xe7   : > { %7773 = vrot.lane.b32.xlu1 %v9760_v43, %s12816_s28  ;;  %v7476_v0 = vunpack.i.h.bf16 %v9858_v54  ;;  %v7475_v38 = vunpack.i.l.bf16 %v9858_v54  ;;  %v1786_v5 = vsel %vm1774_vm4, %v9366_v52, %v7466_v27  ;;  %v1785_v35 = vsel %vm1774_vm4, %v9363_v51, %v7465_v61 }
  0xe8   : > { %7768 = vrot.lane.b32.xlu0 %v9764_v21, %s12821_s20  ;;  %v7471_v20 = vunpack.i.h.bf16 %v9862_v17  ;;  %v7470_v34 = vunpack.i.l.bf16 %v9862_v17  ;;  %v7486_v10 = vunpack.i.h.bf16 %v9886_v49  ;;  %v7485_v33 = vunpack.i.l.bf16 %v9886_v49 }
  0xe9   : > { %v9909_v43 = vpop.permute.xlu1 %7493  ;;  %v7481_v52 = vunpack.i.h.bf16 %v9888_v39  ;;  %v7480_v60 = vunpack.i.l.bf16 %v9888_v39  ;;  %v9964_v51 = vpack.i.bf16 %v912_v56, %v910_v36  ;;  %v1784_v17 = vsel %vm1774_vm4, %v9341_v32, %v7456_v50 }
  0xea   : > { %v9911_v8 = vpop.permute.xlu0 %7488  ;;  %v1783_v49 = vsel %vm1774_vm4, %v9338_v31, %v7455_v59  ;;  %v1818_v40 = vsel %vm1807_vm5, %v1785_v35, %v7475_v38  ;;  %v1819_v9 = vsel %vm1807_vm5, %v1786_v5, %v7476_v0  ;;  %v1817_v39 = vsel %vm1807_vm5, %v1784_v17, %v7471_v20 }
  0xeb   : > { %7783 = vrot.lane.b32.xlu1 %v9794_v58, %s12816_s28  ;;  %v1816_v16 = vsel %vm1807_vm5, %v1783_v49, %v7470_v34  ;;  %v7491_v27 = vunpack.i.h.bf16 %v9911_v8  ;;  %v7490_v61 = vunpack.i.l.bf16 %v9911_v8  ;;  %v1851_v32 = vsel %vm1840_vm6, %v1818_v40, %v7485_v33 }
  0xec   : > { %7778 = vrot.lane.b32.xlu0 %v9890_v63, %s12821_s20  ;;  %v1852_v31 = vsel %vm1840_vm6, %v1819_v9, %v7486_v10  ;;  %v1849_v0 = vsel %vm1840_vm6, %v1816_v16, %v7480_v60  ;;  %v7496_v35 = vunpack.i.h.bf16 %v9909_v43  ;;  %v7495_v8 = vunpack.i.l.bf16 %v9909_v43 }
  0xed   : > { %v9926_v44 = vpop.permute.xlu1 %7503 }
  0xee   : > { %v7499_v37 = vpop.permute.xlu0 %7498  ;;  %v7506_v33 = vunpack.i.h.bf16 %v9926_v44 }
  0xef   : > { %7793 = vrot.lane.b32.xlu1 %v9890_v63, %s12817_s25  ;;  %v7501_v56 = vunpack.i.h.bf16 %v7499_v37  ;;  %v7500_v50 = vunpack.i.l.bf16 %v7499_v37  ;;  %v1882_v37 = vsel %vm1873_vm7, %v1849_v0, %v7490_v61 }
  0xf0   : > { %7788 = vrot.lane.b32.xlu0 %v9764_v21, %s12817_s25  ;;  %v9958_v21 = vpack.i.bf16 %v9901_v7, %v9904_v28 }
  0xf1   : > { %v9952_v13 = vpop.permute.xlu1 %7513  ;;  %v1915_v60 = vsel %vm1906_vm8, %v1882_v37, %v7500_v50  ;;  %v1885_v50 = vsel %vm1873_vm7, %v1852_v31, %v7496_v35  ;;  %v631_v37 = vld [vmem:[%s9248_s24 + $0xf0] sm:$0xff] }
  0xf2   : > { %v7509_v54 = vpop.permute.xlu0 %7508  ;;  %v7516_v43 = vunpack.i.h.bf16 %v9952_v13  ;;  %v7515_v49 = vunpack.i.l.bf16 %v9952_v13  ;;  %v1884_v13 = vsel %vm1873_vm7, %v1851_v32, %v7495_v8 }
  0xf3   : > { %7803 = vrot.lane.b32.xlu1 %v9930_v41, %s12818_s23  ;;  %v7511_v38 = vunpack.i.h.bf16 %v7509_v54  ;;  %v7510_v5 = vunpack.i.l.bf16 %v7509_v54  ;;  %v7505_v54 = vunpack.i.l.bf16 %v9926_v44 }
  0xf4   : > { %7798 = vrot.lane.b32.xlu0 %v9768_v62, %s12818_s23  ;;  %v1850_v62 = vsel %vm1840_vm6, %v1817_v39, %v7481_v52 }
  0xf5   : > { %v7524_v36 = vpop.permute.xlu1 %7523  ;;  %v1883_v10 = vsel %vm1873_vm7, %v1850_v62, %v7491_v27 }
  0xf6   : > { %v7519_v59 = vpop.permute.xlu0 %7518  ;;  %v1916_v17 = vsel %vm1906_vm8, %v1883_v10, %v7501_v56  ;;  %v7526_v44 = vunpack.i.h.bf16 %v7524_v36  ;;  %v7525_v27 = vunpack.i.l.bf16 %v7524_v36  ;;  %v1918_v36 = vsel %vm1906_vm8, %v1885_v50, %v7506_v33 }
  0xf7   : > { %7813 = vrot.lane.b32.xlu1 %v9934_v11, %s12822_s2  ;;  %v7521_v20 = vunpack.i.h.bf16 %v7519_v59  ;;  %v7520_v34 = vunpack.i.l.bf16 %v7519_v59  ;;  %v1949_v9 = vsel %vm1939_vm9, %v1916_v17, %v7511_v38  ;;  %v1917_v38 = vsel %vm1906_vm8, %v1884_v13, %v7505_v54 }
  0xf8   : > { %7808 = vrot.lane.b32.xlu0 %v9794_v58, %s12822_s2  ;;  %v1948_v58 = vsel %vm1939_vm9, %v1915_v60, %v7510_v5  ;;  %v1950_v32 = vsel %vm1939_vm9, %v1917_v38, %v7515_v49  ;;  %v1951_v31 = vsel %vm1939_vm9, %v1918_v36, %v7516_v43  ;;  %v990_v33 = vrot.slane %v9901_v7, 2 }
  0xf9   : > { %v9992_v52 = vpop.permute.xlu1 %7533  ;;  %v1981_v61 = vsel %vm1972_vm10, %v1948_v58, %v7520_v34  ;;  %v1982_v56 = vsel %vm1972_vm10, %v1949_v9, %v7521_v20  ;;  %v989_v20 = vrot.slane %v9904_v28, 2  ;;  %v1983_v10 = vsel %vm1972_vm10, %v1950_v32, %v7525_v27 }
  0xfa   : > { %v7529_v40 = vpop.permute.xlu0 %7528  ;;  %v1984_v54 = vsel %vm1972_vm10, %v1951_v31, %v7526_v44  ;;  %v992_v60 = vrot.slane %v9907_v29, 2 }
  0xfb   : > { %v7531_v39 = vunpack.i.h.bf16 %v7529_v40  ;;  %v7530_v16 = vunpack.i.l.bf16 %v7529_v40  ;;  %7823 = vrot.lane.b32.xlu1 %v9936_v4, %s12823_s29  ;;  %v714_v40 = vrot.slane %v631_v37, 7 }
  0xfc   : > { %7818 = vrot.lane.b32.xlu0 %v9890_v63, %s12823_s29  ;;  %v632_v63 = vld [vmem:[%s9248_s24 + $0xf8] sm:$0xff] }
  0xfd   : > { %v2014_v59 = vsel %vm2005_vm11, %v1981_v61, %v7530_v16  ;;  %v2015_v0 = vsel %vm2005_vm11, %v1982_v56, %v7531_v39  ;;  %v10010_v62 = vpop.permute.xlu1 %7543  ;;  %v715_v58 = vrot.slane %v632_v63, 7  ;;  %v993_v16 = vsel %vm913_vm1, %v990_v33, %v992_v60 }
  0xfe   : > { %v7539_v5 = vpop.permute.xlu0 %7538  ;;  %v2042_v34 = vpack.c.bf16 %v2015_v0, %v2014_v59  ;;  %v782_v27 = vsel %vm666_vm0, 0.0, %v714_v40  ;;  %v7546_v63 = vunpack.i.h.bf16 %v10010_v62  ;;  %v7545_v32 = vunpack.i.l.bf16 %v10010_v62 }
  0xff   : > { %v7541_v35 = vunpack.i.h.bf16 %v7539_v5  ;;  %v7540_v8 = vunpack.i.l.bf16 %v7539_v5  ;;  %7833 = vrot.lane.b32.xlu1 %v9958_v21, %s12819_s27  ;;  %v716_v44 = vsel %vm666_vm0, %v714_v40, %v715_v58  ;;  %v799_v61 = vsel %vm666_vm0, %v715_v58, 0.0 }
 0x100   : > { %7828 = vrot.lane.b32.xlu0 %v9930_v41, %s12819_s27  ;;  %7094 = vmatprep.mubr.msk.bf16.mxu0 %vm2081_vm12, %v2042_v34  ;;  %v991_v41 = vsel %vm913_vm1, %v989_v20, %v990_v33  ;;  %v996_v50 = vrot.slane %v782_v27, 1  ;;  %v997_v59 = vrot.slane %v716_v44, 1  ;;  %v999_v0 = vrot.slane %v799_v61, 1 }
 0x101   : > { %v2017_v17 = vsel %vm2005_vm11, %v1984_v54, %v7541_v35  ;;  %v2016_v43 = vsel %vm2005_vm11, %v1983_v10, %v7540_v8  ;;  %v7554_v49 = vpop.permute.xlu1 %7553  ;;  %v10044_v13 = vpack.i.bf16 %v993_v16, %v991_v41  ;;  %v1001_v5 = vrot.slane %v782_v27, 2 }
 0x102   : > { %v7549_v9 = vpop.permute.xlu0 %7548  ;;  %v2043_v39 = vpack.c.bf16 %v2017_v17, %v2016_v43  ;;  %v1002_v34 = vrot.slane %v716_v44, 2  ;;  %v1004_v20 = vrot.slane %v799_v61, 2  ;;  %v1000_v37 = vsel %vm832_vm2, %v997_v59, %v999_v0 }
 0x103   : > { %7843 = vrot.lane.b32.xlu1 %v9964_v51, %s12820_s22  ;;  %v10060_v8 = vpack.i.bf16 %v716_v44, %v782_v27  ;;  %v7536_v60 = vunpack.i.h.bf16 %v9992_v52  ;;  %v7535_v17 = vunpack.i.l.bf16 %v9992_v52  ;;  %v7556_v43 = vunpack.i.h.bf16 %v7554_v49 }
 0x104   : > { %7838 = vrot.lane.b32.xlu0 %v9934_v11, %s12820_s22  ;;  %7095 = vmatmul.mubr.msk.bf16.gmra.mrb[8].mxu0 %vm2081_vm12, %v2043_v39  ;;  %v1003_v54 = vsel %vm913_vm1, %v1001_v5, %v1002_v34  ;;  %v1005_v33 = vsel %vm913_vm1, %v1002_v34, %v1004_v20  ;;  %v7555_v62 = vunpack.i.l.bf16 %v7554_v49  ;;  %v1790_v40 = vsel %vm1774_vm4, %v9422_v47, %v7546_v63 }
 0x105   : > { %v7564_v29 = vpop.permute.xlu1 %7563  ;;  %v1789_v58 = vsel %vm1774_vm4, %v9425_v48, %v7545_v32  ;;  %v7551_v39 = vunpack.i.h.bf16 %v7549_v9  ;;  %v7550_v41 = vunpack.i.l.bf16 %v7549_v9  ;;  %v10084_v47 = vpack.i.bf16 %v9215_v1, %v9220_v2 }
 0x106   : > { %v7559_v56 = vpop.permute.xlu0 %7558  ;;  %v7566_v44 = vunpack.i.h.bf16 %v7564_v29  ;;  %v7565_v27 = vunpack.i.l.bf16 %v7564_v29  ;;  %v1788_v48 = vsel %vm1774_vm4, %v9397_v22, %v7536_v60  ;;  %v1822_v9 = vsel %vm1807_vm5, %v1789_v58, %v7555_v62 }
 0x107   : > { %7853 = vrot.lane.b32.xlu1 %v9934_v11, %s12816_s28  ;;  %v998_v11 = vsel %vm832_vm2, %v996_v50, %v997_v59  ;;  %v10078_v50 = vpack.i.bf16 %v1005_v33, %v1003_v54  ;;  %v7561_v52 = vunpack.i.h.bf16 %v7559_v56  ;;  %v7560_v49 = vunpack.i.l.bf16 %v7559_v56 }
 0x108   : > { %7848 = vrot.lane.b32.xlu0 %v9936_v4, %s12821_s20  ;;  %v10064_v10 = vpack.i.bf16 %v1000_v37, %v998_v11  ;;  %v1823_v29 = vsel %vm1807_vm5, %v1790_v40, %v7556_v43  ;;  %v1821_v56 = vsel %vm1807_vm5, %v1788_v48, %v7551_v39  ;;  %v1855_v22 = vsel %vm1840_vm6, %v1822_v9, %v7565_v27 }
 0x109   : > { %v10046_v38 = vpop.permute.xlu1 %7573 }
 0x10a   : > { %v10048_v36 = vpop.permute.xlu0 %7568  ;;  %v7576_v33 = vunpack.i.h.bf16 %v10046_v38 }
 0x10b   : > { %7863 = vrot.lane.b32.xlu1 %v9964_v51, %s12816_s28  ;;  %v7571_v0 = vunpack.i.h.bf16 %v10048_v36  ;;  %v7570_v5 = vunpack.i.l.bf16 %v10048_v36  ;;  %v7575_v36 = vunpack.i.l.bf16 %v10046_v38 }
 0x10c   : > { %7858 = vrot.lane.b32.xlu0 %v10044_v13, %s12821_s20 }
 0x10d   : > { %v10058_v31 = vpop.permute.xlu1 %7583 }
 0x10e   : > { %v7579_v35 = vpop.permute.xlu0 %7578  ;;  %v7586_v62 = vunpack.i.h.bf16 %v10058_v31  ;;  %v7585_v40 = vunpack.i.l.bf16 %v10058_v31 }
 0x10f   : > { %7873 = vrot.lane.b32.xlu1 %v10044_v13, %s12817_s25  ;;  %v7581_v20 = vunpack.i.h.bf16 %v7579_v35  ;;  %v7580_v11 = vunpack.i.l.bf16 %v7579_v35 }
 0x110   : > { %7868 = vrot.lane.b32.xlu0 %v9936_v4, %s12817_s25  ;;  %v1787_v4 = vsel %vm1774_vm4, %v9400_v23, %v7535_v17  ;;  %v1856_v23 = vsel %vm1840_vm6, %v1823_v29, %v7566_v44 }
 0x111   : > { %v10076_v16 = vpop.permute.xlu1 %7593  ;;  %v1820_v59 = vsel %vm1807_vm5, %v1787_v4, %v7550_v41  ;;  %v1889_v29 = vsel %vm1873_vm7, %v1856_v23, %v7576_v33 }
 0x112   : > { %v7589_v61 = vpop.permute.xlu0 %7588  ;;  %v1853_v63 = vsel %vm1840_vm6, %v1820_v59, %v7560_v49  ;;  %v7596_v38 = vunpack.i.h.bf16 %v10076_v16  ;;  %v7595_v44 = vunpack.i.l.bf16 %v10076_v16  ;;  %v1888_v16 = vsel %vm1873_vm7, %v1855_v22, %v7575_v36 }
 0x113   : > { %7883 = vrot.lane.b32.xlu1 %v10060_v8, %s12818_s23  ;;  %v7591_v32 = vunpack.i.h.bf16 %v7589_v61  ;;  %v7590_v54 = vunpack.i.l.bf16 %v7589_v61  ;;  %v1886_v35 = vsel %vm1873_vm7, %v1853_v63, %v7570_v5  ;;  %v1921_v5 = vsel %vm1906_vm8, %v1888_v16, %v7585_v40 }
 0x114   : > { %7878 = vrot.lane.b32.xlu0 %v9958_v21, %s12818_s23  ;;  %v1854_v21 = vsel %vm1840_vm6, %v1821_v56, %v7561_v52  ;;  %v1919_v39 = vsel %vm1906_vm8, %v1886_v35, %v7580_v11  ;;  %s12833_s23 = sld [smem:[#allocation19_spill]] }
 0x115   : > { %v7604_v34 = vpop.permute.xlu1 %7603  ;;  %v1887_v43 = vsel %vm1873_vm7, %v1854_v21, %v7571_v0 }
 0x116   : > { %v7599_v37 = vpop.permute.xlu0 %7598  ;;  %v1920_v41 = vsel %vm1906_vm8, %v1887_v43, %v7581_v20  ;;  %v7606_v31 = vunpack.i.h.bf16 %v7604_v34  ;;  %v7605_v48 = vunpack.i.l.bf16 %v7604_v34  ;;  %v1922_v34 = vsel %vm1906_vm8, %v1889_v29, %v7586_v62 }
 0x117   : > { %7893 = vrot.lane.b32.xlu1 %v10064_v10, %s12822_s2  ;;  %v7601_v60 = vunpack.i.h.bf16 %v7599_v37  ;;  %v7600_v17 = vunpack.i.l.bf16 %v7599_v37  ;;  %v1953_v61 = vsel %vm1939_vm9, %v1920_v41, %v7591_v32  ;;  %v1954_v37 = vsel %vm1939_vm9, %v1921_v5, %v7595_v44 }
 0x118   : > { %7888 = vrot.lane.b32.xlu0 %v9964_v51, %s12822_s2  ;;  %v1952_v51 = vsel %vm1939_vm9, %v1919_v39, %v7590_v54  ;;  %v1955_v63 = vsel %vm1939_vm9, %v1922_v34, %v7596_v38  ;;  %v1987_v22 = vsel %vm1972_vm10, %v1954_v37, %v7605_v48 }
 0x119   : > { %v10112_v58 = vpop.permute.xlu1 %7613  ;;  %v1985_v4 = vsel %vm1972_vm10, %v1952_v51, %v7600_v17  ;;  %v1986_v9 = vsel %vm1972_vm10, %v1953_v61, %v7601_v60  ;;  %v1988_v23 = vsel %vm1972_vm10, %v1955_v63, %v7606_v31 }
 0x11a   : > { %v7609_v27 = vpop.permute.xlu0 %7608  ;;  %v7616_v41 = vunpack.i.h.bf16 %v10112_v58  ;;  %v7615_v38 = vunpack.i.l.bf16 %v10112_v58 }
 0x11b   : > { %v7611_v52 = vunpack.i.h.bf16 %v7609_v27  ;;  %v7610_v49 = vunpack.i.l.bf16 %v7609_v27  ;;  %7903 = vrot.lane.b32.xlu1 %v10078_v50, %s12823_s29 }
 0x11c   : > { %7898 = vrot.lane.b32.xlu0 %v10044_v13, %s12823_s29  ;;  %v1792_v58 = vsel %vm1774_vm4, %v9451_v18, %v7616_v41  ;;  %v1791_v29 = vsel %vm1774_vm4, %v9454_v19, %v7615_v38  ;;  %s12770_s29 = smov 48  }
 0x11d   : > { %v2018_v56 = vsel %vm2005_vm11, %v1985_v4, %v7610_v49  ;;  %v2019_v59 = vsel %vm2005_vm11, %v1986_v9, %v7611_v52  ;;  %v7624_v0 = vpop.permute.xlu1 %7623 }
 0x11e   : > { %v7619_v20 = vpop.permute.xlu0 %7618  ;;  %v2044_v11 = vpack.c.bf16 %v2019_v59, %v2018_v56  ;;  %v7626_v62 = vunpack.i.h.bf16 %v7624_v0  ;;  %v7625_v40 = vunpack.i.l.bf16 %v7624_v0 }
 0x11f   : > { %v7621_v13 = vunpack.i.h.bf16 %v7619_v20  ;;  %v7620_v21 = vunpack.i.l.bf16 %v7619_v20  ;;  %7913 = vrot.lane.b32.xlu1 %v10084_v47, %s12819_s27 }
 0x120   : > { %7908 = vrot.lane.b32.xlu0 %v10060_v8, %s12819_s27  ;;  %7098 = vmatprep.mubr.msk.bf16.mxu0 %vm2081_vm12, %v2044_v11  ;;  %v1793_v51 = vsel %vm1774_vm4, %v9479_v46, %v7625_v40 }
 0x121   : > { %v2021_v32 = vsel %vm2005_vm11, %v1988_v23, %v7621_v13  ;;  %v2020_v54 = vsel %vm2005_vm11, %v1987_v22, %v7620_v21  ;;  %v7634_v33 = vpop.permute.xlu1 %7633 }
 0x122   : > { %v7629_v36 = vpop.permute.xlu0 %7628  ;;  %v2045_v60 = vpack.c.bf16 %v2021_v32, %v2020_v54  ;;  %v7636_v44 = vunpack.i.h.bf16 %v7634_v33  ;;  %v7635_v27 = vunpack.i.l.bf16 %v7634_v33 }
 0x123   : > { %7923 = vrot.lane.b32.xlu1 %v9252_v15, %s12820_s22  ;;  %v7631_v61 = vunpack.i.h.bf16 %v7629_v36  ;;  %v7630_v52 = vunpack.i.l.bf16 %v7629_v36 }
 0x124   : > { %7918 = vrot.lane.b32.xlu0 %v10064_v10, %s12820_s22  ;;  %7099 = vmatmul.mubr.msk.bf16.gmra.mrb[12].mxu0 %vm2081_vm12, %v2045_v60  ;;  %v1826_v56 = vsel %vm1807_vm5, %v1793_v51, %v7635_v27  ;;  %s12773_s22 = smov 40  }
 0x125   : > { %v7644_v17 = vpop.permute.xlu1 %7643  ;;  %v1825_v46 = vsel %vm1807_vm5, %v1792_v58, %v7631_v61  ;;  %v1824_v59 = vsel %vm1807_vm5, %v1791_v29, %v7630_v52 }
 0x126   : > { %v7639_v35 = vpop.permute.xlu0 %7638  ;;  %v7646_v31 = vunpack.i.h.bf16 %v7644_v17  ;;  %v7645_v48 = vunpack.i.l.bf16 %v7644_v17 }
 0x127   : > { %7933 = vrot.lane.b32.xlu1 %v9250_v14, %s12821_s20  ;;  %v7641_v9 = vunpack.i.h.bf16 %v7639_v35  ;;  %v7640_v16 = vunpack.i.l.bf16 %v7639_v35 }
 0x128   : > { %7928 = vrot.lane.b32.xlu0 %v10078_v50, %s12821_s20  ;;  %v1794_v50 = vsel %vm1774_vm4, %v9476_v45, %v7626_v62  ;;  %v1859_v20 = vsel %vm1840_vm6, %v1826_v56, %v7645_v48 }
 0x129   : > { %v10152_v8 = vpop.permute.xlu1 %7653  ;;  %v1827_v45 = vsel %vm1807_vm5, %v1794_v50, %v7636_v44  ;;  %v1857_v19 = vsel %vm1840_vm6, %v1824_v59, %v7640_v16  ;;  %v1858_v13 = vsel %vm1840_vm6, %v1825_v46, %v7641_v9 }
 0x12a   : > { %v7649_v43 = vpop.permute.xlu0 %7648  ;;  %v1860_v11 = vsel %vm1840_vm6, %v1827_v45, %v7646_v31  ;;  %v7656_v23 = vunpack.i.h.bf16 %v10152_v8  ;;  %v7655_v32 = vunpack.i.l.bf16 %v10152_v8 }
 0x12b   : > { %v7651_v0 = vunpack.i.h.bf16 %v7649_v43  ;;  %v7650_v5 = vunpack.i.l.bf16 %v7649_v43 }
 0x12c   : > { %7938 = vrot.lane.b32.xlu0 %v9252_v15, %s12817_s25  ;;  %v1892_v31 = vsel %vm1873_vm7, %v1859_v20, %v7655_v32  ;;  %v1893_v48 = vsel %vm1873_vm7, %v1860_v11, %v7656_v23 }
 0x12d   : > { %v10156_v39 = vpop.permute.xlu1 %7663  ;;  %v1890_v36 = vsel %vm1873_vm7, %v1857_v19, %v7650_v5  ;;  %v1891_v60 = vsel %vm1873_vm7, %v1858_v13, %v7651_v0 }
 0x12e   : > { %v7659_v10 = vpop.permute.xlu0 %7658  ;;  %v7666_v17 = vunpack.i.h.bf16 %v10156_v39  ;;  %v7665_v35 = vunpack.i.l.bf16 %v10156_v39 }
 0x12f   : > { %v7661_v37 = vunpack.i.h.bf16 %v7659_v10  ;;  %v7660_v18 = vunpack.i.l.bf16 %v7659_v10 }
 0x130   : > { %7943 = vrot.lane.b32.xlu0 %v9250_v14, %s12822_s2  ;;  %v1925_v16 = vsel %vm1906_vm8, %v1892_v31, %v7665_v35  ;;  %v1926_v58 = vsel %vm1906_vm8, %v1893_v48, %v7666_v17 }
 0x131   : > { %v7674_v49 = vpop.permute.xlu1 %7673  ;;  %v1923_v62 = vsel %vm1906_vm8, %v1890_v36, %v7660_v18  ;;  %v1924_v40 = vsel %vm1906_vm8, %v1891_v60, %v7661_v37 }
 0x132   : > { %v7669_v4 = vpop.permute.xlu0 %7668  ;;  %v7676_v10 = vunpack.i.h.bf16 %v7674_v49  ;;  %v7675_v41 = vunpack.i.l.bf16 %v7674_v49 }
 0x133   : > { %v7671_v21 = vunpack.i.h.bf16 %v7669_v4  ;;  %v7670_v22 = vunpack.i.l.bf16 %v7669_v4 }
 0x134   : > { %v1958_v45 = vsel %vm1939_vm9, %v1925_v16, %v7675_v41  ;;  %v1959_v46 = vsel %vm1939_vm9, %v1926_v58, %v7676_v10 }
 0x135   : > { %v7684_v34 = vpop.permute.xlu1 %7683  ;;  %v1956_v8 = vsel %vm1939_vm9, %v1923_v62, %v7670_v22  ;;  %v1957_v44 = vsel %vm1939_vm9, %v1924_v40, %v7671_v21 }
 0x136   : > { %v7679_v63 = vpop.permute.xlu0 %7678  ;;  %v7686_v51 = vunpack.i.h.bf16 %v7684_v34  ;;  %v7685_v61 = vunpack.i.l.bf16 %v7684_v34 }
 0x137   : > { %v7681_v54 = vunpack.i.h.bf16 %v7679_v63  ;;  %v7680_v33 = vunpack.i.l.bf16 %v7679_v63 }
 0x138   : > { %v1991_v5 = vsel %vm1972_vm10, %v1958_v45, %v7685_v61  ;;  %v1992_v34 = vsel %vm1972_vm10, %v1959_v46, %v7686_v51 }
 0x139   : > { %v7694_v43 = vpop.permute.xlu1 %7693  ;;  %v1989_v52 = vsel %vm1972_vm10, %v1956_v8, %v7680_v33  ;;  %v1990_v39 = vsel %vm1972_vm10, %v1957_v44, %v7681_v54 }
 0x13a   : > { %v7689_v38 = vpop.permute.xlu0 %7688  ;;  %v7696_v36 = vunpack.i.h.bf16 %v7694_v43  ;;  %v7695_v60 = vunpack.i.l.bf16 %v7694_v43 }
 0x13b   : > { %v7691_v27 = vunpack.i.h.bf16 %v7689_v38  ;;  %v7690_v50 = vunpack.i.l.bf16 %v7689_v38 }
 0x13c   : > { %v1796_v61 = vsel %vm1774_vm4, %v9523_v26, %v7696_v36  ;;  %v1795_v43 = vsel %vm1774_vm4, %v9519_v25, %v7695_v60 }
 0x13d   : > { %v2022_v4 = vsel %vm2005_vm11, %v1989_v52, %v7690_v50  ;;  %v2023_v49 = vsel %vm2005_vm11, %v1990_v39, %v7691_v27  ;;  %v7704_v9 = vpop.permute.xlu1 %7703 }
 0x13e   : > { %v7699_v29 = vpop.permute.xlu0 %7698  ;;  %v2046_v56 = vpack.c.bf16 %v2023_v49, %v2022_v4  ;;  %v7706_v23 = vunpack.i.h.bf16 %v7704_v9  ;;  %v7705_v32 = vunpack.i.l.bf16 %v7704_v9 }
 0x13f   : > { %v7701_v59 = vunpack.i.h.bf16 %v7699_v29  ;;  %v7700_v0 = vunpack.i.l.bf16 %v7699_v29 }
 0x140   : > { %7102 = vmatprep.mubr.msk.bf16.mxu0 %vm2081_vm12, %v2046_v56  ;;  %v1798_v62 = vsel %vm1774_vm4, %v9542_v57, %v7706_v23  ;;  %v1797_v40 = vsel %vm1774_vm4, %v9545_v42, %v7705_v32 }
 0x141   : > { %v2025_v20 = vsel %vm2005_vm11, %v1992_v34, %v7701_v59  ;;  %v2024_v11 = vsel %vm2005_vm11, %v1991_v5, %v7700_v0  ;;  %v7714_v37 = vpop.permute.xlu1 %7713 }
 0x142   : > { %v7709_v18 = vpop.permute.xlu0 %7708  ;;  %v2047_v63 = vpack.c.bf16 %v2025_v20, %v2024_v11  ;;  %v7716_v17 = vunpack.i.h.bf16 %v7714_v37  ;;  %v7715_v35 = vunpack.i.l.bf16 %v7714_v37 }
 0x143   : > { %v7711_v10 = vunpack.i.h.bf16 %v7709_v18  ;;  %v7710_v41 = vunpack.i.l.bf16 %v7709_v18 }
 0x144   : > { %7103 = vmatmul.mubr.msk.bf16.gmra.mrb[16].mxu0 %vm2081_vm12, %v2047_v63  ;;  %v1830_v52 = vsel %vm1807_vm5, %v1797_v40, %v7715_v35  ;;  %v1831_v57 = vsel %vm1807_vm5, %v1798_v62, %v7716_v17 }
 0x145   : > { %v7724_v19 = vpop.permute.xlu1 %7723  ;;  %v1829_v42 = vsel %vm1807_vm5, %v1796_v61, %v7711_v10  ;;  %v1828_v39 = vsel %vm1807_vm5, %v1795_v43, %v7710_v41 }
 0x146   : > { %v7719_v13 = vpop.permute.xlu0 %7718  ;;  %v7726_v8 = vunpack.i.h.bf16 %v7724_v19  ;;  %v7725_v44 = vunpack.i.l.bf16 %v7724_v19 }
 0x147   : > { %v7721_v50 = vunpack.i.h.bf16 %v7719_v13  ;;  %v7720_v51 = vunpack.i.l.bf16 %v7719_v13 }
 0x148   : > { %v1863_v49 = vsel %vm1840_vm6, %v1830_v52, %v7725_v44  ;;  %v1864_v9 = vsel %vm1840_vm6, %v1831_v57, %v7726_v8 }
 0x149   : > { %v10204_v21 = vpop.permute.xlu1 %7733  ;;  %v1861_v25 = vsel %vm1840_vm6, %v1828_v39, %v7720_v51  ;;  %v1862_v29 = vsel %vm1840_vm6, %v1829_v42, %v7721_v50 }
 0x14a   : > { %v7729_v22 = vpop.permute.xlu0 %7728  ;;  %v7736_v46 = vunpack.i.h.bf16 %v10204_v21  ;;  %v7735_v59 = vunpack.i.l.bf16 %v10204_v21 }
 0x14b   : > { %v7731_v31 = vunpack.i.h.bf16 %v7729_v22  ;;  %v7730_v48 = vunpack.i.l.bf16 %v7729_v22 }
 0x14c   : > { %v1896_v62 = vsel %vm1873_vm7, %v1863_v49, %v7735_v59  ;;  %v1897_v40 = vsel %vm1873_vm7, %v1864_v9, %v7736_v46 }
 0x14d   : > { %v10206_v54 = vpop.permute.xlu1 %7743  ;;  %v1894_v34 = vsel %vm1873_vm7, %v1861_v25, %v7730_v48  ;;  %v1895_v20 = vsel %vm1873_vm7, %v1862_v29, %v7731_v31 }
 0x14e   : > { %v7739_v33 = vpop.permute.xlu0 %7738  ;;  %v7746_v11 = vunpack.i.h.bf16 %v10206_v54  ;;  %v7745_v37 = vunpack.i.l.bf16 %v10206_v54 }
 0x14f   : > { %v7741_v16 = vunpack.i.h.bf16 %v7739_v33  ;;  %v7740_v26 = vunpack.i.l.bf16 %v7739_v33 }
 0x150   : > { %v1929_v8 = vsel %vm1906_vm8, %v1896_v62, %v7745_v37  ;;  %v1930_v44 = vsel %vm1906_vm8, %v1897_v40, %v7746_v11 }
 0x151   : > { %v7754_v38 = vpop.permute.xlu1 %7753  ;;  %v1927_v63 = vsel %vm1906_vm8, %v1894_v34, %v7740_v26  ;;  %v1928_v19 = vsel %vm1906_vm8, %v1895_v20, %v7741_v16 }
 0x152   : > { %v7749_v27 = vpop.permute.xlu0 %7748  ;;  %v7756_v13 = vunpack.i.h.bf16 %v7754_v38  ;;  %v7755_v22 = vunpack.i.l.bf16 %v7754_v38 }
 0x153   : > { %v7751_v56 = vunpack.i.h.bf16 %v7749_v27  ;;  %v7750_v45 = vunpack.i.l.bf16 %v7749_v27 }
 0x154   : > { %v1962_v51 = vsel %vm1939_vm9, %v1929_v8, %v7755_v22  ;;  %v1963_v61 = vsel %vm1939_vm9, %v1930_v44, %v7756_v13 }
 0x155   : > { %v7764_v4 = vpop.permute.xlu1 %7763  ;;  %v1960_v21 = vsel %vm1939_vm9, %v1927_v63, %v7750_v45  ;;  %v1961_v32 = vsel %vm1939_vm9, %v1928_v19, %v7751_v56 }
 0x156   : > { %v7759_v58 = vpop.permute.xlu0 %7758  ;;  %v7766_v60 = vunpack.i.h.bf16 %v7764_v4  ;;  %v7765_v17 = vunpack.i.l.bf16 %v7764_v4 }
 0x157   : > { %v7761_v0 = vunpack.i.h.bf16 %v7759_v58  ;;  %v7760_v5 = vunpack.i.l.bf16 %v7759_v58 }
 0x158   : > { %v1995_v57 = vsel %vm1972_vm10, %v1962_v51, %v7765_v17  ;;  %v1996_v42 = vsel %vm1972_vm10, %v1963_v61, %v7766_v60 }
 0x159   : > { %v7774_v18 = vpop.permute.xlu1 %7773  ;;  %v1993_v35 = vsel %vm1972_vm10, %v1960_v21, %v7760_v5  ;;  %v1994_v54 = vsel %vm1972_vm10, %v1961_v32, %v7761_v0 }
 0x15a   : > { %v7769_v23 = vpop.permute.xlu0 %7768  ;;  %v7776_v46 = vunpack.i.h.bf16 %v7774_v18  ;;  %v7775_v59 = vunpack.i.l.bf16 %v7774_v18 }
 0x15b   : > { %v7771_v33 = vunpack.i.h.bf16 %v7769_v23  ;;  %v7770_v36 = vunpack.i.l.bf16 %v7769_v23 }
 0x15c   : > { %v1800_v32 = vsel %vm1774_vm4, %v9698_v24, %v7776_v46  ;;  %v1799_v18 = vsel %vm1774_vm4, %v9703_v12, %v7775_v59 }
 0x15d   : > { %v2026_v10 = vsel %vm2005_vm11, %v1993_v35, %v7770_v36  ;;  %v2027_v41 = vsel %vm2005_vm11, %v1994_v54, %v7771_v33  ;;  %v7784_v38 = vpop.permute.xlu1 %7783 }
 0x15e   : > { %v7779_v27 = vpop.permute.xlu0 %7778  ;;  %v2048_v50 = vpack.c.bf16 %v2027_v41, %v2026_v10  ;;  %v7786_v25 = vunpack.i.h.bf16 %v7784_v38  ;;  %v7785_v29 = vunpack.i.l.bf16 %v7784_v38 }
 0x15f   : > { %v7781_v43 = vunpack.i.h.bf16 %v7779_v27  ;;  %v7780_v52 = vunpack.i.l.bf16 %v7779_v27 }
 0x160   : > { %7106 = vmatprep.mubr.msk.bf16.mxu0 %vm2081_vm12, %v2048_v50  ;;  %v1802_v34 = vsel %vm1774_vm4, %v9729_v6, %v7786_v25  ;;  %v1801_v20 = vsel %vm1774_vm4, %v9732_v55, %v7785_v29 }
 0x161   : > { %v2029_v39 = vsel %vm2005_vm11, %v1996_v42, %v7781_v43  ;;  %v2028_v31 = vsel %vm2005_vm11, %v1995_v57, %v7780_v52  ;;  %v7794_v48 = vpop.permute.xlu1 %7793 }
 0x162   : > { %v7789_v4 = vpop.permute.xlu0 %7788  ;;  %v2049_v49 = vpack.c.bf16 %v2029_v39, %v2028_v31  ;;  %v7796_v0 = vunpack.i.h.bf16 %v7794_v48  ;;  %v7795_v5 = vunpack.i.l.bf16 %v7794_v48 }
 0x163   : > { %v7791_v11 = vunpack.i.h.bf16 %v7789_v4  ;;  %v7790_v37 = vunpack.i.l.bf16 %v7789_v4 }
 0x164   : > { %7107 = vmatmul.mubr.msk.bf16.gmra.mrb[20].mxu0 %vm2081_vm12, %v2049_v49  ;;  %v1834_v33 = vsel %vm1807_vm5, %v1801_v20, %v7795_v5  ;;  %v1835_v6 = vsel %vm1807_vm5, %v1802_v34, %v7796_v0 }
 0x165   : > { %v7804_v9 = vpop.permute.xlu1 %7803  ;;  %v1833_v55 = vsel %vm1807_vm5, %v1800_v32, %v7791_v11  ;;  %v1832_v36 = vsel %vm1807_vm5, %v1799_v18, %v7790_v37 }
 0x166   : > { %v7799_v16 = vpop.permute.xlu0 %7798  ;;  %v7806_v19 = vunpack.i.h.bf16 %v7804_v9  ;;  %v7805_v13 = vunpack.i.l.bf16 %v7804_v9 }
 0x167   : > { %v7801_v23 = vunpack.i.h.bf16 %v7799_v16  ;;  %v7800_v21 = vunpack.i.l.bf16 %v7799_v16 }
 0x168   : > { %v1867_v54 = vsel %vm1840_vm6, %v1834_v33, %v7805_v13  ;;  %v1868_v62 = vsel %vm1840_vm6, %v1835_v6, %v7806_v19 }
 0x169   : > { %v10250_v26 = vpop.permute.xlu1 %7813  ;;  %v1865_v12 = vsel %vm1840_vm6, %v1832_v36, %v7800_v21  ;;  %v1866_v41 = vsel %vm1840_vm6, %v1833_v55, %v7801_v23 }
 0x16a   : > { %v7809_v58 = vpop.permute.xlu0 %7808  ;;  %v7816_v44 = vunpack.i.h.bf16 %v10250_v26  ;;  %v7815_v27 = vunpack.i.l.bf16 %v10250_v26 }
 0x16b   : > { %v7811_v60 = vunpack.i.h.bf16 %v7809_v58  ;;  %v7810_v17 = vunpack.i.l.bf16 %v7809_v58 }
 0x16c   : > { %v1900_v46 = vsel %vm1873_vm7, %v1867_v54, %v7815_v27  ;;  %v1901_v59 = vsel %vm1873_vm7, %v1868_v62, %v7816_v44 }
 0x16d   : > { %v10252_v56 = vpop.permute.xlu1 %7823  ;;  %v1898_v61 = vsel %vm1873_vm7, %v1865_v12, %v7810_v17  ;;  %v1899_v43 = vsel %vm1873_vm7, %v1866_v41, %v7811_v60 }
 0x16e   : > { %v7819_v45 = vpop.permute.xlu0 %7818  ;;  %v7826_v52 = vunpack.i.h.bf16 %v10252_v56  ;;  %v7825_v57 = vunpack.i.l.bf16 %v10252_v56 }
 0x16f   : > { %v7821_v40 = vunpack.i.h.bf16 %v7819_v45  ;;  %v7820_v24 = vunpack.i.l.bf16 %v7819_v45 }
 0x170   : > { %v1933_v20 = vsel %vm1906_vm8, %v1900_v46, %v7825_v57  ;;  %v1934_v11 = vsel %vm1906_vm8, %v1901_v59, %v7826_v52 }
 0x171   : > { %v7834_v63 = vpop.permute.xlu1 %7833  ;;  %v1931_v39 = vsel %vm1906_vm8, %v1898_v61, %v7820_v24  ;;  %v1932_v31 = vsel %vm1906_vm8, %v1899_v43, %v7821_v40 }
 0x172   : > { %v7829_v22 = vpop.permute.xlu0 %7828  ;;  %v7836_v48 = vunpack.i.h.bf16 %v7834_v63  ;;  %v7835_v4 = vunpack.i.l.bf16 %v7834_v63 }
 0x173   : > { %v7831_v38 = vunpack.i.h.bf16 %v7829_v22  ;;  %v7830_v8 = vunpack.i.l.bf16 %v7829_v22 }
 0x174   : > { %v1966_v19 = vsel %vm1939_vm9, %v1933_v20, %v7835_v4  ;;  %v1967_v13 = vsel %vm1939_vm9, %v1934_v11, %v7836_v48 }
 0x175   : > { %v7844_v35 = vpop.permute.xlu1 %7843  ;;  %v1964_v9 = vsel %vm1939_vm9, %v1931_v39, %v7830_v8  ;;  %v1965_v16 = vsel %vm1939_vm9, %v1932_v31, %v7831_v38 }
 0x176   : > { %v7839_v10 = vpop.permute.xlu0 %7838  ;;  %v7846_v25 = vunpack.i.h.bf16 %v7844_v35  ;;  %v7845_v29 = vunpack.i.l.bf16 %v7844_v35 }
 0x177   : > { %v7841_v50 = vunpack.i.h.bf16 %v7839_v10  ;;  %v7840_v51 = vunpack.i.l.bf16 %v7839_v10 }
 0x178   : > { %v1999_v21 = vsel %vm1972_vm10, %v1966_v19, %v7845_v29  ;;  %v2000_v32 = vsel %vm1972_vm10, %v1967_v13, %v7846_v25 }
 0x179   : > { %v7854_v42 = vpop.permute.xlu1 %7853  ;;  %v1997_v45 = vsel %vm1972_vm10, %v1964_v9, %v7840_v51  ;;  %v1998_v56 = vsel %vm1972_vm10, %v1965_v16, %v7841_v50 }
 0x17a   : > { %v7849_v49 = vpop.permute.xlu0 %7848  ;;  %v7856_v40 = vunpack.i.h.bf16 %v7854_v42  ;;  %v7855_v24 = vunpack.i.l.bf16 %v7854_v42 }
 0x17b   : > { %v7851_v26 = vunpack.i.h.bf16 %v7849_v49  ;;  %v7850_v58 = vunpack.i.l.bf16 %v7849_v49 }
 0x17c   : > { %v1804_v51 = vsel %vm1774_vm4, %v9883_v30, %v7856_v40  ;;  %v1803_v61 = vsel %vm1774_vm4, %v9877_v53, %v7855_v24 }
 0x17d   : > { %v2030_v0 = vsel %vm2005_vm11, %v1997_v45, %v7850_v58  ;;  %v2031_v5 = vsel %vm2005_vm11, %v1998_v56, %v7851_v26  ;;  %v7864_v34 = vpop.permute.xlu1 %7863 }
 0x17e   : > { %v7859_v37 = vpop.permute.xlu0 %7858  ;;  %v2050_v63 = vpack.c.bf16 %v2031_v5, %v2030_v0  ;;  %v7866_v35 = vunpack.i.h.bf16 %v7864_v34  ;;  %v7865_v54 = vunpack.i.l.bf16 %v7864_v34 }
 0x17f   : > { %v7861_v22 = vunpack.i.h.bf16 %v7859_v37  ;;  %v7860_v23 = vunpack.i.l.bf16 %v7859_v37 }
 0x180   : > { %7110 = vmatprep.mubr.msk.bf16.mxu0 %vm2081_vm12, %v2050_v63  ;;  %v1806_v38 = vsel %vm1774_vm4, %v9901_v7, %v7866_v35  ;;  %v1805_v8 = vsel %vm1774_vm4, %v9904_v28, %v7865_v54 }
 0x181   : > { %v2033_v18 = vsel %vm2005_vm11, %v2000_v32, %v7861_v22  ;;  %v2032_v33 = vsel %vm2005_vm11, %v1999_v21, %v7860_v23  ;;  %v7874_v6 = vpop.permute.xlu1 %7873  ;;  %v10321_v21 = vld [vmem:[%s12833_s23] ss:$0 sm:$0xff] }
 0x182   : > { %v7869_v55 = vpop.permute.xlu0 %7868  ;;  %v2051_v36 = vpack.c.bf16 %v2033_v18, %v2032_v33  ;;  %v7876_v12 = vunpack.i.h.bf16 %v7874_v6  ;;  %v7875_v41 = vunpack.i.l.bf16 %v7874_v6 }
 0x183   : > { %v7871_v44 = vunpack.i.h.bf16 %v7869_v55  ;;  %v7870_v27 = vunpack.i.l.bf16 %v7869_v55 }
 0x184   : > { %7111 = vmatmul.mubr.msk.bf16.gmra.mrb[24].mxu0 %vm2081_vm12, %v2051_v36  ;;  %v1838_v42 = vsel %vm1807_vm5, %v1805_v8, %v7875_v41  ;;  %v1839_v39 = vsel %vm1807_vm5, %v1806_v38, %v7876_v12 }
 0x185   : > { %v7884_v60 = vpop.permute.xlu1 %7883  ;;  %v1837_v28 = vsel %vm1807_vm5, %v1804_v51, %v7871_v44  ;;  %v1836_v48 = vsel %vm1807_vm5, %v1803_v61, %v7870_v27 }
 0x186   : > { %v7879_v17 = vpop.permute.xlu0 %7878  ;;  %v7886_v43 = vunpack.i.h.bf16 %v7884_v60  ;;  %v7885_v52 = vunpack.i.l.bf16 %v7884_v60 }
 0x187   : > { %v7881_v7 = vunpack.i.h.bf16 %v7879_v17  ;;  %v7880_v31 = vunpack.i.l.bf16 %v7879_v17 }
 0x188   : > { %v1871_v58 = vsel %vm1840_vm6, %v1838_v42, %v7885_v52  ;;  %v1872_v25 = vsel %vm1840_vm6, %v1839_v39, %v7886_v43 }
 0x189   : > { %v7894_v62 = vpop.permute.xlu1 %7893  ;;  %v1869_v46 = vsel %vm1840_vm6, %v1836_v48, %v7880_v31  ;;  %v1870_v59 = vsel %vm1840_vm6, %v1837_v28, %v7881_v7  ;;  %vm3640_vm6 = vcmask 457728  }
 0x18a   : > { %v7889_v10 = vpop.permute.xlu0 %7888  ;;  %v7896_v4 = vunpack.i.h.bf16 %v7894_v62  ;;  %v7895_v49 = vunpack.i.l.bf16 %v7894_v62 }
 0x18b   : > { %v7891_v9 = vunpack.i.h.bf16 %v7889_v10  ;;  %v7890_v30 = vunpack.i.l.bf16 %v7889_v10 }
 0x18c   : > { %v1904_v34 = vsel %vm1873_vm7, %v1871_v58, %v7895_v49  ;;  %v1905_v20 = vsel %vm1873_vm7, %v1872_v25, %v7896_v4 }
 0x18d   : > { %v7904_v50 = vpop.permute.xlu1 %7903  ;;  %v1902_v63 = vsel %vm1873_vm7, %v1869_v46, %v7890_v30  ;;  %v1903_v19 = vsel %vm1873_vm7, %v1870_v59, %v7891_v9 }
 0x18e   : > { %v7899_v57 = vpop.permute.xlu0 %7898  ;;  %v7906_v16 = vunpack.i.h.bf16 %v7904_v50  ;;  %v7905_v26 = vunpack.i.l.bf16 %v7904_v50 }
 0x18f   : > { %v7901_v29 = vunpack.i.h.bf16 %v7899_v57  ;;  %v7900_v45 = vunpack.i.l.bf16 %v7899_v57 }
 0x190   : > { %v1937_v13 = vsel %vm1906_vm8, %v1904_v34, %v7905_v26  ;;  %v1938_v22 = vsel %vm1906_vm8, %v1905_v20, %v7906_v16 }
 0x191   : > { %v7914_v53 = vpop.permute.xlu1 %7913  ;;  %v1935_v32 = vsel %vm1906_vm8, %v1902_v63, %v7900_v45  ;;  %v1936_v18 = vsel %vm1906_vm8, %v1903_v19, %v7901_v29  ;;  %vm3673_vm8 = vcmask 523264  }
 0x192   : > { %v7909_v56 = vpop.permute.xlu0 %7908  ;;  %v7916_v0 = vunpack.i.h.bf16 %v7914_v53  ;;  %v7915_v5 = vunpack.i.l.bf16 %v7914_v53 }
 0x193   : > { %v7911_v11 = vunpack.i.h.bf16 %v7909_v56  ;;  %v7910_v37 = vunpack.i.l.bf16 %v7909_v56 }
 0x194   : > { %v1970_v36 = vsel %vm1939_vm9, %v1937_v13, %v7915_v5  ;;  %v1971_v60 = vsel %vm1939_vm9, %v1938_v22, %v7916_v0 }
 0x195   : > { %v7924_v23 = vpop.permute.xlu1 %7923  ;;  %v1968_v62 = vsel %vm1939_vm9, %v1935_v32, %v7910_v37  ;;  %v1969_v40 = vsel %vm1939_vm9, %v1936_v18, %v7911_v11 }
 0x196   : > { %v7926_v33 = vunpack.i.h.bf16 %v7924_v23  ;;  %v7925_v6 = vunpack.i.l.bf16 %v7924_v23  ;;  %v7919_v55 = vpop.permute.xlu0 %7918 }
 0x197   : > { %v7921_v17 = vunpack.i.h.bf16 %v7919_v55  ;;  %v7920_v35 = vunpack.i.l.bf16 %v7919_v55  ;;  %v7088_v54 = vpop.f32.mrb[0].mxu0 }
 0x198   : > { %v2003_v24 = vsel %vm1972_vm10, %v1970_v36, %v7925_v6  ;;  %v2177_v10 = vadd.f32 %v7088_v54, %v10321_v21  ;;  %v2168_v12 = vpop.f32.mrb[1].mxu0  ;;  %v2004_v41 = vsel %vm1972_vm10, %v1971_v60, %v7926_v33 }
 0x199   : > { %v2001_v38 = vsel %vm1972_vm10, %v1968_v62, %v7920_v35  ;;  %v2002_v8 = vsel %vm1972_vm10, %v1969_v40, %v7921_v17  ;;  %v2169_v44 = vadd.f32 %v10321_v21, %v2168_v12  ;;  %v7089_v27 = vpop.f32.mrb[2].mxu0  ;;  %v7934_v50 = vpop.permute.xlu1 %7933  ;;  %vm12792_vm10 = vcmask 588800  }
 0x19a   : > { %v2297_v51 = vmax.f32 %v2177_v10, 0.0  ;;  %v2180_v61 = vadd.f32 %v7089_v27, %v10321_v21  ;;  %v7936_v43 = vunpack.i.h.bf16 %v7934_v50  ;;  %v7935_v52 = vunpack.i.l.bf16 %v7934_v50  ;;  %v7929_v57 = vpop.permute.xlu0 %7928  ;;  %v2171_v42 = vpop.f32.mrb[3].mxu0 }
 0x19b   : > { %v2295_v39 = vmax.f32 %v2169_v44, 0.0  ;;  %v7931_v7 = vunpack.i.h.bf16 %v7929_v57  ;;  %v7930_v31 = vunpack.i.l.bf16 %v7929_v57  ;;  %v2172_v28 = vadd.f32 %v10321_v21, %v2171_v42 }
 0x19c   : > { %v2362_v48 = vrot.slane %v2297_v51, 7  ;;  %v2298_v4 = vmax.f32 %v2180_v61, 0.0  ;;  %v2036_v49 = vsel %vm2005_vm11, %v2003_v24, %v7935_v52  ;;  %v2037_v9 = vsel %vm2005_vm11, %v2004_v41, %v7936_v43 }
 0x19d   : > { %v2034_v30 = vsel %vm2005_vm11, %v2001_v38, %v7930_v31  ;;  %v2035_v16 = vsel %vm2005_vm11, %v2002_v8, %v7931_v7  ;;  %v2296_v26 = vmax.f32 %v2172_v28, 0.0  ;;  %v2053_v25 = vpack.c.bf16 %v2037_v9, %v2036_v49 }
 0x19e   : > { %v2363_v53 = vrot.slane %v2298_v4, 7  ;;  %v2052_v58 = vpack.c.bf16 %v2035_v16, %v2034_v30  ;;  %v10342_v29 = vsel %vm666_vm0, 0.0, %v2362_v48  ;;  %v2359_v56 = vrot.slane %v2295_v39, 7 }
 0x19f   : > { %v2360_v45 = vrot.slane %v2296_v26, 7  ;;  %v2521_v34 = vrot.slane %v10342_v29, 1  ;;  %v2596_v22 = vrot.slane %v10342_v29, 2 }
 0x1a0   : > { %v10345_v46 = vsel %vm666_vm0, %v2362_v48, %v2363_v53  ;;  %v2471_v59 = vsel %vm666_vm0, %v2363_v53, 0.0  ;;  %7114 = vmatprep.mubr.msk.bf16.mxu0 %vm2081_vm12, %v2052_v58  ;;  %v10364_v23 = vsel %vm666_vm0, 0.0, %v2359_v56 }
 0x1a1   : > { %v2522_v0 = vrot.slane %v10345_v46, 1  ;;  %v2524_v5 = vrot.slane %v2471_v59, 1  ;;  %7115 = vmatmul.mubr.msk.bf16.gmra.mrb[28].mxu0 %vm2081_vm12, %v2053_v25  ;;  %v10353_v20 = vsel %vm666_vm0, %v2359_v56, %v2360_v45  ;;  %v7952_v11 = vpack.i.bf16 %v10345_v46, %v10342_v29 }
 0x1a2   : > { %v2597_v63 = vrot.slane %v10345_v46, 2  ;;  %v2599_v19 = vrot.slane %v2471_v59, 2  ;;  %v7957_v18 = vpack.i.bf16 %v10353_v20, %v10364_v23  ;;  %v2470_v55 = vsel %vm666_vm0, %v2360_v45, 0.0 }
 0x1a3   : > { %v2525_v37 = vsel %vm832_vm2, %v2522_v0, %v2524_v5  ;;  %7953 = vrot.lane.b32.xlu0 %v7952_v11, %s12770_s29  ;;  %7948 = vrot.lane.b32.xlu1 %v7952_v11, %s12819_s27  ;;  %v2523_v13 = vsel %vm832_vm2, %v2521_v34, %v2522_v0  ;;  %v2517_v60 = vrot.slane %v10353_v20, 1  ;;  %v2519_v17 = vrot.slane %v2470_v55, 1  ;;  %s12777_s29 = smov 56  }
 0x1a4   : > { %v7962_v32 = vpack.i.bf16 %v2525_v37, %v2523_v13  ;;  %v2600_v33 = vsel %vm913_vm1, %v2597_v63, %v2599_v19  ;;  %v2598_v6 = vsel %vm913_vm1, %v2596_v22, %v2597_v63  ;;  %v2516_v35 = vrot.slane %v10364_v23, 1  ;;  %v8910_v37 = vld [vmem:[%s12835_s0] sm:$0xff]   ;;  %v8911_v63 = vld [vmem:[%s12836_s19 + $0x8] sm:$0xff]   ;;  %s12839_s0 = smov 40  }
 0x1a5   : > { %v7967_v36 = vpack.i.bf16 %v2600_v33, %v2598_v6  ;;  %v2592_v54 = vrot.slane %v10353_v20, 2  ;;  %v2594_v62 = vrot.slane %v2470_v55, 2  ;;  %v2520_v24 = vsel %vm832_vm2, %v2517_v60, %v2519_v17  ;;  %7118 = vmatprep.subr.bf16.mxu1 %v8910_v37 }
 0x1a6   : > { %v2518_v40 = vsel %vm832_vm2, %v2516_v35, %v2517_v60  ;;  %v2591_v10 = vrot.slane %v10364_v23, 2  ;;  %7119 = vmatpush3.bf16.msra.mxu1 %v8910_v37  ;;  %v8913_v35 = vld [vmem:[%s12836_s19 + $0x18] sm:$0xff]   ;;  %vm4459_vm12 = vcmask 1042432  }
 0x1a7   : > { %7963 = vrot.lane.b32.xlu1 %v7962_v32, %s12821_s20  ;;  %7958 = vrot.lane.b32.xlu0 %v7957_v18, %s12819_s27  ;;  %v7992_v12 = vpack.i.bf16 %v2520_v24, %v2518_v40  ;;  %v2595_v38 = vsel %vm913_vm1, %v2592_v54, %v2594_v62  ;;  %v8912_v18 = vld [vmem:[%s12836_s19 + $0x10] sm:$0xff]  }
 0x1a8   : > { %v2593_v41 = vsel %vm913_vm1, %v2591_v10, %v2592_v54  ;;  %7120 = vmatprep.subr.bf16.mxu1 %v8911_v63 }
 0x1a9   : > { %v7997_v8 = vpack.i.bf16 %v2595_v38, %v2593_v41  ;;  %v8914_v41 = vld [vmem:[%s12836_s19 + $0x20] ss:$0 sps:$4 sm:$0xff]  }
 0x1aa   : > { %7121 = vmatpush3.bf16.msra.mxu1 %v8911_v63 }
 0x1ab   : > { %7968 = vrot.lane.b32.xlu1 %v7967_v36, %s12773_s22  ;;  %7973 = vrot.lane.b32.xlu0 %v7962_v32, %s12777_s29  ;;  %s12877_s29 = smov 80  }
 0x1ac   : > { %7122 = vmatprep.subr.bf16.mxu1 %v8912_v18 }
 0x1ae   : > { %7123 = vmatpush3.bf16.msra.mxu1 %v8912_v18 }
 0x1af   : > { %7983 = vrot.lane.b32.xlu1 %v7962_v32, %s12817_s25  ;;  %7978 = vrot.lane.b32.xlu0 %v7967_v36, %s12775_s26  ;;  %s12838_s26 = smov 64  }
 0x1b0   : > { %7124 = vmatprep.subr.bf16.mxu1 %v8913_v35 }
 0x1b2   : > { %7125 = vmatpush3.bf16.msra.mxu1 %v8913_v35 }
 0x1b3   : > { %7988 = vrot.lane.b32.xlu0 %v7967_v36, %s12822_s2  ;;  %7993 = vrot.lane.b32.xlu1 %v7992_v12, %s12817_s25 }
 0x1b4   : > { %7237 = vmatprep.subr.msk.bf16.mxu1 %vm3814_vm13, %v8914_v41 }
 0x1b7   : > { %v7092_v44 = vpop.f32.mrb[4].mxu0  ;;  %8003 = vrot.lane.b32.xlu0 %v7992_v12, %s12821_s20  ;;  %7998 = vrot.lane.b32.xlu1 %v7997_v8, %s12822_s2 }
 0x1b8   : > { %v2193_v27 = vadd.f32 %v7092_v44, %v10321_v21  ;;  %v2184_v50 = vpop.f32.mrb[5].mxu0 }
 0x1b9   : > { %v2185_v51 = vadd.f32 %v10321_v21, %v2184_v50  ;;  %v7093_v61 = vpop.f32.mrb[6].mxu0 }
 0x1ba   : > { %v2301_v43 = vmax.f32 %v2193_v27, 0.0  ;;  %v2196_v52 = vadd.f32 %v7093_v61, %v10321_v21  ;;  %v2187_v57 = vpop.f32.mrb[7].mxu0  ;;  %v3816_v27 = vsel %vm3814_vm13, %v8914_v41, 0 }
 0x1bb   : > { %v2188_v42 = vadd.f32 %v10321_v21, %v2187_v57  ;;  %v2299_v39 = vmax.f32 %v2185_v51, 0.0  ;;  %8008 = vrot.lane.b32.xlu0 %v7997_v8, %s12773_s22  ;;  %s12834_s22 = smov 48   ;;  %7127 = vmatpush3.bf16.msra.mxu1 %v3816_v27 }
 0x1bc   : > { %v2302_v7 = vmax.f32 %v2196_v52, 0.0  ;;  %v2368_v31 = vrot.slane %v2301_v43, 7 }
 0x1bd   : > { %v2300_v28 = vmax.f32 %v2188_v42, 0.0  ;;  %v2365_v49 = vrot.slane %v2299_v39, 7 }
 0x1be   : > { %v2369_v48 = vrot.slane %v2302_v7, 7  ;;  %v10399_v16 = vsel %vm666_vm0, 0.0, %v2368_v31 }
 0x1bf   : > { %v2366_v4 = vrot.slane %v2300_v28, 7  ;;  %v2531_v45 = vrot.slane %v10399_v16, 1  ;;  %v10411_v56 = vsel %vm666_vm0, 0.0, %v2365_v49  ;;  %v2606_v19 = vrot.slane %v10399_v16, 2 }
 0x1c0   : > { %v10395_v9 = vsel %vm666_vm0, %v2368_v31, %v2369_v48  ;;  %v2473_v30 = vsel %vm666_vm0, %v2369_v48, 0.0  ;;  %v2526_v54 = vrot.slane %v10411_v56, 1  ;;  %v2601_v62 = vrot.slane %v10411_v56, 2 }
 0x1c1   : > { %v10402_v26 = vsel %vm666_vm0, %v2365_v49, %v2366_v4  ;;  %v8017_v53 = vpack.i.bf16 %v10395_v9, %v10399_v16  ;;  %v2532_v58 = vrot.slane %v10395_v9, 1  ;;  %v2534_v25 = vrot.slane %v2473_v30, 1 }
 0x1c2   : > { %v8027_v59 = vpack.i.bf16 %v10402_v26, %v10411_v56  ;;  %v2607_v5 = vrot.slane %v10395_v9, 2  ;;  %v2609_v34 = vrot.slane %v2473_v30, 2  ;;  %v2472_v33 = vsel %vm666_vm0, %v2366_v4, 0.0 }
 0x1c3   : > { %8018 = vrot.lane.b32.xlu0 %v8017_v53, %s12834_s22  ;;  %8013 = vrot.lane.b32.xlu1 %v8017_v53, %s12819_s27  ;;  %v2535_v0 = vsel %vm832_vm2, %v2532_v58, %v2534_v25  ;;  %v2533_v11 = vsel %vm832_vm2, %v2531_v45, %v2532_v58  ;;  %v2527_v55 = vrot.slane %v10402_v26, 1  ;;  %v2529_v36 = vrot.slane %v2472_v33, 1 }
 0x1c4   : > { %v8042_v13 = vpack.i.bf16 %v2535_v0, %v2533_v11  ;;  %v2610_v22 = vsel %vm913_vm1, %v2607_v5, %v2609_v34  ;;  %v2608_v32 = vsel %vm913_vm1, %v2606_v19, %v2607_v5  ;;  %v2602_v60 = vrot.slane %v10402_v26, 2 }
 0x1c5   : > { %v8047_v6 = vpack.i.bf16 %v2610_v22, %v2608_v32  ;;  %v2604_v17 = vrot.slane %v2472_v33, 2  ;;  %v2530_v40 = vsel %vm832_vm2, %v2527_v55, %v2529_v36  ;;  %v2528_v12 = vsel %vm832_vm2, %v2526_v54, %v2527_v55 }
 0x1c6   : > { %v2603_v10 = vsel %vm913_vm1, %v2601_v62, %v2602_v60  ;;  %v8062_v8 = vpack.i.bf16 %v2530_v40, %v2528_v12 }
 0x1c7   : > { %8028 = vrot.lane.b32.xlu0 %v8027_v59, %s12819_s27  ;;  %8023 = vrot.lane.b32.xlu1 %v8027_v59, %s12834_s22  ;;  %v2605_v24 = vsel %vm913_vm1, %v2602_v60, %v2604_v17 }
 0x1c8   : > { %v8067_v38 = vpack.i.bf16 %v2605_v24, %v2603_v10 }
 0x1cb   : > { %8043 = vrot.lane.b32.xlu0 %v8042_v13, %s12837_s21  ;;  %8033 = vrot.lane.b32.xlu1 %v8042_v13, %s12821_s20 }
 0x1cf   : > { %8048 = vrot.lane.b32.xlu0 %v8047_v6, %s12838_s26  ;;  %8038 = vrot.lane.b32.xlu1 %v8047_v6, %s12839_s0 }
 0x1d3   : > { %8058 = vrot.lane.b32.xlu0 %v8047_v6, %s12822_s2  ;;  %8053 = vrot.lane.b32.xlu1 %v8042_v13, %s12817_s25 }
 0x1d7   : > { %v7096_v44 = vpop.f32.mrb[8].mxu0  ;;  %8068 = vrot.lane.b32.xlu0 %v8067_v38, %s12838_s26  ;;  %8063 = vrot.lane.b32.xlu1 %v8062_v8, %s12837_s21 }
 0x1d8   : > { %v2209_v50 = vadd.f32 %v7096_v44, %v10321_v21  ;;  %v2200_v51 = vpop.f32.mrb[9].mxu0 }
 0x1d9   : > { %v2201_v61 = vadd.f32 %v10321_v21, %v2200_v51  ;;  %v7097_v43 = vpop.f32.mrb[10].mxu0 }
 0x1da   : > { %v2305_v52 = vmax.f32 %v2209_v50, 0.0  ;;  %v2212_v57 = vadd.f32 %v7097_v43, %v10321_v21  ;;  %v2203_v42 = vpop.f32.mrb[11].mxu0 }
 0x1db   : > { %v2204_v39 = vadd.f32 %v10321_v21, %v2203_v42  ;;  %v2303_v7 = vmax.f32 %v2201_v61, 0.0  ;;  %8083 = vrot.lane.b32.xlu0 %v8062_v8, %s12821_s20  ;;  %8073 = vrot.lane.b32.xlu1 %v8062_v8, %s12817_s25 }
 0x1dc   : > { %v2306_v31 = vmax.f32 %v2212_v57, 0.0  ;;  %v2374_v28 = vrot.slane %v2305_v52, 7 }
 0x1dd   : > { %v2304_v48 = vmax.f32 %v2204_v39, 0.0  ;;  %v2371_v30 = vrot.slane %v2303_v7, 7 }
 0x1de   : > { %v2375_v4 = vrot.slane %v2306_v31, 7  ;;  %v10470_v25 = vsel %vm666_vm0, 0.0, %v2374_v28 }
 0x1df   : > { %v2372_v49 = vrot.slane %v2304_v48, 7  ;;  %8088 = vrot.lane.b32.xlu0 %v8067_v38, %s12839_s0  ;;  %8078 = vrot.lane.b32.xlu1 %v8067_v38, %s12822_s2  ;;  %v2541_v34 = vrot.slane %v10470_v25, 1  ;;  %v10482_v11 = vsel %vm666_vm0, 0.0, %v2371_v30  ;;  %v2616_v32 = vrot.slane %v10470_v25, 2 }
 0x1e0   : > { %v10464_v53 = vsel %vm666_vm0, %v2374_v28, %v2375_v4  ;;  %v2475_v58 = vsel %vm666_vm0, %v2375_v4, 0.0  ;;  %v2536_v62 = vrot.slane %v10482_v11, 1  ;;  %v2611_v40 = vrot.slane %v10482_v11, 2 }
 0x1e1   : > { %v10473_v45 = vsel %vm666_vm0, %v2371_v30, %v2372_v49  ;;  %v8097_v59 = vpack.i.bf16 %v10464_v53, %v10470_v25  ;;  %v2542_v0 = vrot.slane %v10464_v53, 1  ;;  %v2544_v5 = vrot.slane %v2475_v58, 1 }
 0x1e2   : > { %v8107_v37 = vpack.i.bf16 %v10473_v45, %v10482_v11  ;;  %v2617_v19 = vrot.slane %v10464_v53, 2  ;;  %v2619_v13 = vrot.slane %v2475_v58, 2  ;;  %v2474_v55 = vsel %vm666_vm0, %v2372_v49, 0.0 }
 0x1e3   : > { %8098 = vrot.lane.b32.xlu0 %v8097_v59, %s12834_s22  ;;  %8093 = vrot.lane.b32.xlu1 %v8097_v59, %s12819_s27  ;;  %v2545_v63 = vsel %vm832_vm2, %v2542_v0, %v2544_v5  ;;  %v2543_v22 = vsel %vm832_vm2, %v2541_v34, %v2542_v0  ;;  %v2537_v60 = vrot.slane %v10473_v45, 1  ;;  %v2539_v17 = vrot.slane %v2474_v55, 1 }
 0x1e4   : > { %v8122_v18 = vpack.i.bf16 %v2545_v63, %v2543_v22  ;;  %v2620_v33 = vsel %vm913_vm1, %v2617_v19, %v2619_v13  ;;  %v2618_v6 = vsel %vm913_vm1, %v2616_v32, %v2617_v19  ;;  %v2612_v35 = vrot.slane %v10473_v45, 2 }
 0x1e5   : > { %v8127_v36 = vpack.i.bf16 %v2620_v33, %v2618_v6  ;;  %v2614_v54 = vrot.slane %v2474_v55, 2  ;;  %v2540_v24 = vsel %vm832_vm2, %v2537_v60, %v2539_v17  ;;  %v2538_v41 = vsel %vm832_vm2, %v2536_v62, %v2537_v60 }
 0x1e6   : > { %v2613_v12 = vsel %vm913_vm1, %v2611_v40, %v2612_v35  ;;  %v8142_v8 = vpack.i.bf16 %v2540_v24, %v2538_v41 }
 0x1e7   : > { %8108 = vrot.lane.b32.xlu0 %v8107_v37, %s12819_s27  ;;  %8103 = vrot.lane.b32.xlu1 %v8107_v37, %s12834_s22  ;;  %v2615_v10 = vsel %vm913_vm1, %v2612_v35, %v2614_v54 }
 0x1e8   : > { %v8147_v38 = vpack.i.bf16 %v2615_v10, %v2613_v12 }
 0x1eb   : > { %8123 = vrot.lane.b32.xlu0 %v8122_v18, %s12837_s21  ;;  %8113 = vrot.lane.b32.xlu1 %v8122_v18, %s12821_s20 }
 0x1ef   : > { %8128 = vrot.lane.b32.xlu0 %v8127_v36, %s12838_s26  ;;  %8118 = vrot.lane.b32.xlu1 %v8127_v36, %s12839_s0 }
 0x1f3   : > { %8138 = vrot.lane.b32.xlu0 %v8127_v36, %s12822_s2  ;;  %8133 = vrot.lane.b32.xlu1 %v8122_v18, %s12817_s25  ;;  %v10546_v36 = vpop.permute.xlu0 %7938 }
 0x1f7   : > { %v7100_v44 = vpop.f32.mrb[12].mxu0  ;;  %8148 = vrot.lane.b32.xlu0 %v8147_v38, %s12838_s26  ;;  %8143 = vrot.lane.b32.xlu1 %v8142_v8, %s12837_s21  ;;  %v10557_v12 = vpop.permute.xlu0 %7943 }
 0x1f8   : > { %v2225_v27 = vadd.f32 %v7100_v44, %v10321_v21  ;;  %v2216_v50 = vpop.f32.mrb[13].mxu0 }
 0x1f9   : > { %v2217_v51 = vadd.f32 %v10321_v21, %v2216_v50  ;;  %v7101_v61 = vpop.f32.mrb[14].mxu0 }
 0x1fa   : > { %v2309_v43 = vmax.f32 %v2225_v27, 0.0  ;;  %v2228_v52 = vadd.f32 %v7101_v61, %v10321_v21  ;;  %v2219_v57 = vpop.f32.mrb[15].mxu0 }
 0x1fb   : > { %v2220_v42 = vadd.f32 %v10321_v21, %v2219_v57  ;;  %v2307_v39 = vmax.f32 %v2217_v51, 0.0  ;;  %8163 = vrot.lane.b32.xlu0 %v8142_v8, %s12821_s20  ;;  %8153 = vrot.lane.b32.xlu1 %v8142_v8, %s12817_s25 }
 0x1fc   : > { %v2310_v7 = vmax.f32 %v2228_v52, 0.0  ;;  %v2380_v31 = vrot.slane %v2309_v43, 7 }
 0x1fd   : > { %v2308_v28 = vmax.f32 %v2220_v42, 0.0  ;;  %v2377_v49 = vrot.slane %v2307_v39, 7 }
 0x1fe   : > { %v2381_v48 = vrot.slane %v2310_v7, 7  ;;  %v10524_v59 = vsel %vm666_vm0, 0.0, %v2380_v31 }
 0x1ff   : > { %v2378_v4 = vrot.slane %v2308_v28, 7  ;;  %8168 = vrot.lane.b32.xlu0 %v8147_v38, %s12839_s0  ;;  %8158 = vrot.lane.b32.xlu1 %v8147_v38, %s12822_s2  ;;  %v2551_v63 = vrot.slane %v10524_v59, 1  ;;  %v10536_v19 = vsel %vm666_vm0, 0.0, %v2377_v49  ;;  %v2626_v6 = vrot.slane %v10524_v59, 2 }
 0x200   : > { %v10518_v30 = vsel %vm666_vm0, %v2380_v31, %v2381_v48  ;;  %v2477_v58 = vsel %vm666_vm0, %v2381_v48, 0.0  ;;  %v2546_v41 = vrot.slane %v10536_v19, 1  ;;  %v2621_v38 = vrot.slane %v10536_v19, 2 }
 0x201   : > { %v10527_v0 = vsel %vm666_vm0, %v2377_v49, %v2378_v4  ;;  %v8177_v5 = vpack.i.bf16 %v10518_v30, %v10524_v59  ;;  %v2552_v34 = vrot.slane %v10518_v30, 1  ;;  %v2554_v37 = vrot.slane %v2477_v58, 1 }
 0x202   : > { %v8187_v13 = vpack.i.bf16 %v10527_v0, %v10536_v19  ;;  %v2627_v32 = vrot.slane %v10518_v30, 2  ;;  %v2629_v18 = vrot.slane %v2477_v58, 2  ;;  %v2476_v35 = vsel %vm666_vm0, %v2378_v4, 0.0 }
 0x203   : > { %8178 = vrot.lane.b32.xlu0 %v8177_v5, %s12834_s22  ;;  %8173 = vrot.lane.b32.xlu1 %v8177_v5, %s12819_s27  ;;  %v2555_v22 = vsel %vm832_vm2, %v2552_v34, %v2554_v37  ;;  %v2553_v33 = vsel %vm832_vm2, %v2551_v63, %v2552_v34  ;;  %v2547_v62 = vrot.slane %v10527_v0, 1  ;;  %v2549_v40 = vrot.slane %v2476_v35, 1 }
 0x204   : > { %v8202_v55 = vpack.i.bf16 %v2555_v22, %v2553_v33  ;;  %v2630_v60 = vsel %vm913_vm1, %v2627_v32, %v2629_v18  ;;  %v2628_v17 = vsel %vm913_vm1, %v2626_v6, %v2627_v32  ;;  %v2622_v24 = vrot.slane %v10527_v0, 2 }
 0x205   : > { %v8207_v54 = vpack.i.bf16 %v2630_v60, %v2628_v17  ;;  %v2624_v10 = vrot.slane %v2476_v35, 2  ;;  %v2550_v8 = vsel %vm832_vm2, %v2547_v62, %v2549_v40  ;;  %v2548_v50 = vsel %vm832_vm2, %v2546_v41, %v2547_v62 }
 0x206   : > { %v2623_v27 = vsel %vm913_vm1, %v2621_v38, %v2622_v24  ;;  %v8222_v52 = vpack.i.bf16 %v2550_v8, %v2548_v50  ;;  %v7940_v17 = vunpack.i.l.bf16 %v10546_v36  ;;  %v7945_v8 = vunpack.i.l.bf16 %v10557_v12 }
 0x207   : > { %8188 = vrot.lane.b32.xlu0 %v8187_v13, %s12819_s27  ;;  %8183 = vrot.lane.b32.xlu1 %v8187_v13, %s12834_s22  ;;  %v2625_v44 = vsel %vm913_vm1, %v2622_v24, %v2624_v10  ;;  %v7946_v24 = vunpack.i.h.bf16 %v10557_v12 }
 0x208   : > { %v8227_v43 = vpack.i.bf16 %v2625_v44, %v2623_v27 }
 0x20b   : > { %8203 = vrot.lane.b32.xlu0 %v8202_v55, %s12837_s21  ;;  %8193 = vrot.lane.b32.xlu1 %v8202_v55, %s12821_s20 }
 0x20f   : > { %8208 = vrot.lane.b32.xlu0 %v8207_v54, %s12838_s26  ;;  %8198 = vrot.lane.b32.xlu1 %v8207_v54, %s12839_s0 }
 0x213   : > { %8218 = vrot.lane.b32.xlu0 %v8207_v54, %s12822_s2  ;;  %8213 = vrot.lane.b32.xlu1 %v8202_v55, %s12817_s25  ;;  %v7941_v54 = vunpack.i.h.bf16 %v10546_v36 }
 0x215   : > { %v10567_v51 = vpop.permute.xlu0 %7953  ;;  %v10569_v61 = vpop.permute.xlu1 %7948 }
 0x217   : > { %v7104_v57 = vpop.f32.mrb[16].mxu0  ;;  %8228 = vrot.lane.b32.xlu0 %v8227_v43, %s12838_s26  ;;  %8223 = vrot.lane.b32.xlu1 %v8222_v52, %s12837_s21 }
 0x218   : > { %v2241_v42 = vadd.f32 %v7104_v57, %v10321_v21  ;;  %v2232_v39 = vpop.f32.mrb[17].mxu0 }
 0x219   : > { %v2233_v7 = vadd.f32 %v10321_v21, %v2232_v39  ;;  %v7105_v31 = vpop.f32.mrb[18].mxu0  ;;  %v10575_v48 = vpop.permute.xlu1 %7963  ;;  %v3447_v39 = vsel %vm1807_vm5, %v9215_v1, %v7941_v54  ;;  %v7955_v54 = vunpack.i.l.bf16 %v10567_v51 }
 0x21a   : > { %v2313_v28 = vmax.f32 %v2241_v42, 0.0  ;;  %v2244_v4 = vadd.f32 %v7105_v31, %v10321_v21  ;;  %v10578_v49 = vpop.permute.xlu0 %7958  ;;  %v2235_v5 = vpop.f32.mrb[19].mxu0 }
 0x21b   : > { %v2311_v58 = vmax.f32 %v2233_v7, 0.0  ;;  %v2236_v37 = vadd.f32 %v10321_v21, %v2235_v5  ;;  %8243 = vrot.lane.b32.xlu0 %v8222_v52, %s12821_s20  ;;  %8233 = vrot.lane.b32.xlu1 %v8222_v52, %s12817_s25  ;;  %v3446_v52 = vsel %vm1807_vm5, %v9220_v2, %v7940_v17  ;;  %v7960_v5 = vunpack.i.l.bf16 %v10578_v49 }
 0x21c   : > { %v2314_v34 = vmax.f32 %v2244_v4, 0.0  ;;  %v2386_v63 = vrot.slane %v2313_v28, 7  ;;  %v3478_v4 = vsel %vm1873_vm7, %v3446_v52, %v7945_v8 }
 0x21d   : > { %v2312_v22 = vmax.f32 %v2236_v37, 0.0  ;;  %v2383_v18 = vrot.slane %v2311_v58, 7  ;;  %v10588_v6 = vpop.permute.xlu1 %7968  ;;  %v7961_v58 = vunpack.i.h.bf16 %v10578_v49  ;;  %v3479_v37 = vsel %vm1873_vm7, %v3447_v39, %v7946_v24 }
 0x21e   : > { %v2387_v13 = vrot.slane %v2314_v34, 7  ;;  %v10583_v32 = vpop.permute.xlu0 %7973  ;;  %v10605_v10 = vsel %vm666_vm0, 0.0, %v2386_v63  ;;  %v7956_v49 = vunpack.i.h.bf16 %v10567_v51  ;;  %v3510_v24 = vsel %vm1939_vm9, %v3478_v4, %v7960_v5 }
 0x21f   : > { %8248 = vrot.lane.b32.xlu0 %v8227_v43, %s12839_s0  ;;  %8238 = vrot.lane.b32.xlu1 %v8227_v43, %s12822_s2  ;;  %v2384_v55 = vrot.slane %v2312_v22, 7  ;;  %v10596_v35 = vsel %vm666_vm0, 0.0, %v2383_v18  ;;  %v7976_v52 = vunpack.i.h.bf16 %v10583_v32 }
 0x220   : > { %v10586_v33 = vsel %vm666_vm0, %v2386_v63, %v2387_v13  ;;  %v2631_v44 = vrot.slane %v10596_v35, 2  ;;  %v2556_v31 = vrot.slane %v10596_v35, 1  ;;  %v2479_v22 = vsel %vm666_vm0, %v2387_v13, 0.0 }
 0x221   : > { %v10600_v62 = vsel %vm666_vm0, %v2383_v18, %v2384_v55  ;;  %v2478_v40 = vsel %vm666_vm0, %v2384_v55, 0.0  ;;  %v10610_v27 = vpop.permute.xlu1 %7983  ;;  %v10614_v36 = vpack.i.bf16 %v10586_v33, %v10605_v10  ;;  %v2564_v8 = vrot.slane %v2479_v22, 1 }
 0x222   : > { %v10592_v60 = vpop.permute.xlu0 %7978  ;;  %v2632_v41 = vrot.slane %v10600_v62, 2  ;;  %v2634_v38 = vrot.slane %v2478_v40, 2  ;;  %v8262_v50 = vpack.i.bf16 %v10600_v62, %v10596_v35  ;;  %v2557_v57 = vrot.slane %v10600_v62, 1 }
 0x223   : > { %v2559_v42 = vrot.slane %v2478_v40, 1  ;;  %8253 = vrot.lane.b32.xlu1 %v10614_v36, %s12819_s27  ;;  %v3511_v40 = vsel %vm1939_vm9, %v3479_v37, %v7961_v58  ;;  %v7980_v39 = vunpack.i.l.bf16 %v10592_v60  ;;  %v2561_v37 = vrot.slane %v10605_v10, 1 }
 0x224   : > { %v2635_v12 = vsel %vm913_vm1, %v2632_v41, %v2634_v38  ;;  %8263 = vrot.lane.b32.xlu0 %v8262_v50, %s12819_s27  ;;  %v2633_v7 = vsel %vm913_vm1, %v2631_v44, %v2632_v41  ;;  %v2558_v63 = vsel %vm832_vm2, %v2556_v31, %v2557_v57  ;;  %v2562_v38 = vrot.slane %v10586_v33, 1 }
 0x225   : > { %v8272_v28 = vpack.i.bf16 %v2635_v12, %v2633_v7  ;;  %v2560_v1 = vsel %vm832_vm2, %v2557_v57, %v2559_v42  ;;  %v10638_v18 = vpop.permute.xlu1 %7993  ;;  %v7975_v57 = vunpack.i.l.bf16 %v10583_v32  ;;  %v7981_v12 = vunpack.i.h.bf16 %v10592_v60 }
 0x226   : > { %v10618_v43 = vpop.permute.xlu0 %7988  ;;  %v8267_v13 = vpack.i.bf16 %v2560_v1, %v2558_v63  ;;  %v2637_v63 = vrot.slane %v10586_v33, 2 }
 0x227   : > { %8258 = vrot.lane.b32.xlu1 %v8262_v50, %s12834_s22 }
 0x228   : > { %8273 = vrot.lane.b32.xlu0 %v8272_v28, %s12838_s26 }
 0x229   : > { %v7999_v4 = vpop.permute.xlu1 %7998 }
 0x22a   : > { %v8004_v34 = vpop.permute.xlu0 %8003 }
 0x22b   : > { %v8006_v55 = vunpack.i.h.bf16 %v8004_v34  ;;  %v8005_v17 = vunpack.i.l.bf16 %v8004_v34  ;;  %8268 = vrot.lane.b32.xlu1 %v8267_v13, %s12837_s21 }
 0x22c   : > { %8288 = vrot.lane.b32.xlu0 %v8267_v13, %s12821_s20 }
 0x22d   : > { %v3543_v42 = vsel %vm2005_vm11, %v3511_v40, %v8006_v55  ;;  %v3542_v51 = vsel %vm2005_vm11, %v3510_v24, %v8005_v17  ;;  %v2639_v55 = vrot.slane %v2479_v22, 2  ;;  %v2563_v24 = vsel %vm832_vm2, %v2561_v37, %v2562_v38 }
 0x22e   : > { %v8009_v41 = vpop.permute.xlu0 %8008 }
 0x22f   : > { %v8011_v44 = vunpack.i.h.bf16 %v8009_v41  ;;  %v8010_v50 = vunpack.i.l.bf16 %v8009_v41  ;;  %8278 = vrot.lane.b32.xlu1 %v8267_v13, %s12817_s25  ;;  %v2636_v41 = vrot.slane %v10605_v10, 2 }
 0x230   : > { %8298 = vrot.lane.b32.xlu0 %v8272_v28, %s12839_s0 }
 0x231   : > { %v3575_v7 = vsel %vm3574_vm14, %v3542_v51, %v8010_v50  ;;  %v3576_v31 = vsel %vm3574_vm14, %v3543_v42, %v8011_v44 }
 0x232   : > { %v3608_v58 = vsel %vm3607_vm15, %v3575_v7, %v7955_v54  ;;  %v3609_v32 = vsel %vm3607_vm15, %v3576_v31, %v7956_v49  ;;  %v2565_v49 = vsel %vm832_vm2, %v2562_v38, %v2564_v8  ;;  %v2640_v8 = vsel %vm913_vm1, %v2637_v63, %v2639_v55 }
 0x233   : > { %v3641_v5 = vsel %vm3640_vm6, %v3608_v58, %v7975_v57  ;;  %v3642_v34 = vsel %vm3640_vm6, %v3609_v32, %v7976_v52  ;;  %8283 = vrot.lane.b32.xlu1 %v8272_v28, %s12822_s2  ;;  %v10680_v50 = vpack.i.bf16 %v2565_v49, %v2563_v24  ;;  %v2638_v28 = vsel %vm913_vm1, %v2636_v41, %v2637_v63 }
 0x234   : > { %v3674_v60 = vsel %vm3673_vm8, %v3641_v5, %v7980_v39  ;;  %v3675_v1 = vsel %vm3673_vm8, %v3642_v34, %v7981_v12  ;;  %8308 = vrot.lane.b32.xlu0 %v10614_v36, %s12834_s22  ;;  %v7996_v7 = vunpack.i.h.bf16 %v10638_v18  ;;  %v7995_v31 = vunpack.i.l.bf16 %v10638_v18 }
 0x235   : > { %v3706_v17 = vpack.c.bf16 %v3675_v1, %v3674_v60  ;;  %v10668_v54 = vpop.permute.xlu0 %8018  ;;  %v10670_v40 = vpop.permute.xlu1 %8013  ;;  %v8001_v5 = vunpack.i.h.bf16 %v7999_v4  ;;  %v8000_v34 = vunpack.i.l.bf16 %v7999_v4  ;;  %v10696_v37 = vpack.i.bf16 %v2640_v8, %v2638_v28 }
 0x236   : > { %v3449_v49 = vsel %vm1807_vm5, %v10353_v20, %v7996_v7  ;;  %v7951_v24 = vunpack.i.h.bf16 %v10569_v61  ;;  %v7950_v41 = vunpack.i.l.bf16 %v10569_v61 }
 0x237   : > { %7128 = vmatprep.mubr.msk.bf16.mxu1 %vm12792_vm10, %v3706_v17  ;;  %v7108_v13 = vpop.f32.mrb[20].mxu0  ;;  %8293 = vrot.lane.b32.xlu1 %v10680_v50, %s12821_s20  ;;  %v3481_v20 = vsel %vm1873_vm7, %v3449_v49, %v8001_v5 }
 0x238   : > { %v2257_v22 = vadd.f32 %v7108_v13, %v10321_v21  ;;  %v2248_v44 = vpop.f32.mrb[21].mxu0  ;;  %8318 = vrot.lane.b32.xlu0 %v10680_v50, %s12837_s21 }
 0x239   : > { %v2249_v52 = vadd.f32 %v10321_v21, %v2248_v44  ;;  %v7109_v38 = vpop.f32.mrb[22].mxu0  ;;  %v10684_v51 = vpop.permute.xlu0 %8028 }
 0x23a   : > { %v2317_v57 = vmax.f32 %v2257_v22, 0.0  ;;  %v2260_v42 = vadd.f32 %v7109_v38, %v10321_v21  ;;  %v10686_v12 = vpop.permute.xlu1 %8023  ;;  %v2251_v39 = vpop.f32.mrb[23].mxu0  ;;  %v7965_v22 = vunpack.i.l.bf16 %v10575_v48  ;;  %v7971_v38 = vunpack.i.h.bf16 %v10588_v6 }
 0x23b   : > { %v2315_v36 = vmax.f32 %v2249_v52, 0.0  ;;  %v2252_v32 = vadd.f32 %v10321_v21, %v2251_v39  ;;  %v3448_v21 = vsel %vm1807_vm5, %v10364_v23, %v7995_v31  ;;  %8303 = vrot.lane.b32.xlu1 %v10696_v37, %s12839_s0  ;;  %v7966_v23 = vunpack.i.h.bf16 %v10575_v48 }
 0x23c   : > { %v2318_v58 = vmax.f32 %v2260_v42, 0.0  ;;  %v10698_v60 = vrot.slane %v2317_v57, 7  ;;  %8328 = vrot.lane.b32.xlu0 %v10696_v37, %s12838_s26  ;;  %v3480_v13 = vsel %vm1873_vm7, %v3448_v21, %v8000_v34  ;;  %v7970_v57 = vunpack.i.l.bf16 %v10588_v6 }
 0x23d   : > { %v2316_v63 = vmax.f32 %v2252_v32, 0.0  ;;  %v10702_v55 = vpop.permute.xlu0 %8043  ;;  %v2389_v17 = vrot.slane %v2315_v36, 7  ;;  %v7986_v42 = vunpack.i.h.bf16 %v10610_v27  ;;  %v3512_v61 = vsel %vm1939_vm9, %v3480_v13, %v7950_v41 }
 0x23e   : > { %v10700_v1 = vrot.slane %v2318_v58, 7  ;;  %v10704_v18 = vpop.permute.xlu1 %8033  ;;  %v3513_v36 = vsel %vm1939_vm9, %v3481_v20, %v7951_v24  ;;  %v7985_v32 = vunpack.i.l.bf16 %v10610_v27  ;;  %v3544_v21 = vsel %vm2005_vm11, %v3512_v61, %v7965_v22 }
 0x23f   : > { %v2390_v44 = vrot.slane %v2316_v63, 7  ;;  %v10733_v28 = vsel %vm666_vm0, 0.0, %v2389_v17  ;;  %v3545_v24 = vsel %vm2005_vm11, %v3513_v36, %v7966_v23  ;;  %v8026_v27 = vunpack.i.h.bf16 %v10686_v12 }
 0x240   : > { %v10713_v4 = vsel %vm666_vm0, %v10698_v60, %v10700_v1  ;;  %v2566_v5 = vrot.slane %v10733_v28, 1  ;;  %v2641_v34 = vrot.slane %v10733_v28, 2  ;;  %v8025_v41 = vunpack.i.l.bf16 %v10686_v12 }
 0x241   : > { %v10725_v8 = vpop.permute.xlu0 %8048  ;;  %v10738_v48 = vsel %vm666_vm0, %v2389_v17, %v2390_v44  ;;  %v2480_v39 = vsel %vm666_vm0, %v2390_v44, 0.0  ;;  %v7991_v23 = vunpack.i.h.bf16 %v10618_v43  ;;  %v7990_v22 = vunpack.i.l.bf16 %v10618_v43 }
 0x242   : > { %v10727_v52 = vpop.permute.xlu1 %8038  ;;  %v2567_v7 = vrot.slane %v10738_v48, 1  ;;  %v2569_v31 = vrot.slane %v2480_v39, 1  ;;  %v2642_v58 = vrot.slane %v10738_v48, 2  ;;  %v2644_v6 = vrot.slane %v2480_v39, 2 }
 0x243   : > { %v8312_v63 = vpack.i.bf16 %v10738_v48, %v10733_v28  ;;  %v3577_v61 = vsel %vm3574_vm14, %v3544_v21, %v7970_v57  ;;  %v3578_v36 = vsel %vm3574_vm14, %v3545_v24, %v7971_v38  ;;  %v8031_v24 = vunpack.i.h.bf16 %v10684_v51 }
 0x244   : > { %v2570_v13 = vsel %vm832_vm2, %v2567_v7, %v2569_v31  ;;  %v2645_v20 = vsel %vm913_vm1, %v2642_v58, %v2644_v6  ;;  %v2643_v44 = vsel %vm913_vm1, %v2641_v34, %v2642_v58  ;;  %v2568_v39 = vsel %vm832_vm2, %v2566_v5, %v2567_v7 }
 0x245   : > { %v10748_v49 = vpop.permute.xlu0 %8058  ;;  %8313 = vrot.lane.b32.xlu1 %v8312_v63, %s12834_s22  ;;  %v10761_v2 = vpack.i.bf16 %v2645_v20, %v2643_v44  ;;  %v10763_v3 = vpack.i.bf16 %v2570_v13, %v2568_v39  ;;  %v3451_v34 = vsel %vm1807_vm5, %v10345_v46, %v7986_v42  ;;  %v3450_v13 = vsel %vm1807_vm5, %v10342_v29, %v7985_v32 }
 0x246   : > { %v10750_v17 = vpop.permute.xlu1 %8053  ;;  %v3610_v43 = vsel %vm3607_vm15, %v3577_v61, %v8025_v41  ;;  %v3611_v57 = vsel %vm3607_vm15, %v3578_v36, %v8026_v27  ;;  %v8030_v20 = vunpack.i.l.bf16 %v10684_v51  ;;  %v3483_v32 = vsel %vm1873_vm7, %v3451_v34, %v7991_v23 }
 0x247   : > { %8338 = vrot.lane.b32.xlu0 %v10761_v2, %s12838_s26  ;;  %v3482_v27 = vsel %vm1873_vm7, %v3450_v13, %v7990_v22  ;;  %v8021_v41 = vunpack.i.h.bf16 %v10668_v54  ;;  %v10792_v39 = vsel %vm666_vm0, 0.0, %v10698_v60  ;;  %v2481_v51 = vsel %vm666_vm0, %v10700_v1, 0.0 }
 0x248   : > { %v8020_v22 = vunpack.i.l.bf16 %v10668_v54  ;;  %v2571_v60 = vrot.slane %v10792_v39, 1  ;;  %v2647_v34 = vrot.slane %v10713_v4, 2  ;;  %v2649_v13 = vrot.slane %v2481_v51, 2 }
 0x249   : > { %v8069_v31 = vpop.permute.xlu0 %8068  ;;  %8323 = vrot.lane.b32.xlu1 %v10763_v3, %s12837_s21 }
 0x24a   : > { %v8064_v12 = vpop.permute.xlu1 %8063  ;;  %v8071_v58 = vunpack.i.h.bf16 %v8069_v31  ;;  %v8070_v6 = vunpack.i.l.bf16 %v8069_v31 }
 0x24b   : > { %v8066_v7 = vunpack.i.h.bf16 %v8064_v12  ;;  %v8065_v5 = vunpack.i.l.bf16 %v8064_v12  ;;  %8348 = vrot.lane.b32.xlu0 %v10696_v37, %s12822_s2  ;;  %v8015_v12 = vunpack.i.l.bf16 %v10670_v40  ;;  %v3514_v37 = vsel %vm1939_vm9, %v3482_v27, %v8030_v20 }
 0x24c   : > { %v8045_v27 = vunpack.i.l.bf16 %v10702_v55 }
 0x24d   : > { %v3643_v38 = vsel %vm3640_vm6, %v3610_v43, %v8065_v5  ;;  %v3644_v21 = vsel %vm3640_vm6, %v3611_v57, %v8066_v7  ;;  %v8084_v44 = vpop.permute.xlu0 %8083  ;;  %8333 = vrot.lane.b32.xlu1 %v10680_v50, %s12817_s25  ;;  %v2572_v50 = vrot.slane %v10713_v4, 1  ;;  %v2574_v7 = vrot.slane %v2481_v51, 1 }
 0x24e   : > { %v10783_v46 = vpop.permute.xlu1 %8073  ;;  %v3676_v29 = vsel %vm3673_vm8, %v3643_v38, %v8070_v6  ;;  %v3677_v42 = vsel %vm3673_vm8, %v3644_v21, %v8071_v58  ;;  %v8086_v61 = vunpack.i.h.bf16 %v8084_v44  ;;  %v8085_v36 = vunpack.i.l.bf16 %v8084_v44 }
 0x24f   : > { %v3707_v23 = vpack.c.bf16 %v3677_v42, %v3676_v29  ;;  %v3515_v58 = vsel %vm1939_vm9, %v3483_v32, %v8031_v24  ;;  %8358 = vrot.lane.b32.xlu0 %v8312_v63, %s12819_s27  ;;  %v2646_v38 = vrot.slane %v10792_v39, 2  ;;  %v8046_v63 = vunpack.i.h.bf16 %v10702_v55  ;;  %v10840_v55 = vld [vmem:[%s12833_s23] ss:$0 sm:$0xff] }
 0x250   : > { %v3546_v43 = vsel %vm2005_vm11, %v3514_v37, %v8085_v36  ;;  %v3547_v57 = vsel %vm2005_vm11, %v3515_v58, %v8086_v61  ;;  %v2575_v32 = vsel %vm832_vm2, %v2572_v50, %v2574_v7  ;;  %v8060_v51 = vunpack.i.l.bf16 %v10748_v49 }
 0x251   : > { %7129 = vmatmul.mubr.msk.bf16.vlgmr.msra.gmra.mrb[0].mxu1 %vm12792_vm10, %v3707_v23  ;;  %v8089_v1 = vpop.permute.xlu0 %8088  ;;  %8343 = vrot.lane.b32.xlu1 %v10763_v3, %s12817_s25  ;;  %v2650_v23 = vsel %vm913_vm1, %v2647_v34, %v2649_v13  ;;  %v8362_v13 = vpack.i.bf16 %v10713_v4, %v10792_v39 }
 0x252   : > { %v10807_v6 = vpop.permute.xlu1 %8078  ;;  %v8091_v54 = vunpack.i.h.bf16 %v8089_v1  ;;  %v8090_v5 = vunpack.i.l.bf16 %v8089_v1 }
 0x253   : > { %8368 = vrot.lane.b32.xlu0 %v10763_v3, %s12821_s20  ;;  %v8080_v61 = vunpack.i.l.bf16 %v10807_v6 }
 0x254   : > { %v3579_v21 = vsel %vm3574_vm14, %v3546_v43, %v8090_v5  ;;  %v3580_v24 = vsel %vm3574_vm14, %v3547_v57, %v8091_v54 }
 0x255   : > { %v3612_v20 = vsel %vm3607_vm15, %v3579_v21, %v8020_v22  ;;  %v3613_v44 = vsel %vm3607_vm15, %v3580_v24, %v8021_v41  ;;  %v10822_v29 = vpop.permute.xlu0 %8098  ;;  %v8051_v41 = vunpack.i.h.bf16 %v10725_v8  ;;  %v8050_v22 = vunpack.i.l.bf16 %v10725_v8  ;;  %8353 = vrot.lane.b32.xlu1 %v10761_v2, %s12822_s2 }
 0x256   : > { %v10824_v42 = vpop.permute.xlu1 %8093  ;;  %v3645_v7 = vsel %vm3640_vm6, %v3612_v20, %v8045_v27  ;;  %v3646_v54 = vsel %vm3640_vm6, %v3613_v44, %v8046_v63  ;;  %v8055_v8 = vunpack.i.l.bf16 %v10750_v17  ;;  %v8076_v24 = vunpack.i.h.bf16 %v10783_v46 }
 0x257   : > { %v7112_v36 = vpop.f32.mrb[24].mxu0  ;;  %8378 = vrot.lane.b32.xlu0 %v10761_v2, %s12839_s0  ;;  %v2573_v44 = vsel %vm832_vm2, %v2571_v60, %v2572_v50 }
 0x258   : > { %v2273_v58 = vadd.f32 %v10840_v55, %v7112_v36  ;;  %v2264_v37 = vpop.f32.mrb[25].mxu0  ;;  %v8075_v36 = vunpack.i.l.bf16 %v10783_v46  ;;  %v8081_v46 = vunpack.i.h.bf16 %v10807_v6  ;;  %v10868_v60 = vpack.i.bf16 %v2575_v32, %v2573_v44 }
 0x259   : > { %v2265_v3 = vadd.f32 %v10840_v55, %v2264_v37  ;;  %v7113_v1 = vpop.f32.mrb[26].mxu0  ;;  %v10850_v57 = vpop.permute.xlu0 %8108  ;;  %8363 = vrot.lane.b32.xlu1 %v8362_v13, %s12819_s27  ;;  %v3678_v37 = vsel %vm3673_vm8, %v3645_v7, %v8050_v22  ;;  %v8056_v22 = vunpack.i.h.bf16 %v10750_v17  ;;  %v3454_v6 = vsel %vm1807_vm5, %v10399_v16, %v8055_v8 }
 0x25a   : > { %v2321_v5 = vmax.f32 %v2273_v58, 0.0  ;;  %v2276_v43 = vadd.f32 %v10840_v55, %v7113_v1  ;;  %v10852_v21 = vpop.permute.xlu1 %8103  ;;  %v2267_v20 = vpop.f32.mrb[27].mxu0  ;;  %v3679_v1 = vsel %vm3673_vm8, %v3646_v54, %v8051_v41  ;;  %v2648_v54 = vsel %vm913_vm1, %v2646_v38, %v2647_v34 }
 0x25b   : > { %v2319_v63 = vmax.f32 %v2265_v3, 0.0  ;;  %v2268_v58 = vadd.f32 %v10840_v55, %v2267_v20  ;;  %v3708_v41 = vpack.c.bf16 %v3679_v1, %v3678_v37  ;;  %8388 = vrot.lane.b32.xlu0 %v8362_v13, %s12834_s22  ;;  %v3452_v32 = vsel %vm1807_vm5, %v10411_v56, %v8075_v36 }
 0x25c   : > { %v2322_v27 = vmax.f32 %v2276_v43, 0.0  ;;  %v10866_v2 = vrot.slane %v2321_v5, 7  ;;  %v3453_v5 = vsel %vm1807_vm5, %v10402_v26, %v8076_v24  ;;  %v8041_v17 = vunpack.i.h.bf16 %v10727_v52 }
 0x25d   : > { %v2320_v31 = vmax.f32 %v2268_v58, 0.0  ;;  %v10870_v50 = vpop.permute.xlu0 %8123  ;;  %v2395_v7 = vrot.slane %v2319_v63, 7  ;;  %8373 = vrot.lane.b32.xlu1 %v10868_v60, %s12821_s20  ;;  %v3484_v34 = vsel %vm1873_vm7, %v3452_v32, %v8080_v61  ;;  %v3485_v38 = vsel %vm1873_vm7, %v3453_v5, %v8081_v46  ;;  %7132 = vmatprep.mubr.msk.bf16.mxu1 %vm12792_vm10, %v3708_v41 }
 0x25e   : > { %v2399_v3 = vrot.slane %v2322_v27, 7  ;;  %v10872_v43 = vpop.permute.xlu1 %8113  ;;  %v8040_v16 = vunpack.i.l.bf16 %v10727_v52  ;;  %v8061_v26 = vunpack.i.h.bf16 %v10748_v49  ;;  %v10895_v8 = vpack.i.bf16 %v2650_v23, %v2648_v54 }
 0x25f   : > { %v2396_v56 = vrot.slane %v2320_v31, 7  ;;  %v3455_v36 = vsel %vm1807_vm5, %v10395_v9, %v8056_v22  ;;  %v10904_v61 = vsel %vm666_vm0, 0.0, %v2395_v7  ;;  %v3486_v63 = vsel %vm1873_vm7, %v3454_v6, %v8060_v51  ;;  %8398 = vrot.lane.b32.xlu0 %v10868_v60, %s12837_s21 }
 0x260   : > { %v10885_v20 = vsel %vm666_vm0, %v10866_v2, %v2399_v3  ;;  %12840 = vst [vmem:[#allocation14_spill] sm:$0xff] %v10904_v61  ;;  %v3516_v52 = vsel %vm1939_vm9, %v3484_v34, %v8015_v12  ;;  %v12841_v49 = vunpack.i.h.bf16 %v10670_v40  ;;  %v2576_v12 = vrot.slane %v10904_v61, 1 }
 0x261   : > { %v10897_v13 = vpop.permute.xlu0 %8128  ;;  %v10916_v23 = vsel %vm666_vm0, %v2395_v7, %v2396_v56  ;;  %v2482_v9 = vsel %vm666_vm0, %v2396_v56, 0.0  ;;  %8383 = vrot.lane.b32.xlu1 %v10895_v8, %s12839_s0  ;;  %v2651_v40 = vrot.slane %v10904_v61, 2  ;;  %v3487_v37 = vsel %vm1873_vm7, %v3455_v36, %v8061_v26 }
 0x262   : > { %v10899_v24 = vpop.permute.xlu1 %8118  ;;  %v3517_v31 = vsel %vm1939_vm9, %v3485_v38, %v12841_v49  ;;  %12842 = vst [vmem:[#allocation15_spill] sm:$0xff] %v10916_v23  ;;  %v2577_v51 = vrot.slane %v10916_v23, 1  ;;  %v2579_v44 = vrot.slane %v2482_v9, 1  ;;  %v2652_v27 = vrot.slane %v10916_v23, 2 }
 0x263   : > { %v2654_v58 = vrot.slane %v2482_v9, 2  ;;  %v10928_v1 = vpack.i.bf16 %v10916_v23, %v10904_v61  ;;  %v12843_v7 = vunpack.i.l.bf16 %v10704_v18  ;;  %v12844_v54 = vunpack.i.h.bf16 %v10704_v18  ;;  %8408 = vrot.lane.b32.xlu0 %v10895_v8, %s12838_s26 }
 0x264   : > { %v2580_v5 = vsel %vm832_vm2, %v2577_v51, %v2579_v44  ;;  %v8106_v34 = vunpack.i.h.bf16 %v10852_v21  ;;  %v8105_v38 = vunpack.i.l.bf16 %v10852_v21  ;;  %v2653_v26 = vsel %vm913_vm1, %v2651_v40, %v2652_v27 }
 0x265   : > { %v10930_v46 = vpop.permute.xlu0 %8138  ;;  %v3548_v41 = vsel %vm2005_vm11, %v3516_v52, %v12843_v7  ;;  %v3549_v6 = vsel %vm2005_vm11, %v3517_v31, %v12844_v54  ;;  %v2655_v32 = vsel %vm913_vm1, %v2652_v27, %v2654_v58  ;;  %8393 = vrot.lane.b32.xlu1 %v10928_v1, %s12834_s22  ;;  %v2578_v18 = vsel %vm832_vm2, %v2576_v12, %v2577_v51 }
 0x266   : > { %v10932_v22 = vpop.permute.xlu1 %8133  ;;  %v10950_v56 = vpack.i.bf16 %v2655_v32, %v2653_v26  ;;  %v10952_v36 = vpack.i.bf16 %v2580_v5, %v2578_v18  ;;  %v2483_v49 = vsel %vm666_vm0, %v2399_v3, 0.0  ;;  %v3581_v31 = vsel %vm3574_vm14, %v3548_v41, %v8040_v16 }
 0x267   : > { %v3582_v9 = vsel %vm3574_vm14, %v3549_v6, %v8041_v17  ;;  %v8111_v40 = vunpack.i.h.bf16 %v10850_v57  ;;  %v8110_v7 = vunpack.i.l.bf16 %v10850_v57  ;;  %v3614_v54 = vsel %vm3607_vm15, %v3581_v31, %v8105_v38 }
 0x268   : > { %8418 = vrot.lane.b32.xlu0 %v10950_v56, %s12838_s26  ;;  %v3615_v3 = vsel %vm3607_vm15, %v3582_v9, %v8106_v34  ;;  %v10969_v16 = vsel %vm666_vm0, 0.0, %v10866_v2  ;;  %v12788_v5 = vrot.slane %v10885_v20, 1  ;;  %v2584_v57 = vrot.slane %v2483_v49, 1 }
 0x269   : > { %v8149_v21 = vpop.permute.xlu0 %8148  ;;  %8403 = vrot.lane.b32.xlu1 %v10952_v36, %s12837_s21  ;;  %12845 = vst [vmem:[#allocation16_spill] sm:$0xff] %v10969_v16  ;;  %v2657_v31 = vrot.slane %v10885_v20, 2  ;;  %v2659_v9 = vrot.slane %v2483_v49, 2  ;;  %v8135_v49 = vunpack.i.l.bf16 %v10932_v22 }
 0x26a   : > { %v8144_v44 = vpop.permute.xlu1 %8143  ;;  %v8151_v27 = vunpack.i.h.bf16 %v8149_v21  ;;  %v8150_v58 = vunpack.i.l.bf16 %v8149_v21  ;;  %v2581_v21 = vrot.slane %v10969_v16, 1 }
 0x26b   : > { %v8146_v51 = vunpack.i.h.bf16 %v8144_v44  ;;  %v8145_v12 = vunpack.i.l.bf16 %v8144_v44  ;;  %v3518_v44 = vsel %vm1939_vm9, %v3486_v63, %v8110_v7  ;;  %v8136_v63 = vunpack.i.h.bf16 %v10932_v22 }
 0x26c   : > { %8428 = vrot.lane.b32.xlu0 %v10895_v8, %s12822_s2  ;;  %v10996_v8 = vsel %vm832_vm2, %v12788_v5, %v2584_v57 }
 0x26d   : > { %v3647_v41 = vsel %vm3640_vm6, %v3614_v54, %v8145_v12  ;;  %v3648_v6 = vsel %vm3640_vm6, %v3615_v3, %v8146_v51  ;;  %v10974_v32 = vpop.permute.xlu0 %8163  ;;  %v3519_v51 = vsel %vm1939_vm9, %v3487_v37, %v8111_v40  ;;  %8413 = vrot.lane.b32.xlu1 %v10868_v60, %s12817_s25  ;;  %v11002_v40 = vsel %vm913_vm1, %v2657_v31, %v2659_v9 }
 0x26e   : > { %v10976_v38 = vpop.permute.xlu1 %8153  ;;  %v3680_v34 = vsel %vm3673_vm8, %v3647_v41, %v8150_v58  ;;  %v3681_v26 = vsel %vm3673_vm8, %v3648_v6, %v8151_v27  ;;  %v2656_v58 = vrot.slane %v10969_v16, 2  ;;  %v8442_v9 = vpack.i.bf16 %v10885_v20, %v10969_v16 }
 0x26f   : > { %v3709_v27 = vpack.c.bf16 %v3681_v26, %v3680_v34  ;;  %v8165_v7 = vunpack.i.l.bf16 %v10974_v32  ;;  %v11021_v6 = vsel %vm1807_vm5, %v10464_v53, %v8136_v63  ;;  %v8166_v41 = vunpack.i.h.bf16 %v10974_v32 }
 0x270   : > { %8438 = vrot.lane.b32.xlu0 %v10928_v1, %s12819_s27  ;;  %v8156_v18 = vunpack.i.h.bf16 %v10976_v38  ;;  %v8155_v53 = vunpack.i.l.bf16 %v10976_v38 }
 0x271   : > { %7133 = vmatmul.mubr.msk.bf16.gmra.mrb[4].mxu1 %vm12792_vm10, %v3709_v27  ;;  %v8169_v37 = vpop.permute.xlu0 %8168  ;;  %8423 = vrot.lane.b32.xlu1 %v10952_v36, %s12817_s25  ;;  %v3550_v32 = vsel %vm2005_vm11, %v3518_v44, %v8165_v7  ;;  %v12846_v44 = vrot.slane %v10885_v20, 1 }
 0x272   : > { %v8159_v60 = vpop.permute.xlu1 %8158  ;;  %v8170_v57 = vunpack.i.l.bf16 %v8169_v37  ;;  %v8171_v63 = vunpack.i.h.bf16 %v8169_v37  ;;  %v3551_v37 = vsel %vm2005_vm11, %v3519_v51, %v8166_v41  ;;  %v12847_v51 = vunpack.i.l.bf16 %v10822_v29 }
 0x273   : > { %v8161_v17 = vunpack.i.h.bf16 %v8159_v60  ;;  %v8160_v5 = vunpack.i.l.bf16 %v8159_v60 }
 0x274   : > { %v7116_v26 = vpop.f32.mrb[28].mxu0  ;;  %8448 = vrot.lane.b32.xlu0 %v10952_v36, %s12821_s20  ;;  %v3584_v60 = vsel %vm3574_vm14, %v3551_v37, %v8171_v63 }
 0x275   : > { %v2280_v1 = vpop.f32.mrb[29].mxu0  ;;  %v11023_v34 = vpop.permute.xlu0 %8178  ;;  %v2289_v27 = vadd.f32 %v10840_v55, %v7116_v26  ;;  %8433 = vrot.lane.b32.xlu1 %v10950_v56, %s12822_s2 }
 0x276   : > { %v11025_v3 = vpop.permute.xlu1 %8173  ;;  %v2281_v22 = vadd.f32 %v10840_v55, %v2280_v1  ;;  %v7117_v12 = vpop.f32.mrb[30].mxu0  ;;  %v3583_v1 = vsel %vm3574_vm14, %v3550_v32, %v8170_v57 }
 0x277   : > { %v2292_v2 = vadd.f32 %v10840_v55, %v7117_v12  ;;  %v2283_v54 = vpop.f32.mrb[31].mxu0  ;;  %v2325_v52 = vmax.f32 %v2289_v27, 0.0  ;;  %v2583_v12 = vsel %vm832_vm2, %v2581_v21, %v12846_v44  ;;  %v12848_v27 = vunpack.i.h.bf16 %v10822_v29 }
 0x278   : > { %v2323_v36 = vmax.f32 %v2281_v22, 0.0  ;;  %v2284_v26 = vadd.f32 %v10840_v55, %v2283_v54  ;;  %8458 = vrot.lane.b32.xlu0 %v10950_v56, %s12839_s0  ;;  %v2658_v55 = vsel %vm913_vm1, %v2656_v58, %v2657_v31  ;;  %v3457_v54 = vsel %vm1807_vm5, %v10473_v45, %v8156_v18 }
 0x279   : > { %v2326_v16 = vmax.f32 %v2292_v2, 0.0  ;;  %v11040_v61 = vpop.permute.xlu0 %8188  ;;  %v3456_v2 = vsel %vm1807_vm5, %v10482_v11, %v8155_v53  ;;  %8443 = vrot.lane.b32.xlu1 %v8442_v9, %s12819_s27  ;;  %v3616_v56 = vsel %vm3607_vm15, %v3583_v1, %v12847_v51  ;;  %v2404_v41 = vrot.slane %v2325_v52, 7 }
 0x27a   : > { %v11042_v38 = vpop.permute.xlu1 %8183  ;;  %v2324_v23 = vmax.f32 %v2284_v26, 0.0  ;;  %v2401_v57 = vrot.slane %v2323_v36, 7  ;;  %v11062_v31 = vsel %vm1807_vm5, %v10470_v25, %v8135_v49  ;;  %v3488_v45 = vsel %vm1873_vm7, %v3456_v2, %v8160_v5 }
 0x27b   : > { %v2405_v7 = vrot.slane %v2326_v16, 7  ;;  %v3489_v11 = vsel %vm1873_vm7, %v3457_v54, %v8161_v17  ;;  %v11067_v18 = vpack.i.bf16 %v10996_v8, %v2583_v12  ;;  %v3617_v52 = vsel %vm3607_vm15, %v3584_v60, %v12848_v27 }
 0x27c   : > { %v2402_v21 = vrot.slane %v2324_v23, 7  ;;  %8468 = vrot.lane.b32.xlu0 %v8442_v9, %s12834_s22  ;;  %v12849_v17 = vunpack.i.l.bf16 %v10870_v50  ;;  %v11090_v29 = vpack.i.bf16 %v11002_v40, %v2658_v55  ;;  %v12850_v49 = vunpack.i.l.bf16 %v10824_v42 }
 0x27d   : > { %v11069_v16 = vpop.permute.xlu0 %8203  ;;  %v11077_v23 = vsel %vm666_vm0, %v2404_v41, %v2405_v7  ;;  %8453 = vrot.lane.b32.xlu1 %v11067_v18, %s12821_s20  ;;  %v12851_v53 = vunpack.i.h.bf16 %v10824_v42  ;;  %v11099_v9 = vsel %vm666_vm0, 0.0, %v2401_v57  ;;  %v12852_v26 = vunpack.i.h.bf16 %v10870_v50 }
 0x27e   : > { %v11071_v58 = vpop.permute.xlu1 %8193  ;;  %v11080_v25 = vsel %vm666_vm0, %v2401_v57, %v2402_v21  ;;  %v2484_v5 = vsel %vm666_vm0, %v2402_v21, 0.0  ;;  %v3649_v8 = vsel %vm3640_vm6, %v3616_v56, %v12849_v17  ;;  %v3520_v22 = vsel %vm1939_vm9, %v3488_v45, %v12850_v49 }
 0x27f   : > { %v3521_v63 = vsel %vm1939_vm9, %v3489_v11, %v12851_v53  ;;  %v2662_v32 = vrot.slane %v11080_v25, 2  ;;  %v2664_v36 = vrot.slane %v2484_v5, 2  ;;  %v3650_v1 = vsel %vm3640_vm6, %v3617_v52, %v12852_v26 }
 0x280   : > { %v2587_v44 = vrot.slane %v11080_v25, 1  ;;  %v2589_v12 = vrot.slane %v2484_v5, 1  ;;  %v12853_v42 = vunpack.i.l.bf16 %v10897_v13  ;;  %v12854_v54 = vunpack.i.h.bf16 %v10897_v13  ;;  %8478 = vrot.lane.b32.xlu0 %v11067_v18, %s12837_s21 }
 0x281   : > { %v11105_v40 = vpop.permute.xlu0 %8208  ;;  %v2661_v50 = vrot.slane %v11099_v9, 2  ;;  %v12855_v60 = vunpack.i.l.bf16 %v10872_v43  ;;  %v12856_v56 = vunpack.i.h.bf16 %v10872_v43  ;;  %8463 = vrot.lane.b32.xlu1 %v11090_v29, %s12839_s0  ;;  %v2586_v13 = vrot.slane %v11099_v9, 1 }
 0x282   : > { %v11107_v37 = vpop.permute.xlu1 %8198  ;;  %v3682_v55 = vsel %vm3673_vm8, %v3649_v8, %v12853_v42  ;;  %v3683_v2 = vsel %vm3673_vm8, %v3650_v1, %v12854_v54  ;;  %v2485_v45 = vsel %vm666_vm0, %v2405_v7, 0.0  ;;  %v8186_v11 = vunpack.i.h.bf16 %v11042_v38 }
 0x283   : > { %v3552_v51 = vsel %vm2005_vm11, %v3520_v22, %v12855_v60  ;;  %v3553_v57 = vsel %vm2005_vm11, %v3521_v63, %v12856_v56  ;;  %v3710_v21 = vpack.c.bf16 %v3683_v2, %v3682_v55  ;;  %v8185_v27 = vunpack.i.l.bf16 %v11042_v38 }
 0x284   : > { %v2469_v52 = vsel %vm666_vm0, 0.0, %v2404_v41  ;;  %v2665_v5 = vsel %vm913_vm1, %v2662_v32, %v2664_v36  ;;  %v8472_v43 = vpack.i.bf16 %v11080_v25, %v11099_v9  ;;  %v2663_v49 = vsel %vm913_vm1, %v2661_v50, %v2662_v32  ;;  %8488 = vrot.lane.b32.xlu0 %v11090_v29, %s12838_s26 }
 0x285   : > { %7136 = vmatprep.mubr.msk.bf16.mxu1 %vm12792_vm10, %v3710_v21  ;;  %v11136_v17 = vpop.permute.xlu0 %8218  ;;  %v2590_v7 = vsel %vm832_vm2, %v2587_v44, %v2589_v12  ;;  %v12857_v22 = vunpack.i.l.bf16 %v10899_v24  ;;  %v12858_v41 = vunpack.i.h.bf16 %v10899_v24  ;;  %v2588_v63 = vsel %vm832_vm2, %v2586_v13, %v2587_v44 }
 0x286   : > { %v11138_v8 = vpop.permute.xlu1 %8213  ;;  %v2669_v36 = vrot.slane %v11077_v23, 1  ;;  %v2671_v26 = vrot.slane %v2485_v45, 1  ;;  %v2674_v32 = vrot.slane %v11077_v23, 2  ;;  %v8191_v1 = vunpack.i.h.bf16 %v11040_v61  ;;  %8473 = vrot.lane.b32.xlu1 %v8472_v43, %s12834_s22 }
 0x287   : > { %v3585_v38 = vsel %vm3574_vm14, %v3552_v51, %v12857_v22  ;;  %v3586_v53 = vsel %vm3574_vm14, %v3553_v57, %v12858_v41  ;;  %v2668_v12 = vrot.slane %v2469_v52, 1  ;;  %v2673_v42 = vrot.slane %v2469_v52, 2 }
 0x288   : > { %v2676_v55 = vrot.slane %v2485_v45, 2  ;;  %v11155_v24 = vpack.i.bf16 %v2665_v5, %v2663_v49  ;;  %v3618_v54 = vsel %vm3607_vm15, %v3585_v38, %v8185_v27  ;;  %v3619_v2 = vsel %vm3607_vm15, %v3586_v53, %v8186_v11 }
 0x289   : > { %v8482_v50 = vpack.i.bf16 %v2590_v7, %v2588_v63  ;;  %v8229_v44 = vpop.permute.xlu0 %8228  ;;  %v11160_v51 = vpack.i.bf16 %v11077_v23, %v2469_v52  ;;  %v2670_v45 = vsel %vm832_vm2, %v2668_v12, %v2669_v36  ;;  %v2672_v27 = vsel %vm832_vm2, %v2669_v36, %v2671_v26 }
 0x28a   : > { %v8224_v60 = vpop.permute.xlu1 %8223  ;;  %8498 = vrot.lane.b32.xlu0 %v11155_v24, %s12838_s26  ;;  %v8231_v56 = vunpack.i.h.bf16 %v8229_v44  ;;  %v8230_v57 = vunpack.i.l.bf16 %v8229_v44  ;;  %v2675_v11 = vsel %vm913_vm1, %v2673_v42, %v2674_v32  ;;  %v11170_v52 = vpack.i.bf16 %v2672_v27, %v2670_v45 }
 0x28b   : > { %v8226_v21 = vunpack.i.h.bf16 %v8224_v60  ;;  %v8225_v13 = vunpack.i.l.bf16 %v8224_v60  ;;  %8483 = vrot.lane.b32.xlu1 %v8482_v50, %s12837_s21  ;;  %v8190_v49 = vunpack.i.l.bf16 %v11040_v61  ;;  %v2677_v53 = vsel %vm913_vm1, %v2674_v32, %v2676_v55 }
 0x28c   : > { %v12859_v63 = vunpack.i.l.bf16 %v10930_v46  ;;  %v12860_v26 = vunpack.i.h.bf16 %v10930_v46  ;;  %v11188_v32 = vpack.i.bf16 %v2677_v53, %v2675_v11  ;;  %v8181_v55 = vunpack.i.h.bf16 %v11023_v34 }
 0x28d   : > { %v3651_v5 = vsel %vm3640_vm6, %v3618_v54, %v8225_v13  ;;  %v3652_v23 = vsel %vm3640_vm6, %v3619_v2, %v8226_v21  ;;  %v8244_v7 = vpop.permute.xlu0 %8243  ;;  %v8210_v60 = vunpack.i.l.bf16 %v11105_v40 }
 0x28e   : > { %v8234_v22 = vpop.permute.xlu1 %8233  ;;  %v3684_v38 = vsel %vm3673_vm8, %v3651_v5, %v8230_v57  ;;  %v3685_v41 = vsel %vm3673_vm8, %v3652_v23, %v8231_v56  ;;  %v3490_v36 = vsel %vm1873_vm7, %v11062_v31, %v12859_v63  ;;  %v3491_v12 = vsel %vm1873_vm7, %v11021_v6, %v12860_v26  ;;  %8508 = vrot.lane.b32.xlu0 %v11090_v29, %s12822_s2 }
 0x28f   : > { %v8246_v61 = vunpack.i.h.bf16 %v8244_v7  ;;  %8493 = vrot.lane.b32.xlu1 %v11067_v18, %s12817_s25  ;;  %v8245_v42 = vunpack.i.l.bf16 %v8244_v7  ;;  %v3711_v54 = vpack.c.bf16 %v3685_v41, %v3684_v38  ;;  %v8180_v31 = vunpack.i.l.bf16 %v11023_v34 }
 0x290   : > { %v3523_v46 = vsel %vm1939_vm9, %v3491_v12, %v8191_v1  ;;  %v3522_v2 = vsel %vm1939_vm9, %v3490_v36, %v8190_v49  ;;  %v8206_v6 = vunpack.i.h.bf16 %v11069_v16  ;;  %v8205_v29 = vunpack.i.l.bf16 %v11069_v16 }
 0x291   : > { %7137 = vmatmul.mubr.msk.bf16.gmra.mrb[8].mxu1 %vm12792_vm10, %v3711_v54  ;;  %v8249_v44 = vpop.permute.xlu0 %8248  ;;  %v8211_v18 = vunpack.i.h.bf16 %v11105_v40  ;;  %v3554_v1 = vsel %vm2005_vm11, %v3522_v2, %v8245_v42  ;;  %v3555_v21 = vsel %vm2005_vm11, %v3523_v46, %v8246_v61  ;;  %v8236_v13 = vunpack.i.h.bf16 %v8234_v22 }
 0x292   : > { %8518 = vrot.lane.b32.xlu0 %v8472_v43, %s12819_s27  ;;  %v8251_v56 = vunpack.i.h.bf16 %v8249_v44  ;;  %v8250_v57 = vunpack.i.l.bf16 %v8249_v44  ;;  %v8239_v34 = vpop.permute.xlu1 %8238  ;;  %v8235_v16 = vunpack.i.l.bf16 %v8234_v22  ;;  %v8176_v12 = vunpack.i.h.bf16 %v11025_v3 }
 0x293   : > { %8503 = vrot.lane.b32.xlu1 %v8482_v50, %s12817_s25  ;;  %v8241_v43 = vunpack.i.h.bf16 %v8239_v34  ;;  %v8240_v5 = vunpack.i.l.bf16 %v8239_v34  ;;  %v3461_v38 = vsel %vm1807_vm5, %v10527_v0, %v8236_v13  ;;  %v8175_v61 = vunpack.i.l.bf16 %v11025_v3 }
 0x294   : > { %v3587_v45 = vsel %vm3574_vm14, %v3554_v1, %v8250_v57  ;;  %v3588_v27 = vsel %vm3574_vm14, %v3555_v21, %v8251_v56  ;;  %v3460_v41 = vsel %vm1807_vm5, %v10536_v19, %v8235_v16  ;;  %v8196_v42 = vunpack.i.h.bf16 %v11071_v58 }
 0x295   : > { %v3620_v11 = vsel %vm3607_vm15, %v3587_v45, %v8180_v31  ;;  %v3621_v40 = vsel %vm3607_vm15, %v3588_v27, %v8181_v55  ;;  %v3493_v63 = vsel %vm1873_vm7, %v3461_v38, %v8241_v43  ;;  %v8195_v54 = vunpack.i.l.bf16 %v11071_v58 }
 0x296   : > { %8528 = vrot.lane.b32.xlu0 %v8482_v50, %s12821_s20  ;;  %v3653_v23 = vsel %vm3640_vm6, %v3620_v11, %v8205_v29  ;;  %v3654_v49 = vsel %vm3640_vm6, %v3621_v40, %v8206_v6  ;;  %v3492_v50 = vsel %vm1873_vm7, %v3460_v41, %v8240_v5  ;;  %v11220_v36 = vpop.permute.xlu1 %8253  ;;  %v11222_v26 = vpop.permute.xlu0 %8263  ;;  %v3525_v19 = vsel %vm1939_vm9, %v3493_v63, %v8176_v12 }
 0x297   : > { %8513 = vrot.lane.b32.xlu1 %v11155_v24, %s12822_s2  ;;  %v3686_v7 = vsel %vm3673_vm8, %v3653_v23, %v8210_v60  ;;  %v3687_v22 = vsel %vm3673_vm8, %v3654_v49, %v8211_v18  ;;  %v3524_v0 = vsel %vm1939_vm9, %v3492_v50, %v8175_v61  ;;  %v3557_v2 = vsel %vm2005_vm11, %v3525_v19, %v8196_v42  ;;  %v8951_v19 = vld [vmem:[%s9248_s24 + $0x10] sm:$0xff] }
 0x298   : > { %v3712_v53 = vpack.c.bf16 %v3687_v22, %v3686_v7  ;;  %v3556_v46 = vsel %vm2005_vm11, %v3524_v0, %v8195_v54  ;;  %v8201_v6 = vunpack.i.h.bf16 %v11107_v37  ;;  %v8200_v29 = vunpack.i.l.bf16 %v11107_v37  ;;  %v8950_v22 = vld [vmem:[%s9248_s24] sm:$0xff] }
 0x299   : > { %v8216_v11 = vunpack.i.h.bf16 %v11138_v8  ;;  %v8215_v40 = vunpack.i.l.bf16 %v11138_v8  ;;  %v8221_v49 = vunpack.i.h.bf16 %v11136_v17  ;;  %v8220_v7 = vunpack.i.l.bf16 %v11136_v17 }
 0x29a   : > { %8538 = vrot.lane.b32.xlu0 %v11155_v24, %s12839_s0  ;;  %7140 = vmatprep.mubr.msk.bf16.mxu1 %vm12792_vm10, %v3712_v53  ;;  %v8259_v55 = vpop.permute.xlu1 %8258  ;;  %v8274_v31 = vpop.permute.xlu0 %8273  ;;  %v3589_v18 = vsel %vm3574_vm14, %v3556_v46, %v8200_v29  ;;  %v3590_v60 = vsel %vm3574_vm14, %v3557_v2, %v8201_v6  ;;  %v8265_v38 = vunpack.i.l.bf16 %v11222_v26 }
 0x29b   : > { %8523 = vrot.lane.b32.xlu1 %v11160_v51, %s12819_s27  ;;  %v8261_v3 = vunpack.i.h.bf16 %v8259_v55  ;;  %v8260_v24 = vunpack.i.l.bf16 %v8259_v55  ;;  %v8276_v1 = vunpack.i.h.bf16 %v8274_v31  ;;  %v8275_v21 = vunpack.i.l.bf16 %v8274_v31 }
 0x29c   : > { %v3463_v8 = vsel %vm1807_vm5, %v10518_v30, %v8216_v11 }
 0x29d   : > { %v3622_v57 = vsel %vm3607_vm15, %v3589_v18, %v8260_v24  ;;  %v3623_v34 = vsel %vm3607_vm15, %v3590_v60, %v8261_v3  ;;  %v3495_v61 = vsel %vm1873_vm7, %v3463_v8, %v8221_v49  ;;  %v8953_v60 = vld [vmem:[%s9248_s24 + $0x8] sm:$0xff]  ;;  %v8255_v8 = vunpack.i.l.bf16 %v11220_v36 }
 0x29e   : > { %8548 = vrot.lane.b32.xlu0 %v11160_v51, %s12834_s22  ;;  %v8269_v44 = vpop.permute.xlu1 %8268  ;;  %v8289_v58 = vpop.permute.xlu0 %8288 }
 0x29f   : > { %8533 = vrot.lane.b32.xlu1 %v11170_v52, %s12821_s20  ;;  %v8271_v51 = vunpack.i.h.bf16 %v8269_v44  ;;  %v8270_v56 = vunpack.i.l.bf16 %v8269_v44  ;;  %v8291_v41 = vunpack.i.h.bf16 %v8289_v58  ;;  %v8290_v53 = vunpack.i.l.bf16 %v8289_v58  ;;  %v8952_v58 = vld [vmem:[%s9248_s24 + $0x20] sm:$0xff] }
 0x2a1   : > { %v3655_v37 = vsel %vm3640_vm6, %v3622_v57, %v8270_v56  ;;  %v3656_v13 = vsel %vm3640_vm6, %v3623_v34, %v8271_v51  ;;  %v4725_v51 = vld [vmem:[%s12861_s5] sm:$0xf] }
 0x2a2   : > { %8558 = vrot.lane.b32.xlu0 %v11170_v52, %s12837_s21  ;;  %v11253_v16 = vpop.permute.xlu1 %8278  ;;  %v8299_v45 = vpop.permute.xlu0 %8298  ;;  %v3688_v27 = vsel %vm3673_vm8, %v3655_v37, %v8275_v21  ;;  %v3689_v52 = vsel %vm3673_vm8, %v3656_v13, %v8276_v1  ;;  %7238 = vmatprep.subr.msk.bf16.mxu0 %vm3814_vm13, %v4725_v51 }
 0x2a3   : > { %8543 = vrot.lane.b32.xlu1 %v11188_v32, %s12839_s0  ;;  %v3713_v43 = vpack.c.bf16 %v3689_v52, %v3688_v27  ;;  %v8301_v17 = vunpack.i.h.bf16 %v8299_v45  ;;  %v8300_v50 = vunpack.i.l.bf16 %v8299_v45  ;;  %v8281_v56 = vunpack.i.h.bf16 %v11253_v16  ;;  %v8954_v52 = vld [vmem:[%s9248_s24 + $0x30] sm:$0xff] }
 0x2a4   : > { %v8280_v57 = vunpack.i.l.bf16 %v11253_v16  ;;  %v4782_v27 = vsel %vm3814_vm13, %v4725_v51, 0  ;;  %v8955_v16 = vld [vmem:[%s9248_s24 + $0x18] sm:$0xff] }
 0x2a5   : > { %7141 = vmatmul.mubr.msk.bf16.gmra.mrb[12].mxu1 %vm12792_vm10, %v3713_v43  ;;  %7161 = vmatpush3.bf16.msra.mxu0 %v4782_v27  ;;  %v3465_v11 = vsel %vm1807_vm5, %v10600_v62, %v8281_v56  ;;  %v8963_v51 = vld [vmem:[%s9248_s24 + $0x58] sm:$0xff] }
 0x2a6   : > { %8568 = vrot.lane.b32.xlu0 %v11188_v32, %s12838_s26  ;;  %v11264_v5 = vpop.permute.xlu1 %8283  ;;  %v8309_v23 = vpop.permute.xlu0 %8308  ;;  %v8266_v32 = vunpack.i.h.bf16 %v11222_v26 }
 0x2a7   : > { %8553 = vrot.lane.b32.xlu1 %v10084_v47, %s12834_s22  ;;  %v3462_v47 = vsel %vm1807_vm5, %v10524_v59, %v8215_v40  ;;  %v8311_v30 = vunpack.i.h.bf16 %v8309_v23  ;;  %v8310_v0 = vunpack.i.l.bf16 %v8309_v23  ;;  %v8286_v21 = vunpack.i.h.bf16 %v11264_v5 }
 0x2a8   : > { %v3494_v12 = vsel %vm1873_vm7, %v3462_v47, %v8220_v7  ;;  %v3527_v26 = vsel %vm1939_vm9, %v3495_v61, %v8266_v32  ;;  %v8285_v37 = vunpack.i.l.bf16 %v11264_v5  ;;  %v3464_v40 = vsel %vm1807_vm5, %v10596_v35, %v8280_v57  ;;  %v8957_v35 = vld [vmem:[%s9248_s24 + $0x28] sm:$0xff] }
 0x2a9   : > { %v3526_v59 = vsel %vm1939_vm9, %v3494_v12, %v8265_v38  ;;  %v3559_v31 = vsel %vm2005_vm11, %v3527_v26, %v8291_v41  ;;  %v3497_v5 = vsel %vm1873_vm7, %v3465_v11, %v8286_v21  ;;  %v8956_v38 = vld [vmem:[%s9248_s24 + $0x40] sm:$0xff] }
 0x2aa   : > { %4011 = vrot.lane.b32.xlu0 %v8950_v22, %s12816_s28  ;;  %v8319_v63 = vpop.permute.xlu0 %8318  ;;  %v3558_v55 = vsel %vm2005_vm11, %v3526_v59, %v8290_v53  ;;  %v3592_v24 = vsel %vm3574_vm14, %v3559_v31, %v8301_v17  ;;  %v3496_v43 = vsel %vm1873_vm7, %v3464_v40, %v8285_v37  ;;  %v8256_v22 = vunpack.i.h.bf16 %v11220_v36  ;;  %v8958_v59 = vld [vmem:[%s9248_s24 + $0x50] sm:$0xff]  ;;  %v8964_v21 = vld [vmem:[%s9248_s24 + $0x80] sm:$0xff]  ;;  %v8965_v37 = vld [vmem:[%s9248_s24 + $0x68] sm:$0xff] }
 0x2ab   : > { %8563 = vrot.lane.b32.xlu1 %v9252_v15, %s12837_s21  ;;  %v8294_v15 = vpop.permute.xlu1 %8293  ;;  %v8321_v42 = vunpack.i.h.bf16 %v8319_v63  ;;  %v8320_v54 = vunpack.i.l.bf16 %v8319_v63  ;;  %v3591_v3 = vsel %vm3574_vm14, %v3558_v55, %v8300_v50  ;;  %v3625_v6 = vsel %vm3607_vm15, %v3592_v24, %v8311_v30  ;;  %v8959_v55 = vld [vmem:[%s9248_s24 + $0x38] sm:$0xff] }
 0x2ac   : > { %v3624_v2 = vsel %vm3607_vm15, %v3591_v3, %v8310_v0  ;;  %v8296_v23 = vunpack.i.h.bf16 %v8294_v15  ;;  %v8295_v49 = vunpack.i.l.bf16 %v8294_v15  ;;  %v3528_v53 = vsel %vm1939_vm9, %v3496_v43, %v8255_v8  ;;  %v8967_v43 = vld [vmem:[%s9248_s24 + $0x78] sm:$0xff] }
 0x2ad   : > { %v3658_v18 = vsel %vm3640_vm6, %v3625_v6, %v8321_v42  ;;  %v3529_v17 = vsel %vm1939_vm9, %v3497_v5, %v8256_v22 }
 0x2ae   : > { %4015 = vrot.lane.b32.xlu0 %v8951_v19, %s12816_s28  ;;  %v8329_v46 = vpop.permute.xlu0 %8328  ;;  %v3560_v63 = vsel %vm2005_vm11, %v3528_v53, %v8295_v49  ;;  %v3561_v36 = vsel %vm2005_vm11, %v3529_v17, %v8296_v23 }
 0x2af   : > { %8573 = vrot.lane.b32.xlu1 %v9250_v14, %s12838_s26  ;;  %v8331_v29 = vunpack.i.h.bf16 %v8329_v46  ;;  %v8330_v44 = vunpack.i.l.bf16 %v8329_v46  ;;  %v3657_v14 = vsel %vm3640_vm6, %v3624_v2, %v8320_v54  ;;  %v8304_v13 = vpop.permute.xlu1 %8303 }
 0x2b0   : > { %v8306_v47 = vunpack.i.h.bf16 %v8304_v13  ;;  %v8305_v32 = vunpack.i.l.bf16 %v8304_v13 }
 0x2b1   : > { %v3690_v34 = vsel %vm3673_vm8, %v3657_v14, %v8330_v44  ;;  %v3691_v1 = vsel %vm3673_vm8, %v3658_v18, %v8331_v29  ;;  %v8960_v44 = vld [vmem:[%s9248_s24 + $0x60] sm:$0xff] }
 0x2b2   : > { %4019 = vrot.lane.b32.xlu0 %v8952_v58, %s12816_s28  ;;  %v3714_v45 = vpack.c.bf16 %v3691_v1, %v3690_v34  ;;  %v3593_v61 = vsel %vm3574_vm14, %v3560_v63, %v8305_v32  ;;  %v3594_v30 = vsel %vm3574_vm14, %v3561_v36, %v8306_v47  ;;  %v8961_v58 = vld [vmem:[%s9248_s24 + $0x48] sm:$0xff] }
 0x2b3   : > { %4013 = vrot.lane.b32.xlu1 %v8953_v60, %s12816_s28  ;;  %v8962_v60 = vld [vmem:[%s9248_s24 + $0x70] sm:$0xff] }
 0x2b4   : > { %7144 = vmatprep.mubr.msk.bf16.mxu1 %vm12792_vm10, %v3714_v45 }
 0x2b6   : > { %4023 = vrot.lane.b32.xlu0 %v8954_v52, %s12816_s28 }
 0x2b7   : > { %4017 = vrot.lane.b32.xlu1 %v8955_v16, %s12816_s28  ;;  %v8314_v7 = vpop.permute.xlu1 %8313  ;;  %v8966_v16 = vld [vmem:[%s9248_s24 + $0x90] sm:$0xff] }
 0x2b8   : > { %v8316_v62 = vunpack.i.h.bf16 %v8314_v7  ;;  %v8315_v41 = vunpack.i.l.bf16 %v8314_v7 }
 0x2b9   : > { %v8339_v50 = vpop.permute.xlu0 %8338 }
 0x2ba   : > { %4027 = vrot.lane.b32.xlu0 %v8956_v38, %s12816_s28  ;;  %v3626_v26 = vsel %vm3607_vm15, %v3593_v61, %v8315_v41  ;;  %v3627_v15 = vsel %vm3607_vm15, %v3594_v30, %v8316_v62  ;;  %v8341_v42 = vunpack.i.h.bf16 %v8339_v50  ;;  %v8340_v54 = vunpack.i.l.bf16 %v8339_v50  ;;  %v8968_v38 = vld [vmem:[%s9248_s24 + $0xa0] sm:$0xff] }
 0x2bb   : > { %4021 = vrot.lane.b32.xlu1 %v8957_v35, %s12816_s28  ;;  %v8324_v12 = vpop.permute.xlu1 %8323  ;;  %v8969_v35 = vld [vmem:[%s9248_s24 + $0x88] sm:$0xff] }
 0x2bc   : > { %v8326_v0 = vunpack.i.h.bf16 %v8324_v12  ;;  %v8325_v19 = vunpack.i.l.bf16 %v8324_v12 }
 0x2bd   : > { %v8349_v24 = vpop.permute.xlu0 %8348 }
 0x2be   : > { %4031 = vrot.lane.b32.xlu0 %v8958_v59, %s12816_s28  ;;  %v3659_v31 = vsel %vm3640_vm6, %v3626_v26, %v8325_v19  ;;  %v3660_v3 = vsel %vm3640_vm6, %v3627_v15, %v8326_v0  ;;  %v8351_v11 = vunpack.i.h.bf16 %v8349_v24  ;;  %v8350_v40 = vunpack.i.l.bf16 %v8349_v24 }
 0x2bf   : > { %4025 = vrot.lane.b32.xlu1 %v8959_v55, %s12816_s28  ;;  %v8334_v46 = vpop.permute.xlu1 %8333  ;;  %v3692_v2 = vsel %vm3673_vm8, %v3659_v31, %v8340_v54  ;;  %v3693_v6 = vsel %vm3673_vm8, %v3660_v3, %v8341_v42  ;;  %v8970_v54 = vld [vmem:[%s9248_s24 + $0xb0] sm:$0xff]  ;;  %v8971_v3 = vld [vmem:[%s9248_s24 + $0x98] sm:$0xff] }
 0x2c0   : > { %v3715_v29 = vpack.c.bf16 %v3693_v6, %v3692_v2  ;;  %v8336_v34 = vunpack.i.h.bf16 %v8334_v46  ;;  %v8335_v1 = vunpack.i.l.bf16 %v8334_v46 }
 0x2c1   : > { %v8359_v14 = vpop.permute.xlu0 %8358 }
 0x2c2   : > { %4035 = vrot.lane.b32.xlu0 %v8960_v44, %s12816_s28  ;;  %7145 = vmatmul.mubr.msk.bf16.gmra.mrb[16].mxu1 %vm12792_vm10, %v3715_v29  ;;  %v3467_v27 = vsel %vm1807_vm5, %v10586_v33, %v8336_v34  ;;  %v3466_v52 = vsel %vm1807_vm5, %v10605_v10, %v8335_v1  ;;  %v8361_v5 = vunpack.i.h.bf16 %v8359_v14  ;;  %v8360_v23 = vunpack.i.l.bf16 %v8359_v14  ;;  %v8972_v1 = vld [vmem:[%s9248_s24 + $0xc0] sm:$0xff] }
 0x2c3   : > { %4029 = vrot.lane.b32.xlu1 %v8961_v58, %s12816_s28  ;;  %v8344_v18 = vpop.permute.xlu1 %8343  ;;  %v3498_v7 = vsel %vm1873_vm7, %v3466_v52, %v8350_v40  ;;  %v3499_v33 = vsel %vm1873_vm7, %v3467_v27, %v8351_v11  ;;  %v8973_v27 = vld [vmem:[%s9248_s24 + $0xa8] sm:$0xff] }
 0x2c4   : > { %v8346_v22 = vunpack.i.h.bf16 %v8344_v18  ;;  %v8345_v8 = vunpack.i.l.bf16 %v8344_v18  ;;  %v3530_v53 = vsel %vm1939_vm9, %v3498_v7, %v8360_v23  ;;  %v3531_v17 = vsel %vm1939_vm9, %v3499_v33, %v8361_v5 }
 0x2c5   : > { %v8369_v56 = vpop.permute.xlu0 %8368 }
 0x2c6   : > { %4039 = vrot.lane.b32.xlu0 %v8962_v60, %s12816_s28  ;;  %v8371_v47 = vunpack.i.h.bf16 %v8369_v56  ;;  %v8370_v32 = vunpack.i.l.bf16 %v8369_v56  ;;  %v3469_v12 = vsel %vm1807_vm5, %v10738_v48, %v8346_v22  ;;  %v3468_v61 = vsel %vm1807_vm5, %v10733_v28, %v8345_v8  ;;  %v8974_v8 = vld [vmem:[%s9248_s24 + $0xd0] sm:$0xff] }
 0x2c7   : > { %4033 = vrot.lane.b32.xlu1 %v8963_v51, %s12816_s28  ;;  %v8354_v57 = vpop.permute.xlu1 %8353 }
 0x2c8   : > { %v8356_v62 = vunpack.i.h.bf16 %v8354_v57  ;;  %v8355_v41 = vunpack.i.l.bf16 %v8354_v57  ;;  %v3562_v59 = vsel %vm2005_vm11, %v3530_v53, %v8370_v32  ;;  %v3563_v26 = vsel %vm2005_vm11, %v3531_v17, %v8371_v47 }
 0x2c9   : > { %v8379_v13 = vpop.permute.xlu0 %8378 }
 0x2ca   : > { %4043 = vrot.lane.b32.xlu0 %v8964_v21, %s12816_s28  ;;  %v8381_v50 = vunpack.i.h.bf16 %v8379_v13  ;;  %v8380_v63 = vunpack.i.l.bf16 %v8379_v13  ;;  %v3500_v55 = vsel %vm1873_vm7, %v3468_v61, %v8355_v41  ;;  %v3501_v31 = vsel %vm1873_vm7, %v3469_v12, %v8356_v62  ;;  %v8975_v62 = vld [vmem:[%s9248_s24 + $0xb8] sm:$0xff]  ;;  %v8976_v12 = vld [vmem:[%s9248_s24 + $0xe0] sm:$0xff]  ;;  %v8977_v61 = vld [vmem:[%s9248_s24 + $0xc8] sm:$0xff] }
 0x2cb   : > { %4037 = vrot.lane.b32.xlu1 %v8965_v37, %s12816_s28  ;;  %v11355_v45 = vpop.permute.xlu1 %8363 }
 0x2cc   : > { %v8366_v48 = vunpack.i.h.bf16 %v11355_v45  ;;  %v8365_v28 = vunpack.i.l.bf16 %v11355_v45  ;;  %v3595_v24 = vsel %vm3574_vm14, %v3562_v59, %v8380_v63  ;;  %v3596_v46 = vsel %vm3574_vm14, %v3563_v26, %v8381_v50  ;;  %v8979_v59 = vld [vmem:[%s9248_s24 + $0xd8] sm:$0xff] }
 0x2cd   : > { %v8389_v49 = vpop.permute.xlu0 %8388 }
 0x2ce   : > { %4047 = vrot.lane.b32.xlu0 %v8966_v16, %s12816_s28  ;;  %v8391_v30 = vunpack.i.h.bf16 %v8389_v49  ;;  %v8390_v0 = vunpack.i.l.bf16 %v8389_v49  ;;  %v3532_v52 = vsel %vm1939_vm9, %v3500_v55, %v8365_v28  ;;  %v3533_v16 = vsel %vm1939_vm9, %v3501_v31, %v8366_v48  ;;  %v8980_v55 = vld [vmem:[%s9248_s24 + $0xe8] sm:$0xff] }
 0x2cf   : > { %4041 = vrot.lane.b32.xlu1 %v8967_v43, %s12816_s28  ;;  %v8374_v10 = vpop.permute.xlu1 %8373 }
 0x2d0   : > { %v8376_v2 = vunpack.i.h.bf16 %v8374_v10  ;;  %v8375_v6 = vunpack.i.l.bf16 %v8374_v10  ;;  %v3628_v44 = vsel %vm3607_vm15, %v3595_v24, %v8390_v0  ;;  %v3629_v58 = vsel %vm3607_vm15, %v3596_v46, %v8391_v30 }
 0x2d1   : > { %v8399_v36 = vpop.permute.xlu0 %8398 }
 0x2d2   : > { %4051 = vrot.lane.b32.xlu0 %v8968_v38, %s12816_s28  ;;  %v8401_v15 = vunpack.i.h.bf16 %v8399_v36  ;;  %v8400_v42 = vunpack.i.l.bf16 %v8399_v36  ;;  %v3564_v43 = vsel %vm2005_vm11, %v3532_v52, %v8375_v6  ;;  %v3565_v5 = vsel %vm2005_vm11, %v3533_v16, %v8376_v2  ;;  %v8981_v2 = vld [vmem:[%s9248_s24 + $0xf8] sm:$0xff] }
 0x2d3   : > { %4045 = vrot.lane.b32.xlu1 %v8969_v35, %s12816_s28  ;;  %v8384_v19 = vpop.permute.xlu1 %8383  ;;  %v12863_v52 = vld [vmem:[#allocation14_spill] sm:$0xff] }
 0x2d4   : > { %v3661_v51 = vsel %vm3640_vm6, %v3628_v44, %v8400_v42  ;;  %v3662_v56 = vsel %vm3640_vm6, %v3629_v58, %v8401_v15  ;;  %v8386_v57 = vunpack.i.h.bf16 %v8384_v19  ;;  %v8385_v34 = vunpack.i.l.bf16 %v8384_v19  ;;  %v8978_v19 = vld [vmem:[%s9248_s24 + $0xf0] sm:$0xff]  ;;  %s593_s24 = sand.u32 1, %s9037_s30  }
 0x2d5   : > { %v8409_v29 = vpop.permute.xlu0 %8408 }
 0x2d6   : > { %4055 = vrot.lane.b32.xlu0 %v8970_v54, %s12816_s28  ;;  %v8411_v14 = vunpack.i.h.bf16 %v8409_v29  ;;  %v8410_v18 = vunpack.i.l.bf16 %v8409_v29  ;;  %v3597_v49 = vsel %vm3574_vm14, %v3564_v43, %v8385_v34  ;;  %v3598_v7 = vsel %vm3574_vm14, %v3565_v5, %v8386_v57 }
 0x2d7   : > { %4049 = vrot.lane.b32.xlu1 %v8971_v3, %s12816_s28  ;;  %v8394_v60 = vpop.permute.xlu1 %8393 }
 0x2d8   : > { %v3694_v21 = vsel %vm3673_vm8, %v3661_v51, %v8410_v18  ;;  %v3695_v37 = vsel %vm3673_vm8, %v3662_v56, %v8411_v14  ;;  %v8396_v13 = vunpack.i.h.bf16 %v8394_v60  ;;  %v8395_v45 = vunpack.i.l.bf16 %v8394_v60 }
 0x2d9   : > { %v3716_v40 = vpack.c.bf16 %v3695_v37, %v3694_v21 }
 0x2da   : > { %4059 = vrot.lane.b32.xlu0 %v8972_v1, %s12816_s28  ;;  %v8419_v11 = vpop.permute.xlu0 %8418  ;;  %v3630_v10 = vsel %vm3607_vm15, %v3597_v49, %v8395_v45  ;;  %v3631_v47 = vsel %vm3607_vm15, %v3598_v7, %v8396_v13  ;;  %v12862_v45 = vld [vmem:[#allocation15_spill] sm:$0xff] }
 0x2db   : > { %4053 = vrot.lane.b32.xlu1 %v8973_v27, %s12816_s28  ;;  %v8404_v23 = vpop.permute.xlu1 %8403  ;;  %7148 = vmatprep.mubr.msk.bf16.mxu1 %vm12792_vm10, %v3716_v40  ;;  %v8421_v32 = vunpack.i.h.bf16 %v8419_v11  ;;  %v8420_v38 = vunpack.i.l.bf16 %v8419_v11 }
 0x2dc   : > { %v8406_v33 = vunpack.i.h.bf16 %v8404_v23  ;;  %v8405_v22 = vunpack.i.l.bf16 %v8404_v23 }
 0x2de   : > { %4063 = vrot.lane.b32.xlu0 %v8974_v8, %s12816_s28  ;;  %v3663_v41 = vsel %vm3640_vm6, %v3630_v10, %v8405_v22  ;;  %v3664_v35 = vsel %vm3640_vm6, %v3631_v47, %v8406_v33  ;;  %v8429_v53 = vpop.permute.xlu0 %8428 }
 0x2df   : > { %4057 = vrot.lane.b32.xlu1 %v8975_v62, %s12816_s28  ;;  %v8414_v17 = vpop.permute.xlu1 %8413  ;;  %v3696_v50 = vsel %vm3673_vm8, %v3663_v41, %v8420_v38  ;;  %v3697_v63 = vsel %vm3673_vm8, %v3664_v35, %v8421_v32  ;;  %v8431_v24 = vunpack.i.h.bf16 %v8429_v53  ;;  %v8430_v46 = vunpack.i.l.bf16 %v8429_v53 }
 0x2e0   : > { %v3717_v36 = vpack.c.bf16 %v3697_v63, %v3696_v50  ;;  %v8416_v42 = vunpack.i.h.bf16 %v8414_v17  ;;  %v8415_v54 = vunpack.i.l.bf16 %v8414_v17 }
 0x2e2   : > { %4067 = vrot.lane.b32.xlu0 %v8976_v12, %s12816_s28  ;;  %v8439_v30 = vpop.permute.xlu0 %8438  ;;  %7149 = vmatmul.mubr.msk.bf16.gmra.mrb[20].mxu1 %vm12792_vm10, %v3717_v36  ;;  %v3471_v28 = vsel %vm1807_vm5, %v10713_v4, %v8416_v42  ;;  %v3470_v3 = vsel %vm1807_vm5, %v10792_v39, %v8415_v54 }
 0x2e3   : > { %4061 = vrot.lane.b32.xlu1 %v8977_v61, %s12816_s28  ;;  %v8424_v0 = vpop.permute.xlu1 %8423  ;;  %v8441_v6 = vunpack.i.h.bf16 %v8439_v30  ;;  %v8440_v29 = vunpack.i.l.bf16 %v8439_v30  ;;  %v3502_v58 = vsel %vm1873_vm7, %v3470_v3, %v8430_v46  ;;  %v3503_v14 = vsel %vm1873_vm7, %v3471_v28, %v8431_v24 }
 0x2e4   : > { %v8426_v18 = vunpack.i.h.bf16 %v8424_v0  ;;  %v8425_v60 = vunpack.i.l.bf16 %v8424_v0 }
 0x2e5   : > { %v3534_v39 = vsel %vm1939_vm9, %v3502_v58, %v8440_v29  ;;  %v3535_v1 = vsel %vm1939_vm9, %v3503_v14, %v8441_v6 }
 0x2e6   : > { %4071 = vrot.lane.b32.xlu0 %v8978_v19, %s12816_s28  ;;  %v8449_v26 = vpop.permute.xlu0 %8448  ;;  %v3473_v27 = vsel %vm1807_vm5, %v12862_v45, %v8426_v18  ;;  %v3472_v16 = vsel %vm1807_vm5, %v12863_v52, %v8425_v60 }
 0x2e7   : > { %4065 = vrot.lane.b32.xlu1 %v8979_v59, %s12816_s28  ;;  %v8434_v15 = vpop.permute.xlu1 %8433  ;;  %v8451_v56 = vunpack.i.h.bf16 %v8449_v26  ;;  %v8450_v4 = vunpack.i.l.bf16 %v8449_v26 }
 0x2e8   : > { %v8436_v57 = vunpack.i.h.bf16 %v8434_v15  ;;  %v8435_v34 = vunpack.i.l.bf16 %v8434_v15 }
 0x2e9   : > { %v3566_v5 = vsel %vm2005_vm11, %v3534_v39, %v8450_v4  ;;  %v3567_v23 = vsel %vm2005_vm11, %v3535_v1, %v8451_v56 }
 0x2ea   : > { %v8459_v31 = vpop.permute.xlu0 %8458  ;;  %v3504_v33 = vsel %vm1873_vm7, %v3472_v16, %v8435_v34  ;;  %v3505_v22 = vsel %vm1873_vm7, %v3473_v27, %v8436_v57  ;;  %v12864_v16 = vld [vmem:[#allocation16_spill] sm:$0xff] }
 0x2eb   : > { %4069 = vrot.lane.b32.xlu1 %v8980_v55, %s12816_s28  ;;  %v8444_v48 = vpop.permute.xlu1 %8443  ;;  %v8461_v21 = vunpack.i.h.bf16 %v8459_v31  ;;  %v8460_v37 = vunpack.i.l.bf16 %v8459_v31 }
 0x2ec   : > { %v8446_v8 = vunpack.i.h.bf16 %v8444_v48  ;;  %v8445_v10 = vunpack.i.l.bf16 %v8444_v48 }
 0x2ed   : > { %v3599_v47 = vsel %vm3574_vm14, %v3566_v5, %v8460_v37  ;;  %v3600_v32 = vsel %vm3574_vm14, %v3567_v23, %v8461_v21 }
 0x2ee   : > { %v8469_v44 = vpop.permute.xlu0 %8468  ;;  %v3536_v15 = vsel %vm1939_vm9, %v3504_v33, %v8445_v10  ;;  %v3537_v42 = vsel %vm1939_vm9, %v3505_v22, %v8446_v8 }
 0x2ef   : > { %4073 = vrot.lane.b32.xlu1 %v8981_v2, %s12816_s28  ;;  %v8454_v51 = vpop.permute.xlu1 %8453  ;;  %v8471_v11 = vunpack.i.h.bf16 %v8469_v44  ;;  %v8470_v40 = vunpack.i.l.bf16 %v8469_v44 }
 0x2f0   : > { %v8456_v38 = vunpack.i.h.bf16 %v8454_v51  ;;  %v8455_v62 = vunpack.i.l.bf16 %v8454_v51 }
 0x2f1   : > { %v3632_v35 = vsel %vm3607_vm15, %v3599_v47, %v8470_v40  ;;  %v3633_v53 = vsel %vm3607_vm15, %v3600_v32, %v8471_v11 }
 0x2f2   : > { %v8479_v13 = vpop.permute.xlu0 %8478  ;;  %v3568_v31 = vsel %vm2005_vm11, %v3536_v15, %v8455_v62  ;;  %v3569_v48 = vsel %vm2005_vm11, %v3537_v42, %v8456_v38 }
 0x2f3   : > { %v8464_v43 = vpop.permute.xlu1 %8463  ;;  %v8481_v49 = vunpack.i.h.bf16 %v8479_v13  ;;  %v8480_v7 = vunpack.i.l.bf16 %v8479_v13 }
 0x2f4   : > { %v8466_v61 = vunpack.i.h.bf16 %v8464_v43  ;;  %v8465_v30 = vunpack.i.l.bf16 %v8464_v43 }
 0x2f5   : > { %v3665_v36 = vsel %vm3640_vm6, %v3632_v35, %v8480_v7  ;;  %v3666_v12 = vsel %vm3640_vm6, %v3633_v53, %v8481_v49 }
 0x2f6   : > { %v8489_v41 = vpop.permute.xlu0 %8488  ;;  %v3601_v3 = vsel %vm3574_vm14, %v3568_v31, %v8465_v30  ;;  %v3602_v24 = vsel %vm3574_vm14, %v3569_v48, %v8466_v61 }
 0x2f7   : > { %v8491_v17 = vunpack.i.h.bf16 %v8489_v41  ;;  %v8490_v50 = vunpack.i.l.bf16 %v8489_v41 }
 0x2f8   : > { %v8474_v63 = vpop.permute.xlu1 %8473 }
 0x2f9   : > { %v3698_v0 = vsel %vm3673_vm8, %v3665_v36, %v8490_v50  ;;  %v3699_v19 = vsel %vm3673_vm8, %v3666_v12, %v8491_v17  ;;  %v8476_v59 = vunpack.i.h.bf16 %v8474_v63  ;;  %v8475_v26 = vunpack.i.l.bf16 %v8474_v63 }
 0x2fa   : > { %v3718_v55 = vpack.c.bf16 %v3699_v19, %v3698_v0 }
 0x2fb   : > { %v3634_v6 = vsel %vm3607_vm15, %v3601_v3, %v8475_v26  ;;  %v3635_v29 = vsel %vm3607_vm15, %v3602_v24, %v8476_v59 }
 0x2fc   : > { %v8499_v54 = vpop.permute.xlu0 %8498  ;;  %7152 = vmatprep.mubr.msk.bf16.mxu1 %vm12792_vm10, %v3718_v55 }
 0x2fd   : > { %v8484_v28 = vpop.permute.xlu1 %8483  ;;  %v8501_v44 = vunpack.i.h.bf16 %v8499_v54  ;;  %v8500_v58 = vunpack.i.l.bf16 %v8499_v54 }
 0x2fe   : > { %v8486_v46 = vunpack.i.h.bf16 %v8484_v28  ;;  %v8485_v2 = vunpack.i.l.bf16 %v8484_v28 }
 0x300   : > { %v3667_v14 = vsel %vm3640_vm6, %v3634_v6, %v8485_v2  ;;  %v3668_v18 = vsel %vm3640_vm6, %v3635_v29, %v8486_v46  ;;  %v8509_v60 = vpop.permute.xlu0 %8508 }
 0x301   : > { %v8494_v51 = vpop.permute.xlu1 %8493  ;;  %v3700_v56 = vsel %vm3673_vm8, %v3667_v14, %v8500_v58  ;;  %v3701_v4 = vsel %vm3673_vm8, %v3668_v18, %v8501_v44  ;;  %v8511_v43 = vunpack.i.h.bf16 %v8509_v60  ;;  %v8510_v5 = vunpack.i.l.bf16 %v8509_v60 }
 0x302   : > { %v3719_v57 = vpack.c.bf16 %v3701_v4, %v3700_v56  ;;  %v8496_v37 = vunpack.i.h.bf16 %v8494_v51  ;;  %v8495_v13 = vunpack.i.l.bf16 %v8494_v51 }
 0x304   : > { %v8519_v34 = vpop.permute.xlu0 %8518  ;;  %7153 = vmatmul.mubr.msk.bf16.gmra.mrb[24].mxu1 %vm12792_vm10, %v3719_v57  ;;  %v3475_v52 = vsel %vm1807_vm5, %v10885_v20, %v8496_v37  ;;  %v3474_v11 = vsel %vm1807_vm5, %v12864_v16, %v8495_v13 }
 0x305   : > { %v8504_v39 = vpop.permute.xlu1 %8503  ;;  %v8521_v49 = vunpack.i.h.bf16 %v8519_v34  ;;  %v8520_v7 = vunpack.i.l.bf16 %v8519_v34  ;;  %v3506_v33 = vsel %vm1873_vm7, %v3474_v11, %v8510_v5  ;;  %v3507_v22 = vsel %vm1873_vm7, %v3475_v52, %v8511_v43  ;;  %v11509_v5 = vld [vmem:[%s12865_s4] ss:$0 sm:$0xff] }
 0x306   : > { %v8506_v12 = vunpack.i.h.bf16 %v8504_v39  ;;  %v8505_v61 = vunpack.i.l.bf16 %v8504_v39 }
 0x307   : > { %v3538_v35 = vsel %vm1939_vm9, %v3506_v33, %v8520_v7  ;;  %v3539_v53 = vsel %vm1939_vm9, %v3507_v22, %v8521_v49 }
 0x308   : > { %v8529_v1 = vpop.permute.xlu0 %8528  ;;  %v3477_v58 = vsel %vm1807_vm5, %v11080_v25, %v8506_v12  ;;  %v3476_v14 = vsel %vm1807_vm5, %v11099_v9, %v8505_v61 }
 0x309   : > { %v8514_v21 = vpop.permute.xlu1 %8513  ;;  %v8531_v8 = vunpack.i.h.bf16 %v8529_v1  ;;  %v8530_v10 = vunpack.i.l.bf16 %v8529_v1 }
 0x30a   : > { %v8516_v55 = vunpack.i.h.bf16 %v8514_v21  ;;  %v8515_v31 = vunpack.i.l.bf16 %v8514_v21 }
 0x30b   : > { %v3570_v63 = vsel %vm2005_vm11, %v3538_v35, %v8530_v10  ;;  %v3571_v36 = vsel %vm2005_vm11, %v3539_v53, %v8531_v8 }
 0x30c   : > { %v8539_v45 = vpop.permute.xlu0 %8538  ;;  %v3508_v4 = vsel %vm1873_vm7, %v3476_v14, %v8515_v31  ;;  %v3509_v57 = vsel %vm1873_vm7, %v3477_v58, %v8516_v55 }
 0x30d   : > { %v8524_v27 = vpop.permute.xlu1 %8523  ;;  %v8541_v47 = vunpack.i.h.bf16 %v8539_v45  ;;  %v8540_v32 = vunpack.i.l.bf16 %v8539_v45 }
 0x30e   : > { %v8526_v3 = vunpack.i.h.bf16 %v8524_v27  ;;  %v8525_v24 = vunpack.i.l.bf16 %v8524_v27 }
 0x30f   : > { %v3603_v30 = vsel %vm3574_vm14, %v3570_v63, %v8540_v32  ;;  %v3604_v0 = vsel %vm3574_vm14, %v3571_v36, %v8541_v47 }
 0x310   : > { %v8549_v40 = vpop.permute.xlu0 %8548  ;;  %v3540_v1 = vsel %vm1939_vm9, %v3508_v4, %v8525_v24  ;;  %v3541_v25 = vsel %vm1939_vm9, %v3509_v57, %v8526_v3 }
 0x311   : > { %v8534_v23 = vpop.permute.xlu1 %8533  ;;  %v8551_v62 = vunpack.i.h.bf16 %v8549_v40  ;;  %v8550_v20 = vunpack.i.l.bf16 %v8549_v40 }
 0x312   : > { %v8536_v6 = vunpack.i.h.bf16 %v8534_v23  ;;  %v8535_v29 = vunpack.i.l.bf16 %v8534_v23 }
 0x313   : > { %v3636_v59 = vsel %vm3607_vm15, %v3603_v30, %v8550_v20  ;;  %v3637_v26 = vsel %vm3607_vm15, %v3604_v0, %v8551_v62 }
 0x314   : > { %v8559_v38 = vpop.permute.xlu0 %8558  ;;  %v3572_v37 = vsel %vm2005_vm11, %v3540_v1, %v8535_v29  ;;  %v3573_v13 = vsel %vm2005_vm11, %v3541_v25, %v8536_v6 }
 0x315   : > { %v8544_v41 = vpop.permute.xlu1 %8543  ;;  %v8561_v17 = vunpack.i.h.bf16 %v8559_v38  ;;  %v8560_v50 = vunpack.i.l.bf16 %v8559_v38 }
 0x316   : > { %v8546_v18 = vunpack.i.h.bf16 %v8544_v41  ;;  %v8545_v60 = vunpack.i.l.bf16 %v8544_v41 }
 0x317   : > { %v3669_v48 = vsel %vm3640_vm6, %v3636_v59, %v8560_v50  ;;  %v3670_v28 = vsel %vm3640_vm6, %v3637_v26, %v8561_v17 }
 0x318   : > { %v8569_v19 = vpop.permute.xlu0 %8568  ;;  %v3605_v45 = vsel %vm3574_vm14, %v3572_v37, %v8545_v60  ;;  %v3606_v27 = vsel %vm3574_vm14, %v3573_v13, %v8546_v18 }
 0x319   : > { %v8571_v15 = vunpack.i.h.bf16 %v8569_v19  ;;  %v8570_v42 = vunpack.i.l.bf16 %v8569_v19  ;;  %v11481_v54 = vpop.permute.xlu1 %8553 }
 0x31a   : > { %v8556_v34 = vunpack.i.h.bf16 %v11481_v54  ;;  %v8555_v39 = vunpack.i.l.bf16 %v11481_v54  ;;  %v9060_v54 = vmov 0  }
 0x31b   : > { %v3702_v46 = vsel %vm3673_vm8, %v3669_v48, %v8570_v42  ;;  %v3703_v2 = vsel %vm3673_vm8, %v3670_v28, %v8571_v15 }
 0x31c   : > { %v3720_v44 = vpack.c.bf16 %v3703_v2, %v3702_v46  ;;  %v4012_v56 = vpop.permute.xlu0 %4011  ;;  %v3638_v16 = vsel %vm3607_vm15, %v3605_v45, %v8555_v39  ;;  %v3639_v11 = vsel %vm3607_vm15, %v3606_v27, %v8556_v34 }
 0x31d   : > { %v8564_v51 = vpop.permute.xlu1 %8563  ;;  %v4107_v35 = vsel %vm1774_vm4, 0.0, %v4012_v56 }
 0x31e   : > { %7156 = vmatprep.mubr.msk.bf16.mxu1 %vm12792_vm10, %v3720_v44  ;;  %v8566_v21 = vunpack.i.h.bf16 %v8564_v51  ;;  %v8565_v9 = vunpack.i.l.bf16 %v8564_v51 }
 0x320   : > { %v3671_v23 = vsel %vm3640_vm6, %v3638_v16, %v8565_v9  ;;  %v3672_v49 = vsel %vm3640_vm6, %v3639_v11, %v8566_v21  ;;  %v4016_v7 = vpop.permute.xlu0 %4015 }
 0x321   : > { %v8574_v52 = vpop.permute.xlu1 %8573  ;;  %v4109_v41 = vsel %vm1774_vm4, 0.0, %v4016_v7 }
 0x322   : > { %v8576_v40 = vunpack.i.h.bf16 %v8574_v52  ;;  %v8575_v43 = vunpack.i.l.bf16 %v8574_v52 }
 0x324   : > { %v3704_v33 = vsel %vm3673_vm8, %v3671_v23, %v8575_v43  ;;  %v3705_v22 = vsel %vm3673_vm8, %v3672_v49, %v8576_v40  ;;  %v7130_v8 = vpop.f32.mrb[0].mxu1 }
 0x325   : > { %v3861_v10 = vadd.f32 %v7130_v8, %v11509_v5  ;;  %v4014_v47 = vpop.permute.xlu1 %4013  ;;  %v3852_v32 = vpop.f32.mrb[1].mxu1  ;;  %v3721_v38 = vpack.c.bf16 %v3705_v22, %v3704_v33 }
 0x326   : > { %v3853_v62 = vadd.f32 %v11509_v5, %v3852_v32  ;;  %v7131_v20 = vpop.f32.mrb[2].mxu1  ;;  %v4108_v0 = vsel %vm1774_vm4, 0.0, %v4014_v47 }
 0x327   : > { %v3981_v53 = vmax.f32 %v3861_v10, 0.0  ;;  %7157 = vmatmul.mubr.msk.bf16.gmra.mrb[28].mxu1 %vm12792_vm10, %v3721_v38  ;;  %v3864_v17 = vadd.f32 %v7131_v20, %v11509_v5  ;;  %v3855_v50 = vpop.f32.mrb[3].mxu1  ;;  %vm4492_vm10 = vcmask 1044480  }
 0x328   : > { %v3979_v63 = vmax.f32 %v3853_v62, 0.0  ;;  %v3856_v36 = vadd.f32 %v11509_v5, %v3855_v50  ;;  %v4020_v50 = vpop.permute.xlu0 %4019 }
 0x329   : > { %v3982_v12 = vmax.f32 %v3864_v17, 0.0  ;;  %v4141_v61 = vadd.f32 %v4109_v41, %v3981_v53  ;;  %v4018_v30 = vpop.permute.xlu1 %4017 }
 0x32a   : > { %v4139_v19 = vadd.f32 %v4107_v35, %v3979_v63  ;;  %v3980_v59 = vmax.f32 %v3856_v36, 0.0  ;;  %v4110_v26 = vsel %vm1774_vm4, 0.0, %v4018_v30 }
 0x32b   : > { %v4188_v15 = vrot.slane %v4141_v61, 1  ;;  %v4220_v42 = vrot.slane %v4141_v61, 2  ;;  %v4252_v55 = vrot.slane %v4141_v61, 3  ;;  %v4542_v31 = vrot.slane %v4141_v61, 4 }
 0x32c   : > { %v4187_v48 = vrot.slane %v4139_v19, 1  ;;  %v4219_v28 = vrot.slane %v4139_v19, 2  ;;  %v4251_v3 = vrot.slane %v4139_v19, 3  ;;  %v4541_v24 = vrot.slane %v4139_v19, 4  ;;  %v4024_v36 = vpop.permute.xlu0 %4023 }
 0x32d   : > { %v4428_v46 = vsel %vm666_vm0, %v4141_v61, %v4188_v15  ;;  %v4574_v2 = vsel %vm666_vm0, %v4188_v15, %v4220_v42  ;;  %v4140_v6 = vadd.f32 %v4108_v0, %v3980_v59  ;;  %v4142_v29 = vadd.f32 %v4110_v26, %v3982_v12  ;;  %v4022_v63 = vpop.permute.xlu1 %4021 }
 0x32e   : > { %v4427_v44 = vsel %vm666_vm0, %v4139_v19, %v4187_v48  ;;  %v4573_v58 = vsel %vm666_vm0, %v4187_v48, %v4219_v28  ;;  %v4444_v14 = vsel %vm2130_vm3, %v4428_v46, %v4220_v42  ;;  %v4590_v18 = vsel %vm2130_vm3, %v4574_v2, %v4252_v55 }
 0x32f   : > { %v4443_v60 = vsel %vm2130_vm3, %v4427_v44, %v4219_v28  ;;  %v4589_v51 = vsel %vm2130_vm3, %v4573_v58, %v4251_v3  ;;  %v4461_v56 = vsel %vm4459_vm12, %v4444_v14, %v4252_v55  ;;  %v4606_v4 = vsel %vm4459_vm12, %v4590_v18, %v4542_v31 }
 0x330   : > { %v4460_v57 = vsel %vm4459_vm12, %v4443_v60, %v4251_v3  ;;  %v4605_v34 = vsel %vm4459_vm12, %v4589_v51, %v4541_v24  ;;  %v4299_v1 = vrot.slane %v4140_v6, 4  ;;  %v4331_v25 = vrot.slane %v4140_v6, 5 }
 0x331   : > { %v4300_v21 = vrot.slane %v4142_v29, 4  ;;  %v4332_v9 = vrot.slane %v4142_v29, 5  ;;  %v4363_v37 = vrot.slane %v4140_v6, 6  ;;  %v4709_v16 = vpack.c.bf16 %v4140_v6, %v4139_v19  ;;  %v4026_v31 = vpop.permute.xlu1 %4025 }
 0x332   : > { %v4476_v13 = vsel %vm3814_vm13, %v4460_v57, %v4299_v1  ;;  %v4621_v45 = vsel %vm3814_vm13, %v4605_v34, %v4331_v25  ;;  %v4710_v11 = vpack.c.bf16 %v4142_v29, %v4141_v61  ;;  %v4395_v40 = vrot.slane %v4140_v6, 7 }
 0x333   : > { %v4477_v27 = vsel %vm3814_vm13, %v4461_v56, %v4300_v21  ;;  %v4622_v52 = vsel %vm3814_vm13, %v4606_v4, %v4332_v9  ;;  %v4364_v43 = vrot.slane %v4142_v29, 6  ;;  %v4396_v23 = vrot.slane %v4142_v29, 7  ;;  %7162 = vmatprep.mubr.msk.bf16.mxu0 %vm1807_vm5, %v4709_v16 }
 0x334   : > { %v4493_v49 = vsel %vm4492_vm10, %v4476_v13, %v4331_v25  ;;  %v4494_v7 = vsel %vm4492_vm10, %v4477_v27, %v4332_v9  ;;  %v4637_v33 = vsel %vm4492_vm10, %v4621_v45, %v4363_v37  ;;  %7163 = vmatmul.mubr.msk.bf16.vlgmr.msra.gmra.mrb[32].mxu0 %vm1807_vm5, %v4710_v11  ;;  %v4113_v59 = vsel %vm1774_vm4, 0.0, %v4024_v36 }
 0x335   : > { %v4509_v22 = vsel %vm913_vm1, %v4493_v49, %v4363_v37  ;;  %v4510_v8 = vsel %vm913_vm1, %v4494_v7, %v4364_v43  ;;  %v4638_v10 = vsel %vm4492_vm10, %v4622_v52, %v4364_v43  ;;  %v4653_v38 = vsel %vm913_vm1, %v4637_v33, %v4395_v40 }
 0x336   : > { %v4525_v47 = vsel %vm832_vm2, %v4509_v22, %v4395_v40  ;;  %v4526_v32 = vsel %vm832_vm2, %v4510_v8, %v4396_v23  ;;  %v4654_v62 = vsel %vm913_vm1, %v4638_v10, %v4396_v23  ;;  %v4669_v20 = vsel %vm832_vm2, %v4653_v38, %v4140_v6 }
 0x337   : > { %v4670_v41 = vsel %vm832_vm2, %v4654_v62, %v4142_v29  ;;  %v4685_v35 = vmax.f32 %v4525_v47, %v4669_v20  ;;  %v4111_v26 = vsel %vm1774_vm4, 0.0, %v4020_v50  ;;  %v4112_v46 = vsel %vm1774_vm4, 0.0, %v4022_v63 }
 0x338   : > { %v4686_v53 = vmax.f32 %v4526_v32, %v4670_v41  ;;  %v4114_v29 = vsel %vm1774_vm4, 0.0, %v4026_v31  ;;  %v4028_v31 = vpop.permute.xlu0 %4027 }
 0x33a   : > { %v11554_v17 = vmax.f32 %v4685_v35, %v4686_v53 }
 0x344   : > { %v7134_v12 = vpop.f32.mrb[4].mxu1 }
 0x345   : > { %v3877_v61 = vadd.f32 %v7134_v12, %v11509_v5  ;;  %v3868_v30 = vpop.f32.mrb[5].mxu1 }
 0x346   : > { %v3869_v0 = vadd.f32 %v11509_v5, %v3868_v30  ;;  %v7135_v19 = vpop.f32.mrb[6].mxu1 }
 0x347   : > { %v3985_v15 = vmax.f32 %v3877_v61, 0.0  ;;  %v3880_v42 = vadd.f32 %v7135_v19, %v11509_v5  ;;  %v3871_v55 = vpop.f32.mrb[7].mxu1 }
 0x348   : > { %v3983_v48 = vmax.f32 %v3869_v0, 0.0  ;;  %v3872_v28 = vadd.f32 %v11509_v5, %v3871_v55 }
 0x349   : > { %v3986_v3 = vmax.f32 %v3880_v42, 0.0  ;;  %v4145_v24 = vadd.f32 %v4113_v59, %v3985_v15 }
 0x34a   : > { %v4143_v2 = vadd.f32 %v4111_v26, %v3983_v48  ;;  %v3984_v6 = vmax.f32 %v3872_v28, 0.0  ;;  %v4030_v48 = vpop.permute.xlu1 %4029  ;;  %v4032_v28 = vpop.permute.xlu0 %4031 }
 0x34b   : > { %v4190_v44 = vrot.slane %v4145_v24, 1  ;;  %v4222_v58 = vrot.slane %v4145_v24, 2  ;;  %v4254_v14 = vrot.slane %v4145_v24, 3  ;;  %v4544_v18 = vrot.slane %v4145_v24, 4 }
 0x34c   : > { %v4189_v60 = vrot.slane %v4143_v2, 1  ;;  %v4221_v51 = vrot.slane %v4143_v2, 2  ;;  %v4253_v56 = vrot.slane %v4143_v2, 3  ;;  %v4543_v4 = vrot.slane %v4143_v2, 4 }
 0x34d   : > { %v4430_v57 = vsel %vm666_vm0, %v4145_v24, %v4190_v44  ;;  %v4576_v34 = vsel %vm666_vm0, %v4190_v44, %v4222_v58  ;;  %v4144_v1 = vadd.f32 %v4112_v46, %v3984_v6  ;;  %v4146_v25 = vadd.f32 %v4114_v29, %v3986_v3 }
 0x34e   : > { %v4429_v21 = vsel %vm666_vm0, %v4143_v2, %v4189_v60  ;;  %v4575_v9 = vsel %vm666_vm0, %v4189_v60, %v4221_v51  ;;  %v4446_v37 = vsel %vm2130_vm3, %v4430_v57, %v4222_v58  ;;  %v4592_v13 = vsel %vm2130_vm3, %v4576_v34, %v4254_v14  ;;  %v4034_v60 = vpop.permute.xlu1 %4033 }
 0x34f   : > { %v4445_v45 = vsel %vm2130_vm3, %v4429_v21, %v4221_v51  ;;  %v4591_v27 = vsel %vm2130_vm3, %v4575_v9, %v4253_v56  ;;  %v4463_v52 = vsel %vm4459_vm12, %v4446_v37, %v4254_v14  ;;  %v4608_v16 = vsel %vm4459_vm12, %v4592_v13, %v4544_v18 }
 0x350   : > { %v4462_v11 = vsel %vm4459_vm12, %v4445_v45, %v4253_v56  ;;  %v4607_v40 = vsel %vm4459_vm12, %v4591_v27, %v4543_v4  ;;  %v4301_v43 = vrot.slane %v4144_v1, 4  ;;  %v4333_v23 = vrot.slane %v4144_v1, 5 }
 0x351   : > { %v4302_v49 = vrot.slane %v4146_v25, 4  ;;  %v4334_v7 = vrot.slane %v4146_v25, 5  ;;  %v4365_v33 = vrot.slane %v4144_v1, 6  ;;  %v4366_v10 = vrot.slane %v4146_v25, 6 }
 0x352   : > { %v4478_v22 = vsel %vm3814_vm13, %v4462_v11, %v4301_v43  ;;  %v4623_v8 = vsel %vm3814_vm13, %v4607_v40, %v4333_v23  ;;  %v4711_v38 = vpack.c.bf16 %v4144_v1, %v4143_v2  ;;  %v4712_v62 = vpack.c.bf16 %v4146_v25, %v4145_v24 }
 0x353   : > { %v4479_v47 = vsel %vm3814_vm13, %v4463_v52, %v4302_v49  ;;  %v4624_v32 = vsel %vm3814_vm13, %v4608_v16, %v4334_v7  ;;  %v4397_v20 = vrot.slane %v4144_v1, 7  ;;  %v4398_v41 = vrot.slane %v4146_v25, 7 }
 0x354   : > { %v4495_v35 = vsel %vm4492_vm10, %v4478_v22, %v4333_v23  ;;  %7166 = vmatprep.mubr.msk.bf16.mxu0 %vm1807_vm5, %v4711_v38  ;;  %v4496_v53 = vsel %vm4492_vm10, %v4479_v47, %v4334_v7  ;;  %v4639_v63 = vsel %vm4492_vm10, %v4623_v8, %v4365_v33  ;;  %v4640_v36 = vsel %vm4492_vm10, %v4624_v32, %v4366_v10 }
 0x355   : > { %v4511_v50 = vsel %vm913_vm1, %v4495_v35, %v4365_v33  ;;  %7167 = vmatmul.mubr.msk.bf16.gmra.mrb[36].mxu0 %vm1807_vm5, %v4712_v62  ;;  %v4512_v12 = vsel %vm913_vm1, %v4496_v53, %v4366_v10  ;;  %v4655_v30 = vsel %vm913_vm1, %v4639_v63, %v4397_v20  ;;  %v4656_v0 = vsel %vm913_vm1, %v4640_v36, %v4398_v41 }
 0x356   : > { %v4527_v61 = vsel %vm832_vm2, %v4511_v50, %v4397_v20  ;;  %v4528_v19 = vsel %vm832_vm2, %v4512_v12, %v4398_v41  ;;  %v4671_v59 = vsel %vm832_vm2, %v4655_v30, %v4144_v1  ;;  %v4672_v26 = vsel %vm832_vm2, %v4656_v0, %v4146_v25 }
 0x357   : > { %v4687_v15 = vmax.f32 %v4527_v61, %v4671_v59  ;;  %v4688_v42 = vmax.f32 %v4528_v19, %v4672_v26  ;;  %v4117_v29 = vsel %vm1774_vm4, 0.0, %v4032_v28  ;;  %v4115_v44 = vsel %vm1774_vm4, 0.0, %v4028_v31 }
 0x358   : > { %v4116_v34 = vsel %vm1774_vm4, 0.0, %v4030_v48  ;;  %v4118_v21 = vsel %vm1774_vm4, 0.0, %v4034_v60 }
 0x359   : > { %v11594_v55 = vmax.f32 %v4687_v15, %v4688_v42 }
 0x364   : > { %v7138_v3 = vpop.f32.mrb[8].mxu1 }
 0x365   : > { %v3893_v24 = vadd.f32 %v7138_v3, %v11509_v5  ;;  %v3884_v46 = vpop.f32.mrb[9].mxu1  ;;  %v4036_v3 = vpop.permute.xlu0 %4035 }
 0x366   : > { %v3885_v2 = vadd.f32 %v11509_v5, %v3884_v46  ;;  %v7139_v6 = vpop.f32.mrb[10].mxu1 }
 0x367   : > { %v3989_v58 = vmax.f32 %v3893_v24, 0.0  ;;  %v3896_v14 = vadd.f32 %v7139_v6, %v11509_v5  ;;  %v3887_v18 = vpop.f32.mrb[11].mxu1 }
 0x368   : > { %v3987_v51 = vmax.f32 %v3885_v2, 0.0  ;;  %v3888_v56 = vadd.f32 %v11509_v5, %v3887_v18 }
 0x369   : > { %v3990_v4 = vmax.f32 %v3896_v14, 0.0  ;;  %v4149_v57 = vadd.f32 %v4117_v29, %v3989_v58 }
 0x36a   : > { %v4147_v1 = vadd.f32 %v4115_v44, %v3987_v51  ;;  %v3988_v25 = vmax.f32 %v3888_v56, 0.0  ;;  %v4038_v51 = vpop.permute.xlu1 %4037 }
 0x36b   : > { %v4192_v9 = vrot.slane %v4149_v57, 1  ;;  %v4224_v37 = vrot.slane %v4149_v57, 2  ;;  %v4256_v13 = vrot.slane %v4149_v57, 3  ;;  %v4546_v45 = vrot.slane %v4149_v57, 4 }
 0x36c   : > { %v4191_v27 = vrot.slane %v4147_v1, 1  ;;  %v4223_v52 = vrot.slane %v4147_v1, 2  ;;  %v4255_v16 = vrot.slane %v4147_v1, 3  ;;  %v4545_v11 = vrot.slane %v4147_v1, 4 }
 0x36d   : > { %v4432_v40 = vsel %vm666_vm0, %v4149_v57, %v4192_v9  ;;  %v4578_v43 = vsel %vm666_vm0, %v4192_v9, %v4224_v37  ;;  %v4148_v23 = vadd.f32 %v4116_v34, %v3988_v25  ;;  %v4150_v49 = vadd.f32 %v4118_v21, %v3990_v4  ;;  %v4040_v4 = vpop.permute.xlu0 %4039 }
 0x36e   : > { %v4431_v7 = vsel %vm666_vm0, %v4147_v1, %v4191_v27  ;;  %v4577_v33 = vsel %vm666_vm0, %v4191_v27, %v4223_v52  ;;  %v4448_v22 = vsel %vm2130_vm3, %v4432_v40, %v4224_v37  ;;  %v4594_v8 = vsel %vm2130_vm3, %v4578_v43, %v4256_v13 }
 0x36f   : > { %v4447_v10 = vsel %vm2130_vm3, %v4431_v7, %v4223_v52  ;;  %v4593_v47 = vsel %vm2130_vm3, %v4577_v33, %v4255_v16  ;;  %v4465_v32 = vsel %vm4459_vm12, %v4448_v22, %v4256_v13  ;;  %v4610_v38 = vsel %vm4459_vm12, %v4594_v8, %v4546_v45  ;;  %v4042_v52 = vpop.permute.xlu1 %4041 }
 0x370   : > { %v4464_v62 = vsel %vm4459_vm12, %v4447_v10, %v4255_v16  ;;  %v4609_v20 = vsel %vm4459_vm12, %v4593_v47, %v4545_v11  ;;  %v4303_v41 = vrot.slane %v4148_v23, 4  ;;  %v4335_v35 = vrot.slane %v4148_v23, 5 }
 0x371   : > { %v4367_v53 = vrot.slane %v4148_v23, 6  ;;  %v4399_v50 = vrot.slane %v4148_v23, 7  ;;  %v4304_v63 = vrot.slane %v4150_v49, 4  ;;  %v4336_v36 = vrot.slane %v4150_v49, 5 }
 0x372   : > { %v4480_v12 = vsel %vm3814_vm13, %v4464_v62, %v4303_v41  ;;  %v4625_v61 = vsel %vm3814_vm13, %v4609_v20, %v4335_v35  ;;  %v4368_v30 = vrot.slane %v4150_v49, 6  ;;  %v4400_v0 = vrot.slane %v4150_v49, 7 }
 0x373   : > { %v4481_v19 = vsel %vm3814_vm13, %v4465_v32, %v4304_v63  ;;  %v4626_v59 = vsel %vm3814_vm13, %v4610_v38, %v4336_v36  ;;  %v4713_v26 = vpack.c.bf16 %v4148_v23, %v4147_v1  ;;  %v4714_v15 = vpack.c.bf16 %v4150_v49, %v4149_v57 }
 0x374   : > { %v4497_v42 = vsel %vm4492_vm10, %v4480_v12, %v4335_v35  ;;  %v4498_v31 = vsel %vm4492_vm10, %v4481_v19, %v4336_v36  ;;  %v4641_v48 = vsel %vm4492_vm10, %v4625_v61, %v4367_v53  ;;  %v4642_v28 = vsel %vm4492_vm10, %v4626_v59, %v4368_v30 }
 0x375   : > { %7170 = vmatprep.mubr.msk.bf16.mxu0 %vm1807_vm5, %v4713_v26  ;;  %v4513_v24 = vsel %vm913_vm1, %v4497_v42, %v4367_v53  ;;  %v4514_v46 = vsel %vm913_vm1, %v4498_v31, %v4368_v30  ;;  %v4657_v2 = vsel %vm913_vm1, %v4641_v48, %v4399_v50  ;;  %v4658_v6 = vsel %vm913_vm1, %v4642_v28, %v4400_v0 }
 0x376   : > { %7171 = vmatmul.mubr.msk.bf16.gmra.mrb[40].mxu0 %vm1807_vm5, %v4714_v15  ;;  %v4529_v29 = vsel %vm832_vm2, %v4513_v24, %v4399_v50  ;;  %v4530_v44 = vsel %vm832_vm2, %v4514_v46, %v4400_v0  ;;  %v4673_v58 = vsel %vm832_vm2, %v4657_v2, %v4148_v23  ;;  %v4674_v14 = vsel %vm832_vm2, %v4658_v6, %v4150_v49 }
 0x377   : > { %v4689_v18 = vmax.f32 %v4529_v29, %v4673_v58  ;;  %v4690_v60 = vmax.f32 %v4530_v44, %v4674_v14  ;;  %v4121_v9 = vsel %vm1774_vm4, 0.0, %v4040_v4  ;;  %v4119_v37 = vsel %vm1774_vm4, 0.0, %v4036_v3 }
 0x378   : > { %v7142_v57 = vpop.f32.mrb[12].mxu1  ;;  %v4120_v23 = vsel %vm1774_vm4, 0.0, %v4038_v51  ;;  %v4122_v33 = vsel %vm1774_vm4, 0.0, %v4042_v52 }
 0x379   : > { %v11634_v56 = vmax.f32 %v4689_v18, %v4690_v60  ;;  %v3909_v34 = vadd.f32 %v7142_v57, %v11509_v5  ;;  %v3900_v1 = vpop.f32.mrb[13].mxu1 }
 0x37a   : > { %v3901_v25 = vadd.f32 %v11509_v5, %v3900_v1  ;;  %v7143_v21 = vpop.f32.mrb[14].mxu1 }
 0x37b   : > { %v3993_v13 = vmax.f32 %v3909_v34, 0.0  ;;  %v3912_v45 = vadd.f32 %v7143_v21, %v11509_v5  ;;  %v3903_v27 = vpop.f32.mrb[15].mxu1 }
 0x37c   : > { %v3991_v16 = vmax.f32 %v3901_v25, 0.0  ;;  %v3904_v11 = vadd.f32 %v11509_v5, %v3903_v27  ;;  %v4044_v27 = vpop.permute.xlu0 %4043 }
 0x37d   : > { %v3994_v40 = vmax.f32 %v3912_v45, 0.0  ;;  %v4153_v43 = vadd.f32 %v4121_v9, %v3993_v13 }
 0x37e   : > { %v4151_v49 = vadd.f32 %v4119_v37, %v3991_v16  ;;  %v3992_v7 = vmax.f32 %v3904_v11, 0.0 }
 0x37f   : > { %v4194_v22 = vrot.slane %v4153_v43, 1  ;;  %v4226_v8 = vrot.slane %v4153_v43, 2  ;;  %v4258_v10 = vrot.slane %v4153_v43, 3  ;;  %v4548_v47 = vrot.slane %v4153_v43, 4 }
 0x380   : > { %v4193_v32 = vrot.slane %v4151_v49, 1  ;;  %v4225_v38 = vrot.slane %v4151_v49, 2  ;;  %v4257_v62 = vrot.slane %v4151_v49, 3  ;;  %v4547_v20 = vrot.slane %v4151_v49, 4 }
 0x381   : > { %v4434_v41 = vsel %vm666_vm0, %v4153_v43, %v4194_v22  ;;  %v4580_v35 = vsel %vm666_vm0, %v4194_v22, %v4226_v8  ;;  %v4152_v53 = vadd.f32 %v4120_v23, %v3992_v7  ;;  %v4154_v50 = vadd.f32 %v4122_v33, %v3994_v40  ;;  %v4046_v40 = vpop.permute.xlu1 %4045 }
 0x382   : > { %v4433_v63 = vsel %vm666_vm0, %v4151_v49, %v4193_v32  ;;  %v4579_v36 = vsel %vm666_vm0, %v4193_v32, %v4225_v38  ;;  %v4450_v12 = vsel %vm2130_vm3, %v4434_v41, %v4226_v8  ;;  %v4596_v61 = vsel %vm2130_vm3, %v4580_v35, %v4258_v10 }
 0x383   : > { %v4449_v30 = vsel %vm2130_vm3, %v4433_v63, %v4225_v38  ;;  %v4595_v0 = vsel %vm2130_vm3, %v4579_v36, %v4257_v62  ;;  %v4467_v19 = vsel %vm4459_vm12, %v4450_v12, %v4258_v10  ;;  %v4612_v59 = vsel %vm4459_vm12, %v4596_v61, %v4548_v47 }
 0x384   : > { %v4466_v26 = vsel %vm4459_vm12, %v4449_v30, %v4257_v62  ;;  %v4611_v15 = vsel %vm4459_vm12, %v4595_v0, %v4547_v20  ;;  %v4305_v42 = vrot.slane %v4152_v53, 4  ;;  %v4337_v31 = vrot.slane %v4152_v53, 5 }
 0x385   : > { %v4306_v48 = vrot.slane %v4154_v50, 4  ;;  %v4338_v28 = vrot.slane %v4154_v50, 5  ;;  %v4369_v3 = vrot.slane %v4152_v53, 6  ;;  %v4370_v2 = vrot.slane %v4154_v50, 6  ;;  %v4050_v62 = vpop.permute.xlu1 %4049 }
 0x386   : > { %v4482_v24 = vsel %vm3814_vm13, %v4466_v26, %v4305_v42  ;;  %v4627_v46 = vsel %vm3814_vm13, %v4611_v15, %v4337_v31  ;;  %v4715_v44 = vpack.c.bf16 %v4152_v53, %v4151_v49  ;;  %v4716_v58 = vpack.c.bf16 %v4154_v50, %v4153_v43  ;;  %v4048_v43 = vpop.permute.xlu0 %4047 }
 0x387   : > { %v4483_v6 = vsel %vm3814_vm13, %v4467_v19, %v4306_v48  ;;  %v4628_v29 = vsel %vm3814_vm13, %v4612_v59, %v4338_v28  ;;  %v4401_v14 = vrot.slane %v4152_v53, 7  ;;  %v4402_v18 = vrot.slane %v4154_v50, 7 }
 0x388   : > { %v4499_v60 = vsel %vm4492_vm10, %v4482_v24, %v4337_v31  ;;  %v4500_v51 = vsel %vm4492_vm10, %v4483_v6, %v4338_v28  ;;  %7174 = vmatprep.mubr.msk.bf16.mxu0 %vm1807_vm5, %v4715_v44  ;;  %v4643_v34 = vsel %vm4492_vm10, %v4627_v46, %v4369_v3  ;;  %v4644_v1 = vsel %vm4492_vm10, %v4628_v29, %v4370_v2 }
 0x389   : > { %v4515_v4 = vsel %vm913_vm1, %v4499_v60, %v4369_v3  ;;  %v4516_v57 = vsel %vm913_vm1, %v4500_v51, %v4370_v2  ;;  %7175 = vmatmul.mubr.msk.bf16.gmra.mrb[44].mxu0 %vm1807_vm5, %v4716_v58  ;;  %v4659_v9 = vsel %vm913_vm1, %v4643_v34, %v4401_v14  ;;  %v4660_v37 = vsel %vm913_vm1, %v4644_v1, %v4402_v18 }
 0x38a   : > { %v4531_v25 = vsel %vm832_vm2, %v4515_v4, %v4401_v14  ;;  %v4532_v21 = vsel %vm832_vm2, %v4516_v57, %v4402_v18  ;;  %v4675_v13 = vsel %vm832_vm2, %v4659_v9, %v4152_v53  ;;  %v4676_v45 = vsel %vm832_vm2, %v4660_v37, %v4154_v50 }
 0x38b   : > { %v4691_v52 = vmax.f32 %v4531_v25, %v4675_v13  ;;  %v4692_v16 = vmax.f32 %v4532_v21, %v4676_v45  ;;  %v4125_v8 = vsel %vm1774_vm4, 0.0, %v4048_v43  ;;  %v4123_v10 = vsel %vm1774_vm4, 0.0, %v4044_v27 }
 0x38c   : > { %v4124_v50 = vsel %vm1774_vm4, 0.0, %v4046_v40  ;;  %v4126_v12 = vsel %vm1774_vm4, 0.0, %v4050_v62 }
 0x38d   : > { %v11674_v11 = vmax.f32 %v4691_v52, %v4692_v16 }
 0x395   : > { %v7146_v23 = vpop.f32.mrb[16].mxu1 }
 0x396   : > { %v3925_v49 = vadd.f32 %v7146_v23, %v11509_v5  ;;  %v3916_v7 = vpop.f32.mrb[17].mxu1 }
 0x397   : > { %v3917_v33 = vadd.f32 %v11509_v5, %v3916_v7  ;;  %v7147_v22 = vpop.f32.mrb[18].mxu1 }
 0x398   : > { %v3997_v47 = vmax.f32 %v3925_v49, 0.0  ;;  %v3928_v32 = vadd.f32 %v7147_v22, %v11509_v5  ;;  %v3919_v38 = vpop.f32.mrb[19].mxu1 }
 0x399   : > { %v3995_v20 = vmax.f32 %v3917_v33, 0.0  ;;  %v3920_v41 = vadd.f32 %v11509_v5, %v3919_v38 }
 0x39a   : > { %v3998_v35 = vmax.f32 %v3928_v32, 0.0  ;;  %v4157_v53 = vadd.f32 %v4125_v8, %v3997_v47 }
 0x39b   : > { %v4155_v63 = vadd.f32 %v4123_v10, %v3995_v20  ;;  %v3996_v36 = vmax.f32 %v3920_v41, 0.0 }
 0x39c   : > { %v4196_v61 = vrot.slane %v4157_v53, 1  ;;  %v4228_v30 = vrot.slane %v4157_v53, 2  ;;  %v4260_v0 = vrot.slane %v4157_v53, 3  ;;  %v4550_v19 = vrot.slane %v4157_v53, 4 }
 0x39d   : > { %v4195_v59 = vrot.slane %v4155_v63, 1  ;;  %v4227_v26 = vrot.slane %v4155_v63, 2  ;;  %v4259_v15 = vrot.slane %v4155_v63, 3  ;;  %v4549_v42 = vrot.slane %v4155_v63, 4 }
 0x39e   : > { %v4436_v31 = vsel %vm666_vm0, %v4157_v53, %v4196_v61  ;;  %v4582_v48 = vsel %vm666_vm0, %v4196_v61, %v4228_v30  ;;  %v4156_v28 = vadd.f32 %v4124_v50, %v3996_v36  ;;  %v4158_v3 = vadd.f32 %v4126_v12, %v3998_v35  ;;  %v4052_v35 = vpop.permute.xlu0 %4051 }
 0x39f   : > { %v4435_v24 = vsel %vm666_vm0, %v4155_v63, %v4195_v59  ;;  %v4581_v46 = vsel %vm666_vm0, %v4195_v59, %v4227_v26  ;;  %v4452_v2 = vsel %vm2130_vm3, %v4436_v31, %v4228_v30  ;;  %v4598_v6 = vsel %vm2130_vm3, %v4582_v48, %v4260_v0 }
 0x3a0   : > { %v4451_v29 = vsel %vm2130_vm3, %v4435_v24, %v4227_v26  ;;  %v4597_v44 = vsel %vm2130_vm3, %v4581_v46, %v4259_v15  ;;  %v4469_v58 = vsel %vm4459_vm12, %v4452_v2, %v4260_v0  ;;  %v4614_v14 = vsel %vm4459_vm12, %v4598_v6, %v4550_v19 }
 0x3a1   : > { %v4468_v18 = vsel %vm4459_vm12, %v4451_v29, %v4259_v15  ;;  %v4613_v60 = vsel %vm4459_vm12, %v4597_v44, %v4549_v42  ;;  %v4307_v51 = vrot.slane %v4156_v28, 4  ;;  %v4339_v4 = vrot.slane %v4156_v28, 5 }
 0x3a2   : > { %v4371_v57 = vrot.slane %v4156_v28, 6  ;;  %v4308_v34 = vrot.slane %v4158_v3, 4  ;;  %v4340_v1 = vrot.slane %v4158_v3, 5  ;;  %v4403_v25 = vrot.slane %v4156_v28, 7  ;;  %v4056_v50 = vpop.permute.xlu0 %4055 }
 0x3a3   : > { %v4484_v21 = vsel %vm3814_vm13, %v4468_v18, %v4307_v51  ;;  %v4629_v9 = vsel %vm3814_vm13, %v4613_v60, %v4339_v4  ;;  %v4372_v37 = vrot.slane %v4158_v3, 6  ;;  %v4717_v27 = vpack.c.bf16 %v4156_v28, %v4155_v63 }
 0x3a4   : > { %v4485_v13 = vsel %vm3814_vm13, %v4469_v58, %v4308_v34  ;;  %v4630_v45 = vsel %vm3814_vm13, %v4614_v14, %v4340_v1  ;;  %v4718_v52 = vpack.c.bf16 %v4158_v3, %v4157_v53  ;;  %v4404_v16 = vrot.slane %v4158_v3, 7  ;;  %v4054_v53 = vpop.permute.xlu1 %4053 }
 0x3a5   : > { %v4501_v40 = vsel %vm4492_vm10, %v4484_v21, %v4339_v4  ;;  %v4502_v43 = vsel %vm4492_vm10, %v4485_v13, %v4340_v1  ;;  %v4645_v23 = vsel %vm4492_vm10, %v4629_v9, %v4371_v57  ;;  %7178 = vmatprep.mubr.msk.bf16.mxu0 %vm1807_vm5, %v4717_v27  ;;  %v4646_v33 = vsel %vm4492_vm10, %v4630_v45, %v4372_v37 }
 0x3a6   : > { %v4517_v49 = vsel %vm913_vm1, %v4501_v40, %v4371_v57  ;;  %v4518_v7 = vsel %vm913_vm1, %v4502_v43, %v4372_v37  ;;  %v4661_v22 = vsel %vm913_vm1, %v4645_v23, %v4403_v25  ;;  %7179 = vmatmul.mubr.msk.bf16.gmra.mrb[48].mxu0 %vm1807_vm5, %v4718_v52  ;;  %v4662_v47 = vsel %vm913_vm1, %v4646_v33, %v4404_v16 }
 0x3a7   : > { %v4533_v8 = vsel %vm832_vm2, %v4517_v49, %v4403_v25  ;;  %v4534_v10 = vsel %vm832_vm2, %v4518_v7, %v4404_v16  ;;  %v4677_v32 = vsel %vm832_vm2, %v4661_v22, %v4156_v28  ;;  %v4678_v38 = vsel %vm832_vm2, %v4662_v47, %v4158_v3 }
 0x3a8   : > { %v4693_v62 = vmax.f32 %v4533_v8, %v4677_v32  ;;  %v4694_v20 = vmax.f32 %v4534_v10, %v4678_v38  ;;  %v4129_v0 = vsel %vm1774_vm4, 0.0, %v4056_v50  ;;  %v4127_v19 = vsel %vm1774_vm4, 0.0, %v4052_v35  ;;  %v4058_v42 = vpop.permute.xlu1 %4057 }
 0x3a9   : > { %v4128_v24 = vsel %vm1774_vm4, 0.0, %v4054_v53  ;;  %v4130_v6 = vsel %vm1774_vm4, 0.0, %v4058_v42 }
 0x3aa   : > { %v11714_v41 = vmax.f32 %v4693_v62, %v4694_v20 }
 0x3b5   : > { %v7150_v63 = vpop.f32.mrb[20].mxu1 }
 0x3b6   : > { %v3941_v36 = vadd.f32 %v7150_v63, %v11509_v5  ;;  %v3932_v12 = vpop.f32.mrb[21].mxu1 }
 0x3b7   : > { %v3933_v61 = vadd.f32 %v11509_v5, %v3932_v12  ;;  %v7151_v30 = vpop.f32.mrb[22].mxu1 }
 0x3b8   : > { %v4001_v59 = vmax.f32 %v3941_v36, 0.0  ;;  %v3944_v26 = vadd.f32 %v7151_v30, %v11509_v5  ;;  %v3935_v15 = vpop.f32.mrb[23].mxu1 }
 0x3b9   : > { %v3999_v31 = vmax.f32 %v3933_v61, 0.0  ;;  %v3936_v48 = vadd.f32 %v11509_v5, %v3935_v15 }
 0x3ba   : > { %v4002_v28 = vmax.f32 %v3944_v26, 0.0  ;;  %v4161_v3 = vadd.f32 %v4129_v0, %v4001_v59 }
 0x3bb   : > { %v4159_v46 = vadd.f32 %v4127_v19, %v3999_v31  ;;  %v4000_v2 = vmax.f32 %v3936_v48, 0.0 }
 0x3bc   : > { %v4198_v29 = vrot.slane %v4161_v3, 1  ;;  %v4230_v44 = vrot.slane %v4161_v3, 2  ;;  %v4262_v58 = vrot.slane %v4161_v3, 3  ;;  %v4552_v14 = vrot.slane %v4161_v3, 4 }
 0x3bd   : > { %v4197_v18 = vrot.slane %v4159_v46, 1  ;;  %v4229_v60 = vrot.slane %v4159_v46, 2  ;;  %v4261_v51 = vrot.slane %v4159_v46, 3  ;;  %v4551_v4 = vrot.slane %v4159_v46, 4 }
 0x3be   : > { %v4438_v57 = vsel %vm666_vm0, %v4161_v3, %v4198_v29  ;;  %v4584_v34 = vsel %vm666_vm0, %v4198_v29, %v4230_v44  ;;  %v4160_v1 = vadd.f32 %v4128_v24, %v4000_v2  ;;  %v4162_v25 = vadd.f32 %v4130_v6, %v4002_v28  ;;  %v4062_v24 = vpop.permute.xlu1 %4061 }
 0x3bf   : > { %v4437_v21 = vsel %vm666_vm0, %v4159_v46, %v4197_v18  ;;  %v4583_v9 = vsel %vm666_vm0, %v4197_v18, %v4229_v60  ;;  %v4454_v37 = vsel %vm2130_vm3, %v4438_v57, %v4230_v44  ;;  %v4600_v13 = vsel %vm2130_vm3, %v4584_v34, %v4262_v58 }
 0x3c0   : > { %v4453_v45 = vsel %vm2130_vm3, %v4437_v21, %v4229_v60  ;;  %v4599_v27 = vsel %vm2130_vm3, %v4583_v9, %v4261_v51  ;;  %v4471_v52 = vsel %vm4459_vm12, %v4454_v37, %v4262_v58  ;;  %v4616_v16 = vsel %vm4459_vm12, %v4600_v13, %v4552_v14 }
 0x3c1   : > { %v4470_v40 = vsel %vm4459_vm12, %v4453_v45, %v4261_v51  ;;  %v4615_v43 = vsel %vm4459_vm12, %v4599_v27, %v4551_v4  ;;  %v4309_v23 = vrot.slane %v4160_v1, 4  ;;  %v4341_v49 = vrot.slane %v4160_v1, 5 }
 0x3c2   : > { %v4373_v7 = vrot.slane %v4160_v1, 6  ;;  %v4405_v33 = vrot.slane %v4160_v1, 7  ;;  %v4310_v22 = vrot.slane %v4162_v25, 4  ;;  %v4342_v8 = vrot.slane %v4162_v25, 5  ;;  %v4066_v57 = vpop.permute.xlu1 %4065 }
 0x3c3   : > { %v4486_v10 = vsel %vm3814_vm13, %v4470_v40, %v4309_v23  ;;  %v4631_v47 = vsel %vm3814_vm13, %v4615_v43, %v4341_v49  ;;  %v4374_v32 = vrot.slane %v4162_v25, 6  ;;  %v4406_v38 = vrot.slane %v4162_v25, 7 }
 0x3c4   : > { %v4487_v62 = vsel %vm3814_vm13, %v4471_v52, %v4310_v22  ;;  %v4632_v20 = vsel %vm3814_vm13, %v4616_v16, %v4342_v8  ;;  %v4719_v35 = vpack.c.bf16 %v4160_v1, %v4159_v46  ;;  %v4720_v53 = vpack.c.bf16 %v4162_v25, %v4161_v3  ;;  %v4060_v3 = vpop.permute.xlu0 %4059 }
 0x3c5   : > { %v4503_v50 = vsel %vm4492_vm10, %v4486_v10, %v4341_v49  ;;  %v4504_v63 = vsel %vm4492_vm10, %v4487_v62, %v4342_v8  ;;  %v4647_v36 = vsel %vm4492_vm10, %v4631_v47, %v4373_v7  ;;  %v4648_v12 = vsel %vm4492_vm10, %v4632_v20, %v4374_v32 }
 0x3c6   : > { %7182 = vmatprep.mubr.msk.bf16.mxu0 %vm1807_vm5, %v4719_v35  ;;  %v4519_v61 = vsel %vm913_vm1, %v4503_v50, %v4373_v7  ;;  %v4520_v30 = vsel %vm913_vm1, %v4504_v63, %v4374_v32  ;;  %v4663_v0 = vsel %vm913_vm1, %v4647_v36, %v4405_v33  ;;  %v4664_v19 = vsel %vm913_vm1, %v4648_v12, %v4406_v38 }
 0x3c7   : > { %7183 = vmatmul.mubr.msk.bf16.gmra.mrb[52].mxu0 %vm1807_vm5, %v4720_v53  ;;  %v4535_v59 = vsel %vm832_vm2, %v4519_v61, %v4405_v33  ;;  %v4536_v26 = vsel %vm832_vm2, %v4520_v30, %v4406_v38  ;;  %v4679_v15 = vsel %vm832_vm2, %v4663_v0, %v4160_v1  ;;  %v4680_v42 = vsel %vm832_vm2, %v4664_v19, %v4162_v25 }
 0x3c8   : > { %v4695_v31 = vmax.f32 %v4535_v59, %v4679_v15  ;;  %v4696_v48 = vmax.f32 %v4536_v26, %v4680_v42  ;;  %v4064_v46 = vpop.permute.xlu0 %4063  ;;  %v4131_v18 = vsel %vm1774_vm4, 0.0, %v4060_v3  ;;  %v4132_v9 = vsel %vm1774_vm4, 0.0, %v4062_v24 }
 0x3c9   : > { %v4133_v14 = vsel %vm1774_vm4, 0.0, %v4064_v46  ;;  %v4134_v45 = vsel %vm1774_vm4, 0.0, %v4066_v57 }
 0x3ca   : > { %v11754_v28 = vmax.f32 %v4695_v31, %v4696_v48 }
 0x3d7   : > { %v7154_v2 = vpop.f32.mrb[24].mxu1 }
 0x3d8   : > { %v3957_v6 = vadd.f32 %v7154_v2, %v11509_v5  ;;  %v3948_v29 = vpop.f32.mrb[25].mxu1 }
 0x3d9   : > { %v3949_v44 = vadd.f32 %v11509_v5, %v3948_v29  ;;  %v7155_v58 = vpop.f32.mrb[26].mxu1 }
 0x3da   : > { %v4005_v60 = vmax.f32 %v3957_v6, 0.0  ;;  %v3960_v51 = vadd.f32 %v7155_v58, %v11509_v5  ;;  %v3951_v4 = vpop.f32.mrb[27].mxu1 }
 0x3db   : > { %v4003_v34 = vmax.f32 %v3949_v44, 0.0  ;;  %v3952_v1 = vadd.f32 %v11509_v5, %v3951_v4 }
 0x3dc   : > { %v4006_v25 = vmax.f32 %v3960_v51, 0.0  ;;  %v4165_v21 = vadd.f32 %v4133_v14, %v4005_v60 }
 0x3dd   : > { %v4163_v37 = vadd.f32 %v4131_v18, %v4003_v34  ;;  %v4004_v13 = vmax.f32 %v3952_v1, 0.0 }
 0x3de   : > { %v4200_v27 = vrot.slane %v4165_v21, 1  ;;  %v4232_v52 = vrot.slane %v4165_v21, 2  ;;  %v4264_v16 = vrot.slane %v4165_v21, 3  ;;  %v4554_v40 = vrot.slane %v4165_v21, 4 }
 0x3df   : > { %v4199_v43 = vrot.slane %v4163_v37, 1  ;;  %v4231_v23 = vrot.slane %v4163_v37, 2  ;;  %v4263_v49 = vrot.slane %v4163_v37, 3  ;;  %v4553_v7 = vrot.slane %v4163_v37, 4 }
 0x3e0   : > { %v4440_v33 = vsel %vm666_vm0, %v4165_v21, %v4200_v27  ;;  %v4586_v5 = vsel %vm666_vm0, %v4200_v27, %v4232_v52  ;;  %v4164_v22 = vadd.f32 %v4132_v9, %v4004_v13  ;;  %v4166_v8 = vadd.f32 %v4134_v45, %v4006_v25  ;;  %v4070_v9 = vpop.permute.xlu1 %4069  ;;  %v8982_v45 = vld [vmem:[%s12865_s4] ss:$0 sm:$0xff]  ;;  %s12879_s4 = smov 112  }
 0x3e1   : > { %v4439_v10 = vsel %vm666_vm0, %v4163_v37, %v4199_v43  ;;  %v4585_v47 = vsel %vm666_vm0, %v4199_v43, %v4231_v23  ;;  %v4456_v32 = vsel %vm2130_vm3, %v4440_v33, %v4232_v52  ;;  %v4602_v38 = vsel %vm2130_vm3, %v4586_v5, %v4264_v16 }
 0x3e2   : > { %v4455_v62 = vsel %vm2130_vm3, %v4439_v10, %v4231_v23  ;;  %v4601_v20 = vsel %vm2130_vm3, %v4585_v47, %v4263_v49  ;;  %v4473_v35 = vsel %vm4459_vm12, %v4456_v32, %v4264_v16  ;;  %v4618_v53 = vsel %vm4459_vm12, %v4602_v38, %v4554_v40 }
 0x3e3   : > { %v4472_v50 = vsel %vm4459_vm12, %v4455_v62, %v4263_v49  ;;  %v4617_v63 = vsel %vm4459_vm12, %v4601_v20, %v4553_v7  ;;  %v4311_v36 = vrot.slane %v4164_v22, 4  ;;  %v4343_v12 = vrot.slane %v4164_v22, 5 }
 0x3e4   : > { %v4375_v61 = vrot.slane %v4164_v22, 6  ;;  %v4407_v30 = vrot.slane %v4164_v22, 7  ;;  %v4312_v0 = vrot.slane %v4166_v8, 4  ;;  %v4344_v19 = vrot.slane %v4166_v8, 5  ;;  %v4074_v5 = vpop.permute.xlu1 %4073 }
 0x3e5   : > { %v4488_v59 = vsel %vm3814_vm13, %v4472_v50, %v4311_v36  ;;  %v4633_v26 = vsel %vm3814_vm13, %v4617_v63, %v4343_v12  ;;  %v4376_v15 = vrot.slane %v4166_v8, 6  ;;  %v4408_v42 = vrot.slane %v4166_v8, 7 }
 0x3e6   : > { %v4489_v31 = vsel %vm3814_vm13, %v4473_v35, %v4312_v0  ;;  %v4634_v48 = vsel %vm3814_vm13, %v4618_v53, %v4344_v19  ;;  %v4721_v3 = vpack.c.bf16 %v4164_v22, %v4163_v37  ;;  %v4722_v24 = vpack.c.bf16 %v4166_v8, %v4165_v21  ;;  %v4068_v21 = vpop.permute.xlu0 %4067 }
 0x3e7   : > { %v4505_v46 = vsel %vm4492_vm10, %v4488_v59, %v4343_v12  ;;  %v4506_v2 = vsel %vm4492_vm10, %v4489_v31, %v4344_v19  ;;  %v4649_v6 = vsel %vm4492_vm10, %v4633_v26, %v4375_v61  ;;  %v4650_v29 = vsel %vm4492_vm10, %v4634_v48, %v4376_v15 }
 0x3e8   : > { %7186 = vmatprep.mubr.msk.bf16.mxu0 %vm1807_vm5, %v4721_v3  ;;  %v4521_v44 = vsel %vm913_vm1, %v4505_v46, %v4375_v61  ;;  %v4522_v58 = vsel %vm913_vm1, %v4506_v2, %v4376_v15  ;;  %v4665_v14 = vsel %vm913_vm1, %v4649_v6, %v4407_v30  ;;  %v4666_v18 = vsel %vm913_vm1, %v4650_v29, %v4408_v42 }
 0x3e9   : > { %7187 = vmatmul.mubr.msk.bf16.gmra.mrb[56].mxu0 %vm1807_vm5, %v4722_v24  ;;  %v4537_v60 = vsel %vm832_vm2, %v4521_v44, %v4407_v30  ;;  %v4538_v51 = vsel %vm832_vm2, %v4522_v58, %v4408_v42  ;;  %v4681_v4 = vsel %vm832_vm2, %v4665_v14, %v4164_v22  ;;  %v4682_v57 = vsel %vm832_vm2, %v4666_v18, %v4166_v8 }
 0x3ea   : > { %v4697_v34 = vmax.f32 %v4537_v60, %v4681_v4  ;;  %v4698_v1 = vmax.f32 %v4538_v51, %v4682_v57  ;;  %v4072_v37 = vpop.permute.xlu0 %4071  ;;  %v4135_v23 = vsel %vm1774_vm4, 0.0, %v4068_v21  ;;  %v4136_v32 = vsel %vm1774_vm4, 0.0, %v4070_v9  ;;  %v11820_v21 = vld [vmem:[%s12727_s6] ss:$0 sm:$0xff] }
 0x3eb   : > { %v4137_v43 = vsel %vm1774_vm4, 0.0, %v4072_v37  ;;  %v4138_v20 = vsel %vm1774_vm4, 0.0, %v4074_v5  ;;  %vm12872_vm4 = vcmask 588800  }
 0x3ec   : > { %v11794_v25 = vmax.f32 %v4697_v34, %v4698_v1 }
 0x3fa   : > { %v7158_v13 = vpop.f32.mrb[28].mxu1 }
 0x3fb   : > { %v3973_v27 = vadd.f32 %v8982_v45, %v7158_v13  ;;  %v3964_v52 = vpop.f32.mrb[29].mxu1 }
 0x3fc   : > { %v3965_v16 = vadd.f32 %v8982_v45, %v3964_v52  ;;  %v7159_v40 = vpop.f32.mrb[30].mxu1 }
 0x3fd   : > { %v4009_v49 = vmax.f32 %v3973_v27, 0.0  ;;  %v3976_v7 = vadd.f32 %v8982_v45, %v7159_v40  ;;  %v3967_v33 = vpop.f32.mrb[31].mxu1 }
 0x3fe   : > { %v4007_v22 = vmax.f32 %v3965_v16, 0.0  ;;  %v3968_v8 = vadd.f32 %v8982_v45, %v3967_v33 }
 0x3ff   : > { %v4010_v10 = vmax.f32 %v3976_v7, 0.0  ;;  %v4169_v47 = vadd.f32 %v4137_v43, %v4009_v49 }
 0x400   : > { %v4167_v38 = vadd.f32 %v4135_v23, %v4007_v22  ;;  %v4008_v62 = vmax.f32 %v3968_v8, 0.0 }
 0x401   : > { %v4202_v35 = vrot.slane %v4169_v47, 1  ;;  %v4234_v53 = vrot.slane %v4169_v47, 2  ;;  %v4266_v50 = vrot.slane %v4169_v47, 3  ;;  %v4556_v63 = vrot.slane %v4169_v47, 4 }
 0x402   : > { %v4201_v36 = vrot.slane %v4167_v38, 1  ;;  %v4233_v12 = vrot.slane %v4167_v38, 2  ;;  %v4265_v61 = vrot.slane %v4167_v38, 3  ;;  %v4555_v30 = vrot.slane %v4167_v38, 4 }
 0x403   : > { %v4442_v0 = vsel %vm666_vm0, %v4169_v47, %v4202_v35  ;;  %v4588_v19 = vsel %vm666_vm0, %v4202_v35, %v4234_v53  ;;  %v4168_v59 = vadd.f32 %v4136_v32, %v4008_v62  ;;  %v4170_v26 = vadd.f32 %v4138_v20, %v4010_v10 }
 0x404   : > { %v4441_v15 = vsel %vm666_vm0, %v4167_v38, %v4201_v36  ;;  %v4587_v42 = vsel %vm666_vm0, %v4201_v36, %v4233_v12  ;;  %v4458_v31 = vsel %vm2130_vm3, %v4442_v0, %v4234_v53  ;;  %v4604_v48 = vsel %vm2130_vm3, %v4588_v19, %v4266_v50 }
 0x405   : > { %v4457_v3 = vsel %vm2130_vm3, %v4441_v15, %v4233_v12  ;;  %v4603_v24 = vsel %vm2130_vm3, %v4587_v42, %v4265_v61  ;;  %v4475_v46 = vsel %vm4459_vm12, %v4458_v31, %v4266_v50  ;;  %v4620_v2 = vsel %vm4459_vm12, %v4604_v48, %v4556_v63 }
 0x406   : > { %v4474_v6 = vsel %vm4459_vm12, %v4457_v3, %v4265_v61  ;;  %v4619_v29 = vsel %vm4459_vm12, %v4603_v24, %v4555_v30  ;;  %v4313_v44 = vrot.slane %v4168_v59, 4  ;;  %v4345_v58 = vrot.slane %v4168_v59, 5 }
 0x407   : > { %v4377_v14 = vrot.slane %v4168_v59, 6  ;;  %v4409_v18 = vrot.slane %v4168_v59, 7  ;;  %v4314_v60 = vrot.slane %v4170_v26, 4  ;;  %v4346_v51 = vrot.slane %v4170_v26, 5  ;;  %v7164_v13 = vpop.f32.mrb[32].mxu0 }
 0x408   : > { %v4490_v4 = vsel %vm3814_vm13, %v4474_v6, %v4313_v44  ;;  %v4635_v57 = vsel %vm3814_vm13, %v4619_v29, %v4345_v58  ;;  %v4378_v34 = vrot.slane %v4170_v26, 6  ;;  %v4410_v1 = vrot.slane %v4170_v26, 7  ;;  %v4818_v52 = vpop.f32.mrb[33].mxu0  ;;  %v12866_v29 = vld [vmem:[#allocation13_spill] sm:$0xff] }
 0x409   : > { %v4491_v9 = vsel %vm3814_vm13, %v4475_v46, %v4314_v60  ;;  %v4636_v37 = vsel %vm3814_vm13, %v4620_v2, %v4346_v51  ;;  %v4723_v45 = vpack.c.bf16 %v4168_v59, %v4167_v38  ;;  %v4724_v27 = vpack.c.bf16 %v4170_v26, %v4169_v47  ;;  %v7165_v7 = vpop.f32.mrb[34].mxu0 }
 0x40a   : > { %v4507_v16 = vsel %vm4492_vm10, %v4490_v4, %v4345_v58  ;;  %v4508_v40 = vsel %vm4492_vm10, %v4491_v9, %v4346_v51  ;;  %v4651_v43 = vsel %vm4492_vm10, %v4635_v57, %v4377_v14  ;;  %v4652_v23 = vsel %vm4492_vm10, %v4636_v37, %v4378_v34  ;;  %v4821_v8 = vpop.f32.mrb[35].mxu0  ;;  %v12868_v58 = vld [vmem:[#allocation12_spill] sm:$0xff] }
 0x40b   : > { %7190 = vmatprep.mubr.msk.bf16.mxu0 %vm1807_vm5, %v4723_v45  ;;  %v4819_v49 = vadd.f32 %v11820_v21, %v4818_v52  ;;  %v4523_v33 = vsel %vm913_vm1, %v4507_v16, %v4377_v14  ;;  %v4524_v5 = vsel %vm913_vm1, %v4508_v40, %v4378_v34  ;;  %v4667_v22 = vsel %vm913_vm1, %v4651_v43, %v4409_v18 }
 0x40c   : > { %7191 = vmatmul.mubr.msk.bf16.gmra.mrb[60].mxu0 %vm1807_vm5, %v4724_v27  ;;  %v4539_v10 = vsel %vm832_vm2, %v4523_v33, %v4409_v18  ;;  %v4540_v47 = vsel %vm832_vm2, %v4524_v5, %v4410_v1  ;;  %v4668_v32 = vsel %vm913_vm1, %v4652_v23, %v4410_v1  ;;  %v4683_v38 = vsel %vm832_vm2, %v4667_v22, %v4168_v59 }
 0x40d   : > { %v4937_v62 = vrot.slane %v4819_v49, 1  ;;  %v4953_v20 = vrot.slane %v4819_v49, 2  ;;  %v4822_v35 = vadd.f32 %v11820_v21, %v4821_v8  ;;  %v4684_v53 = vsel %vm832_vm2, %v4668_v32, %v4170_v26 }
 0x40e   : > { %v4699_v50 = vmax.f32 %v4539_v10, %v4683_v38  ;;  %v4969_v63 = vrot.slane %v4819_v49, 3  ;;  %v4700_v30 = vmax.f32 %v4540_v47, %v4684_v53  ;;  %v12867_v44 = vrot.slane %v12866_v29, 1 }
 0x40f   : > { %v5057_v36 = vsel %vm666_vm0, %v4819_v49, %v4937_v62  ;;  %v4993_v12 = vrot.slane %v4822_v35, 4  ;;  %v5009_v19 = vrot.slane %v4822_v35, 5  ;;  %v5025_v15 = vrot.slane %v4822_v35, 6 }
 0x410   : > { %v5065_v61 = vsel %vm2130_vm3, %v5057_v36, %v4953_v20  ;;  %v11844_v42 = vmax.f32 %v4699_v50, %v4700_v30  ;;  %v5041_v31 = vrot.slane %v4822_v35, 7  ;;  %v12869_v14 = vrot.slane %v12868_v58, 1 }
 0x411   : > { %v5073_v0 = vsel %vm4459_vm12, %v5065_v61, %v4969_v63  ;;  %v12870_v1 = vrot.slane %v12866_v29, 2  ;;  %v12871_v9 = vrot.slane %v12868_v58, 2 }
 0x412   : > { %v5081_v59 = vsel %vm3814_vm13, %v5073_v0, %v4993_v12  ;;  %v11862_v18 = vsel %vm832_vm2, %v12869_v14, %v12867_v44 }
 0x413   : > { %v5089_v48 = vsel %vm4492_vm10, %v5081_v59, %v5009_v19  ;;  %v11873_v37 = vsel %vm913_vm1, %v12871_v9, %v12870_v1 }
 0x414   : > { %v5097_v26 = vsel %vm913_vm1, %v5089_v48, %v5025_v15 }
 0x415   : > { %v5105_v3 = vsel %vm832_vm2, %v5097_v26, %v5041_v31 }
 0x416   : > { %v11850_v24 = vadd.f32 %v5105_v3, %v11554_v17 }
 0x418   : > { %v5129_v46 = vrot.slane %v11850_v24, 7 }
 0x41a   : > { %v11854_v2 = vsel %vm666_vm0, 0.0, %v5129_v46  ;;  %v5153_v6 = vsel %vm666_vm0, %v5129_v46, 0.0 }
 0x41b   : > { %v5176_v60 = vrot.slane %v11854_v2, 1  ;;  %v5177_v51 = vrot.slane %v5153_v6, 1  ;;  %v5198_v17 = vrot.slane %v11854_v2, 2  ;;  %v5199_v4 = vrot.slane %v5153_v6, 2 }
 0x41d   : > { %v5178_v57 = vsel %vm832_vm2, %v5176_v60, %v5177_v51  ;;  %v5200_v13 = vsel %vm913_vm1, %v5198_v17, %v5199_v4 }
 0x41e   : > { %v8577_v34 = vpack.i.bf16 %v5178_v57, %v11862_v18  ;;  %v8582_v45 = vpack.i.bf16 %v5200_v13, %v11873_v37 }
 0x420   : > { %8578 = vrot.lane.b32.xlu0 %v8577_v34, %s12817_s25 }
 0x424   : > { %8583 = vrot.lane.b32.xlu0 %v8582_v45, %s12822_s2 }
 0x428   : > { %v7168_v27 = vpop.f32.mrb[36].mxu0 }
 0x429   : > { %v4832_v52 = vpop.f32.mrb[37].mxu0 }
 0x42a   : > { %v4833_v16 = vadd.f32 %v11820_v21, %v4832_v52  ;;  %v7169_v40 = vpop.f32.mrb[38].mxu0 }
 0x42b   : > { %v4835_v43 = vpop.f32.mrb[39].mxu0 }
 0x42c   : > { %v4938_v23 = vrot.slane %v4833_v16, 1  ;;  %v4954_v49 = vrot.slane %v4833_v16, 2  ;;  %v4836_v7 = vadd.f32 %v11820_v21, %v4835_v43  ;;  %v4970_v33 = vrot.slane %v4833_v16, 3 }
 0x42e   : > { %v5058_v5 = vsel %vm666_vm0, %v4833_v16, %v4938_v23  ;;  %v4994_v22 = vrot.slane %v4836_v7, 4  ;;  %v5010_v47 = vrot.slane %v4836_v7, 5  ;;  %v5026_v32 = vrot.slane %v4836_v7, 6 }
 0x42f   : > { %v5066_v8 = vsel %vm2130_vm3, %v5058_v5, %v4954_v49  ;;  %v5042_v62 = vrot.slane %v4836_v7, 7 }
 0x430   : > { %v5074_v10 = vsel %vm4459_vm12, %v5066_v8, %v4970_v33 }
 0x431   : > { %v5082_v38 = vsel %vm3814_vm13, %v5074_v10, %v4994_v22 }
 0x432   : > { %v5090_v20 = vsel %vm4492_vm10, %v5082_v38, %v5010_v47 }
 0x433   : > { %v5098_v35 = vsel %vm913_vm1, %v5090_v20, %v5026_v32 }
 0x434   : > { %v5106_v53 = vsel %vm832_vm2, %v5098_v35, %v5042_v62 }
 0x435   : > { %v11889_v50 = vadd.f32 %v5106_v53, %v11594_v55 }
 0x437   : > { %v5130_v63 = vrot.slane %v11889_v50, 7 }
 0x439   : > { %v11893_v36 = vsel %vm666_vm0, 0.0, %v5130_v63  ;;  %v5154_v12 = vsel %vm666_vm0, %v5130_v63, 0.0 }
 0x43a   : > { %v8587_v61 = vpack.i.bf16 %v11893_v36, %v11854_v2  ;;  %v5179_v30 = vrot.slane %v11893_v36, 1  ;;  %v5180_v0 = vrot.slane %v5154_v12, 1  ;;  %v5201_v19 = vrot.slane %v11893_v36, 2 }
 0x43b   : > { %v5202_v15 = vrot.slane %v5154_v12, 2 }
 0x43c   : > { %8588 = vrot.lane.b32.xlu0 %v8587_v61, %s12819_s27  ;;  %v5181_v55 = vsel %vm832_vm2, %v5179_v30, %v5180_v0 }
 0x43d   : > { %v8592_v59 = vpack.i.bf16 %v5181_v55, %v5178_v57  ;;  %v5203_v31 = vsel %vm913_vm1, %v5201_v19, %v5202_v15 }
 0x43e   : > { %v8597_v48 = vpack.i.bf16 %v5203_v31, %v5200_v13 }
 0x440   : > { %8593 = vrot.lane.b32.xlu0 %v8592_v59, %s12821_s20 }
 0x444   : > { %8598 = vrot.lane.b32.xlu0 %v8597_v48, %s12839_s0 }
 0x449   : > { %v7172_v26 = vpop.f32.mrb[40].mxu0 }
 0x44a   : > { %v4846_v3 = vpop.f32.mrb[41].mxu0 }
 0x44b   : > { %v4847_v46 = vadd.f32 %v11820_v21, %v4846_v3  ;;  %v7173_v6 = vpop.f32.mrb[42].mxu0 }
 0x44c   : > { %v4849_v29 = vpop.f32.mrb[43].mxu0 }
 0x44d   : > { %v4939_v44 = vrot.slane %v4847_v46, 1  ;;  %v4955_v14 = vrot.slane %v4847_v46, 2  ;;  %v4850_v60 = vadd.f32 %v11820_v21, %v4849_v29  ;;  %v4971_v51 = vrot.slane %v4847_v46, 3 }
 0x44f   : > { %v5059_v17 = vsel %vm666_vm0, %v4847_v46, %v4939_v44  ;;  %v4995_v4 = vrot.slane %v4850_v60, 4  ;;  %v5011_v1 = vrot.slane %v4850_v60, 5  ;;  %v5027_v9 = vrot.slane %v4850_v60, 6 }
 0x450   : > { %v5067_v57 = vsel %vm2130_vm3, %v5059_v17, %v4955_v14  ;;  %v5043_v45 = vrot.slane %v4850_v60, 7 }
 0x451   : > { %v5075_v34 = vsel %vm4459_vm12, %v5067_v57, %v4971_v51 }
 0x452   : > { %v5083_v13 = vsel %vm3814_vm13, %v5075_v34, %v4995_v4 }
 0x453   : > { %v5091_v27 = vsel %vm4492_vm10, %v5083_v13, %v5011_v1 }
 0x454   : > { %v5099_v52 = vsel %vm913_vm1, %v5091_v27, %v5027_v9 }
 0x455   : > { %v5107_v16 = vsel %vm832_vm2, %v5099_v52, %v5043_v45  ;;  %v8915_v45 = vld [vmem:[%s12728_s7] sm:$0xff]  }
 0x456   : > { %v11915_v40 = vadd.f32 %v5107_v16, %v11634_v56  ;;  %7194 = vmatprep.subr.bf16.mxu1 %v8915_v45 }
 0x457   : > { %7195 = vmatpush3.bf16.msra.mxu1 %v8915_v45 }
 0x458   : > { %v5131_v43 = vrot.slane %v11915_v40, 7 }
 0x45a   : > { %v11919_v23 = vsel %vm666_vm0, 0.0, %v5131_v43  ;;  %v5155_v49 = vsel %vm666_vm0, %v5131_v43, 0.0 }
 0x45b   : > { %v8602_v7 = vpack.i.bf16 %v11919_v23, %v11893_v36  ;;  %v5182_v33 = vrot.slane %v11919_v23, 1  ;;  %v5183_v5 = vrot.slane %v5155_v49, 1  ;;  %v5204_v22 = vrot.slane %v11919_v23, 2 }
 0x45c   : > { %v5205_v8 = vrot.slane %v5155_v49, 2  ;;  %v7176_v32 = vpop.f32.mrb[44].mxu0 }
 0x45d   : > { %8603 = vrot.lane.b32.xlu0 %v8602_v7, %s12834_s22  ;;  %v5184_v56 = vsel %vm832_vm2, %v5182_v33, %v5183_v5  ;;  %v4860_v38 = vpop.f32.mrb[45].mxu0  ;;  %v8916_v7 = vld [vmem:[%s12728_s7 + $0x8] sm:$0xff]  }
 0x45e   : > { %v8607_v10 = vpack.i.bf16 %v5184_v56, %v5181_v55  ;;  %v5206_v47 = vsel %vm913_vm1, %v5204_v22, %v5205_v8  ;;  %v4861_v20 = vadd.f32 %v11820_v21, %v4860_v38  ;;  %v7177_v35 = vpop.f32.mrb[46].mxu0  ;;  %7196 = vmatprep.subr.bf16.mxu1 %v8916_v7 }
 0x45f   : > { %v8612_v62 = vpack.i.bf16 %v5206_v47, %v5203_v31  ;;  %v4863_v53 = vpop.f32.mrb[47].mxu0  ;;  %7197 = vmatpush3.bf16.msra.mxu1 %v8916_v7  ;;  %v8917_v35 = vld [vmem:[%s12728_s7 + $0x10] sm:$0xff]  }
 0x460   : > { %8608 = vrot.lane.b32.xlu1 %v8607_v10, %s12817_s25  ;;  %v4940_v63 = vrot.slane %v4861_v20, 1  ;;  %v4956_v12 = vrot.slane %v4861_v20, 2  ;;  %v4864_v61 = vadd.f32 %v11820_v21, %v4863_v53  ;;  %v4972_v30 = vrot.slane %v4861_v20, 3  ;;  %7198 = vmatprep.subr.bf16.mxu1 %v8917_v35 }
 0x461   : > { %8618 = vrot.lane.b32.xlu0 %v8607_v10, %s12837_s21 }
 0x462   : > { %v5060_v0 = vsel %vm666_vm0, %v4861_v20, %v4940_v63  ;;  %v4996_v19 = vrot.slane %v4864_v61, 4  ;;  %v5012_v59 = vrot.slane %v4864_v61, 5  ;;  %v5028_v31 = vrot.slane %v4864_v61, 6 }
 0x463   : > { %v5068_v15 = vsel %vm2130_vm3, %v5060_v0, %v4956_v12  ;;  %v5044_v26 = vrot.slane %v4864_v61, 7  ;;  %7199 = vmatpush3.bf16.msra.mxu1 %v8917_v35  ;;  %v8918_v0 = vld [vmem:[%s12728_s7 + $0x18] sm:$0xff]  }
 0x464   : > { %8613 = vrot.lane.b32.xlu1 %v8612_v62, %s12822_s2  ;;  %v5076_v55 = vsel %vm4459_vm12, %v5068_v15, %v4972_v30  ;;  %7200 = vmatprep.subr.bf16.mxu1 %v8918_v0 }
 0x465   : > { %8623 = vrot.lane.b32.xlu0 %v8612_v62, %s12838_s26  ;;  %v5084_v48 = vsel %vm3814_vm13, %v5076_v55, %v4996_v19 }
 0x466   : > { %v5092_v3 = vsel %vm4492_vm10, %v5084_v48, %v5012_v59 }
 0x467   : > { %v5100_v46 = vsel %vm913_vm1, %v5092_v3, %v5028_v31  ;;  %7201 = vmatpush3.bf16.msra.mxu1 %v8918_v0 }
 0x468   : > { %v5108_v6 = vsel %vm832_vm2, %v5100_v46, %v5044_v26  ;;  %v8919_v26 = vld [vmem:[%s12728_s7 + $0x20] ss:$0 sps:$4 sm:$0xff]  }
 0x469   : > { %v11943_v29 = vadd.f32 %v5108_v6, %v11674_v11  ;;  %7239 = vmatprep.subr.msk.bf16.mxu1 %vm3814_vm13, %v8919_v26  ;;  %v5540_v6 = vsel %vm3814_vm13, %v8919_v26, 0 }
 0x46b   : > { %v5132_v44 = vrot.slane %v11943_v29, 7  ;;  %7203 = vmatpush3.bf16.msra.mxu1 %v5540_v6 }
 0x46c   : > { %6053 = vmatprep.subr.bf16.mxu1 %v9060_v54 }
 0x46d   : > { %v11947_v14 = vsel %vm666_vm0, 0.0, %v5132_v44  ;;  %v5156_v60 = vsel %vm666_vm0, %v5132_v44, 0.0 }
 0x46e   : > { %v8627_v51 = vpack.i.bf16 %v11947_v14, %v11919_v23  ;;  %v5185_v17 = vrot.slane %v11947_v14, 1  ;;  %v5186_v4 = vrot.slane %v5156_v60, 1  ;;  %v5207_v57 = vrot.slane %v11947_v14, 2 }
 0x46f   : > { %v5208_v34 = vrot.slane %v5156_v60, 2 }
 0x470   : > { %8628 = vrot.lane.b32.xlu1 %v8627_v51, %s12819_s27  ;;  %v5187_v11 = vsel %vm832_vm2, %v5185_v17, %v5186_v4 }
 0x471   : > { %v8632_v1 = vpack.i.bf16 %v5187_v11, %v5184_v56  ;;  %v5209_v9 = vsel %vm913_vm1, %v5207_v57, %v5208_v34 }
 0x472   : > { %v8637_v13 = vpack.i.bf16 %v5209_v9, %v5206_v47 }
 0x474   : > { %8633 = vrot.lane.b32.xlu1 %v8632_v1, %s12821_s20 }
 0x478   : > { %8638 = vrot.lane.b32.xlu1 %v8637_v13, %s12839_s0 }
 0x479   : > { %v7180_v27 = vpop.f32.mrb[48].mxu0 }
 0x47a   : > { %v4874_v52 = vpop.f32.mrb[49].mxu0 }
 0x47b   : > { %v4875_v16 = vadd.f32 %v11820_v21, %v4874_v52  ;;  %v7181_v43 = vpop.f32.mrb[50].mxu0 }
 0x47c   : > { %v4877_v49 = vpop.f32.mrb[51].mxu0 }
 0x47d   : > { %v4941_v33 = vrot.slane %v4875_v16, 1  ;;  %v4957_v5 = vrot.slane %v4875_v16, 2  ;;  %v4878_v22 = vadd.f32 %v11820_v21, %v4877_v49  ;;  %v4973_v8 = vrot.slane %v4875_v16, 3 }
 0x47f   : > { %v5061_v56 = vsel %vm666_vm0, %v4875_v16, %v4941_v33  ;;  %v4997_v10 = vrot.slane %v4878_v22, 4  ;;  %v5013_v38 = vrot.slane %v4878_v22, 5  ;;  %v5029_v62 = vrot.slane %v4878_v22, 6 }
 0x480   : > { %v5069_v47 = vsel %vm2130_vm3, %v5061_v56, %v4957_v5  ;;  %v5045_v53 = vrot.slane %v4878_v22, 7 }
 0x481   : > { %v5077_v32 = vsel %vm4459_vm12, %v5069_v47, %v4973_v8 }
 0x482   : > { %v5085_v20 = vsel %vm3814_vm13, %v5077_v32, %v4997_v10 }
 0x483   : > { %v5093_v63 = vsel %vm4492_vm10, %v5085_v20, %v5013_v38 }
 0x484   : > { %v5101_v12 = vsel %vm913_vm1, %v5093_v63, %v5029_v62 }
 0x485   : > { %v5109_v61 = vsel %vm832_vm2, %v5101_v12, %v5045_v53 }
 0x486   : > { %v11978_v30 = vadd.f32 %v5109_v61, %v11714_v41 }
 0x488   : > { %v5133_v19 = vrot.slane %v11978_v30, 7 }
 0x48a   : > { %v11985_v15 = vsel %vm666_vm0, 0.0, %v5133_v19  ;;  %v5157_v55 = vsel %vm666_vm0, %v5133_v19, 0.0 }
 0x48b   : > { %v8642_v59 = vpack.i.bf16 %v11985_v15, %v11947_v14  ;;  %v5188_v31 = vrot.slane %v11985_v15, 1  ;;  %v5189_v41 = vrot.slane %v5157_v55, 1  ;;  %v5210_v48 = vrot.slane %v11985_v15, 2 }
 0x48c   : > { %v5211_v3 = vrot.slane %v5157_v55, 2 }
 0x48d   : > { %8643 = vrot.lane.b32.xlu1 %v8642_v59, %s12834_s22  ;;  %v5190_v46 = vsel %vm832_vm2, %v5188_v31, %v5189_v41 }
 0x48e   : > { %v8657_v44 = vpack.i.bf16 %v5190_v46, %v5187_v11  ;;  %v5212_v60 = vsel %vm913_vm1, %v5210_v48, %v5211_v3 }
 0x48f   : > { %v8662_v51 = vpack.i.bf16 %v5212_v60, %v5209_v9 }
 0x490   : > { %8658 = vrot.lane.b32.xlu0 %v8657_v44, %s12817_s25 }
 0x491   : > { %8648 = vrot.lane.b32.xlu1 %v8657_v44, %s12837_s21 }
 0x492   : > { %v8579_v0 = vpop.permute.xlu0 %8578 }
 0x494   : > { %8663 = vrot.lane.b32.xlu0 %v8662_v51, %s12822_s2 }
 0x495   : > { %8653 = vrot.lane.b32.xlu1 %v8662_v51, %s12838_s26 }
 0x496   : > { %v8584_v55 = vpop.permute.xlu0 %8583 }
 0x49a   : > { %v7184_v17 = vpop.f32.mrb[52].mxu0 }
 0x49b   : > { %v4888_v4 = vpop.f32.mrb[53].mxu0 }
 0x49c   : > { %v4889_v57 = vadd.f32 %v11820_v21, %v4888_v4  ;;  %v7185_v34 = vpop.f32.mrb[54].mxu0 }
 0x49d   : > { %v4891_v1 = vpop.f32.mrb[55].mxu0 }
 0x49e   : > { %v4942_v13 = vrot.slane %v4889_v57, 1  ;;  %v4958_v11 = vrot.slane %v4889_v57, 2  ;;  %v4892_v45 = vadd.f32 %v11820_v21, %v4891_v1  ;;  %v4974_v27 = vrot.slane %v4889_v57, 3 }
 0x4a0   : > { %v5062_v52 = vsel %vm666_vm0, %v4889_v57, %v4942_v13  ;;  %v4998_v16 = vrot.slane %v4892_v45, 4  ;;  %v5014_v49 = vrot.slane %v4892_v45, 5  ;;  %v5030_v7 = vrot.slane %v4892_v45, 6 }
 0x4a1   : > { %v5070_v9 = vsel %vm2130_vm3, %v5062_v52, %v4958_v11  ;;  %v5046_v5 = vrot.slane %v4892_v45, 7 }
 0x4a2   : > { %v5078_v43 = vsel %vm4459_vm12, %v5070_v9, %v4974_v27 }
 0x4a3   : > { %v5086_v33 = vsel %vm3814_vm13, %v5078_v43, %v4998_v16 }
 0x4a4   : > { %v5094_v22 = vsel %vm4492_vm10, %v5086_v33, %v5014_v49 }
 0x4a5   : > { %v5102_v8 = vsel %vm913_vm1, %v5094_v22, %v5030_v7  ;;  %v8580_v7 = vunpack.i.l.bf16 %v8579_v0 }
 0x4a6   : > { %v5110_v56 = vsel %vm832_vm2, %v5102_v8, %v5046_v5 }
 0x4a7   : > { %v12014_v10 = vadd.f32 %v5110_v56, %v11754_v28 }
 0x4a9   : > { %v5134_v47 = vrot.slane %v12014_v10, 7 }
 0x4ab   : > { %v12018_v32 = vsel %vm666_vm0, 0.0, %v5134_v47  ;;  %v5158_v38 = vsel %vm666_vm0, %v5134_v47, 0.0 }
 0x4ac   : > { %v8667_v62 = vpack.i.bf16 %v12018_v32, %v11985_v15  ;;  %v5191_v20 = vrot.slane %v12018_v32, 1  ;;  %v5192_v35 = vrot.slane %v5158_v38, 1  ;;  %v5213_v53 = vrot.slane %v12018_v32, 2 }
 0x4ad   : > { %v5214_v63 = vrot.slane %v5158_v38, 2  ;;  %v8581_v38 = vunpack.i.h.bf16 %v8579_v0 }
 0x4ae   : > { %8668 = vrot.lane.b32.xlu0 %v8667_v62, %s12819_s27  ;;  %v5193_v28 = vsel %vm832_vm2, %v5191_v20, %v5192_v35  ;;  %v8589_v26 = vpop.permute.xlu0 %8588  ;;  %v8586_v35 = vunpack.i.h.bf16 %v8584_v55 }
 0x4af   : > { %v8672_v12 = vpack.i.bf16 %v5193_v28, %v5190_v46  ;;  %v12028_v61 = vsel %vm913_vm1, %v5213_v53, %v5214_v63  ;;  %v8590_v53 = vunpack.i.l.bf16 %v8589_v26 }
 0x4b0   : > { %v8677_v19 = vpack.i.bf16 %v12028_v61, %v5212_v60 }
 0x4b2   : > { %8673 = vrot.lane.b32.xlu0 %v8672_v12, %s12821_s20  ;;  %v8594_v1 = vpop.permute.xlu0 %8593  ;;  %v8591_v12 = vunpack.i.h.bf16 %v8589_v26 }
 0x4b6   : > { %8678 = vrot.lane.b32.xlu0 %v8677_v19, %s12839_s0  ;;  %v8599_v43 = vpop.permute.xlu0 %8598 }
 0x4bc   : > { %v7188_v59 = vpop.f32.mrb[56].mxu0 }
 0x4bd   : > { %v4902_v31 = vpop.f32.mrb[57].mxu0  ;;  %v5416_v59 = vsel %vm1807_vm5, %v12868_v58, %v8580_v7 }
 0x4be   : > { %v4903_v41 = vadd.f32 %v11820_v21, %v4902_v31  ;;  %v7189_v48 = vpop.f32.mrb[58].mxu0  ;;  %v8596_v31 = vunpack.i.h.bf16 %v8594_v1 }
 0x4bf   : > { %v4905_v3 = vpop.f32.mrb[59].mxu0 }
 0x4c0   : > { %v4943_v6 = vrot.slane %v4903_v41, 1  ;;  %v4959_v46 = vrot.slane %v4903_v41, 2  ;;  %v4906_v44 = vadd.f32 %v11820_v21, %v4905_v3  ;;  %v4975_v51 = vrot.slane %v4903_v41, 3 }
 0x4c1   : > { %v8601_v3 = vunpack.i.h.bf16 %v8599_v43 }
 0x4c2   : > { %v5063_v17 = vsel %vm666_vm0, %v4903_v41, %v4943_v6  ;;  %v4999_v4 = vrot.slane %v4906_v44, 4  ;;  %v5015_v34 = vrot.slane %v4906_v44, 5  ;;  %v5031_v13 = vrot.slane %v4906_v44, 6 }
 0x4c3   : > { %v5071_v60 = vsel %vm2130_vm3, %v5063_v17, %v4959_v46  ;;  %v5047_v45 = vrot.slane %v4906_v44, 7  ;;  %v8595_v41 = vunpack.i.l.bf16 %v8594_v1  ;;  %v8600_v6 = vunpack.i.l.bf16 %v8599_v43 }
 0x4c4   : > { %v5079_v57 = vsel %vm4459_vm12, %v5071_v60, %v4975_v51 }
 0x4c5   : > { %v5087_v11 = vsel %vm3814_vm13, %v5079_v57, %v4999_v4 }
 0x4c6   : > { %v5095_v27 = vsel %vm4492_vm10, %v5087_v11, %v5015_v34 }
 0x4c7   : > { %v5103_v52 = vsel %vm913_vm1, %v5095_v27, %v5031_v13 }
 0x4c8   : > { %v5111_v16 = vsel %vm832_vm2, %v5103_v52, %v5047_v45 }
 0x4c9   : > { %v12043_v9 = vadd.f32 %v5111_v16, %v11794_v25  ;;  %v8585_v25 = vunpack.i.l.bf16 %v8584_v55  ;;  %v5417_v55 = vsel %vm1807_vm5, %v11854_v2, %v8581_v38 }
 0x4cb   : > { %v5135_v49 = vrot.slane %v12043_v9, 7  ;;  %v5424_v48 = vsel %vm1873_vm7, %v5416_v59, %v8585_v25 }
 0x4cc   : > { %v5432_v46 = vsel %vm1939_vm9, %v5424_v48, %v8590_v53 }
 0x4cd   : > { %v12047_v33 = vsel %vm666_vm0, 0.0, %v5135_v49  ;;  %v5159_v5 = vsel %vm666_vm0, %v5135_v49, 0.0  ;;  %v5440_v57 = vsel %vm2005_vm11, %v5432_v46, %v8595_v41 }
 0x4ce   : > { %v8682_v22 = vpack.i.bf16 %v12047_v33, %v12018_v32  ;;  %v5194_v8 = vrot.slane %v12047_v33, 1  ;;  %v5195_v56 = vrot.slane %v5159_v5, 1  ;;  %v5216_v47 = vrot.slane %v12047_v33, 2 }
 0x4cf   : > { %v8604_v62 = vpop.permute.xlu0 %8603  ;;  %v5217_v20 = vrot.slane %v5159_v5, 2  ;;  %v5448_v1 = vsel %vm3574_vm14, %v5440_v57, %v8600_v6 }
 0x4d0   : > { %8683 = vrot.lane.b32.xlu0 %v8682_v22, %s12834_s22  ;;  %v12056_v63 = vsel %vm832_vm2, %v5194_v8, %v5195_v56  ;;  %v8606_v44 = vunpack.i.h.bf16 %v8604_v62  ;;  %v8605_v51 = vunpack.i.l.bf16 %v8604_v62 }
 0x4d1   : > { %v8687_v19 = vpack.i.bf16 %v12056_v63, %v5193_v28  ;;  %v12062_v0 = vsel %vm913_vm1, %v5216_v47, %v5217_v20  ;;  %v5425_v28 = vsel %vm1873_vm7, %v5417_v55, %v8586_v35 }
 0x4d2   : > { %v5433_v17 = vsel %vm1939_vm9, %v5425_v28, %v8591_v12  ;;  %v8692_v2 = vpack.i.bf16 %v12062_v0, %v12028_v61  ;;  %v5456_v45 = vsel %vm3607_vm15, %v5448_v1, %v8605_v51  ;;  %v8609_v41 = vpop.permute.xlu1 %8608 }
 0x4d3   : > { %8688 = vrot.lane.b32.xlu1 %v8687_v19, %s12817_s25  ;;  %v8619_v26 = vpop.permute.xlu0 %8618  ;;  %v5441_v34 = vsel %vm2005_vm11, %v5433_v17, %v8596_v31 }
 0x4d4   : > { %8698 = vrot.lane.b32.xlu0 %v8687_v19, %s12837_s21  ;;  %v8621_v4 = vunpack.i.h.bf16 %v8619_v26  ;;  %v8620_v60 = vunpack.i.l.bf16 %v8619_v26  ;;  %v5449_v13 = vsel %vm3574_vm14, %v5441_v34, %v8601_v3 }
 0x4d5   : > { %v5457_v27 = vsel %vm3607_vm15, %v5449_v13, %v8606_v44 }
 0x4d6   : > { %v5464_v61 = vsel %vm3640_vm6, %v5456_v45, %v8620_v60  ;;  %v5465_v43 = vsel %vm3640_vm6, %v5457_v27, %v8621_v4  ;;  %v8614_v46 = vpop.permute.xlu1 %8613 }
 0x4d7   : > { %8693 = vrot.lane.b32.xlu1 %v8692_v2, %s12822_s2  ;;  %v8624_v11 = vpop.permute.xlu0 %8623 }
 0x4d8   : > { %8703 = vrot.lane.b32.xlu0 %v8692_v2, %s12838_s26  ;;  %v8626_v52 = vunpack.i.h.bf16 %v8624_v11  ;;  %v8625_v16 = vunpack.i.l.bf16 %v8624_v11 }
 0x4da   : > { %v5472_v49 = vsel %vm3673_vm8, %v5464_v61, %v8625_v16  ;;  %v5473_v7 = vsel %vm3673_vm8, %v5465_v43, %v8626_v52  ;;  %v8611_v61 = vunpack.i.h.bf16 %v8609_v41  ;;  %v8610_v43 = vunpack.i.l.bf16 %v8609_v41 }
 0x4db   : > { %v5480_v5 = vpack.c.bf16 %v5473_v7, %v5472_v49  ;;  %v8616_v7 = vunpack.i.h.bf16 %v8614_v46 }
 0x4dd   : > { %7204 = vmatprep.mubr.msk.bf16.mxu1 %vm12872_vm4, %v5480_v5  ;;  %v8615_v5 = vunpack.i.l.bf16 %v8614_v46 }
 0x4df   : > { %v7192_v22 = vpop.f32.mrb[60].mxu0 }
 0x4e0   : > { %v4916_v8 = vpop.f32.mrb[61].mxu0 }
 0x4e1   : > { %v4917_v56 = vadd.f32 %v11820_v21, %v4916_v8  ;;  %v7193_v47 = vpop.f32.mrb[62].mxu0 }
 0x4e2   : > { %v4919_v38 = vpop.f32.mrb[63].mxu0  ;;  %v8629_v60 = vpop.permute.xlu1 %8628 }
 0x4e3   : > { %v4944_v25 = vrot.slane %v4917_v56, 1  ;;  %v4960_v62 = vrot.slane %v4917_v56, 2  ;;  %v4920_v20 = vadd.f32 %v11820_v21, %v4919_v38  ;;  %v4976_v35 = vrot.slane %v4917_v56, 3 }
 0x4e4   : > { %v8631_v22 = vunpack.i.h.bf16 %v8629_v60  ;;  %v5418_v38 = vsel %vm1807_vm5, %v11893_v36, %v8610_v43 }
 0x4e5   : > { %v5064_v53 = vsel %vm666_vm0, %v4917_v56, %v4944_v25  ;;  %v5000_v12 = vrot.slane %v4920_v20, 4  ;;  %v5016_v31 = vrot.slane %v4920_v20, 5  ;;  %v5032_v55 = vrot.slane %v4920_v20, 6 }
 0x4e6   : > { %v5072_v19 = vsel %vm2130_vm3, %v5064_v53, %v4960_v62  ;;  %v5048_v3 = vrot.slane %v4920_v20, 7 }
 0x4e7   : > { %v5080_v59 = vsel %vm4459_vm12, %v5072_v19, %v4976_v35  ;;  %v5426_v35 = vsel %vm1873_vm7, %v5418_v38, %v8615_v5 }
 0x4e8   : > { %v5088_v48 = vsel %vm3814_vm13, %v5080_v59, %v5000_v12  ;;  %vm12873_vm13 = vmmov %vm12872_vm4 }
 0x4e9   : > { %v5096_v6 = vsel %vm4492_vm10, %v5088_v48, %v5016_v31  ;;  %vm12874_vm10 = vmmov %vm12872_vm4 }
 0x4ea   : > { %v5104_v26 = vsel %vm913_vm1, %v5096_v6, %v5032_v55 }
 0x4eb   : > { %v5112_v21 = vsel %vm832_vm2, %v5104_v26, %v5048_v3 }
 0x4ec   : > { %v12097_v28 = vadd.f32 %v5112_v21, %v11844_v42  ;;  %v8634_v42 = vpop.permute.xlu1 %8633 }
 0x4ed   : > { %v8636_v8 = vunpack.i.h.bf16 %v8634_v42  ;;  %v8635_v56 = vunpack.i.l.bf16 %v8634_v42 }
 0x4ee   : > { %v5136_v44 = vrot.slane %v12097_v28, 7 }
 0x4f0   : > { %v5152_v51 = vsel %vm666_vm0, 0.0, %v5136_v44  ;;  %v5160_v17 = vsel %vm666_vm0, %v5136_v44, 0.0  ;;  %v8639_v52 = vpop.permute.xlu1 %8638 }
 0x4f1   : > { %v8707_v4 = vpack.i.bf16 %v5152_v51, %v12047_v33  ;;  %v5221_v2 = vrot.slane %v5152_v51, 1  ;;  %v5222_v57 = vrot.slane %v5160_v17, 1  ;;  %v5224_v1 = vrot.slane %v5152_v51, 2 }
 0x4f2   : > { %v5225_v13 = vrot.slane %v5160_v17, 2  ;;  %v8641_v25 = vunpack.i.h.bf16 %v8639_v52  ;;  %v8640_v62 = vunpack.i.l.bf16 %v8639_v52 }
 0x4f3   : > { %8708 = vrot.lane.b32.xlu1 %v8707_v4, %s12819_s27  ;;  %v5223_v34 = vsel %vm832_vm2, %v5221_v2, %v5222_v57  ;;  %s12795_s27 = smov 80  }
 0x4f4   : > { %v8712_v11 = vpack.i.bf16 %v5223_v34, %v12056_v63  ;;  %v5226_v45 = vsel %vm913_vm1, %v5224_v1, %v5225_v13  ;;  %v8722_v16 = vpack.i.bf16 %v11862_v18, %v5223_v34  ;;  %v8630_v63 = vunpack.i.l.bf16 %v8629_v60 }
 0x4f5   : > { %v8717_v27 = vpack.i.bf16 %v5226_v45, %v12062_v0  ;;  %v8727_v47 = vpack.i.bf16 %v11873_v37, %v5226_v45  ;;  %v5419_v0 = vsel %vm1807_vm5, %v11919_v23, %v8611_v61 }
 0x4f6   : > { %v5427_v53 = vsel %vm1873_vm7, %v5419_v0, %v8616_v7  ;;  %v5434_v59 = vsel %vm1939_vm9, %v5426_v35, %v8630_v63 }
 0x4f7   : > { %5359 = vrot.lane.b32.xlu1 %v5152_v51, %s12834_s22  ;;  %v5435_v31 = vsel %vm1939_vm9, %v5427_v53, %v8631_v22  ;;  %v5442_v55 = vsel %vm2005_vm11, %v5434_v59, %v8635_v56 }
 0x4f8   : > { %v5443_v36 = vsel %vm2005_vm11, %v5435_v31, %v8636_v8  ;;  %v5450_v48 = vsel %vm3574_vm14, %v5442_v55, %v8640_v62 }
 0x4f9   : > { %v5451_v3 = vsel %vm3574_vm14, %v5443_v36, %v8641_v25 }
 0x4fb   : > { %8713 = vrot.lane.b32.xlu1 %v8712_v11, %s12821_s20 }
 0x4ff   : > { %8718 = vrot.lane.b32.xlu1 %v8717_v27, %s12839_s0  ;;  %v8644_v49 = vpop.permute.xlu1 %8643  ;;  %s12794_s0 = smov 96  }
 0x500   : > { %v8646_v12 = vunpack.i.h.bf16 %v8644_v49  ;;  %v8645_v19 = vunpack.i.l.bf16 %v8644_v49 }
 0x502   : > { %v5458_v26 = vsel %vm3607_vm15, %v5450_v48, %v8645_v19  ;;  %v5459_v21 = vsel %vm3607_vm15, %v5451_v3, %v8646_v12  ;;  %v8659_v57 = vpop.permute.xlu0 %8658 }
 0x503   : > { %8723 = vrot.lane.b32.xlu1 %v8722_v16, %s12837_s21  ;;  %v8649_v20 = vpop.permute.xlu1 %8648  ;;  %v8661_v11 = vunpack.i.h.bf16 %v8659_v57  ;;  %v8660_v45 = vunpack.i.l.bf16 %v8659_v57  ;;  %s12793_s21 = smov 112  }
 0x504   : > { %v8651_v41 = vunpack.i.h.bf16 %v8649_v20  ;;  %v8650_v23 = vunpack.i.l.bf16 %v8649_v20 }
 0x505   : > { %v5421_v5 = vsel %vm1807_vm5, %v11985_v15, %v8661_v11  ;;  %v5420_v22 = vsel %vm1807_vm5, %v11947_v14, %v8660_v45 }
 0x506   : > { %v5466_v51 = vsel %vm3640_vm6, %v5458_v26, %v8650_v23  ;;  %v5467_v17 = vsel %vm3640_vm6, %v5459_v21, %v8651_v41  ;;  %v8664_v34 = vpop.permute.xlu0 %8663 }
 0x507   : > { %8728 = vrot.lane.b32.xlu1 %v8727_v47, %s12838_s26  ;;  %v8654_v6 = vpop.permute.xlu1 %8653  ;;  %v8666_v52 = vunpack.i.h.bf16 %v8664_v34  ;;  %v8665_v16 = vunpack.i.l.bf16 %v8664_v34 }
 0x508   : > { %v8656_v46 = vunpack.i.h.bf16 %v8654_v6  ;;  %v8655_v44 = vunpack.i.l.bf16 %v8654_v6 }
 0x509   : > { %v5428_v47 = vsel %vm1873_vm7, %v5420_v22, %v8665_v16  ;;  %v5429_v0 = vsel %vm1873_vm7, %v5421_v5, %v8666_v52 }
 0x50a   : > { %v5474_v4 = vsel %vm3673_vm8, %v5466_v51, %v8655_v44  ;;  %v5475_v60 = vsel %vm3673_vm8, %v5467_v17, %v8656_v46 }
 0x50b   : > { %v5481_v2 = vpack.c.bf16 %v5475_v60, %v5474_v4 }
 0x50d   : > { %7205 = vmatmul.mubr.msk.bf16.vlgmr.msra.gmra.mrb[32].mxu1 %vm12873_vm13, %v5481_v2 }
 0x520   : > { %v8669_v1 = vpop.permute.xlu0 %8668 }
 0x521   : > { %v8671_v61 = vunpack.i.h.bf16 %v8669_v1  ;;  %v8670_v43 = vunpack.i.l.bf16 %v8669_v1 }
 0x523   : > { %v5436_v62 = vsel %vm1939_vm9, %v5428_v47, %v8670_v43  ;;  %v5437_v20 = vsel %vm1939_vm9, %v5429_v0, %v8671_v61 }
 0x524   : > { %v8674_v13 = vpop.permute.xlu0 %8673 }
 0x525   : > { %v8676_v49 = vunpack.i.h.bf16 %v8674_v13  ;;  %v8675_v7 = vunpack.i.l.bf16 %v8674_v13 }
 0x527   : > { %v5444_v15 = vsel %vm2005_vm11, %v5436_v62, %v8675_v7  ;;  %v5445_v12 = vsel %vm2005_vm11, %v5437_v20, %v8676_v49 }
 0x528   : > { %v8679_v42 = vpop.permute.xlu0 %8678 }
 0x529   : > { %v8681_v63 = vunpack.i.h.bf16 %v8679_v42  ;;  %v8680_v8 = vunpack.i.l.bf16 %v8679_v42 }
 0x52b   : > { %v5452_v14 = vsel %vm3574_vm14, %v5444_v15, %v8680_v8  ;;  %v5453_v19 = vsel %vm3574_vm14, %v5445_v12, %v8681_v63 }
 0x542   : > { %v8684_v27 = vpop.permute.xlu0 %8683 }
 0x543   : > { %v8686_v38 = vunpack.i.h.bf16 %v8684_v27  ;;  %v8685_v25 = vunpack.i.l.bf16 %v8684_v27 }
 0x545   : > { %v5460_v31 = vsel %vm3607_vm15, %v5452_v14, %v8685_v25  ;;  %v5461_v41 = vsel %vm3607_vm15, %v5453_v19, %v8686_v38  ;;  %v8689_v21 = vpop.permute.xlu1 %8688  ;;  %v8920_v14 = vld [vmem:[%s12730_s9] sm:$0xff]  }
 0x546   : > { %v8699_v56 = vpop.permute.xlu0 %8698  ;;  %v8691_v4 = vunpack.i.h.bf16 %v8689_v21  ;;  %v8690_v60 = vunpack.i.l.bf16 %v8689_v21  ;;  %6054 = vmatpush1.bf16.msra.mxu1 %v8920_v14  ;;  %v12185_v19 = vld [vmem:[%s12729_s8] ss:$0 sm:$0xff]  ;;  %v8926_v14 = vld [vmem:[%s12730_s9 + $0x30] sm:$0xff]  }
 0x547   : > { %v8701_v35 = vunpack.i.h.bf16 %v8699_v56  ;;  %v8700_v53 = vunpack.i.l.bf16 %v8699_v56  ;;  %6055 = vmatprep.subr.bf16.mxu1 %v9060_v54 }
 0x548   : > { %v5423_v45 = vsel %vm1807_vm5, %v12047_v33, %v8691_v4  ;;  %v5422_v27 = vsel %vm1807_vm5, %v12018_v32, %v8690_v60 }
 0x549   : > { %v5468_v36 = vsel %vm3640_vm6, %v5460_v31, %v8700_v53  ;;  %v5469_v48 = vsel %vm3640_vm6, %v5461_v41, %v8701_v35  ;;  %v8694_v46 = vpop.permute.xlu1 %8693  ;;  %v8922_v31 = vld [vmem:[%s12730_s9 + $0x10] sm:$0xff]  }
 0x54a   : > { %v8704_v59 = vpop.permute.xlu0 %8703  ;;  %v8696_v2 = vunpack.i.h.bf16 %v8694_v46  ;;  %v8695_v57 = vunpack.i.l.bf16 %v8694_v46  ;;  %v8923_v46 = vld [vmem:[%s12730_s9 + $0x18] sm:$0xff]  }
 0x54b   : > { %v8706_v23 = vunpack.i.h.bf16 %v8704_v59  ;;  %v8705_v55 = vunpack.i.l.bf16 %v8704_v59 }
 0x54c   : > { %v5430_v61 = vsel %vm1873_vm7, %v5422_v27, %v8695_v57  ;;  %v5431_v43 = vsel %vm1873_vm7, %v5423_v45, %v8696_v2 }
 0x54d   : > { %v5476_v3 = vsel %vm3673_vm8, %v5468_v36, %v8705_v55  ;;  %v5477_v6 = vsel %vm3673_vm8, %v5469_v48, %v8706_v23 }
 0x54e   : > { %v5482_v26 = vpack.c.bf16 %v5477_v6, %v5476_v3 }
 0x550   : > { %7208 = vmatprep.mubr.msk.bf16.mxu1 %vm12874_vm10, %v5482_v26 }
 0x565   : > { %v8709_v44 = vpop.permute.xlu1 %8708 }
 0x566   : > { %v8711_v34 = vunpack.i.h.bf16 %v8709_v44  ;;  %v8710_v1 = vunpack.i.l.bf16 %v8709_v44 }
 0x568   : > { %v5438_v49 = vsel %vm1939_vm9, %v5430_v61, %v8710_v1  ;;  %v5439_v7 = vsel %vm1939_vm9, %v5431_v43, %v8711_v34  ;;  %vm12875_vm9 = vmmov %vm12872_vm4 }
 0x569   : > { %v5360_v51 = vpop.permute.xlu1 %5359 }
 0x56d   : > { %v8714_v17 = vpop.permute.xlu1 %8713 }
 0x56e   : > { %v8716_v42 = vunpack.i.h.bf16 %v8714_v17  ;;  %v8715_v11 = vunpack.i.l.bf16 %v8714_v17 }
 0x570   : > { %v5446_v22 = vsel %vm2005_vm11, %v5438_v49, %v8715_v11  ;;  %v5447_v63 = vsel %vm2005_vm11, %v5439_v7, %v8716_v42  ;;  %v8924_v11 = vld [vmem:[%s12730_s9 + $0x20] sm:$0xff]  }
 0x571   : > { %v8719_v13 = vpop.permute.xlu1 %8718 }
 0x572   : > { %v8721_v52 = vunpack.i.h.bf16 %v8719_v13  ;;  %v8720_v16 = vunpack.i.l.bf16 %v8719_v13 }
 0x574   : > { %v5454_v33 = vsel %vm3574_vm14, %v5446_v22, %v8720_v16  ;;  %v5455_v8 = vsel %vm3574_vm14, %v5447_v63, %v8721_v52  ;;  %vm5945_vm14 = vcmask 916480  }
 0x575   : > { %v8724_v5 = vpop.permute.xlu1 %8723  ;;  %v5462_v0 = vsel %vm3607_vm15, %v5454_v33, %v5360_v51  ;;  %v5463_v38 = vsel %vm3607_vm15, %v5455_v8, %v8555_v39  ;;  %v8921_v39 = vld [vmem:[%s12730_s9 + $0x8] sm:$0xff]  }
 0x576   : > { %v8726_v32 = vunpack.i.h.bf16 %v8724_v5  ;;  %v8725_v56 = vunpack.i.l.bf16 %v8724_v5  ;;  %6056 = vmatpush1.bf16.msra.mxu1 %v8921_v39  ;;  %v8925_v5 = vld [vmem:[%s12730_s9 + $0x28] sm:$0xff]  }
 0x577   : > { %6057 = vmatprep.subr.bf16.mxu1 %v9060_v54 }
 0x578   : > { %v5470_v20 = vsel %vm3640_vm6, %v5462_v0, %v8725_v56  ;;  %v5471_v35 = vsel %vm3640_vm6, %v5463_v38, %v8726_v32 }
 0x579   : > { %v8729_v47 = vpop.permute.xlu1 %8728 }
 0x57a   : > { %v8731_v25 = vunpack.i.h.bf16 %v8729_v47  ;;  %v8730_v62 = vunpack.i.l.bf16 %v8729_v47  ;;  %6058 = vmatpush1.bf16.msra.mxu1 %v8922_v31 }
 0x57b   : > { %6059 = vmatprep.subr.bf16.mxu1 %v9060_v54 }
 0x57c   : > { %v5478_v53 = vsel %vm3673_vm8, %v5470_v20, %v8730_v62  ;;  %v5479_v15 = vsel %vm3673_vm8, %v5471_v35, %v8731_v25 }
 0x57d   : > { %v5483_v12 = vpack.c.bf16 %v5479_v15, %v5478_v53 }
 0x57e   : > { %6060 = vmatpush1.bf16.msra.mxu1 %v8923_v46 }
 0x57f   : > { %7209 = vmatmul.mubr.msk.bf16.gmra.mrb[36].mxu1 %vm12875_vm9, %v5483_v12  ;;  %6061 = vmatprep.subr.bf16.mxu1 %v9060_v54 }
 0x582   : > { %6062 = vmatpush1.bf16.msra.mxu1 %v8924_v11 }
 0x583   : > { %6063 = vmatprep.subr.bf16.mxu1 %v9060_v54 }
 0x586   : > { %6064 = vmatpush1.bf16.msra.mxu1 %v8925_v5 }
 0x587   : > { %6065 = vmatprep.subr.bf16.mxu1 %v9060_v54 }
 0x58a   : > { %6066 = vmatpush1.bf16.msra.mxu1 %v8926_v14 }
 0x58b   : > { %6067 = vmatprep.subr.bf16.mxu1 %v9060_v54 }
 0x5e0   : > { %v7206_v59 = vpop.f32.mrb[32].mxu1 }
 0x5e1   : > { %v5585_v41 = vadd.f32 %v7206_v59, %v12185_v19  ;;  %v5576_v23 = vpop.f32.mrb[33].mxu1 }
 0x5e2   : > { %v5577_v55 = vadd.f32 %v12185_v19, %v5576_v23  ;;  %v7207_v36 = vpop.f32.mrb[34].mxu1 }
 0x5e3   : > { %v5609_v48 = vmax.f32 %v5585_v41, 0.0  ;;  %v5588_v3 = vadd.f32 %v7207_v36, %v12185_v19  ;;  %v5579_v6 = vpop.f32.mrb[35].mxu1 }
 0x5e4   : > { %v5607_v26 = vmax.f32 %v5577_v55, 0.0  ;;  %v5580_v21 = vadd.f32 %v12185_v19, %v5579_v6 }
 0x5e5   : > { %v5625_v44 = vrot.slane %v5609_v48, 7  ;;  %v5610_v51 = vmax.f32 %v5588_v3, 0.0 }
 0x5e6   : > { %v5623_v17 = vrot.slane %v5607_v26, 7  ;;  %v5608_v57 = vmax.f32 %v5580_v21, 0.0  ;;  %v8927_v21 = vld [vmem:[%s12730_s9 + $0x38] sm:$0xff]  }
 0x5e7   : > { %v12200_v4 = vsel %vm666_vm0, 0.0, %v5625_v44  ;;  %v5649_v60 = vsel %vm666_vm0, %v5625_v44, 0.0  ;;  %v5626_v2 = vrot.slane %v5610_v51, 7  ;;  %6068 = vmatpush1.bf16.msra.mxu1 %v8927_v21 }
 0x5e8   : > { %v5675_v34 = vrot.slane %v12200_v4, 1  ;;  %v5676_v1 = vrot.slane %v5649_v60, 1  ;;  %v5696_v13 = vrot.slane %v12200_v4, 2  ;;  %v5697_v42 = vrot.slane %v5649_v60, 2  ;;  %6069 = vmatprep.subr.bf16.mxu1 %v9060_v54  ;;  %v8928_v60 = vld [vmem:[%s12730_s9 + $0x40] sm:$0xff]  }
 0x5e9   : > { %v12210_v45 = vsel %vm666_vm0, 0.0, %v5626_v2  ;;  %v12213_v27 = vsel %vm666_vm0, 0.0, %v5623_v17  ;;  %v5647_v52 = vsel %vm666_vm0, %v5623_v17, 0.0  ;;  %v5650_v16 = vsel %vm666_vm0, %v5626_v2, 0.0 }
 0x5ea   : > { %v5677_v61 = vsel %vm832_vm2, %v5675_v34, %v5676_v1  ;;  %v5698_v43 = vsel %vm913_vm1, %v5696_v13, %v5697_v42  ;;  %v5624_v49 = vrot.slane %v5608_v57, 7  ;;  %v8732_v7 = vpack.i.bf16 %v12210_v45, %v12200_v4 }
 0x5eb   : > { %v5669_v22 = vrot.slane %v12213_v27, 1  ;;  %v5670_v63 = vrot.slane %v5647_v52, 1  ;;  %v5690_v33 = vrot.slane %v12213_v27, 2  ;;  %v5691_v8 = vrot.slane %v5647_v52, 2  ;;  %6070 = vmatpush1.bf16.msra.mxu1 %v8928_v60 }
 0x5ec   : > { %v5678_v32 = vrot.slane %v12210_v45, 1  ;;  %v5679_v56 = vrot.slane %v5650_v16, 1  ;;  %v12229_v47 = vsel %vm666_vm0, 0.0, %v5624_v49  ;;  %v5648_v0 = vsel %vm666_vm0, %v5624_v49, 0.0  ;;  %8733 = vrot.lane.b32.xlu1 %v8732_v7, %s12834_s22 }
 0x5ed   : > { %v5672_v38 = vrot.slane %v12229_v47, 1  ;;  %v5673_v25 = vrot.slane %v5648_v0, 1  ;;  %v5693_v62 = vrot.slane %v12229_v47, 2  ;;  %v5694_v20 = vrot.slane %v5648_v0, 2 }
 0x5ee   : > { %v5699_v35 = vrot.slane %v12210_v45, 2  ;;  %v5700_v53 = vrot.slane %v5650_v16, 2  ;;  %v8737_v15 = vpack.i.bf16 %v12229_v47, %v12213_v27  ;;  %v8742_v12 = vpack.i.bf16 %v12200_v4, %v12229_v47 }
 0x5ef   : > { %v5674_v39 = vsel %vm832_vm2, %v5672_v38, %v5673_v25  ;;  %v5695_v59 = vsel %vm913_vm1, %v5693_v62, %v5694_v20  ;;  %v5671_v31 = vsel %vm832_vm2, %v5669_v22, %v5670_v63  ;;  %v5692_v41 = vsel %vm913_vm1, %v5690_v33, %v5691_v8 }
 0x5f0   : > { %8738 = vrot.lane.b32.xlu0 %v8737_v15, %s12834_s22  ;;  %8743 = vrot.lane.b32.xlu1 %v8742_v12, %s12794_s0  ;;  %v5955_v23 = vpack.c.bf16 %v5698_v43, %v5695_v59  ;;  %v8772_v55 = vpack.i.bf16 %v5695_v59, %v5692_v41  ;;  %v8767_v36 = vpack.i.bf16 %v5674_v39, %v5671_v31 }
 0x5f1   : > { %v8777_v48 = vpack.i.bf16 %v5677_v61, %v5674_v39  ;;  %v8787_v3 = vpack.i.bf16 %v5698_v43, %v5695_v59  ;;  %v8747_v6 = vpack.i.bf16 %v5671_v31, %v11862_v18  ;;  %v8752_v26 = vpack.i.bf16 %v5692_v41, %v11873_v37 }
 0x5f2   : > { %6947 = vmatprep.mubr.msk.bf16.mxu1 %vm1873_vm7, %v5955_v23  ;;  %v12258_v46 = vsel %vm832_vm2, %v5678_v32, %v5679_v56  ;;  %v12261_v44 = vsel %vm913_vm1, %v5699_v35, %v5700_v53 }
 0x5f3   : > { %v8757_v51 = vpack.i.bf16 %v12258_v46, %v5677_v61  ;;  %v8762_v17 = vpack.i.bf16 %v12261_v44, %v5698_v43 }
 0x5f4   : > { %8748 = vrot.lane.b32.xlu0 %v8747_v6, %s12822_s2  ;;  %8753 = vrot.lane.b32.xlu1 %v8752_v26, %s12821_s20 }
 0x5f8   : > { %8758 = vrot.lane.b32.xlu0 %v8757_v51, %s12838_s26  ;;  %8763 = vrot.lane.b32.xlu1 %v8762_v17, %s12795_s27 }
 0x5fc   : > { %8773 = vrot.lane.b32.xlu0 %v8772_v55, %s12795_s27  ;;  %8768 = vrot.lane.b32.xlu1 %v8767_v36, %s12838_s26 }
 0x600   : > { %8778 = vrot.lane.b32.xlu0 %v8777_v48, %s12793_s21  ;;  %8783 = vrot.lane.b32.xlu1 %v8777_v48, %s12822_s2 }
 0x604   : > { %8788 = vrot.lane.b32.xlu0 %v8787_v3, %s12821_s20 }
 0x652   : > { %v7210_v54 = vpop.f32.mrb[36].mxu1 }
 0x653   : > { %v5601_v2 = vadd.f32 %v7210_v54, %v12185_v19  ;;  %v5592_v57 = vpop.f32.mrb[37].mxu1 }
 0x654   : > { %v5593_v34 = vadd.f32 %v12185_v19, %v5592_v57  ;;  %v7211_v1 = vpop.f32.mrb[38].mxu1 }
 0x655   : > { %v5613_v13 = vmax.f32 %v5601_v2, 0.0  ;;  %v5604_v42 = vadd.f32 %v7211_v1, %v12185_v19  ;;  %v5595_v11 = vpop.f32.mrb[39].mxu1 }
 0x656   : > { %v5611_v52 = vmax.f32 %v5593_v34, 0.0  ;;  %v5596_v16 = vadd.f32 %v12185_v19, %v5595_v11 }
 0x657   : > { %v5629_v61 = vrot.slane %v5613_v13, 7  ;;  %v5614_v43 = vmax.f32 %v5604_v42, 0.0 }
 0x658   : > { %v5627_v49 = vrot.slane %v5611_v52, 7  ;;  %v5612_v63 = vmax.f32 %v5596_v16, 0.0 }
 0x659   : > { %v12283_v7 = vsel %vm666_vm0, 0.0, %v5629_v61  ;;  %v5653_v5 = vsel %vm666_vm0, %v5629_v61, 0.0  ;;  %v5630_v22 = vrot.slane %v5614_v43, 7 }
 0x65a   : > { %v12287_v33 = vsel %vm666_vm0, 0.0, %v5627_v49  ;;  %v5651_v8 = vsel %vm666_vm0, %v5627_v49, 0.0  ;;  %v5687_v56 = vrot.slane %v12283_v7, 1  ;;  %v5688_v0 = vrot.slane %v5653_v5, 1 }
 0x65b   : > { %v12291_v32 = vsel %vm666_vm0, 0.0, %v5630_v22  ;;  %v5654_v19 = vsel %vm666_vm0, %v5630_v22, 0.0  ;;  %v5708_v38 = vrot.slane %v12283_v7, 2  ;;  %v5709_v25 = vrot.slane %v5653_v5, 2 }
 0x65c   : > { %v5681_v62 = vrot.slane %v12287_v33, 1  ;;  %v5713_v20 = vrot.slane %v12291_v32, 1  ;;  %v5714_v35 = vrot.slane %v5654_v19, 1  ;;  %v5682_v53 = vrot.slane %v5651_v8, 1 }
 0x65d   : > { %v5702_v15 = vrot.slane %v12287_v33, 2  ;;  %v5703_v12 = vrot.slane %v5651_v8, 2  ;;  %v5628_v14 = vrot.slane %v5612_v63, 7  ;;  %v5716_v39 = vrot.slane %v12291_v32, 2 }
 0x65e   : > { %v5717_v59 = vrot.slane %v5654_v19, 2  ;;  %v8792_v31 = vpack.i.bf16 %v12287_v33, %v12210_v45  ;;  %v8797_v41 = vpack.i.bf16 %v12291_v32, %v12283_v7  ;;  %v5689_v23 = vsel %vm832_vm2, %v5687_v56, %v5688_v0  ;;  %v12327_v34 = vpop.permute.xlu1 %8733 }
 0x65f   : > { %v12306_v55 = vsel %vm666_vm0, 0.0, %v5628_v14  ;;  %v5652_v36 = vsel %vm666_vm0, %v5628_v14, 0.0  ;;  %v12310_v48 = vsel %vm832_vm2, %v5713_v20, %v5714_v35  ;;  %v5683_v51 = vsel %vm832_vm2, %v5681_v62, %v5682_v53 }
 0x660   : > { %v5684_v3 = vrot.slane %v12306_v55, 1  ;;  %v5685_v6 = vrot.slane %v5652_v36, 1  ;;  %v5705_v26 = vrot.slane %v12306_v55, 2  ;;  %v5706_v21 = vrot.slane %v5652_v36, 2  ;;  %8793 = vrot.lane.b32.xlu0 %v8792_v31, %s12794_s0  ;;  %8798 = vrot.lane.b32.xlu1 %v8797_v41, %s12834_s22 }
 0x661   : > { %v12318_v17 = vsel %vm913_vm1, %v5702_v15, %v5703_v12  ;;  %v8802_v60 = vpack.i.bf16 %v12306_v55, %v12287_v33  ;;  %v8827_v54 = vpack.i.bf16 %v12310_v48, %v5689_v23  ;;  %v8807_v1 = vpack.i.bf16 %v12283_v7, %v12306_v55 }
 0x662   : > { %v5686_v2 = vsel %vm832_vm2, %v5684_v3, %v5685_v6  ;;  %v12325_v57 = vsel %vm913_vm1, %v5705_v26, %v5706_v21  ;;  %v12332_v13 = vsel %vm913_vm1, %v5716_v39, %v5717_v59  ;;  %v12335_v42 = vsel %vm913_vm1, %v5708_v38, %v5709_v25  ;;  %v8739_v5 = vpop.permute.xlu0 %8738  ;;  %v8744_v22 = vpop.permute.xlu1 %8743 }
 0x663   : > { %v8837_v11 = vpack.i.bf16 %v12325_v57, %v12318_v17  ;;  %v8832_v52 = vpack.i.bf16 %v5686_v2, %v5683_v51  ;;  %v8842_v16 = vpack.i.bf16 %v5689_v23, %v5686_v2  ;;  %v8857_v61 = vpack.i.bf16 %v12335_v42, %v12325_v57 }
 0x664   : > { %8803 = vrot.lane.b32.xlu0 %v8802_v60, %s12834_s22  ;;  %8808 = vrot.lane.b32.xlu1 %v8807_v1, %s12794_s0  ;;  %v8852_v43 = vpack.i.bf16 %v12332_v13, %v12335_v42  ;;  %v5959_v49 = vpack.c.bf16 %v12335_v42, %v12325_v57  ;;  %v8817_v63 = vpack.i.bf16 %v5683_v51, %v12258_v46  ;;  %v8741_v14 = vunpack.i.h.bf16 %v8739_v5 }
 0x665   : > { %v8822_v56 = vpack.i.bf16 %v12318_v17, %v12261_v44  ;;  %v8740_v39 = vunpack.i.l.bf16 %v8739_v5  ;;  %vm5927_vm1 = vcmask 654336   ;;  %vm5936_vm2 = vcmask 785408  }
 0x666   : > { %v8749_v8 = vpop.permute.xlu0 %8748  ;;  %v8754_v19 = vpop.permute.xlu1 %8753  ;;  %v8746_v26 = vunpack.i.h.bf16 %v8744_v22  ;;  %v8745_v21 = vunpack.i.l.bf16 %v8744_v22 }
 0x667   : > { %v8751_v0 = vunpack.i.h.bf16 %v8749_v8  ;;  %v8750_v38 = vunpack.i.l.bf16 %v8749_v8  ;;  %v8756_v25 = vunpack.i.h.bf16 %v8754_v19  ;;  %v8755_v62 = vunpack.i.l.bf16 %v8754_v19 }
 0x668   : > { %8818 = vrot.lane.b32.xlu0 %v8817_v63, %s12822_s2  ;;  %8813 = vrot.lane.b32.xlu1 %v8817_v63, %s12793_s21 }
 0x669   : > { %v5896_v35 = vsel %vm1873_vm7, %v12213_v27, %v8751_v0  ;;  %v5895_v53 = vsel %vm1873_vm7, %v12868_v58, %v8750_v38  ;;  %v8862_v0 = vpack.i.bf16 %v12868_v58, %v12291_v32  ;;  %v5957_v58 = vpack.c.bf16 %v12318_v17, %v12261_v44 }
 0x66a   : > { %v12354_v20 = vpop.permute.xlu0 %8758  ;;  %v12356_v46 = vpop.permute.xlu1 %8763  ;;  %v5903_v15 = vsel %vm2005_vm11, %v5895_v53, %v8755_v62  ;;  %v5904_v12 = vsel %vm2005_vm11, %v5896_v35, %v8756_v25 }
 0x66b   : > { %v5911_v3 = vsel %vm3607_vm15, %v5903_v15, %v8740_v39  ;;  %v5912_v6 = vsel %vm3607_vm15, %v5904_v12, %v8741_v14  ;;  %v8736_v15 = vunpack.i.h.bf16 %v12327_v34  ;;  %v8735_v12 = vunpack.i.l.bf16 %v12327_v34 }
 0x66c   : > { %8828 = vrot.lane.b32.xlu0 %v8827_v54, %s12838_s26  ;;  %8823 = vrot.lane.b32.xlu1 %v8822_v56, %s12821_s20  ;;  %v8765_v34 = vunpack.i.l.bf16 %v12356_v46 }
 0x66e   : > { %v8774_v59 = vpop.permute.xlu0 %8773  ;;  %v8769_v31 = vpop.permute.xlu1 %8768 }
 0x66f   : > { %v8771_v41 = vunpack.i.h.bf16 %v8769_v31  ;;  %v8770_v23 = vunpack.i.l.bf16 %v8769_v31  ;;  %v8776_v27 = vunpack.i.h.bf16 %v8774_v59  ;;  %v8775_v36 = vunpack.i.l.bf16 %v8774_v59 }
 0x670   : > { %8838 = vrot.lane.b32.xlu0 %v8837_v11, %s12795_s27  ;;  %8833 = vrot.lane.b32.xlu1 %v8832_v52, %s12838_s26 }
 0x671   : > { %v5919_v51 = vsel %vm3673_vm8, %v5911_v3, %v8770_v23  ;;  %v5920_v60 = vsel %vm3673_vm8, %v5912_v6, %v8771_v41 }
 0x672   : > { %v5928_v54 = vsel %vm5927_vm1, %v5919_v51, %v8775_v36  ;;  %v5929_v2 = vsel %vm5927_vm1, %v5920_v60, %v8776_v27  ;;  %v8779_v1 = vpop.permute.xlu0 %8778  ;;  %v8784_v11 = vpop.permute.xlu1 %8783 }
 0x673   : > { %v8781_v52 = vunpack.i.h.bf16 %v8779_v1  ;;  %v8780_v5 = vunpack.i.l.bf16 %v8779_v1  ;;  %v5937_v63 = vsel %vm5936_vm2, %v5928_v54, %v8745_v21  ;;  %v5938_v8 = vsel %vm5936_vm2, %v5929_v2, %v8746_v26  ;;  %v8929_v26 = vld [vmem:[%s12732_s11] sm:$0xff]  }
 0x674   : > { %8843 = vrot.lane.b32.xlu0 %v8842_v16, %s12793_s21  ;;  %8848 = vrot.lane.b32.xlu1 %v8842_v16, %s12822_s2  ;;  %v8786_v16 = vunpack.i.h.bf16 %v8784_v11  ;;  %v8785_v19 = vunpack.i.l.bf16 %v8784_v11 }
 0x675   : > { %v5946_v22 = vsel %vm5945_vm14, %v5937_v63, %v8780_v5  ;;  %v5947_v56 = vsel %vm5945_vm14, %v5938_v8, %v8781_v52  ;;  %7212 = vmatprep.subr.bf16.mxu0 %v8929_v26  ;;  %v12876_v63 = vmov 0.0  }
 0x676   : > { %v5954_v38 = vpack.c.bf16 %v5947_v56, %v5946_v22  ;;  %v5898_v25 = vsel %vm1873_vm7, %v12200_v4, %v8786_v16  ;;  %v5897_v62 = vsel %vm1873_vm7, %v12229_v47, %v8785_v19  ;;  %v8789_v35 = vpop.permute.xlu0 %8788  ;;  %v8761_v4 = vunpack.i.h.bf16 %v12354_v20  ;;  %7213 = vmatpush3.bf16.msra.mxu0 %v8929_v26 }
 0x677   : > { %v8791_v53 = vunpack.i.h.bf16 %v8789_v35  ;;  %v8760_v47 = vunpack.i.l.bf16 %v12354_v20  ;;  %7222 = vmatprep.subr.bf16.mxu0 %v12876_v63 }
 0x678   : > { %8858 = vrot.lane.b32.xlu0 %v8857_v61, %s12821_s20  ;;  %8853 = vrot.lane.b32.xlu1 %v8852_v43, %s12795_s27  ;;  %v8867_v61 = vpack.i.bf16 %v11862_v18, %v12310_v48  ;;  %v8790_v43 = vunpack.i.l.bf16 %v8789_v35  ;;  %v8766_v48 = vunpack.i.h.bf16 %v12356_v46  ;;  %s12881_s27 = sld [smem:[#allocation23_spill]] }
 0x679   : > { %v5906_v32 = vsel %vm2005_vm11, %v5898_v25, %v8791_v53  ;;  %6086 = vmatmul.mubr.bf16.vlgmr.msra.gmra.mrb[40].mxu1 %v5954_v38 }
 0x67a   : > { %v5905_v18 = vsel %vm2005_vm11, %v5897_v62, %v8790_v43  ;;  %v5914_v14 = vsel %vm3607_vm15, %v5906_v32, %v8736_v15  ;;  %6948 = vmatprep.mubr.msk.bf16.mxu1 %vm1873_vm7, %v5957_v58 }
 0x67b   : > { %v5913_v39 = vsel %vm3607_vm15, %v5905_v18, %v8735_v12  ;;  %v5922_v17 = vsel %vm3673_vm8, %v5914_v14, %v8761_v4 }
 0x67c   : > { %8863 = vrot.lane.b32.xlu0 %v8862_v0, %s12794_s0  ;;  %8868 = vrot.lane.b32.xlu1 %v8867_v61, %s12793_s21  ;;  %v5921_v44 = vsel %vm3673_vm8, %v5913_v39, %v8760_v47  ;;  %v5931_v46 = vsel %vm5927_vm1, %v5922_v17, %v8766_v48 }
 0x67d   : > { %v5930_v20 = vsel %vm5927_vm1, %v5921_v44, %v8765_v34 }
 0x680   : > { %6126 = vrot.lane.b32.xlu0 %v11850_v24, %s12817_s25  ;;  %6128 = vrot.lane.b32.xlu1 %v11889_v50, %s12817_s25 }
 0x684   : > { %6130 = vrot.lane.b32.xlu0 %v11915_v40, %s12817_s25  ;;  %6132 = vrot.lane.b32.xlu1 %v11943_v29, %s12817_s25 }
 0x688   : > { %6134 = vrot.lane.b32.xlu0 %v11978_v30, %s12817_s25  ;;  %6136 = vrot.lane.b32.xlu1 %v12014_v10, %s12817_s25 }
 0x68c   : > { %6138 = vrot.lane.b32.xlu0 %v12043_v9, %s12817_s25  ;;  %6140 = vrot.lane.b32.xlu1 %v12097_v28, %s12817_s25 }
 0x6d2   : > { %v8794_v24 = vpop.permute.xlu0 %8793  ;;  %v12423_v50 = vpop.permute.xlu1 %8798 }
 0x6d3   : > { %v8796_v31 = vunpack.i.h.bf16 %v8794_v24  ;;  %v8795_v41 = vunpack.i.l.bf16 %v8794_v24  ;;  %v8800_v24 = vunpack.i.l.bf16 %v12423_v50 }
 0x6d5   : > { %v5939_v36 = vsel %vm5936_vm2, %v5930_v20, %v8795_v41  ;;  %v5940_v10 = vsel %vm5936_vm2, %v5931_v46, %v8796_v31  ;;  %v5961_v20 = vpack.c.bf16 %v11873_v37, %v12332_v13  ;;  %v8801_v46 = vunpack.i.h.bf16 %v12423_v50 }
 0x6d6   : > { %v8804_v59 = vpop.permute.xlu0 %8803  ;;  %v8809_v40 = vpop.permute.xlu1 %8808 }
 0x6d7   : > { %v8806_v8 = vunpack.i.h.bf16 %v8804_v59  ;;  %v8805_v16 = vunpack.i.l.bf16 %v8804_v59  ;;  %v8811_v42 = vunpack.i.h.bf16 %v8809_v40 }
 0x6da   : > { %v8819_v29 = vpop.permute.xlu0 %8818  ;;  %v8814_v23 = vpop.permute.xlu1 %8813 }
 0x6db   : > { %v8816_v27 = vunpack.i.h.bf16 %v8814_v23  ;;  %v8815_v30 = vunpack.i.l.bf16 %v8814_v23  ;;  %v8821_v3 = vunpack.i.h.bf16 %v8819_v29  ;;  %v8820_v9 = vunpack.i.l.bf16 %v8819_v29 }
 0x6dd   : > { %v5948_v6 = vsel %vm5945_vm14, %v5939_v36, %v8815_v30  ;;  %v5949_v28 = vsel %vm5945_vm14, %v5940_v10, %v8816_v27  ;;  %v5900_v1 = vsel %vm1873_vm7, %v12287_v33, %v8821_v3  ;;  %v5899_v11 = vsel %vm1873_vm7, %v12210_v45, %v8820_v9 }
 0x6de   : > { %v12432_v21 = vpop.permute.xlu0 %8828  ;;  %v8824_v51 = vpop.permute.xlu1 %8823  ;;  %v5956_v60 = vpack.c.bf16 %v5949_v28, %v5948_v6 }
 0x6df   : > { %v8826_v54 = vunpack.i.h.bf16 %v8824_v51  ;;  %v8825_v2 = vunpack.i.l.bf16 %v8824_v51  ;;  %v8831_v31 = vunpack.i.h.bf16 %v12432_v21  ;;  %v8830_v41 = vunpack.i.l.bf16 %v12432_v21 }
 0x6e0   : > { %6094 = vmatmul.mubr.bf16.gmra.mrb[44].mxu1 %v5956_v60 }
 0x6e1   : > { %v5907_v52 = vsel %vm2005_vm11, %v5899_v11, %v8825_v2  ;;  %v5908_v5 = vsel %vm2005_vm11, %v5900_v1, %v8826_v54  ;;  %6949 = vmatprep.mubr.msk.bf16.mxu1 %vm1873_vm7, %v5959_v49  ;;  %v8810_v49 = vunpack.i.l.bf16 %v8809_v40  ;;  %v12481_v1 = vld [vmem:[%s12731_s10] ss:$0 sm:$0xff] }
 0x6e2   : > { %v8839_v19 = vpop.permute.xlu0 %8838  ;;  %v8834_v33 = vpop.permute.xlu1 %8833  ;;  %v5915_v38 = vsel %vm3607_vm15, %v5907_v52, %v8805_v16  ;;  %v5916_v25 = vsel %vm3607_vm15, %v5908_v5, %v8806_v8 }
 0x6e3   : > { %v8836_v22 = vunpack.i.h.bf16 %v8834_v33  ;;  %v8835_v56 = vunpack.i.l.bf16 %v8834_v33  ;;  %v8841_v45 = vunpack.i.h.bf16 %v8839_v19  ;;  %v8840_v0 = vunpack.i.l.bf16 %v8839_v19 }
 0x6e5   : > { %v5923_v62 = vsel %vm3673_vm8, %v5915_v38, %v8835_v56  ;;  %v5924_v57 = vsel %vm3673_vm8, %v5916_v25, %v8836_v22 }
 0x6e6   : > { %v5932_v35 = vsel %vm5927_vm1, %v5923_v62, %v8840_v0  ;;  %v5933_v61 = vsel %vm5927_vm1, %v5924_v57, %v8841_v45  ;;  %v8844_v53 = vpop.permute.xlu0 %8843  ;;  %v8849_v43 = vpop.permute.xlu1 %8848 }
 0x6e7   : > { %v8846_v15 = vunpack.i.h.bf16 %v8844_v53  ;;  %v8845_v12 = vunpack.i.l.bf16 %v8844_v53  ;;  %v8851_v58 = vunpack.i.h.bf16 %v8849_v43  ;;  %v8850_v4 = vunpack.i.l.bf16 %v8849_v43 }
 0x6e8   : > { %v5941_v47 = vsel %vm5936_vm2, %v5932_v35, %v8810_v49  ;;  %v5942_v32 = vsel %vm5936_vm2, %v5933_v61, %v8811_v42 }
 0x6e9   : > { %v5950_v18 = vsel %vm5945_vm14, %v5941_v47, %v8845_v12  ;;  %v5951_v48 = vsel %vm5945_vm14, %v5942_v32, %v8846_v15  ;;  %v5902_v59 = vsel %vm1873_vm7, %v12283_v7, %v8851_v58  ;;  %v5901_v40 = vsel %vm1873_vm7, %v12306_v55, %v8850_v4 }
 0x6ea   : > { %v8859_v34 = vpop.permute.xlu0 %8858  ;;  %v8854_v14 = vpop.permute.xlu1 %8853  ;;  %v5958_v39 = vpack.c.bf16 %v5951_v48, %v5950_v18 }
 0x6eb   : > { %v8861_v44 = vunpack.i.h.bf16 %v8859_v34  ;;  %v8860_v17 = vunpack.i.l.bf16 %v8859_v34  ;;  %v8856_v50 = vunpack.i.h.bf16 %v8854_v14  ;;  %v8855_v7 = vunpack.i.l.bf16 %v8854_v14 }
 0x6ec   : > { %6102 = vmatmul.mubr.bf16.gmra.mrb[48].mxu1 %v5958_v39 }
 0x6ed   : > { %v5910_v29 = vsel %vm2005_vm11, %v5902_v59, %v8861_v44  ;;  %v5909_v23 = vsel %vm2005_vm11, %v5901_v40, %v8860_v17  ;;  %6950 = vmatprep.mubr.msk.bf16.mxu1 %vm1873_vm7, %v5961_v20 }
 0x6ee   : > { %v5918_v37 = vsel %vm3607_vm15, %v5910_v29, %v8801_v46  ;;  %v5917_v13 = vsel %vm3607_vm15, %v5909_v23, %v8800_v24  ;;  %v8864_v27 = vpop.permute.xlu0 %8863  ;;  %v8869_v30 = vpop.permute.xlu1 %8868 }
 0x6ef   : > { %v5925_v55 = vsel %vm3673_vm8, %v5917_v13, %v8830_v41  ;;  %v5926_v36 = vsel %vm3673_vm8, %v5918_v37, %v8831_v31  ;;  %v8866_v10 = vunpack.i.h.bf16 %v8864_v27  ;;  %v8865_v3 = vunpack.i.l.bf16 %v8864_v27 }
 0x6f0   : > { %v5934_v9 = vsel %vm5927_vm1, %v5925_v55, %v8855_v7  ;;  %v5935_v6 = vsel %vm5927_vm1, %v5926_v36, %v8856_v50  ;;  %v8871_v28 = vunpack.i.h.bf16 %v8869_v30  ;;  %v8870_v26 = vunpack.i.l.bf16 %v8869_v30 }
 0x6f1   : > { %v5943_v21 = vsel %vm5936_vm2, %v5934_v9, %v8865_v3  ;;  %v5944_v51 = vsel %vm5936_vm2, %v5935_v6, %v8866_v10 }
 0x6f2   : > { %v5952_v60 = vsel %vm5945_vm14, %v5943_v21, %v8870_v26  ;;  %v5953_v54 = vsel %vm5945_vm14, %v5944_v51, %v8871_v28  ;;  %v6127_v52 = vpop.permute.xlu0 %6126  ;;  %v6129_v45 = vpop.permute.xlu1 %6128 }
 0x6f3   : > { %v5960_v2 = vpack.c.bf16 %v5953_v54, %v5952_v60  ;;  %v6150_v56 = vsel %vm1807_vm5, 0.0, %v6127_v52  ;;  %v6151_v25 = vsel %vm1807_vm5, 0.0, %v6129_v45 }
 0x6f5   : > { %6110 = vmatmul.mubr.bf16.gmra.mrb[52].mxu1 %v5960_v2 }
 0x6f6   : > { %v6131_v31 = vpop.permute.xlu0 %6130  ;;  %v6133_v27 = vpop.permute.xlu1 %6132 }
 0x6f7   : > { %v6152_v7 = vsel %vm1807_vm5, 0.0, %v6131_v31  ;;  %v6153_v36 = vsel %vm1807_vm5, 0.0, %v6133_v27 }
 0x74c   : > { %v6087_v11 = vpop.f32.mrb[40].mxu1 }
 0x74d   : > { %v6088_v5 = vadd.f32 %v12481_v1, %v6087_v11  ;;  %v6089_v8 = vpop.f32.mrb[41].mxu1 }
 0x74e   : > { %v6090_v16 = vpop.f32.mrb[42].mxu1 }
 0x74f   : > { %v6118_v19 = vmax.f32 %v6088_v5, 0.0  ;;  %v6091_v33 = vadd.f32 %v12481_v1, %v6090_v16  ;;  %v6092_v22 = vpop.f32.mrb[43].mxu1 }
 0x751   : > { %v6158_v0 = vadd.f32 %v6150_v56, %v6118_v19  ;;  %v6119_v38 = vmax.f32 %v6091_v33, 0.0  ;;  %v6135_v56 = vpop.permute.xlu0 %6134 }
 0x753   : > { %v6174_v62 = vrot.slane %v6158_v0, 1  ;;  %v6190_v57 = vrot.slane %v6158_v0, 2  ;;  %v6206_v42 = vrot.slane %v6158_v0, 3  ;;  %v6159_v49 = vadd.f32 %v6151_v25, %v6119_v38 }
 0x754   : > { %v6246_v53 = vrot.slane %v6158_v0, 4 }
 0x755   : > { %v6222_v35 = vsel %vm666_vm0, %v6158_v0, %v6174_v62  ;;  %v6262_v61 = vsel %vm666_vm0, %v6174_v62, %v6190_v57  ;;  %v6175_v43 = vrot.slane %v6159_v49, 1  ;;  %v6191_v15 = vrot.slane %v6159_v49, 2 }
 0x756   : > { %v6207_v12 = vrot.slane %v6159_v49, 3  ;;  %v6247_v58 = vrot.slane %v6159_v49, 4  ;;  %v6298_v4 = vpack.c.bf16 %v6159_v49, %v6158_v0  ;;  %v6230_v47 = vsel %vm2130_vm3, %v6222_v35, %v6190_v57 }
 0x757   : > { %v6270_v32 = vsel %vm2130_vm3, %v6262_v61, %v6206_v42  ;;  %v6223_v18 = vsel %vm666_vm0, %v6159_v49, %v6175_v43  ;;  %v6238_v48 = vsel %vm4459_vm12, %v6230_v47, %v6206_v42  ;;  %v6263_v34 = vsel %vm666_vm0, %v6175_v43, %v6191_v15 }
 0x758   : > { %v6278_v14 = vsel %vm4459_vm12, %v6270_v32, %v6246_v53  ;;  %7214 = vmatprep.mubr.msk.bf16.mxu0 %vm1873_vm7, %v6298_v4  ;;  %v6231_v39 = vsel %vm2130_vm3, %v6223_v18, %v6191_v15  ;;  %v6271_v44 = vsel %vm2130_vm3, %v6263_v34, %v6207_v12  ;;  %v6154_v15 = vsel %vm1807_vm5, 0.0, %v6135_v56 }
 0x759   : > { %v6239_v17 = vsel %vm4459_vm12, %v6231_v39, %v6207_v12  ;;  %v6279_v20 = vsel %vm4459_vm12, %v6271_v44, %v6247_v58  ;;  %v6286_v46 = vmax.f32 %v6238_v48, %v6278_v14  ;;  %v6137_v12 = vpop.permute.xlu1 %6136 }
 0x75a   : > { %v6287_v24 = vmax.f32 %v6239_v17, %v6279_v20  ;;  %v6155_v32 = vsel %vm1807_vm5, 0.0, %v6137_v12 }
 0x75c   : > { %v12500_v59 = vmax.f32 %v6286_v46, %v6287_v24 }
 0x75d   : > { %v6141_v27 = vpop.permute.xlu1 %6140 }
 0x7b3   : > { %v6095_v40 = vpop.f32.mrb[44].mxu1 }
 0x7b4   : > { %v6096_v41 = vadd.f32 %v12481_v1, %v6095_v40  ;;  %v6097_v29 = vpop.f32.mrb[45].mxu1 }
 0x7b5   : > { %v6098_v23 = vpop.f32.mrb[46].mxu1  ;;  %v6139_v29 = vpop.permute.xlu0 %6138 }
 0x7b6   : > { %v6120_v37 = vmax.f32 %v6096_v41, 0.0  ;;  %v6099_v13 = vadd.f32 %v12481_v1, %v6098_v23  ;;  %v6100_v50 = vpop.f32.mrb[47].mxu1 }
 0x7b8   : > { %v6160_v30 = vadd.f32 %v6152_v7, %v6120_v37  ;;  %v6121_v55 = vmax.f32 %v6099_v13, 0.0 }
 0x7ba   : > { %v6176_v10 = vrot.slane %v6160_v30, 1  ;;  %v6192_v3 = vrot.slane %v6160_v30, 2  ;;  %v6208_v9 = vrot.slane %v6160_v30, 3  ;;  %v6161_v6 = vadd.f32 %v6153_v36, %v6121_v55 }
 0x7bb   : > { %v6248_v21 = vrot.slane %v6160_v30, 4 }
 0x7bc   : > { %v6224_v28 = vsel %vm666_vm0, %v6160_v30, %v6176_v10  ;;  %v6264_v26 = vsel %vm666_vm0, %v6176_v10, %v6192_v3  ;;  %v6177_v51 = vrot.slane %v6161_v6, 1  ;;  %v6193_v60 = vrot.slane %v6161_v6, 2 }
 0x7bd   : > { %v6209_v54 = vrot.slane %v6161_v6, 3  ;;  %v6249_v2 = vrot.slane %v6161_v6, 4  ;;  %v6299_v11 = vpack.c.bf16 %v6161_v6, %v6160_v30  ;;  %v6232_v52 = vsel %vm2130_vm3, %v6224_v28, %v6192_v3 }
 0x7be   : > { %v6272_v5 = vsel %vm2130_vm3, %v6264_v26, %v6208_v9  ;;  %v6225_v8 = vsel %vm666_vm0, %v6161_v6, %v6177_v51  ;;  %v6240_v19 = vsel %vm4459_vm12, %v6232_v52, %v6208_v9  ;;  %v6265_v33 = vsel %vm666_vm0, %v6177_v51, %v6193_v60 }
 0x7bf   : > { %v6103_v16 = vpop.f32.mrb[48].mxu1  ;;  %v6280_v22 = vsel %vm4459_vm12, %v6272_v5, %v6248_v21  ;;  %7215 = vmatmul.mubr.msk.bf16.vlgmr.msra.gmra.mrb[64].mxu0 %vm1873_vm7, %v6299_v11  ;;  %v6233_v38 = vsel %vm2130_vm3, %v6225_v8, %v6193_v60  ;;  %v6273_v25 = vsel %vm2130_vm3, %v6265_v33, %v6209_v54  ;;  %v6156_v21 = vsel %vm1807_vm5, 0.0, %v6139_v29 }
 0x7c0   : > { %v6104_v45 = vadd.f32 %v12481_v1, %v6103_v16  ;;  %v6105_v0 = vpop.f32.mrb[49].mxu1  ;;  %v6241_v57 = vsel %vm4459_vm12, %v6233_v38, %v6209_v54  ;;  %v6281_v42 = vsel %vm4459_vm12, %v6273_v25, %v6249_v2  ;;  %v6288_v53 = vmax.f32 %v6240_v19, %v6280_v22 }
 0x7c1   : > { %v6106_v62 = vpop.f32.mrb[50].mxu1  ;;  %v6289_v43 = vmax.f32 %v6241_v57, %v6281_v42  ;;  %v6157_v54 = vsel %vm1807_vm5, 0.0, %v6141_v27 }
 0x7c2   : > { %v6122_v49 = vmax.f32 %v6104_v45, 0.0  ;;  %v6107_v35 = vadd.f32 %v12481_v1, %v6106_v62  ;;  %v6108_v61 = vpop.f32.mrb[51].mxu1 }
 0x7c3   : > { %v12522_v47 = vmax.f32 %v6288_v53, %v6289_v43 }
 0x7c4   : > { %v6162_v58 = vadd.f32 %v6154_v15, %v6122_v49  ;;  %v6123_v4 = vmax.f32 %v6107_v35, 0.0 }
 0x7c6   : > { %v6178_v18 = vrot.slane %v6162_v58, 1  ;;  %v6194_v48 = vrot.slane %v6162_v58, 2  ;;  %v6210_v34 = vrot.slane %v6162_v58, 3  ;;  %v6163_v14 = vadd.f32 %v6155_v32, %v6123_v4 }
 0x7c7   : > { %v6250_v44 = vrot.slane %v6162_v58, 4 }
 0x7c8   : > { %v6226_v39 = vsel %vm666_vm0, %v6162_v58, %v6178_v18  ;;  %v6111_v17 = vpop.f32.mrb[52].mxu1  ;;  %v6266_v20 = vsel %vm666_vm0, %v6178_v18, %v6194_v48  ;;  %v6179_v46 = vrot.slane %v6163_v14, 1  ;;  %v6195_v24 = vrot.slane %v6163_v14, 2 }
 0x7c9   : > { %v6211_v40 = vrot.slane %v6163_v14, 3  ;;  %v6251_v31 = vrot.slane %v6163_v14, 4  ;;  %v6113_v41 = vpop.f32.mrb[53].mxu1  ;;  %v6112_v23 = vadd.f32 %v12481_v1, %v6111_v17  ;;  %v6300_v13 = vpack.c.bf16 %v6163_v14, %v6162_v58  ;;  %v8934_v17 = vld [vmem:[%s12734_s13 + $0x50] sm:$0xff]  }
 0x7ca   : > { %v6114_v37 = vpop.f32.mrb[54].mxu1  ;;  %v6234_v50 = vsel %vm2130_vm3, %v6226_v39, %v6194_v48  ;;  %v6274_v7 = vsel %vm2130_vm3, %v6266_v20, %v6210_v34  ;;  %v6227_v30 = vsel %vm666_vm0, %v6163_v14, %v6179_v46  ;;  %v6267_v3 = vsel %vm666_vm0, %v6179_v46, %v6195_v24  ;;  %v8931_v14 = vld [vmem:[%s12734_s13] sm:$0xff]   ;;  %v8932_v39 = vld [vmem:[%s12734_s13 + $0x48] sm:$0xff]   ;;  %v8935_v20 = vld [vmem:[%s12734_s13 + $0x10] sm:$0xff]  }
 0x7cb   : > { %v6115_v55 = vadd.f32 %v12481_v1, %v6114_v37  ;;  %v6116_v36 = vpop.f32.mrb[55].mxu1  ;;  %v6242_v10 = vsel %vm4459_vm12, %v6234_v50, %v6210_v34  ;;  %v6124_v9 = vmax.f32 %v6112_v23, 0.0  ;;  %7218 = vmatprep.mubr.msk.bf16.mxu0 %vm1873_vm7, %v6300_v13  ;;  %v6235_v6 = vsel %vm2130_vm3, %v6227_v30, %v6195_v24  ;;  %v8930_v34 = vld [vmem:[%s12734_s13 + $0x40] sm:$0xff]   ;;  %v8936_v46 = vld [vmem:[%s12734_s13 + $0x58] sm:$0xff]  }
 0x7cc   : > { %v6275_v28 = vsel %vm2130_vm3, %v6267_v3, %v6211_v40  ;;  %v6282_v26 = vsel %vm4459_vm12, %v6274_v7, %v6250_v44  ;;  %v6243_v60 = vsel %vm4459_vm12, %v6235_v6, %v6211_v40  ;;  %7053 = vmatprep.subr.bf16.mxu1 %v8930_v34  ;;  %v8933_v44 = vld [vmem:[%s12734_s13 + $0x8] sm:$0xff]   ;;  %v6951_v24 = vld [vmem:[%s12733_s12] ss:$0 sm:$0xff] }
 0x7cd   : > { %v6125_v51 = vmax.f32 %v6115_v55, 0.0  ;;  %v6283_v1 = vsel %vm4459_vm12, %v6275_v28, %v6251_v31  ;;  %v6164_v2 = vadd.f32 %v6156_v21, %v6124_v9  ;;  %v6290_v5 = vmax.f32 %v6242_v10, %v6282_v26  ;;  %7054 = vmatpush3.bf16.msra.mxu1 %v8931_v14 }
 0x7ce   : > { %v6291_v11 = vmax.f32 %v6243_v60, %v6283_v1  ;;  %7055 = vmatprep.subr.bf16.mxu1 %v8932_v39 }
 0x7cf   : > { %v6165_v52 = vadd.f32 %v6157_v54, %v6125_v51  ;;  %v6180_v8 = vrot.slane %v6164_v2, 1  ;;  %v6196_v16 = vrot.slane %v6164_v2, 2  ;;  %v6212_v19 = vrot.slane %v6164_v2, 3  ;;  %v8937_v51 = vld [vmem:[%s12734_s13 + $0x18] sm:$0xff]  }
 0x7d0   : > { %v6252_v33 = vrot.slane %v6164_v2, 4  ;;  %v12544_v57 = vmax.f32 %v6290_v5, %v6291_v11 }
 0x7d1   : > { %v6181_v22 = vrot.slane %v6165_v52, 1  ;;  %v6197_v56 = vrot.slane %v6165_v52, 2  ;;  %v6213_v45 = vrot.slane %v6165_v52, 3  ;;  %v6253_v0 = vrot.slane %v6165_v52, 4  ;;  %7056 = vmatpush3.bf16.msra.mxu1 %v8933_v44 }
 0x7d2   : > { %v6228_v38 = vsel %vm666_vm0, %v6164_v2, %v6180_v8  ;;  %v6301_v25 = vpack.c.bf16 %v6165_v52, %v6164_v2  ;;  %v6268_v62 = vsel %vm666_vm0, %v6180_v8, %v6196_v16  ;;  %7057 = vmatprep.subr.bf16.mxu1 %v8934_v17  ;;  %v8938_v2 = vld [vmem:[%s12734_s13 + $0x60] sm:$0xff]   ;;  %v8943_v17 = vld [vmem:[%s12734_s13 + $0x30] sm:$0xff]  }
 0x7d3   : > { %v6229_v42 = vsel %vm666_vm0, %v6165_v52, %v6181_v22  ;;  %v6236_v49 = vsel %vm2130_vm3, %v6228_v38, %v6196_v16  ;;  %v6269_v35 = vsel %vm666_vm0, %v6181_v22, %v6197_v56  ;;  %v6276_v61 = vsel %vm2130_vm3, %v6268_v62, %v6212_v19  ;;  %v8940_v62 = vld [vmem:[%s12734_s13 + $0x68] sm:$0xff]  }
 0x7d4   : > { %7219 = vmatmul.mubr.msk.bf16.gmra.mrb[68].mxu0 %vm1873_vm7, %v6301_v25  ;;  %v6237_v53 = vsel %vm2130_vm3, %v6229_v42, %v6197_v56  ;;  %v6244_v43 = vsel %vm4459_vm12, %v6236_v49, %v6212_v19  ;;  %v6277_v15 = vsel %vm2130_vm3, %v6269_v35, %v6213_v45  ;;  %v6284_v12 = vsel %vm4459_vm12, %v6276_v61, %v6252_v33  ;;  %v8941_v42 = vld [vmem:[%s12734_s13 + $0x28] sm:$0xff]  }
 0x7d5   : > { %v6245_v58 = vsel %vm4459_vm12, %v6237_v53, %v6213_v45  ;;  %v6285_v4 = vsel %vm4459_vm12, %v6277_v15, %v6253_v0  ;;  %v6292_v32 = vmax.f32 %v6244_v43, %v6284_v12  ;;  %7058 = vmatpush3.bf16.msra.mxu1 %v8935_v20 }
 0x7d6   : > { %v6293_v18 = vmax.f32 %v6245_v58, %v6285_v4  ;;  %7059 = vmatprep.subr.bf16.mxu1 %v8936_v46 }
 0x7d8   : > { %v6297_v48 = vmax.f32 %v6292_v32, %v6293_v18 }
 0x7d9   : > { %7060 = vmatpush3.bf16.msra.mxu1 %v8937_v51 }
 0x7da   : > { %7061 = vmatprep.subr.bf16.mxu1 %v8938_v2 }
 0x892   : > { %v7216_v40 = vpop.f32.mrb[64].mxu0 }
 0x893   : > { %v6371_v31 = vadd.f32 %v7216_v40, %v6951_v24  ;;  %v6363_v41 = vpop.f32.mrb[65].mxu0 }
 0x894   : > { %v6364_v29 = vadd.f32 %v6951_v24, %v6363_v41  ;;  %v7217_v23 = vpop.f32.mrb[66].mxu0  ;;  %v8945_v41 = vld [vmem:[%s12734_s13 + $0x38] sm:$0xff]  }
 0x895   : > { %v6395_v37 = vrot.slane %v6371_v31, 1  ;;  %v6403_v13 = vrot.slane %v6371_v31, 2  ;;  %v6366_v50 = vpop.f32.mrb[67].mxu0  ;;  %v6411_v30 = vrot.slane %v6371_v31, 3  ;;  %v8946_v23 = vld [vmem:[%s12736_s15] sm:$0xff]  }
 0x896   : > { %v6394_v7 = vrot.slane %v6364_v29, 1  ;;  %v6402_v27 = vrot.slane %v6364_v29, 2  ;;  %v6410_v10 = vrot.slane %v6364_v29, 3  ;;  %7223 = vmatpush3.bf16.msra.mxu0 %v8946_v23 }
 0x897   : > { %v6419_v55 = vsel %vm666_vm0, %v6371_v31, %v6395_v37  ;;  %v8944_v31 = vld [vmem:[%s12734_s13 + $0x78] sm:$0xff]   ;;  %7224 = vmatprep.subr.bf16.mxu0 %v12876_v63 }
 0x898   : > { %v6423_v36 = vsel %vm2130_vm3, %v6419_v55, %v6403_v13  ;;  %v6418_v3 = vsel %vm666_vm0, %v6364_v29, %v6394_v7 }
 0x899   : > { %v6427_v9 = vsel %vm4459_vm12, %v6423_v36, %v6411_v30  ;;  %v6422_v6 = vsel %vm2130_vm3, %v6418_v3, %v6402_v27 }
 0x89a   : > { %v6431_v28 = vadd.f32 %v6427_v9, %v12522_v47  ;;  %v6426_v26 = vsel %vm4459_vm12, %v6422_v6, %v6410_v10 }
 0x89b   : > { %v12589_v21 = vadd.f32 %v6426_v26, %v12500_v59  ;;  %v8939_v59 = vld [vmem:[%s12734_s13 + $0x20] sm:$0xff]  }
 0x89c   : > { %7062 = vmatpush3.bf16.msra.mxu1 %v8939_v59  ;;  %v6451_v53 = vrot.slane %v6431_v28, 1  ;;  %v6455_v43 = vrot.slane %v6431_v28, 2  ;;  %v6459_v15 = vrot.slane %v6431_v28, 3 }
 0x89d   : > { %7063 = vmatprep.subr.bf16.mxu1 %v8940_v62  ;;  %v6439_v18 = vrot.slane %v12589_v21, 2  ;;  %v6435_v46 = vrot.slane %v12589_v21, 1  ;;  %v6443_v29 = vrot.slane %v12589_v21, 3 }
 0x8a0   : > { %7064 = vmatpush3.bf16.msra.mxu1 %v8941_v42 }
 0x8a7   : > { %v7220_v60 = vpop.f32.mrb[68].mxu0 }
 0x8a8   : > { %v6385_v1 = vadd.f32 %v7220_v60, %v6951_v24  ;;  %v6377_v54 = vpop.f32.mrb[69].mxu0 }
 0x8a9   : > { %v6378_v11 = vadd.f32 %v6951_v24, %v6377_v54  ;;  %v7221_v52 = vpop.f32.mrb[70].mxu0 }
 0x8aa   : > { %v6397_v47 = vrot.slane %v6385_v1, 1  ;;  %v6405_v5 = vrot.slane %v6385_v1, 2  ;;  %v6380_v8 = vpop.f32.mrb[71].mxu0  ;;  %v6413_v33 = vrot.slane %v6385_v1, 3 }
 0x8ab   : > { %v6396_v16 = vrot.slane %v6378_v11, 1  ;;  %v6404_v19 = vrot.slane %v6378_v11, 2  ;;  %v6412_v45 = vrot.slane %v6378_v11, 3 }
 0x8ac   : > { %v6421_v22 = vsel %vm666_vm0, %v6385_v1, %v6397_v47 }
 0x8ad   : > { %v6425_v56 = vsel %vm2130_vm3, %v6421_v22, %v6405_v5  ;;  %v6420_v0 = vsel %vm666_vm0, %v6378_v11, %v6396_v16  ;;  %vm9064_vm0 = vmmov 0  }
 0x8ae   : > { %v6429_v38 = vsel %vm4459_vm12, %v6425_v56, %v6413_v33  ;;  %v6424_v25 = vsel %vm2130_vm3, %v6420_v0, %v6404_v19  ;;  %7226 = vmatprep.mubr.msk.bf16.mxu0 %vm9064_vm0, %v12876_v63 }
 0x8af   : > { %v6433_v49 = vadd.f32 %v6429_v38, %v6297_v48  ;;  %v6428_v35 = vsel %vm4459_vm12, %v6424_v25, %v6412_v45 }
 0x8b0   : > { %v6432_v61 = vadd.f32 %v6428_v35, %v12544_v57  ;;  %v8942_v57 = vld [vmem:[%s12734_s13 + $0x70] sm:$0xff]   ;;  %v8947_v35 = vld [vmem:[%s12736_s15 + $0x8] sm:$0xff]  }
 0x8b1   : > { %v8872_v12 = vpack.i.bf16 %v6431_v28, %v6433_v49  ;;  %v6480_v58 = vrot.slane %v6433_v49, 1  ;;  %v6484_v4 = vrot.slane %v6433_v49, 2  ;;  %v6488_v32 = vrot.slane %v6433_v49, 3  ;;  %7065 = vmatprep.subr.bf16.mxu1 %v8942_v57  ;;  %7225 = vmatpush3.bf16.msra.mxu0 %v8947_v35 }
 0x8b2   : > { %v6468_v34 = vrot.slane %v6432_v61, 2  ;;  %v6464_v48 = vrot.slane %v6432_v61, 1  ;;  %7066 = vmatpush3.bf16.msra.mxu1 %v8943_v17  ;;  %v6472_v40 = vrot.slane %v6432_v61, 3 }
 0x8b3   : > { %8873 = vrot.lane.b32.xlu1 %v8872_v12, %s12838_s26  ;;  %v8877_v14 = vpack.i.bf16 %v6451_v53, %v6480_v58  ;;  %v8897_v39 = vpack.i.bf16 %v6455_v43, %v6484_v4  ;;  %v8902_v44 = vpack.i.bf16 %v6459_v15, %v6488_v32  ;;  %7067 = vmatprep.subr.bf16.mxu1 %v8944_v31  ;;  %v6540_v43 = vld [vmem:[%s12735_s14] sm:$0x1]  ;;  %s9065_s26 = smov [#allocation2]  }
 0x8b4   : > { %v8887_v20 = vpack.i.bf16 %v6439_v18, %v6468_v34  ;;  %v8882_v24 = vpack.i.bf16 %v6435_v46, %v6464_v48  ;;  %v8892_v37 = vpack.i.bf16 %v6443_v29, %v6472_v40  ;;  %v6683_v34 = vld [vmem:[%s12737_s16] sm:$0x1]  ;;  %s8987_s25 = sshll.u32 %s9065_s26, 4  ;;  %s8988_s25 = int_to_ptr.vmem [resolvable:$false] %s8987_s25 }
 0x8b5   : > { %8878 = vrot.lane.b32.xlu0 %v8877_v14, %s12877_s29  ;;  %v6743_v46 = vld [vmem:[%s12739_s18] sm:$0x1]  ;;  %s6795_s29 = scalar_lea.sflag [#allocation3], %s593_s24  ;;  %s8989_s21 = scalar_lea.vmem %s8988_s25, 32 }
 0x8b6   : > { %7068 = vmatpush3.bf16.msra.mxu1 %v8945_v41 }
 0x8b7   : > { %8888 = vrot.lane.b32.xlu1 %v8887_v20, %s12821_s20  ;;  %s12878_s20 = smov 96   ;;  %7230 = vmatprep.subr.bf16.mxu1 %v12876_v63 }
 0x8b9   : > { %8883 = vrot.lane.b32.xlu0 %v8882_v24, %s12822_s2 }
 0x8bb   : > { %8898 = vrot.lane.b32.xlu1 %v8897_v39, %s12878_s20  ;;  %s6978_s20 = sshll.u32 %s9187_s1, 4 }
 0x8bc   : > { %s12679_s3 = scalar_lea.hbm %s12881_s27, %s6978_s20 }
 0x8bd   : > { %8893 = vrot.lane.b32.xlu0 %v8892_v37, %s12834_s22 }
 0x8c1   : > { %8903 = vrot.lane.b32.xlu0 %v8902_v44, %s12879_s4  ;;  %s594_s4 = scalar_lea.vmem [#allocation2], %s593_s24 }
 0x8c2   : > { %s6807_s2 = sshll.u32 %s594_s4, 4  ;;  %s12681_s2 = int_to_ptr.vmem [resolvable:$true] %s6807_s2 }
 0x8c3   : > { %s8983_s1 = scalar_lea.vmem %s12681_s2, 16  ;;  %p8990_p0 = scmp.lt.s32.totalorder %s12681_s2, %s8988_s25 }
 0x8c4   : > { %p8984_p11 = scmp.ne.s32.totalorder %s12681_s2, %s8983_s1  ;;  %p8991_p1 = scmp.lt.s32.totalorder %s8989_s21, %s8983_s1 }
 0x8c6   : > { %p8985_p12 = pnand %p8984_p11, %p9204_p5  ;;  %p8992_p2 = por %p8991_p1, %p8990_p0 }
 0x8c8   : > { %p8986_p13 = pneg %p8985_p12 }
 0x8ca   : > { %p8993_p3 = pnand %p8992_p2, %p8986_p13 }
 0x925   : > { %v8874_v13 = vpop.permute.xlu1 %8873 }
 0x926   : > { %v8876_v60 = vunpack.i.h.bf16 %v8874_v13  ;;  %v8875_v1 = vunpack.i.l.bf16 %v8874_v13 }
 0x927   : > { %v8879_v50 = vpop.permute.xlu0 %8878 }
 0x928   : > { %v8881_v11 = vunpack.i.h.bf16 %v8879_v50  ;;  %v8880_v52 = vunpack.i.l.bf16 %v8879_v50 }
 0x929   : > { %v8889_v7 = vpop.permute.xlu1 %8888 }
 0x92a   : > { %v8891_v3 = vunpack.i.h.bf16 %v8889_v7  ;;  %v8890_v9 = vunpack.i.l.bf16 %v8889_v7 }
 0x92b   : > { %v8884_v27 = vpop.permute.xlu0 %8883 }
 0x92c   : > { %v8886_v30 = vunpack.i.h.bf16 %v8884_v27  ;;  %v8885_v55 = vunpack.i.l.bf16 %v8884_v27 }
 0x92d   : > { %v8899_v28 = vpop.permute.xlu1 %8898 }
 0x92e   : > { %v6492_v36 = vsel %vm1873_vm7, %v12589_v21, %v8886_v30  ;;  %v6499_v10 = vsel %vm1873_vm7, %v6432_v61, %v8885_v55  ;;  %v8901_v5 = vunpack.i.h.bf16 %v8899_v28  ;;  %v8900_v8 = vunpack.i.l.bf16 %v8899_v28  ;;  %v8948_v61 = vld [vmem:[%s12738_s17] sm:$0xff]  }
 0x92f   : > { %v8894_v6 = vpop.permute.xlu0 %8893  ;;  %v6493_v54 = vsel %vm2005_vm11, %v6492_v36, %v8891_v3  ;;  %v6500_v2 = vsel %vm2005_vm11, %v6499_v10, %v8890_v9 }
 0x930   : > { %v8896_v26 = vunpack.i.h.bf16 %v8894_v6  ;;  %v8895_v51 = vunpack.i.l.bf16 %v8894_v6 }
 0x932   : > { %v6494_v47 = vsel %vm3607_vm15, %v6493_v54, %v8896_v26  ;;  %v6501_v21 = vsel %vm3607_vm15, %v6500_v2, %v8895_v51 }
 0x933   : > { %v6495_v59 = vsel %vm3673_vm8, %v6494_v47, %v8876_v60  ;;  %v6502_v16 = vsel %vm3673_vm8, %v6501_v21, %v8875_v1  ;;  %v8904_v19 = vpop.permute.xlu0 %8903 }
 0x934   : > { %v8906_v33 = vunpack.i.h.bf16 %v8904_v19  ;;  %v8905_v22 = vunpack.i.l.bf16 %v8904_v19  ;;  %v6496_v56 = vsel %vm5927_vm1, %v6495_v59, %v8881_v11  ;;  %v6503_v45 = vsel %vm5927_vm1, %v6502_v16, %v8880_v52 }
 0x935   : > { %v6497_v0 = vsel %vm5936_vm2, %v6496_v56, %v8901_v5  ;;  %v6504_v38 = vsel %vm5936_vm2, %v6503_v45, %v8900_v8 }
 0x936   : > { %v6498_v25 = vsel %vm5945_vm14, %v6497_v0, %v8906_v33  ;;  %v6505_v62 = vsel %vm5945_vm14, %v6504_v38, %v8905_v22 }
 0x937   : > { %v6506_v42 = vpack.c.bf16 %v6498_v25, %v6498_v25  ;;  %v6507_v49 = vpack.c.bf16 %v6505_v62, %v6505_v62 }
 0x939   : > { %6669 = vmatprep.mubr.bf16.mxu1 %v6507_v49 }
 0x93a   : > { %6670 = vmatmul.mubr.bf16.vlgmr.msra.gmra.mrb[56].mxu1 %v6506_v42 }
 0x93b   : > { %7232 = vmatprep.mubr.msk.bf16.mxu1 %vm9064_vm0, %v12876_v63  ;;  %7231 = vmatpush3.bf16.msra.mxu1 %v8948_v61 }
 0xa0d   : > { %v7069_v53 = vpop.f32.mrb[56].mxu1 }
 0xa0e   : > { %v7070_v15 = vpop.f32.mrb[57].mxu1 }
 0xa0f   : > { %v7071_v12 = vadd.f32 %v7070_v15, %v7069_v53  ;;  %v7072_v58 = vpop.f32.mrb[58].mxu1 }
 0xa10   : > { %v7073_v4 = vpop.f32.mrb[59].mxu1 }
 0xa11   : > { %v6672_v32 = vadd.f32 %v7071_v12, %v6540_v43 }
 0xa13   : > { %v6677_v18 = vmax.f32 %v6672_v32, 0.0 }
 0xa15   : > { %v6678_v63 = vpack.c.bf16 %v6677_v18, %v6677_v18 }
 0xa17   : > { %7227 = vmatmul.mubr.msk.bf16.vlgmr.msra.gmra.mrb[72].mxu0 %vm2005_vm11, %v6678_v63 }
 0xaea   : > { %v6733_v14 = vpop.f32.mrb[72].mxu0 }
 0xaeb   : > { %v6734_v48 = vadd.f32 %v6733_v14, %v6683_v34  ;;  %v7228_v39 = vpop.f32.mrb[73].mxu0 }
 0xaec   : > { %v6736_v44 = vpop.f32.mrb[74].mxu0 }
 0xaed   : > { %v6739_v57 = vmax.f32 %v6734_v48, 0.0  ;;  %v7229_v17 = vpop.f32.mrb[75].mxu0 }
 0xaef   : > { %v6740_v20 = vpack.c.bf16 %v6739_v57, %v6739_v57 }
 0xaf1   : > { %7233 = vmatmul.mubr.msk.bf16.vlgmr.msra.gmra.mrb[60].mxu1 %vm1873_vm7, %v6740_v20 }
 0xbc4   : > { %v6787_v24 = vpop.f32.mrb[60].mxu1 }
 0xbc5   : > { %v6788_v40 = vadd.f32 %v6787_v24, %v6743_v46  ;;  %v7234_v31 = vpop.f32.mrb[61].mxu1 }
 0xbc6   : > { %v6790_v41 = vpop.f32.mrb[62].mxu1 }
 0xbc7   : > { %6793 = vst [vmem:[%s594_s4] sm:$0x1] %v6788_v40  ;;  %v7235_v29 = vpop.f32.mrb[63].mxu1 }
 0xbc8   : > { %8996 = shalt.err (!%p8993_p3)
}
 0xbc9   : > { %s8997_s24 = scalar_lea.hbm %s12679_s3, 16  ;;  %s9001_s4 = scalar_lea.hbm %s12881_s27, 32 }
 0xbca   : > { %p8998_p4 = scmp.ne.s32.totalorder %s12679_s3, %s8997_s24  ;;  %p9002_p9 = scmp.lt.u32.totalorder %s12679_s3, %s12881_s27 }
 0xbcb   : > { %p9003_p10 = scmp.lt.u32.totalorder %s9001_s4, %s8997_s24  ;;  %p9005_p12 = scmp.lt.u32.totalorder %s8997_s24, %s12679_s3 }
 0xbcc   : > { %p8999_p7 = pnand %p8998_p4, %p9204_p5 }
 0xbcd   : > { %p9004_p11 = por %p9003_p10, %p9002_p9 }
 0xbce   : > { %p9000_p8 = pneg %p8999_p7 }
 0xbcf   : > { %p9006_p13 = por %p9005_p12, %p9004_p11 }
 0xbd1   : > { %p9007_p0 = pnand %p9006_p13, %p9000_p8 }
 0xbd3   : > { %9010 = shalt.err (!%p9007_p0)
}
 0xbd4   : > { %7240 = dma.vmem_to_hbm [thread:$0]  (%p9204_p5), %s12681_s2, 16, %s12679_s3, %s6795_s29  }
 0xbd5 PF: > { %s12882_s1 = sld [smem:[#allocation7_spill]]  ;;  %s12883_s26 = sld [smem:[#allocation5_spill]] }
 0xbdb   : > { %p7246_p1 = scmp.ge.s32.totalorder %s12882_s1, 2  ;;  %s6819_s21 = sand.u32 1, %s12883_s26  }
 0xbdc   : > { %s6820_s28 = scalar_lea.sflag [#allocation3], %s6819_s21 }
 0xbdd   : > { %p7243_p2 = pnand %p7246_p1, %p9208_p6 }
 0xbdf   : > { %9028 = dma.done.wait (!%p7243_p2), %s6820_s28, 16  }
 0xbe0   : > { %9030 = vsyncadd (!%p7243_p2), %s6820_s28, 4294967280  ;;  %s12885_s21 = sld [smem:[#allocation8_spill]]  ;;  %s12886_s24 = sld [smem:[#allocation6_spill]] }
 0xbe1   : > { %s12887_s20 = sld [smem:[#allocation9_spill]]  ;;  %s12888_s0 = smov %s9037_s30 }
 0xbe6   : > { %p29_p3 = scmp.ge.s32.totalorder %s12885_s21, 4   ;;  %s12889_s30 = smov %s12886_s24 }
 0xbe8   :  { %31 = sbr.rel (!%p29_p3) target bundleno = 11 (0xb), region = 131 }
 0xbef   :  { %6824 = vsyncpa [#allocation3], 1 }
 0xbf0   :  { %6826 = vsyncpa [#allocation3 + $0x1], 1 }

</bundles_post_ra>
